<compile_context>
chip_gen: v7x
topology: tpu7x:2x2x1
jax: 0.10.0
libtpu: 0.0.40
codegen_flags: <defaults>
</compile_context>

<pallas_src>
import jax
import jax.numpy as jnp
from jax.experimental import pallas as pl
from jax.experimental.pallas import tpu as pltpu


def _round_up(x, m):
    return (x + m - 1) // m * m


# Below v7x's 64 MiB physical VMEM, above the 16/32 MiB default scoped limits.
_VMEM_LIMIT_BYTES = 48 * 1024 * 1024


# ---------------------------------------------------------------------------
# Kernel 1: fused conv (transposed matmul) + 2x2 max-pool + bias + ReLU
# ---------------------------------------------------------------------------
def _conv_pool_kernel(p_ref, w_ref, b_ref, o_ref):
    # p_ref: (4, K, TM) -- one transposed im2col slab per 2x2 pool-window offset.
    # w_ref: (OC, K) resident weights, b_ref: (OC, 1) bias.
    w = w_ref[...]
    y = jnp.dot(w, p_ref[0], preferred_element_type=jnp.float32)
    for idx in range(1, 4):                                   # 2x2 max-pool over offsets
        y = jnp.maximum(y, jnp.dot(w, p_ref[idx], preferred_element_type=jnp.float32))
    y = y + b_ref[...]                                        # per-OC bias (lane broadcast)
    o_ref[...] = jnp.maximum(y, 0.0).astype(o_ref.dtype)      # ReLU


def _pool_window_patches_cbhw(x_cbhw, k):
    """Stacked transposed-im2col patches for the four 2x2 pool-window offsets.

    x_cbhw: (C, B, H, W). Returns ((4, C*k*k, B*POH*POW), POH, POW).
    Feature order is (c, kh, kw), matching torch's (OC, IC, KH, KW).reshape(OC, -1);
    column order is (b, oh, ow). Pure slice + stack + reshape: no transposes or
    pads over slab-sized data.
    """
    C, B, H, W = x_cbhw.shape
    OH, OW = H - k + 1, W - k + 1
    assert OH % 2 == 0 and OW % 2 == 0, (OH, OW)
    POH, POW = OH // 2, OW // 2
    slabs = []
    for dy in range(2):
        for dx in range(2):
            cols = [x_cbhw[:, :,
                           dy + kh: dy + kh + 2 * POH: 2,
                           dx + kw: dx + kw + 2 * POW: 2]      # (C, B, POH, POW)
                    for kh in range(k) for kw in range(k)]
            p = jnp.stack(cols, axis=1)                        # (C, k*k, B, POH, POW)
            slabs.append(p.reshape(C * k * k, B * POH * POW))
    return jnp.stack(slabs, axis=0), POH, POW                  # (4, K, M)


def conv_relu_pool_pallas(x_cbhw, w_oihw, bias, k, *, out_dtype,
                          compute_dtype=jnp.bfloat16, max_tm=4096):
    """pool2x2(relu(conv_valid(x, w) + b)) on channel-major (C, B, H, W) input.

    Returns (OC, B, POH, POW) so the next conv layer consumes it directly.
    Requires B * POH * POW to be a multiple of 128 (pad the batch upstream).
    """
    C, B, H, W = x_cbhw.shape
    OC = w_oihw.shape[0]
    K = C * k * k

    patches, POH, POW = _pool_window_patches_cbhw(x_cbhw.astype(compute_dtype), k)
    M = B * POH * POW
    assert M % 128 == 0, "pad the batch so B*POH*POW is lane-aligned"

    # Largest lane tile <= max_tm, but <= ~M/2 so the grid has >= 2 steps
    # (lets dimension_semantics=("parallel",) shard across v7x's 2 TensorCores).
    TM = min(max_tm, max(128, (M // 256) * 128))
    grid = (pl.cdiv(M, TM),)

    w2d = w_oihw.reshape(OC, K).astype(compute_dtype)
    b2d = bias.reshape(OC, 1).astype(jnp.float32)

    cost = pl.CostEstimate(
        flops=2 * 4 * OC * K * M,
        transcendentals=0,
        bytes_accessed=int(patches.size * patches.dtype.itemsize
                           + w2d.size * w2d.dtype.itemsize
                           + b2d.size * 4
                           + OC * M * jnp.dtype(out_dtype).itemsize))

    out = pl.pallas_call(
        _conv_pool_kernel,
        out_shape=jax.ShapeDtypeStruct((OC, M), out_dtype),
        grid=grid,
        in_specs=[pl.BlockSpec((4, K, TM), lambda i: (0, 0, i)),
                  pl.BlockSpec((OC, K), lambda i: (0, 0)),
                  pl.BlockSpec((OC, 1), lambda i: (0, 0))],
        out_specs=pl.BlockSpec((OC, TM), lambda i: (0, i)),
        compiler_params=pltpu.CompilerParams(
            dimension_semantics=("parallel",),
            vmem_limit_bytes=_VMEM_LIMIT_BYTES),
        cost_estimate=cost,
    )(patches, w2d, b2d)

    return out.reshape(OC, B, POH, POW)


# ---------------------------------------------------------------------------
# Kernel 2: fused FC tail  (fc1 -> relu -> fc2 -> relu -> head)
# ---------------------------------------------------------------------------
def _mlp_head_kernel(x_ref, w1_ref, b1_ref, w2_ref, b2_ref, w3_ref, b3_ref, o_ref):
    h = jnp.dot(x_ref[...], w1_ref[...], preferred_element_type=jnp.float32) + b1_ref[...]
    h = jnp.maximum(h, 0.0)
    h = jnp.dot(h, w2_ref[...], preferred_element_type=jnp.float32) + b2_ref[...]
    h = jnp.maximum(h, 0.0)
    y = jnp.dot(h, w3_ref[...], preferred_element_type=jnp.float32) + b3_ref[...]
    o_ref[...] = y.astype(o_ref.dtype)


def mlp_head_pallas(x, w1, b1, w2, b2, w3, b3, *, max_tb=1024):
    """fc1 -> relu -> fc2 -> relu -> head fused; hidden widths padded to 128 lanes."""
    B, K = x.shape
    N1, N2, N3 = w1.shape[1], w2.shape[1], w3.shape[1]
    N1p, N2p = _round_up(N1, 128), _round_up(N2, 128)
    # Zero padding keeps the math exact: padded h columns are relu(0 + 0) = 0
    # and feed zero rows of the next weight matrix.
    w1p = jnp.pad(w1, ((0, 0), (0, N1p - N1)))
    b1p = jnp.pad(b1, (0, N1p - N1)).reshape(1, N1p)
    w2p = jnp.pad(w2, ((0, N1p - N1), (0, N2p - N2)))
    b2p = jnp.pad(b2, (0, N2p - N2)).reshape(1, N2p)
    w3p = jnp.pad(w3, ((0, N2p - N2), (0, 0)))
    b3r = b3.reshape(1, N3)

    Bp = _round_up(B, 8)
    xp = x if Bp == B else jnp.pad(x, ((0, Bp - B), (0, 0)))
    TB = min(max_tb, Bp)
    grid = (pl.cdiv(Bp, TB),)

    cost = pl.CostEstimate(
        flops=2 * Bp * (K * N1p + N1p * N2p + N2p * N3),
        transcendentals=0,
        bytes_accessed=4 * (Bp * K + K * N1p + N1p * N2p + N2p * N3
                            + N1p + N2p + N3 + Bp * N3))

    out = pl.pallas_call(
        _mlp_head_kernel,
        out_shape=jax.ShapeDtypeStruct((Bp, N3), jnp.float32),
        grid=grid,
        in_specs=[
            pl.BlockSpec((TB, K), lambda i: (i, 0)),
            pl.BlockSpec((K, N1p), lambda i: (0, 0)),
            pl.BlockSpec((1, N1p), lambda i: (0, 0)),
            pl.BlockSpec((N1p, N2p), lambda i: (0, 0)),
            pl.BlockSpec((1, N2p), lambda i: (0, 0)),
            pl.BlockSpec((N2p, N3), lambda i: (0, 0)),
            pl.BlockSpec((1, N3), lambda i: (0, 0)),
        ],
        out_specs=pl.BlockSpec((TB, N3), lambda i: (i, 0)),
        compiler_params=pltpu.CompilerParams(
            dimension_semantics=("parallel",),
            vmem_limit_bytes=_VMEM_LIMIT_BYTES),
        cost_estimate=cost,
    )(xp, w1p, b1p, w2p, b2p, w3p, b3r)
    return out[:B]


# ---------------------------------------------------------------------------
# Model: parameters + forward
# ---------------------------------------------------------------------------
def init_params(key, num_classes=10):
    def uinit(k, shape, fan_in):
        bound = 1.0 / float(fan_in) ** 0.5
        return jax.random.uniform(k, shape, jnp.float32, -bound, bound)

    ks = jax.random.split(key, 10)
    return {
        "conv1_w": uinit(ks[0], (6, 3, 5, 5), 3 * 5 * 5),
        "conv1_b": uinit(ks[1], (6,), 3 * 5 * 5),
        "conv2_w": uinit(ks[2], (16, 6, 5, 5), 6 * 5 * 5),
        "conv2_b": uinit(ks[3], (16,), 6 * 5 * 5),
        "fc1_w": uinit(ks[4], (16 * 5 * 5, 120), 16 * 5 * 5),
        "fc1_b": uinit(ks[5], (120,), 16 * 5 * 5),
        "fc2_w": uinit(ks[6], (120, 84), 120),
        "fc2_b": uinit(ks[7], (84,), 120),
        "head_w": uinit(ks[8], (84, num_classes), 84),
        "head_b": uinit(ks[9], (num_classes,), 84),
    }


@jax.jit
def cnn_cifar_forward(params, x_nchw):
    B = x_nchw.shape[0]
    # One cheap pad on the tiny raw input: Bp multiple of 128 keeps every conv
    # layer's M = Bp*POH*POW lane-aligned without any slab-sized pads later.
    Bp = _round_up(B, 128)
    xp = jnp.pad(x_nchw, ((0, Bp - B), (0, 0), (0, 0), (0, 0)))
    x = jnp.transpose(xp, (1, 0, 2, 3))                                  # (3, Bp, 32, 32)
    x = conv_relu_pool_pallas(x, params["conv1_w"], params["conv1_b"], 5,
                              out_dtype=jnp.bfloat16)                    # (6, Bp, 14, 14)
    x = conv_relu_pool_pallas(x, params["conv2_w"], params["conv2_b"], 5,
                              out_dtype=jnp.float32)                     # (16, Bp, 5, 5)
    # channel-major -> torch's x.view(-1, 16*5*5) feature order (c, h, w); tiny array.
    x = jnp.transpose(x.reshape(16, Bp, 25), (1, 0, 2)).reshape(Bp, 16 * 25)
    logits = mlp_head_pallas(x, params["fc1_w"], params["fc1_b"],
                             params["fc2_w"], params["fc2_b"],
                             params["head_w"], params["head_b"])
    return logits[:B]


def reference_forward(params, x_nchw):
    """Pure-JAX f32 reference (no Pallas) for correctness checking."""
    hi = jax.lax.Precision.HIGHEST

    def conv_relu_pool(x, w, b):
        y = jax.lax.conv_general_dilated(
            x, w, window_strides=(1, 1), padding="VALID",
            dimension_numbers=("NCHW", "OIHW", "NCHW"), precision=hi)
        y = jnp.maximum(y + b[None, :, None, None], 0.0)
        B, C, H, W = y.shape
        return y.reshape(B, C, H // 2, 2, W // 2, 2).max(axis=(3, 5))

    def lin(x, w, b, relu):
        y = jnp.dot(x, w, precision=hi) + b[None, :]
        return jnp.maximum(y, 0.0) if relu else y

    x = conv_relu_pool(x_nchw, params["conv1_w"], params["conv1_b"])
    x = conv_relu_pool(x, params["conv2_w"], params["conv2_b"])
    B = x.shape[0]
    x = x.reshape(B, 16 * 5 * 5)
    x = lin(x, params["fc1_w"], params["fc1_b"], True)
    x = lin(x, params["fc2_w"], params["fc2_b"], True)
    return lin(x, params["head_w"], params["head_b"], False)


if __name__ == "__main__":
    key = jax.random.PRNGKey(0)
    k_x, k_p = jax.random.split(key)
    # CIFAR-style input: the view(-1, 16*5*5) in the torch forward forces 3x32x32.
    x = jax.random.normal(k_x, (2, 3, 32, 32), dtype=jnp.float32)
    params = init_params(k_p, num_classes=10)

    out = jax.block_until_ready(cnn_cifar_forward(params, x))
    ref = jax.block_until_ready(reference_forward(params, x))

    assert out.shape == (2, 10), out.shape
    # bf16 conv slabs/weights vs f32 reference -> loosened tolerance (perf review).
    assert jnp.allclose(out, ref, rtol=2e-2, atol=2e-2), (
        "mismatch vs JAX reference", float(jnp.max(jnp.abs(out - ref))))

    print("KERNEL_OK")
</pallas_src>

<mosaic_0001>
module attributes {stable_mosaic.version = 11 : i64} {
  func.func @_conv_pool_kernel(%arg0: i32, %arg1: memref<4x75x4096xbf16, #tpu.memory_space<vmem>>, %arg2: memref<6x75xbf16, #tpu.memory_space<vmem>>, %arg3: memref<6x1xf32, #tpu.memory_space<vmem>>, %arg4: memref<6x4096xbf16, #tpu.memory_space<vmem>>) attributes {dimension_semantics = [#tpu.dimension_semantics<parallel>], iteration_bounds = array<i64: 7>, scalar_prefetch = 0 : i64, scratch_operands = 0 : i64, tpu.core_type = #tpu.core_type<tc>, window_params = [{transform_indices = @transform_0, window_bounds = array<i64: 4, 75, 4096>}, {pipeline_mode = #tpu.pipeline_mode<synchronous>, transform_indices = @transform_1, window_bounds = array<i64: 6, 75>}, {pipeline_mode = #tpu.pipeline_mode<synchronous>, transform_indices = @transform_2, window_bounds = array<i64: 6, 1>}, {transform_indices = @transform_3, window_bounds = array<i64: 6, 4096>}]} {
    %c0 = arith.constant 0 : index
    %c0_0 = arith.constant 0 : index
    %0 = vector.load %arg2[%c0, %c0_0] : memref<6x75xbf16, #tpu.memory_space<vmem>>, vector<6x75xbf16>
    %c0_1 = arith.constant 0 : index
    %c0_2 = arith.constant 0 : index
    %c0_3 = arith.constant 0 : index
    %1 = vector.load %arg1[%c0_1, %c0_2, %c0_3] : memref<4x75x4096xbf16, #tpu.memory_space<vmem>>, vector<1x75x4096xbf16>
    %2 = vector.shape_cast %1 : vector<1x75x4096xbf16> to vector<75x4096xbf16>
    %cst = arith.constant dense<0.000000e+00> : vector<6x4096xf32>
    %3 = tpu.matmul %0, %2, %cst {dimension_numbers = #tpu.dot_dimension_numbers<[1], [0], [0], [1], [0, 0, 1, 1], [], []>} : vector<6x75xbf16>, vector<75x4096xbf16>, vector<6x4096xf32> -> vector<6x4096xf32>
    %c1 = arith.constant 1 : index
    %c0_4 = arith.constant 0 : index
    %c0_5 = arith.constant 0 : index
    %4 = vector.load %arg1[%c1, %c0_4, %c0_5] : memref<4x75x4096xbf16, #tpu.memory_space<vmem>>, vector<1x75x4096xbf16>
    %5 = vector.shape_cast %4 : vector<1x75x4096xbf16> to vector<75x4096xbf16>
    %cst_6 = arith.constant dense<0.000000e+00> : vector<6x4096xf32>
    %6 = tpu.matmul %0, %5, %cst_6 {dimension_numbers = #tpu.dot_dimension_numbers<[1], [0], [0], [1], [0, 0, 1, 1], [], []>} : vector<6x75xbf16>, vector<75x4096xbf16>, vector<6x4096xf32> -> vector<6x4096xf32>
    %7 = arith.maximumf %3, %6 : vector<6x4096xf32>
    %c2 = arith.constant 2 : index
    %c0_7 = arith.constant 0 : index
    %c0_8 = arith.constant 0 : index
    %8 = vector.load %arg1[%c2, %c0_7, %c0_8] : memref<4x75x4096xbf16, #tpu.memory_space<vmem>>, vector<1x75x4096xbf16>
    %9 = vector.shape_cast %8 : vector<1x75x4096xbf16> to vector<75x4096xbf16>
    %cst_9 = arith.constant dense<0.000000e+00> : vector<6x4096xf32>
    %10 = tpu.matmul %0, %9, %cst_9 {dimension_numbers = #tpu.dot_dimension_numbers<[1], [0], [0], [1], [0, 0, 1, 1], [], []>} : vector<6x75xbf16>, vector<75x4096xbf16>, vector<6x4096xf32> -> vector<6x4096xf32>
    %11 = arith.maximumf %7, %10 : vector<6x4096xf32>
    %c3 = arith.constant 3 : index
    %c0_10 = arith.constant 0 : index
    %c0_11 = arith.constant 0 : index
    %12 = vector.load %arg1[%c3, %c0_10, %c0_11] : memref<4x75x4096xbf16, #tpu.memory_space<vmem>>, vector<1x75x4096xbf16>
    %13 = vector.shape_cast %12 : vector<1x75x4096xbf16> to vector<75x4096xbf16>
    %cst_12 = arith.constant dense<0.000000e+00> : vector<6x4096xf32>
    %14 = tpu.matmul %0, %13, %cst_12 {dimension_numbers = #tpu.dot_dimension_numbers<[1], [0], [0], [1], [0, 0, 1, 1], [], []>} : vector<6x75xbf16>, vector<75x4096xbf16>, vector<6x4096xf32> -> vector<6x4096xf32>
    %15 = arith.maximumf %11, %14 : vector<6x4096xf32>
    %c0_13 = arith.constant 0 : index
    %c0_14 = arith.constant 0 : index
    %16 = vector.load %arg3[%c0_13, %c0_14] : memref<6x1xf32, #tpu.memory_space<vmem>>, vector<6x1xf32>
    %17 = vector.broadcast %16 : vector<6x1xf32> to vector<6x4096xf32>
    %18 = arith.addf %15, %17 : vector<6x4096xf32>
    %cst_15 = arith.constant 0.000000e+00 : f32
    %19 = vector.broadcast %cst_15 : f32 to vector<6x4096xf32>
    %20 = arith.maximumf %18, %19 : vector<6x4096xf32>
    %21 = arith.truncf %20 : vector<6x4096xf32> to vector<6x4096xbf16>
    %c0_16 = arith.constant 0 : index
    %c0_17 = arith.constant 0 : index
    %22 = vector.load %arg4[%c0_16, %c0_17] : memref<6x4096xbf16, #tpu.memory_space<vmem>>, vector<6x4096xbf16>
    tpu.vector_store %arg4[%c0_16, %c0_17], %21 {strides = array<i32>} : memref<6x4096xbf16, #tpu.memory_space<vmem>>, vector<6x4096xbf16>,
    return
  }
  func.func @transform_0(%arg0: i32) -> (i32, i32, i32) {
    %c0_i32 = arith.constant 0 : i32
    %c0_i32_0 = arith.constant 0 : i32
    %c0_i32_1 = arith.constant 0 : i32
    return %c0_i32, %c0_i32_0, %arg0 : i32, i32, i32
  }
  func.func @transform_1(%arg0: i32) -> (i32, i32) {
    %c0_i32 = arith.constant 0 : i32
    %c0_i32_0 = arith.constant 0 : i32
    %c0_i32_1 = arith.constant 0 : i32
    return %c0_i32, %c0_i32_0 : i32, i32
  }
  func.func @transform_2(%arg0: i32) -> (i32, i32) {
    %c0_i32 = arith.constant 0 : i32
    %c0_i32_0 = arith.constant 0 : i32
    %c0_i32_1 = arith.constant 0 : i32
    return %c0_i32, %c0_i32_0 : i32, i32
  }
  func.func @transform_3(%arg0: i32) -> (i32, i32) {
    %c0_i32 = arith.constant 0 : i32
    %c0_i32_0 = arith.constant 0 : i32
    return %c0_i32, %arg0 : i32, i32
  }
}

module attributes {stable_mosaic.version = 11 : i64} {
  func.func @_conv_pool_kernel(%arg0: i32, %arg1: memref<4x150x1536xbf16, #tpu.memory_space<vmem>>, %arg2: memref<16x150xbf16, #tpu.memory_space<vmem>>, %arg3: memref<16x1xf32, #tpu.memory_space<vmem>>, %arg4: memref<16x1536xf32, #tpu.memory_space<vmem>>) attributes {dimension_semantics = [#tpu.dimension_semantics<parallel>], iteration_bounds = array<i64: 3>, scalar_prefetch = 0 : i64, scratch_operands = 0 : i64, tpu.core_type = #tpu.core_type<tc>, window_params = [{transform_indices = @transform_0, window_bounds = array<i64: 4, 150, 1536>}, {pipeline_mode = #tpu.pipeline_mode<synchronous>, transform_indices = @transform_1, window_bounds = array<i64: 16, 150>}, {pipeline_mode = #tpu.pipeline_mode<synchronous>, transform_indices = @transform_2, window_bounds = array<i64: 16, 1>}, {transform_indices = @transform_3, window_bounds = array<i64: 16, 1536>}]} {
    %c0 = arith.constant 0 : index
    %c0_0 = arith.constant 0 : index
    %0 = vector.load %arg2[%c0, %c0_0] : memref<16x150xbf16, #tpu.memory_space<vmem>>, vector<16x150xbf16>
    %c0_1 = arith.constant 0 : index
    %c0_2 = arith.constant 0 : index
    %c0_3 = arith.constant 0 : index
    %1 = vector.load %arg1[%c0_1, %c0_2, %c0_3] : memref<4x150x1536xbf16, #tpu.memory_space<vmem>>, vector<1x150x1536xbf16>
    %2 = vector.shape_cast %1 : vector<1x150x1536xbf16> to vector<150x1536xbf16>
    %cst = arith.constant dense<0.000000e+00> : vector<16x1536xf32>
    %3 = tpu.matmul %0, %2, %cst {dimension_numbers = #tpu.dot_dimension_numbers<[1], [0], [0], [1], [0, 0, 1, 1], [], []>} : vector<16x150xbf16>, vector<150x1536xbf16>, vector<16x1536xf32> -> vector<16x1536xf32>
    %c1 = arith.constant 1 : index
    %c0_4 = arith.constant 0 : index
    %c0_5 = arith.constant 0 : index
    %4 = vector.load %arg1[%c1, %c0_4, %c0_5] : memref<4x150x1536xbf16, #tpu.memory_space<vmem>>, vector<1x150x1536xbf16>
    %5 = vector.shape_cast %4 : vector<1x150x1536xbf16> to vector<150x1536xbf16>
    %cst_6 = arith.constant dense<0.000000e+00> : vector<16x1536xf32>
    %6 = tpu.matmul %0, %5, %cst_6 {dimension_numbers = #tpu.dot_dimension_numbers<[1], [0], [0], [1], [0, 0, 1, 1], [], []>} : vector<16x150xbf16>, vector<150x1536xbf16>, vector<16x1536xf32> -> vector<16x1536xf32>
    %7 = arith.maximumf %3, %6 : vector<16x1536xf32>
    %c2 = arith.constant 2 : index
    %c0_7 = arith.constant 0 : index
    %c0_8 = arith.constant 0 : index
    %8 = vector.load %arg1[%c2, %c0_7, %c0_8] : memref<4x150x1536xbf16, #tpu.memory_space<vmem>>, vector<1x150x1536xbf16>
    %9 = vector.shape_cast %8 : vector<1x150x1536xbf16> to vector<150x1536xbf16>
    %cst_9 = arith.constant dense<0.000000e+00> : vector<16x1536xf32>
    %10 = tpu.matmul %0, %9, %cst_9 {dimension_numbers = #tpu.dot_dimension_numbers<[1], [0], [0], [1], [0, 0, 1, 1], [], []>} : vector<16x150xbf16>, vector<150x1536xbf16>, vector<16x1536xf32> -> vector<16x1536xf32>
    %11 = arith.maximumf %7, %10 : vector<16x1536xf32>
    %c3 = arith.constant 3 : index
    %c0_10 = arith.constant 0 : index
    %c0_11 = arith.constant 0 : index
    %12 = vector.load %arg1[%c3, %c0_10, %c0_11] : memref<4x150x1536xbf16, #tpu.memory_space<vmem>>, vector<1x150x1536xbf16>
    %13 = vector.shape_cast %12 : vector<1x150x1536xbf16> to vector<150x1536xbf16>
    %cst_12 = arith.constant dense<0.000000e+00> : vector<16x1536xf32>
    %14 = tpu.matmul %0, %13, %cst_12 {dimension_numbers = #tpu.dot_dimension_numbers<[1], [0], [0], [1], [0, 0, 1, 1], [], []>} : vector<16x150xbf16>, vector<150x1536xbf16>, vector<16x1536xf32> -> vector<16x1536xf32>
    %15 = arith.maximumf %11, %14 : vector<16x1536xf32>
    %c0_13 = arith.constant 0 : index
    %c0_14 = arith.constant 0 : index
    %16 = vector.load %arg3[%c0_13, %c0_14] : memref<16x1xf32, #tpu.memory_space<vmem>>, vector<16x1xf32>
    %17 = vector.broadcast %16 : vector<16x1xf32> to vector<16x1536xf32>
    %18 = arith.addf %15, %17 : vector<16x1536xf32>
    %cst_15 = arith.constant 0.000000e+00 : f32
    %19 = vector.broadcast %cst_15 : f32 to vector<16x1536xf32>
    %20 = arith.maximumf %18, %19 : vector<16x1536xf32>
    %c0_16 = arith.constant 0 : index
    %c0_17 = arith.constant 0 : index
    %21 = vector.load %arg4[%c0_16, %c0_17] : memref<16x1536xf32, #tpu.memory_space<vmem>>, vector<16x1536xf32>
    tpu.vector_store %arg4[%c0_16, %c0_17], %20 {strides = array<i32>} : memref<16x1536xf32, #tpu.memory_space<vmem>>, vector<16x1536xf32>,
    return
  }
  func.func @transform_0(%arg0: i32) -> (i32, i32, i32) {
    %c0_i32 = arith.constant 0 : i32
    %c0_i32_0 = arith.constant 0 : i32
    %c0_i32_1 = arith.constant 0 : i32
    return %c0_i32, %c0_i32_0, %arg0 : i32, i32, i32
  }
  func.func @transform_1(%arg0: i32) -> (i32, i32) {
    %c0_i32 = arith.constant 0 : i32
    %c0_i32_0 = arith.constant 0 : i32
    %c0_i32_1 = arith.constant 0 : i32
    return %c0_i32, %c0_i32_0 : i32, i32
  }
  func.func @transform_2(%arg0: i32) -> (i32, i32) {
    %c0_i32 = arith.constant 0 : i32
    %c0_i32_0 = arith.constant 0 : i32
    %c0_i32_1 = arith.constant 0 : i32
    return %c0_i32, %c0_i32_0 : i32, i32
  }
  func.func @transform_3(%arg0: i32) -> (i32, i32) {
    %c0_i32 = arith.constant 0 : i32
    %c0_i32_0 = arith.constant 0 : i32
    return %c0_i32, %arg0 : i32, i32
  }
}

module attributes {stable_mosaic.version = 11 : i64} {
  func.func @_mlp_head_kernel(%arg0: i32, %arg1: memref<128x400xf32, #tpu.memory_space<vmem>>, %arg2: memref<400x128xf32, #tpu.memory_space<vmem>>, %arg3: memref<1x128xf32, #tpu.memory_space<vmem>>, %arg4: memref<128x128xf32, #tpu.memory_space<vmem>>, %arg5: memref<1x128xf32, #tpu.memory_space<vmem>>, %arg6: memref<128x10xf32, #tpu.memory_space<vmem>>, %arg7: memref<1x10xf32, #tpu.memory_space<vmem>>, %arg8: memref<128x10xf32, #tpu.memory_space<vmem>>) attributes {dimension_semantics = [#tpu.dimension_semantics<parallel>], iteration_bounds = array<i64: 1>, scalar_prefetch = 0 : i64, scratch_operands = 0 : i64, tpu.core_type = #tpu.core_type<tc>, window_params = [{transform_indices = @transform_0, window_bounds = array<i64: 128, 400>}, {pipeline_mode = #tpu.pipeline_mode<synchronous>, transform_indices = @transform_1, window_bounds = array<i64: 400, 128>}, {pipeline_mode = #tpu.pipeline_mode<synchronous>, transform_indices = @transform_2, window_bounds = array<i64: 1, 128>}, {pipeline_mode = #tpu.pipeline_mode<synchronous>, transform_indices = @transform_3, window_bounds = array<i64: 128, 128>}, {pipeline_mode = #tpu.pipeline_mode<synchronous>, transform_indices = @transform_4, window_bounds = array<i64: 1, 128>}, {pipeline_mode = #tpu.pipeline_mode<synchronous>, transform_indices = @transform_5, window_bounds = array<i64: 128, 10>}, {pipeline_mode = #tpu.pipeline_mode<synchronous>, transform_indices = @transform_6, window_bounds = array<i64: 1, 10>}, {transform_indices = @transform_7, window_bounds = array<i64: 128, 10>}]} {
    %c0 = arith.constant 0 : index
    %c0_0 = arith.constant 0 : index
    %0 = vector.load %arg1[%c0, %c0_0] : memref<128x400xf32, #tpu.memory_space<vmem>>, vector<128x400xf32>
    %c0_1 = arith.constant 0 : index
    %c0_2 = arith.constant 0 : index
    %1 = vector.load %arg2[%c0_1, %c0_2] : memref<400x128xf32, #tpu.memory_space<vmem>>, vector<400x128xf32>
    %cst = arith.constant dense<0.000000e+00> : vector<128x128xf32>
    %2 = tpu.matmul %0, %1, %cst {dimension_numbers = #tpu.dot_dimension_numbers<[1], [0], [0], [1], [0, 0, 1, 1], [], []>} : vector<128x400xf32>, vector<400x128xf32>, vector<128x128xf32> -> vector<128x128xf32>
    %c0_3 = arith.constant 0 : index
    %c0_4 = arith.constant 0 : index
    %3 = vector.load %arg3[%c0_3, %c0_4] : memref<1x128xf32, #tpu.memory_space<vmem>>, vector<1x128xf32>
    %4 = vector.broadcast %3 : vector<1x128xf32> to vector<128x128xf32>
    %5 = arith.addf %2, %4 : vector<128x128xf32>
    %cst_5 = arith.constant 0.000000e+00 : f32
    %6 = vector.broadcast %cst_5 : f32 to vector<128x128xf32>
    %7 = arith.maximumf %5, %6 : vector<128x128xf32>
    %c0_6 = arith.constant 0 : index
    %c0_7 = arith.constant 0 : index
    %8 = vector.load %arg4[%c0_6, %c0_7] : memref<128x128xf32, #tpu.memory_space<vmem>>, vector<128x128xf32>
    %cst_8 = arith.constant dense<0.000000e+00> : vector<128x128xf32>
    %9 = tpu.matmul %7, %8, %cst_8 {dimension_numbers = #tpu.dot_dimension_numbers<[1], [0], [0], [1], [0, 0, 1, 1], [], []>} : vector<128x128xf32>, vector<128x128xf32>, vector<128x128xf32> -> vector<128x128xf32>
    %c0_9 = arith.constant 0 : index
    %c0_10 = arith.constant 0 : index
    %10 = vector.load %arg5[%c0_9, %c0_10] : memref<1x128xf32, #tpu.memory_space<vmem>>, vector<1x128xf32>
    %11 = vector.broadcast %10 : vector<1x128xf32> to vector<128x128xf32>
    %12 = arith.addf %9, %11 : vector<128x128xf32>
    %cst_11 = arith.constant 0.000000e+00 : f32
    %13 = vector.broadcast %cst_11 : f32 to vector<128x128xf32>
    %14 = arith.maximumf %12, %13 : vector<128x128xf32>
    %c0_12 = arith.constant 0 : index
    %c0_13 = arith.constant 0 : index
    %15 = vector.load %arg6[%c0_12, %c0_13] : memref<128x10xf32, #tpu.memory_space<vmem>>, vector<128x10xf32>
    %cst_14 = arith.constant dense<0.000000e+00> : vector<128x10xf32>
    %16 = tpu.matmul %14, %15, %cst_14 {dimension_numbers = #tpu.dot_dimension_numbers<[1], [0], [0], [1], [0, 0, 1, 1], [], []>} : vector<128x128xf32>, vector<128x10xf32>, vector<128x10xf32> -> vector<128x10xf32>
    %c0_15 = arith.constant 0 : index
    %c0_16 = arith.constant 0 : index
    %17 = vector.load %arg7[%c0_15, %c0_16] : memref<1x10xf32, #tpu.memory_space<vmem>>, vector<1x10xf32>
    %18 = vector.broadcast %17 : vector<1x10xf32> to vector<128x10xf32>
    %19 = arith.addf %16, %18 : vector<128x10xf32>
    %c0_17 = arith.constant 0 : index
    %c0_18 = arith.constant 0 : index
    %20 = vector.load %arg8[%c0_17, %c0_18] : memref<128x10xf32, #tpu.memory_space<vmem>>, vector<128x10xf32>
    tpu.vector_store %arg8[%c0_17, %c0_18], %19 {strides = array<i32>} : memref<128x10xf32, #tpu.memory_space<vmem>>, vector<128x10xf32>,
    return
  }
  func.func @transform_0(%arg0: i32) -> (i32, i32) {
    %c0_i32 = arith.constant 0 : i32
    %c0_i32_0 = arith.constant 0 : i32
    return %arg0, %c0_i32 : i32, i32
  }
  func.func @transform_1(%arg0: i32) -> (i32, i32) {
    %c0_i32 = arith.constant 0 : i32
    %c0_i32_0 = arith.constant 0 : i32
    %c0_i32_1 = arith.constant 0 : i32
    return %c0_i32, %c0_i32_0 : i32, i32
  }
  func.func @transform_2(%arg0: i32) -> (i32, i32) {
    %c0_i32 = arith.constant 0 : i32
    %c0_i32_0 = arith.constant 0 : i32
    %c0_i32_1 = arith.constant 0 : i32
    return %c0_i32, %c0_i32_0 : i32, i32
  }
  func.func @transform_3(%arg0: i32) -> (i32, i32) {
    %c0_i32 = arith.constant 0 : i32
    %c0_i32_0 = arith.constant 0 : i32
    %c0_i32_1 = arith.constant 0 : i32
    return %c0_i32, %c0_i32_0 : i32, i32
  }
  func.func @transform_4(%arg0: i32) -> (i32, i32) {
    %c0_i32 = arith.constant 0 : i32
    %c0_i32_0 = arith.constant 0 : i32
    %c0_i32_1 = arith.constant 0 : i32
    return %c0_i32, %c0_i32_0 : i32, i32
  }
  func.func @transform_5(%arg0: i32) -> (i32, i32) {
    %c0_i32 = arith.constant 0 : i32
    %c0_i32_0 = arith.constant 0 : i32
    %c0_i32_1 = arith.constant 0 : i32
    return %c0_i32, %c0_i32_0 : i32, i32
  }
  func.func @transform_6(%arg0: i32) -> (i32, i32) {
    %c0_i32 = arith.constant 0 : i32
    %c0_i32_0 = arith.constant 0 : i32
    %c0_i32_1 = arith.constant 0 : i32
    return %c0_i32, %c0_i32_0 : i32, i32
  }
  func.func @transform_7(%arg0: i32) -> (i32, i32) {
    %c0_i32 = arith.constant 0 : i32
    %c0_i32_0 = arith.constant 0 : i32
    return %arg0, %c0_i32 : i32, i32
  }
}

</mosaic_0001>

<bundles_post_ra>
// kernel: cnn_cifar_forward.3
= control target key start
LH: loop header
LB: loop body
LE: loop exit
PB: predicated region body
PF: predicated region fallthrough
CT: control target
= control target key end

     0   :  { %s10524_s12 = smov 0   ;;  %s10526_s13 = smov 0   ;;  %s13461_s0 = inlined_call_operand.vmem [shape: bf16[4,75,25088], index: 0, kind: input, shape index: {}]   ;;  %s13462_s1 = inlined_call_operand.vmem [shape: bf16[6,75], index: 1, kind: input, shape index: {}]   ;;  %s13463_s2 = inlined_call_operand.vmem [shape: f32[6,1], index: 2, kind: input, shape index: {}]   ;;  %s13464_s3 = inlined_call_operand.vmem [shape: bf16[6,25088], index: 3, kind: output, shape index: {}]  }
   0x1   :  { %s10528_s14 = smov 0  }
   0x2 LB: > { %s10540_s15 = sadd.s32 4294967295, %s10368_s14   ;;  %s10543_s16 = sadd.s32 1, %s10368_s14   ;;  %s10368_s14 = sphi %s10528_s14, %s13617_s14   ;;  %s10364_s13 = sphi %s10526_s13, %s13616_s13   ;;  %s10360_s12 = sphi %s10524_s12, %s13615_s12  }
   0x3   : > { %s17_s17 = ssub.s32 %s10368_s14, %s10543_s16  ;;  %s20_s18 = sadd.s32 1, %s10364_s13 }
   0x4   : > { %p18_p0 = scmp.eq.s32.totalorder %s17_s17, 0  ;;  %p27_p1 = scmp.ne.s32.totalorder %s10364_s13, %s10360_s12 }
   0x5   : > { %p28_p2 = scmp.eq.s32.totalorder %s10368_s14, 0  ;;  %p99_p3 = scmp.eq.s32.totalorder %s10540_s15, 6 }
   0x6   : > { %s10553_s19 = scalar_select %p18_p0, %s10364_s13, %s20_s18  }
   0x7   : > { %p29_p4 = por %p28_p2, %p27_p1  ;;  %p10555_p5 = por %p99_p3, %p27_p1 }
   0x8   : > { %p8642_p6 = scmp.ge.s32.totalorder %s10368_s14, 7 }
   0xa   : > { %127 = sbr.rel (%p8642_p6) target bundleno = 300 (0x12c), region = 24 }
  0x11   : > { %130 = sbr.rel (!%p29_p4) target bundleno = 300 (0x12c), region = 28  ;;  %s132_s21 = sand.u32 (%p29_p4), 1, %s10364_s13  }
  0x12   : > { %s8643_s22 = sshll.u32 (%p29_p4), %s10368_s14, 5  ;;  %s9925_s23 = smul.u32 (%p29_p4), 5120, %s132_s21 }
  0x13   : > { %s136_s24 = ssub.s32 (%p29_p4), 196, %s8643_s22  ;;  %s9899_s25 = sshll.u32 (%p29_p4), %s10368_s14, 7 }
  0x14   : > { %p137_p7 = scmp.lt.s32.totalorder (%p29_p4), %s136_s24, 32  ;;  %s10566_s28 = scalar_lea.vmem (%p29_p4), %s13461_s0, %s9899_s25  }
  0x15   : > { %s10570_s4 = scalar_lea.vmem (%p29_p4), [#allocation2], %s9925_s23  }
  0x18   : > { %s13619_s24 = smov (!%p137_p7, %s136_s24), 32 }
  0x19   : > { %s139_s29 = smul.u32 2560, %s13619_s24  ;;  %s10568_s30 = sshll.u32 %s13619_s24, 2 }
  0x1b   : > { %p8647_p8 = scmp.eq.s32.totalorder %s139_s29, 0 }
  0x1c   : > { %p147_p9 = scmp.lt.u32.totalorder (!%p8647_p8), %s10568_s30, 8 }
  0x1d   : > { %146 = sbr.rel (%p8647_p8) target bundleno = 300 (0x12c), region = 32 }
  0x24   : > { %150 = sbr.rel (%p147_p9) target bundleno = 257 (0x101), region = 36  ;;  %s10574_s5 = sand.u32 (!%p147_p9), 7, %s10568_s30  }
  0x25   : > { %p244_p10 = scmp.eq.s32.totalorder (!%p147_p9), %s10574_s5, 0  ;;  %p8648_p11 = scmp.ne.s32.totalorder (!%p147_p9), %s10574_s5, 0 }
  0x2b   : > { %247 = sbr.rel (%p8648_p11) target bundleno = 129 (0x81), region = 51  ;;  %s248_s6 = sshrl.u32 (!%p8648_p11), %s10568_s30, 3 }
  0x2c   : > { %s10581_s7 = sshrl.u32 (!%p8648_p11), %s248_s6, 1 }
  0x2d   : > { %p8649_p12 = scmp.le.s32.totalorder (!%p8648_p11), %s10581_s7, 0 }
  0x32   : > { %8512 = sbr.rel (%p8649_p12) target bundleno = 98 (0x62), region = 232  ;;  %s13496_s8 = smov (!%p8649_p12), %s10570_s4 }
  0x33   : > { %s13497_s9 = smov (!%p8649_p12), %s10566_s28  ;;  %s10590_s10 = smov (!%p8649_p12), 0  }
  0x34   : > { %s10592_s11 = smov (!%p8649_p12), 0  }
  0x39 LB: >> { %v261_v0 = vld [vmem:[%s10376_s9] sm:$0xff]  ;;  %v263_v1 = vld [vmem:[%s10376_s9 + $0x8] sm:$0xff]  ;;  %v265_v2 = vld [vmem:[%s10376_s9 + $0x310] sm:$0xff]  ;;  %s421_s17 = sadd.s32 1, %s10380_s10  ;;  %s255_s11 = sadd.s32 1, %s10384_s11   ;;  %s10384_s11 = sphi %s10592_s11, %s255_s11   ;;  %s10380_s10 = sphi %s10590_s10, %s13500_s10   ;;  %s10376_s9 = sphi %s13497_s9, %s13499_s9   ;;  %s10372_s8 = sphi %s13496_s8, %s13498_s8  }
  0x3a   : >> { %262 = vst [vmem:[%s10372_s8] sm:$0xff] %v261_v0  ;;  %264 = vst [vmem:[%s10372_s8 + $0x8] sm:$0xff] %v263_v1  ;;  %v267_v3 = vld [vmem:[%s10376_s9 + $0x318] sm:$0xff]  ;;  %v269_v4 = vld [vmem:[%s10376_s9 + $0x620] sm:$0xff]  ;;  %p422_p13 = scmp.ge.s32.totalorder %s421_s17, %s10581_s7  ;;  %p254_p0 = scmp.ge.s32.totalorder %s255_s11, %s10581_s7 }
  0x3b   : >> { %266 = vst [vmem:[%s10372_s8 + $0x80] sm:$0xff] %v265_v2  ;;  %v271_v5 = vld [vmem:[%s10376_s9 + $0x628] sm:$0xff]  ;;  %268 = vst [vmem:[%s10372_s8 + $0x88] sm:$0xff] %v267_v3  ;;  %v273_v6 = vld [vmem:[%s10376_s9 + $0x930] sm:$0xff] }
  0x3c   : >> { %270 = vst [vmem:[%s10372_s8 + $0x100] sm:$0xff] %v269_v4  ;;  %272 = vst [vmem:[%s10372_s8 + $0x108] sm:$0xff] %v271_v5  ;;  %v275_v7 = vld [vmem:[%s10376_s9 + $0x938] sm:$0xff]  ;;  %v277_v8 = vld [vmem:[%s10376_s9 + $0xc40] sm:$0xff]  ;;  %s13621_s17 = smov (%p422_p13, %s421_s17), 0 }
  0x3d   : >> { %274 = vst [vmem:[%s10372_s8 + $0x180] sm:$0xff] %v273_v6  ;;  %276 = vst [vmem:[%s10372_s8 + $0x188] sm:$0xff] %v275_v7  ;;  %v279_v9 = vld [vmem:[%s10376_s9 + $0xc48] sm:$0xff]  ;;  %v281_v10 = vld [vmem:[%s10376_s9 + $0xf50] sm:$0xff]  ;;  %s8650_s18 = sshll.u32 %s13621_s17, 4  ;;  %s13500_s10 = smov %s13621_s17 }
  0x3e   : >> { %278 = vst [vmem:[%s10372_s8 + $0x200] sm:$0xff] %v277_v8  ;;  %v283_v11 = vld [vmem:[%s10376_s9 + $0xf58] sm:$0xff]  ;;  %280 = vst [vmem:[%s10372_s8 + $0x208] sm:$0xff] %v279_v9  ;;  %v285_v12 = vld [vmem:[%s10376_s9 + $0x1260] sm:$0xff]  ;;  %s10648_s21 = scalar_lea.vmem %s10566_s28, %s8650_s18   ;;  %s10651_s22 = scalar_lea.vmem %s10570_s4, %s8650_s18 [#allocation2]  }
  0x3f   : >> { %282 = vst [vmem:[%s10372_s8 + $0x280] sm:$0xff] %v281_v10  ;;  %284 = vst [vmem:[%s10372_s8 + $0x288] sm:$0xff] %v283_v11  ;;  %v287_v13 = vld [vmem:[%s10376_s9 + $0x1268] sm:$0xff]  ;;  %v289_v14 = vld [vmem:[%s10376_s9 + $0x1570] sm:$0xff] }
  0x40   : >> { %286 = vst [vmem:[%s10372_s8 + $0x300] sm:$0xff] %v285_v12  ;;  %288 = vst [vmem:[%s10372_s8 + $0x308] sm:$0xff] %v287_v13  ;;  %v291_v15 = vld [vmem:[%s10376_s9 + $0x1578] sm:$0xff]  ;;  %v293_v16 = vld [vmem:[%s10376_s9 + $0x1880] sm:$0xff] }
  0x41   : >> { %290 = vst [vmem:[%s10372_s8 + $0x380] sm:$0xff] %v289_v14  ;;  %v295_v17 = vld [vmem:[%s10376_s9 + $0x1888] sm:$0xff]  ;;  %292 = vst [vmem:[%s10372_s8 + $0x388] sm:$0xff] %v291_v15  ;;  %v297_v18 = vld [vmem:[%s10376_s9 + $0x1b90] sm:$0xff] }
  0x42   : >> { %294 = vst [vmem:[%s10372_s8 + $0x400] sm:$0xff] %v293_v16  ;;  %296 = vst [vmem:[%s10372_s8 + $0x408] sm:$0xff] %v295_v17  ;;  %v299_v19 = vld [vmem:[%s10376_s9 + $0x1b98] sm:$0xff]  ;;  %v301_v20 = vld [vmem:[%s10376_s9 + $0x1ea0] sm:$0xff] }
  0x43   : >> { %298 = vst [vmem:[%s10372_s8 + $0x480] sm:$0xff] %v297_v18  ;;  %300 = vst [vmem:[%s10372_s8 + $0x488] sm:$0xff] %v299_v19  ;;  %v303_v21 = vld [vmem:[%s10376_s9 + $0x1ea8] sm:$0xff]  ;;  %v305_v22 = vld [vmem:[%s10376_s9 + $0x21b0] sm:$0xff] }
  0x44   : >> { %302 = vst [vmem:[%s10372_s8 + $0x500] sm:$0xff] %v301_v20  ;;  %v307_v23 = vld [vmem:[%s10376_s9 + $0x21b8] sm:$0xff]  ;;  %304 = vst [vmem:[%s10372_s8 + $0x508] sm:$0xff] %v303_v21  ;;  %v309_v24 = vld [vmem:[%s10376_s9 + $0x24c0] sm:$0xff] }
  0x45   : >> { %306 = vst [vmem:[%s10372_s8 + $0x580] sm:$0xff] %v305_v22  ;;  %308 = vst [vmem:[%s10372_s8 + $0x588] sm:$0xff] %v307_v23  ;;  %v311_v25 = vld [vmem:[%s10376_s9 + $0x24c8] sm:$0xff]  ;;  %v313_v26 = vld [vmem:[%s10376_s9 + $0x27d0] sm:$0xff] }
  0x46   : >> { %310 = vst [vmem:[%s10372_s8 + $0x600] sm:$0xff] %v309_v24  ;;  %312 = vst [vmem:[%s10372_s8 + $0x608] sm:$0xff] %v311_v25  ;;  %v315_v27 = vld [vmem:[%s10376_s9 + $0x27d8] sm:$0xff]  ;;  %v317_v28 = vld [vmem:[%s10376_s9 + $0x2ae0] sm:$0xff] }
  0x47   : >> { %314 = vst [vmem:[%s10372_s8 + $0x680] sm:$0xff] %v313_v26  ;;  %v319_v29 = vld [vmem:[%s10376_s9 + $0x2ae8] sm:$0xff]  ;;  %316 = vst [vmem:[%s10372_s8 + $0x688] sm:$0xff] %v315_v27  ;;  %v321_v30 = vld [vmem:[%s10376_s9 + $0x2df0] sm:$0xff] }
  0x48   : >> { %318 = vst [vmem:[%s10372_s8 + $0x700] sm:$0xff] %v317_v28  ;;  %320 = vst [vmem:[%s10372_s8 + $0x708] sm:$0xff] %v319_v29  ;;  %v323_v31 = vld [vmem:[%s10376_s9 + $0x2df8] sm:$0xff]  ;;  %v325_v32 = vld [vmem:[%s10376_s9 + $0x3100] sm:$0xff] }
  0x49   : >> { %322 = vst [vmem:[%s10372_s8 + $0x780] sm:$0xff] %v321_v30  ;;  %324 = vst [vmem:[%s10372_s8 + $0x788] sm:$0xff] %v323_v31  ;;  %v327_v33 = vld [vmem:[%s10376_s9 + $0x3108] sm:$0xff]  ;;  %v329_v34 = vld [vmem:[%s10376_s9 + $0x3410] sm:$0xff] }
  0x4a   : >> { %326 = vst [vmem:[%s10372_s8 + $0x800] sm:$0xff] %v325_v32  ;;  %v331_v35 = vld [vmem:[%s10376_s9 + $0x3418] sm:$0xff]  ;;  %328 = vst [vmem:[%s10372_s8 + $0x808] sm:$0xff] %v327_v33  ;;  %v333_v36 = vld [vmem:[%s10376_s9 + $0x3720] sm:$0xff] }
  0x4b   : >> { %330 = vst [vmem:[%s10372_s8 + $0x880] sm:$0xff] %v329_v34  ;;  %332 = vst [vmem:[%s10372_s8 + $0x888] sm:$0xff] %v331_v35  ;;  %v335_v37 = vld [vmem:[%s10376_s9 + $0x3728] sm:$0xff]  ;;  %v337_v38 = vld [vmem:[%s10376_s9 + $0x3a30] sm:$0xff] }
  0x4c   : >> { %334 = vst [vmem:[%s10372_s8 + $0x900] sm:$0xff] %v333_v36  ;;  %336 = vst [vmem:[%s10372_s8 + $0x908] sm:$0xff] %v335_v37  ;;  %v339_v39 = vld [vmem:[%s10376_s9 + $0x3a38] sm:$0xff]  ;;  %v341_v40 = vld [vmem:[%s10376_s9 + $0x3d40] sm:$0xff] }
  0x4d   : >> { %338 = vst [vmem:[%s10372_s8 + $0x980] sm:$0xff] %v337_v38  ;;  %v343_v41 = vld [vmem:[%s10376_s9 + $0x3d48] sm:$0xff]  ;;  %340 = vst [vmem:[%s10372_s8 + $0x988] sm:$0xff] %v339_v39  ;;  %v345_v42 = vld [vmem:[%s10376_s9 + $0x4050] sm:$0xff] }
  0x4e   : >> { %342 = vst [vmem:[%s10372_s8 + $0xa00] sm:$0xff] %v341_v40  ;;  %344 = vst [vmem:[%s10372_s8 + $0xa08] sm:$0xff] %v343_v41  ;;  %v347_v43 = vld [vmem:[%s10376_s9 + $0x4058] sm:$0xff]  ;;  %v349_v44 = vld [vmem:[%s10376_s9 + $0x4360] sm:$0xff] }
  0x4f   : >> { %346 = vst [vmem:[%s10372_s8 + $0xa80] sm:$0xff] %v345_v42  ;;  %348 = vst [vmem:[%s10372_s8 + $0xa88] sm:$0xff] %v347_v43  ;;  %v351_v45 = vld [vmem:[%s10376_s9 + $0x4368] sm:$0xff]  ;;  %v353_v46 = vld [vmem:[%s10376_s9 + $0x4670] sm:$0xff] }
  0x50   : >> { %350 = vst [vmem:[%s10372_s8 + $0xb00] sm:$0xff] %v349_v44  ;;  %v355_v47 = vld [vmem:[%s10376_s9 + $0x4678] sm:$0xff]  ;;  %352 = vst [vmem:[%s10372_s8 + $0xb08] sm:$0xff] %v351_v45  ;;  %v357_v48 = vld [vmem:[%s10376_s9 + $0x4980] sm:$0xff] }
  0x51   : >> { %354 = vst [vmem:[%s10372_s8 + $0xb80] sm:$0xff] %v353_v46  ;;  %356 = vst [vmem:[%s10372_s8 + $0xb88] sm:$0xff] %v355_v47  ;;  %v359_v49 = vld [vmem:[%s10376_s9 + $0x4988] sm:$0xff]  ;;  %v361_v50 = vld [vmem:[%s10376_s9 + $0x4c90] sm:$0xff] }
  0x52   : >> { %358 = vst [vmem:[%s10372_s8 + $0xc00] sm:$0xff] %v357_v48  ;;  %360 = vst [vmem:[%s10372_s8 + $0xc08] sm:$0xff] %v359_v49  ;;  %v363_v51 = vld [vmem:[%s10376_s9 + $0x4c98] sm:$0xff]  ;;  %v365_v52 = vld [vmem:[%s10376_s9 + $0x4fa0] sm:$0xff] }
  0x53   : >> { %362 = vst [vmem:[%s10372_s8 + $0xc80] sm:$0xff] %v361_v50  ;;  %v367_v53 = vld [vmem:[%s10376_s9 + $0x4fa8] sm:$0xff]  ;;  %364 = vst [vmem:[%s10372_s8 + $0xc88] sm:$0xff] %v363_v51  ;;  %v369_v54 = vld [vmem:[%s10376_s9 + $0x52b0] sm:$0xff] }
  0x54   : >> { %366 = vst [vmem:[%s10372_s8 + $0xd00] sm:$0xff] %v365_v52  ;;  %368 = vst [vmem:[%s10372_s8 + $0xd08] sm:$0xff] %v367_v53  ;;  %v371_v55 = vld [vmem:[%s10376_s9 + $0x52b8] sm:$0xff]  ;;  %v373_v56 = vld [vmem:[%s10376_s9 + $0x55c0] sm:$0xff] }
  0x55   : >> { %370 = vst [vmem:[%s10372_s8 + $0xd80] sm:$0xff] %v369_v54  ;;  %372 = vst [vmem:[%s10372_s8 + $0xd88] sm:$0xff] %v371_v55  ;;  %v375_v57 = vld [vmem:[%s10376_s9 + $0x55c8] sm:$0xff]  ;;  %v377_v58 = vld [vmem:[%s10376_s9 + $0x58d0] sm:$0xff] }
  0x56   : >> { %374 = vst [vmem:[%s10372_s8 + $0xe00] sm:$0xff] %v373_v56  ;;  %v379_v59 = vld [vmem:[%s10376_s9 + $0x58d8] sm:$0xff]  ;;  %376 = vst [vmem:[%s10372_s8 + $0xe08] sm:$0xff] %v375_v57  ;;  %v381_v60 = vld [vmem:[%s10376_s9 + $0x5be0] sm:$0xff] }
  0x57   : >> { %378 = vst [vmem:[%s10372_s8 + $0xe80] sm:$0xff] %v377_v58  ;;  %380 = vst [vmem:[%s10372_s8 + $0xe88] sm:$0xff] %v379_v59  ;;  %v383_v61 = vld [vmem:[%s10376_s9 + $0x5be8] sm:$0xff]  ;;  %v385_v62 = vld [vmem:[%s10376_s9 + $0x5ef0] sm:$0xff] }
  0x58   : >> { %382 = vst [vmem:[%s10372_s8 + $0xf00] sm:$0xff] %v381_v60  ;;  %384 = vst [vmem:[%s10372_s8 + $0xf08] sm:$0xff] %v383_v61  ;;  %v387_v63 = vld [vmem:[%s10376_s9 + $0x5ef8] sm:$0xff]  ;;  %v389_v0 = vld [vmem:[%s10376_s9 + $0x6200] sm:$0xff] }
  0x59   : >> { %386 = vst [vmem:[%s10372_s8 + $0xf80] sm:$0xff] %v385_v62  ;;  %v391_v1 = vld [vmem:[%s10376_s9 + $0x6208] sm:$0xff]  ;;  %388 = vst [vmem:[%s10372_s8 + $0xf88] sm:$0xff] %v387_v63  ;;  %v393_v2 = vld [vmem:[%s10376_s9 + $0x6510] sm:$0xff] }
  0x5a   : >> { %390 = vst [vmem:[%s10372_s8 + $0x1000] sm:$0xff] %v389_v0  ;;  %392 = vst [vmem:[%s10372_s8 + $0x1008] sm:$0xff] %v391_v1  ;;  %v395_v3 = vld [vmem:[%s10376_s9 + $0x6518] sm:$0xff]  ;;  %v397_v4 = vld [vmem:[%s10376_s9 + $0x6820] sm:$0xff] }
  0x5b   : >> { %394 = vst [vmem:[%s10372_s8 + $0x1080] sm:$0xff] %v393_v2  ;;  %396 = vst [vmem:[%s10372_s8 + $0x1088] sm:$0xff] %v395_v3  ;;  %v399_v5 = vld [vmem:[%s10376_s9 + $0x6828] sm:$0xff]  ;;  %v401_v6 = vld [vmem:[%s10376_s9 + $0x6b30] sm:$0xff]  ;;  %257 = sbr.rel (!%p254_p0) target bundleno = 57 (0x39), region = 238 }
  0x5c   : >> { %398 = vst [vmem:[%s10372_s8 + $0x1100] sm:$0xff] %v397_v4  ;;  %v403_v7 = vld [vmem:[%s10376_s9 + $0x6b38] sm:$0xff]  ;;  %400 = vst [vmem:[%s10372_s8 + $0x1108] sm:$0xff] %v399_v5  ;;  %v405_v8 = vld [vmem:[%s10376_s9 + $0x6e40] sm:$0xff] }
  0x5d   : >> { %402 = vst [vmem:[%s10372_s8 + $0x1180] sm:$0xff] %v401_v6  ;;  %404 = vst [vmem:[%s10372_s8 + $0x1188] sm:$0xff] %v403_v7  ;;  %v407_v9 = vld [vmem:[%s10376_s9 + $0x6e48] sm:$0xff]  ;;  %v409_v10 = vld [vmem:[%s10376_s9 + $0x7150] sm:$0xff] }
  0x5e   : >> { %406 = vst [vmem:[%s10372_s8 + $0x1200] sm:$0xff] %v405_v8  ;;  %408 = vst [vmem:[%s10372_s8 + $0x1208] sm:$0xff] %v407_v9  ;;  %v411_v11 = vld [vmem:[%s10376_s9 + $0x7158] sm:$0xff]  ;;  %v413_v12 = vld [vmem:[%s10376_s9 + $0x7460] sm:$0xff] }
  0x5f   : >> { %410 = vst [vmem:[%s10372_s8 + $0x1280] sm:$0xff] %v409_v10  ;;  %v415_v13 = vld [vmem:[%s10376_s9 + $0x7468] sm:$0xff]  ;;  %412 = vst [vmem:[%s10372_s8 + $0x1288] sm:$0xff] %v411_v11  ;;  %v417_v14 = vld [vmem:[%s10376_s9 + $0x7770] sm:$0xff] }
  0x60   : >> { %414 = vst [vmem:[%s10372_s8 + $0x1300] sm:$0xff] %v413_v12  ;;  %416 = vst [vmem:[%s10372_s8 + $0x1308] sm:$0xff] %v415_v13  ;;  %v419_v15 = vld [vmem:[%s10376_s9 + $0x7778] sm:$0xff]  ;;  %s13499_s9 = smov %s10648_s21 }
  0x61   : >> { %418 = vst [vmem:[%s10372_s8 + $0x1380] sm:$0xff] %v417_v14  ;;  %420 = vst [vmem:[%s10372_s8 + $0x1388] sm:$0xff] %v419_v15  ;;  %s13498_s8 = smov %s10651_s22 }
  0x62 PF: > { %s10789_s23 = sand.u32 1, %s248_s6   ;;  %s9900_s24 = sshll.u32 %s10581_s7, 8 }
  0x63   : > { %s432_s25 = sshra.s32 %s9900_s24, 4  ;;  %p8655_p1 = scmp.le.s32.totalorder %s10789_s23, 0 }
  0x64   : > { %s10793_s26 = scalar_lea.vmem %s10566_s28, %s432_s25   ;;  %s10796_s27 = scalar_lea.vmem %s10570_s4, %s432_s25 [#allocation2]  }
  0x65   : > { %8526 = sbr.rel (%p8655_p1) target bundleno = 129 (0x81), region = 243  ;;  %s13501_s29 = smov (!%p8655_p1), %s10796_s27 }
  0x66   : > { %s13502_s8 = smov (!%p8655_p1), %s10793_s26  ;;  %s10805_s9 = smov (!%p8655_p1), 0  }
  0x67   : > { %s10807_s10 = smov (!%p8655_p1), 0  }
  0x6c LB: >> { %v448_v16 = vld [vmem:[%s10392_s8] sm:$0xff]  ;;  %v450_v17 = vld [vmem:[%s10392_s8 + $0x310] sm:$0xff]  ;;  %s528_s6 = sadd.s32 1, %s10396_s9  ;;  %s442_s10 = sadd.s32 1, %s10400_s10   ;;  %s10400_s10 = sphi %s10807_s10, %s442_s10   ;;  %s10396_s9 = sphi %s10805_s9, %s13505_s9   ;;  %s10392_s8 = sphi %s13502_s8, %s13504_s8   ;;  %s10388_s29 = sphi %s13501_s29, %s13503_s29  }
  0x6d   : >> { %v452_v18 = vld [vmem:[%s10392_s8 + $0x620] sm:$0xff]  ;;  %449 = vst [vmem:[%s10388_s29] sm:$0xff] %v448_v16  ;;  %451 = vst [vmem:[%s10388_s29 + $0x80] sm:$0xff] %v450_v17  ;;  %v454_v19 = vld [vmem:[%s10392_s8 + $0x930] sm:$0xff]  ;;  %p529_p2 = scmp.ge.s32.totalorder %s528_s6, %s10789_s23  ;;  %p441_p3 = scmp.ge.s32.totalorder %s442_s10, %s10789_s23 }
  0x6e   : >> { %453 = vst [vmem:[%s10388_s29 + $0x100] sm:$0xff] %v452_v18  ;;  %v456_v20 = vld [vmem:[%s10392_s8 + $0xc40] sm:$0xff]  ;;  %v458_v21 = vld [vmem:[%s10392_s8 + $0xf50] sm:$0xff]  ;;  %455 = vst [vmem:[%s10388_s29 + $0x180] sm:$0xff] %v454_v19 }
  0x6f   : >> { %457 = vst [vmem:[%s10388_s29 + $0x200] sm:$0xff] %v456_v20  ;;  %459 = vst [vmem:[%s10388_s29 + $0x280] sm:$0xff] %v458_v21  ;;  %v460_v22 = vld [vmem:[%s10392_s8 + $0x1260] sm:$0xff]  ;;  %v462_v23 = vld [vmem:[%s10392_s8 + $0x1570] sm:$0xff]  ;;  %s13623_s6 = smov (%p529_p2, %s528_s6), 0 }
  0x70   : >> { %v464_v24 = vld [vmem:[%s10392_s8 + $0x1880] sm:$0xff]  ;;  %461 = vst [vmem:[%s10388_s29 + $0x300] sm:$0xff] %v460_v22  ;;  %463 = vst [vmem:[%s10388_s29 + $0x380] sm:$0xff] %v462_v23  ;;  %v466_v25 = vld [vmem:[%s10392_s8 + $0x1b90] sm:$0xff]  ;;  %s8656_s7 = sshll.u32 %s13623_s6, 3  ;;  %s13505_s9 = smov %s13623_s6 }
  0x71   : >> { %465 = vst [vmem:[%s10388_s29 + $0x400] sm:$0xff] %v464_v24  ;;  %v468_v26 = vld [vmem:[%s10392_s8 + $0x1ea0] sm:$0xff]  ;;  %v470_v27 = vld [vmem:[%s10392_s8 + $0x21b0] sm:$0xff]  ;;  %467 = vst [vmem:[%s10388_s29 + $0x480] sm:$0xff] %v466_v25  ;;  %s10863_s11 = scalar_lea.vmem %s10793_s26, %s8656_s7   ;;  %s10866_s17 = scalar_lea.vmem %s10796_s27, %s8656_s7 [#allocation2]  }
  0x72   : >> { %469 = vst [vmem:[%s10388_s29 + $0x500] sm:$0xff] %v468_v26  ;;  %471 = vst [vmem:[%s10388_s29 + $0x580] sm:$0xff] %v470_v27  ;;  %v472_v28 = vld [vmem:[%s10392_s8 + $0x24c0] sm:$0xff]  ;;  %v474_v29 = vld [vmem:[%s10392_s8 + $0x27d0] sm:$0xff] }
  0x73   : >> { %v476_v30 = vld [vmem:[%s10392_s8 + $0x2ae0] sm:$0xff]  ;;  %473 = vst [vmem:[%s10388_s29 + $0x600] sm:$0xff] %v472_v28  ;;  %475 = vst [vmem:[%s10388_s29 + $0x680] sm:$0xff] %v474_v29  ;;  %v478_v31 = vld [vmem:[%s10392_s8 + $0x2df0] sm:$0xff] }
  0x74   : >> { %477 = vst [vmem:[%s10388_s29 + $0x700] sm:$0xff] %v476_v30  ;;  %v480_v32 = vld [vmem:[%s10392_s8 + $0x3100] sm:$0xff]  ;;  %v482_v33 = vld [vmem:[%s10392_s8 + $0x3410] sm:$0xff]  ;;  %479 = vst [vmem:[%s10388_s29 + $0x780] sm:$0xff] %v478_v31 }
  0x75   : >> { %481 = vst [vmem:[%s10388_s29 + $0x800] sm:$0xff] %v480_v32  ;;  %483 = vst [vmem:[%s10388_s29 + $0x880] sm:$0xff] %v482_v33  ;;  %v484_v34 = vld [vmem:[%s10392_s8 + $0x3720] sm:$0xff]  ;;  %v486_v35 = vld [vmem:[%s10392_s8 + $0x3a30] sm:$0xff] }
  0x76   : >> { %v488_v36 = vld [vmem:[%s10392_s8 + $0x3d40] sm:$0xff]  ;;  %485 = vst [vmem:[%s10388_s29 + $0x900] sm:$0xff] %v484_v34  ;;  %487 = vst [vmem:[%s10388_s29 + $0x980] sm:$0xff] %v486_v35  ;;  %v490_v37 = vld [vmem:[%s10392_s8 + $0x4050] sm:$0xff] }
  0x77   : >> { %489 = vst [vmem:[%s10388_s29 + $0xa00] sm:$0xff] %v488_v36  ;;  %v492_v38 = vld [vmem:[%s10392_s8 + $0x4360] sm:$0xff]  ;;  %v494_v39 = vld [vmem:[%s10392_s8 + $0x4670] sm:$0xff]  ;;  %491 = vst [vmem:[%s10388_s29 + $0xa80] sm:$0xff] %v490_v37 }
  0x78   : >> { %493 = vst [vmem:[%s10388_s29 + $0xb00] sm:$0xff] %v492_v38  ;;  %495 = vst [vmem:[%s10388_s29 + $0xb80] sm:$0xff] %v494_v39  ;;  %v496_v40 = vld [vmem:[%s10392_s8 + $0x4980] sm:$0xff]  ;;  %v498_v41 = vld [vmem:[%s10392_s8 + $0x4c90] sm:$0xff] }
  0x79   : >> { %v500_v42 = vld [vmem:[%s10392_s8 + $0x4fa0] sm:$0xff]  ;;  %497 = vst [vmem:[%s10388_s29 + $0xc00] sm:$0xff] %v496_v40  ;;  %499 = vst [vmem:[%s10388_s29 + $0xc80] sm:$0xff] %v498_v41  ;;  %v502_v43 = vld [vmem:[%s10392_s8 + $0x52b0] sm:$0xff] }
  0x7a   : >> { %501 = vst [vmem:[%s10388_s29 + $0xd00] sm:$0xff] %v500_v42  ;;  %v504_v44 = vld [vmem:[%s10392_s8 + $0x55c0] sm:$0xff]  ;;  %v506_v45 = vld [vmem:[%s10392_s8 + $0x58d0] sm:$0xff]  ;;  %503 = vst [vmem:[%s10388_s29 + $0xd80] sm:$0xff] %v502_v43  ;;  %444 = sbr.rel (!%p441_p3) target bundleno = 108 (0x6c), region = 249 }
  0x7b   : >> { %505 = vst [vmem:[%s10388_s29 + $0xe00] sm:$0xff] %v504_v44  ;;  %507 = vst [vmem:[%s10388_s29 + $0xe80] sm:$0xff] %v506_v45  ;;  %v508_v46 = vld [vmem:[%s10392_s8 + $0x5be0] sm:$0xff]  ;;  %v510_v47 = vld [vmem:[%s10392_s8 + $0x5ef0] sm:$0xff] }
  0x7c   : >> { %v512_v48 = vld [vmem:[%s10392_s8 + $0x6200] sm:$0xff]  ;;  %509 = vst [vmem:[%s10388_s29 + $0xf00] sm:$0xff] %v508_v46  ;;  %511 = vst [vmem:[%s10388_s29 + $0xf80] sm:$0xff] %v510_v47  ;;  %v514_v49 = vld [vmem:[%s10392_s8 + $0x6510] sm:$0xff] }
  0x7d   : >> { %513 = vst [vmem:[%s10388_s29 + $0x1000] sm:$0xff] %v512_v48  ;;  %v516_v50 = vld [vmem:[%s10392_s8 + $0x6820] sm:$0xff]  ;;  %v518_v51 = vld [vmem:[%s10392_s8 + $0x6b30] sm:$0xff]  ;;  %515 = vst [vmem:[%s10388_s29 + $0x1080] sm:$0xff] %v514_v49 }
  0x7e   : >> { %517 = vst [vmem:[%s10388_s29 + $0x1100] sm:$0xff] %v516_v50  ;;  %519 = vst [vmem:[%s10388_s29 + $0x1180] sm:$0xff] %v518_v51  ;;  %v520_v52 = vld [vmem:[%s10392_s8 + $0x6e40] sm:$0xff]  ;;  %v522_v53 = vld [vmem:[%s10392_s8 + $0x7150] sm:$0xff] }
  0x7f   : >> { %v524_v54 = vld [vmem:[%s10392_s8 + $0x7460] sm:$0xff]  ;;  %521 = vst [vmem:[%s10388_s29 + $0x1200] sm:$0xff] %v520_v52  ;;  %523 = vst [vmem:[%s10388_s29 + $0x1280] sm:$0xff] %v522_v53  ;;  %v526_v55 = vld [vmem:[%s10392_s8 + $0x7770] sm:$0xff]  ;;  %s13504_s8 = smov %s10863_s11 }
  0x80   : >> { %525 = vst [vmem:[%s10388_s29 + $0x1300] sm:$0xff] %v524_v54  ;;  %527 = vst [vmem:[%s10388_s29 + $0x1380] sm:$0xff] %v526_v55  ;;  %s13503_s29 = smov %s10866_s17 }
  0x81 PF: > { %537 = sbr.rel (%p244_p10) target bundleno = 257 (0x101), region = 69  ;;  %s539_s18 = ssub.s32 (!%p244_p10), %s10568_s30, %s10574_s5 }
  0x82   : > { %s543_s21 = sshrl.u32 (!%p244_p10), %s10568_s30, 3  ;;  %s10928_s22 = scalar_lea.vmem (!%p244_p10), %s10566_s28, %s539_s18 }
  0x83   : > { %s10931_s24 = scalar_lea.vmem (!%p244_p10), %s10570_s4, %s539_s18 [#allocation2]  ;;  %s10935_s25 = sshrl.u32 (!%p244_p10), %s543_s21, 1 }
  0x84   : > { %p8658_p4 = scmp.le.s32.totalorder (!%p244_p10), %s10935_s25, 0 }
  0x88   : > { %8540 = sbr.rel (%p8658_p4) target bundleno = 184 (0xb8), region = 254  ;;  %s13506_s23 = smov (!%p8658_p4), %s10570_s4 }
  0x89   : > { %s13507_s26 = smov (!%p8658_p4), %s10566_s28  ;;  %s10944_s27 = smov (!%p8658_p4), 0  }
  0x8a   : > { %s10946_s29 = smov (!%p8658_p4), 0  }
  0x8f LB: >> { %v556_v56 = vld [vmem:[%s10408_s26] sm:$0xff]  ;;  %v558_v57 = vld [vmem:[%s10408_s26 + $0x8] sm:$0xff]  ;;  %v560_v58 = vld [vmem:[%s10408_s26 + $0x310] sm:$0xff]  ;;  %s716_s8 = sadd.s32 1, %s10412_s27  ;;  %s550_s29 = sadd.s32 1, %s10416_s29   ;;  %s10416_s29 = sphi %s10946_s29, %s550_s29   ;;  %s10412_s27 = sphi %s10944_s27, %s13510_s27   ;;  %s10408_s26 = sphi %s13507_s26, %s13509_s26   ;;  %s10404_s23 = sphi %s13506_s23, %s13508_s23  }
  0x90   : >> { %557 = vst [vmem:[%s10404_s23] sm:$0xff] %v556_v56  ;;  %559 = vst [vmem:[%s10404_s23 + $0x8] sm:$0xff] %v558_v57  ;;  %v562_v59 = vld [vmem:[%s10408_s26 + $0x318] sm:$0xff]  ;;  %v564_v60 = vld [vmem:[%s10408_s26 + $0x620] sm:$0xff]  ;;  %p717_p6 = scmp.ge.s32.totalorder %s716_s8, %s10935_s25  ;;  %p549_p7 = scmp.ge.s32.totalorder %s550_s29, %s10935_s25 }
  0x91   : >> { %561 = vst [vmem:[%s10404_s23 + $0x80] sm:$0xff] %v560_v58  ;;  %v566_v61 = vld [vmem:[%s10408_s26 + $0x628] sm:$0xff]  ;;  %563 = vst [vmem:[%s10404_s23 + $0x88] sm:$0xff] %v562_v59  ;;  %v568_v62 = vld [vmem:[%s10408_s26 + $0x930] sm:$0xff] }
  0x92   : >> { %565 = vst [vmem:[%s10404_s23 + $0x100] sm:$0xff] %v564_v60  ;;  %567 = vst [vmem:[%s10404_s23 + $0x108] sm:$0xff] %v566_v61  ;;  %v570_v63 = vld [vmem:[%s10408_s26 + $0x938] sm:$0xff]  ;;  %v572_v0 = vld [vmem:[%s10408_s26 + $0xc40] sm:$0xff]  ;;  %s13625_s8 = smov (%p717_p6, %s716_s8), 0 }
  0x93   : >> { %569 = vst [vmem:[%s10404_s23 + $0x180] sm:$0xff] %v568_v62  ;;  %571 = vst [vmem:[%s10404_s23 + $0x188] sm:$0xff] %v570_v63  ;;  %v574_v1 = vld [vmem:[%s10408_s26 + $0xc48] sm:$0xff]  ;;  %v576_v2 = vld [vmem:[%s10408_s26 + $0xf50] sm:$0xff]  ;;  %s8659_s9 = sshll.u32 %s13625_s8, 4  ;;  %s13510_s27 = smov %s13625_s8 }
  0x94   : >> { %573 = vst [vmem:[%s10404_s23 + $0x200] sm:$0xff] %v572_v0  ;;  %v578_v3 = vld [vmem:[%s10408_s26 + $0xf58] sm:$0xff]  ;;  %575 = vst [vmem:[%s10404_s23 + $0x208] sm:$0xff] %v574_v1  ;;  %v580_v4 = vld [vmem:[%s10408_s26 + $0x1260] sm:$0xff]  ;;  %s11002_s10 = scalar_lea.vmem %s10566_s28, %s8659_s9   ;;  %s11005_s6 = scalar_lea.vmem %s10570_s4, %s8659_s9 [#allocation2]  }
  0x95   : >> { %577 = vst [vmem:[%s10404_s23 + $0x280] sm:$0xff] %v576_v2  ;;  %579 = vst [vmem:[%s10404_s23 + $0x288] sm:$0xff] %v578_v3  ;;  %v582_v5 = vld [vmem:[%s10408_s26 + $0x1268] sm:$0xff]  ;;  %v584_v6 = vld [vmem:[%s10408_s26 + $0x1570] sm:$0xff] }
  0x96   : >> { %581 = vst [vmem:[%s10404_s23 + $0x300] sm:$0xff] %v580_v4  ;;  %583 = vst [vmem:[%s10404_s23 + $0x308] sm:$0xff] %v582_v5  ;;  %v586_v7 = vld [vmem:[%s10408_s26 + $0x1578] sm:$0xff]  ;;  %v588_v8 = vld [vmem:[%s10408_s26 + $0x1880] sm:$0xff] }
  0x97   : >> { %585 = vst [vmem:[%s10404_s23 + $0x380] sm:$0xff] %v584_v6  ;;  %v590_v9 = vld [vmem:[%s10408_s26 + $0x1888] sm:$0xff]  ;;  %587 = vst [vmem:[%s10404_s23 + $0x388] sm:$0xff] %v586_v7  ;;  %v592_v10 = vld [vmem:[%s10408_s26 + $0x1b90] sm:$0xff] }
  0x98   : >> { %589 = vst [vmem:[%s10404_s23 + $0x400] sm:$0xff] %v588_v8  ;;  %591 = vst [vmem:[%s10404_s23 + $0x408] sm:$0xff] %v590_v9  ;;  %v594_v11 = vld [vmem:[%s10408_s26 + $0x1b98] sm:$0xff]  ;;  %v596_v12 = vld [vmem:[%s10408_s26 + $0x1ea0] sm:$0xff] }
  0x99   : >> { %593 = vst [vmem:[%s10404_s23 + $0x480] sm:$0xff] %v592_v10  ;;  %595 = vst [vmem:[%s10404_s23 + $0x488] sm:$0xff] %v594_v11  ;;  %v598_v13 = vld [vmem:[%s10408_s26 + $0x1ea8] sm:$0xff]  ;;  %v600_v14 = vld [vmem:[%s10408_s26 + $0x21b0] sm:$0xff] }
  0x9a   : >> { %597 = vst [vmem:[%s10404_s23 + $0x500] sm:$0xff] %v596_v12  ;;  %v602_v15 = vld [vmem:[%s10408_s26 + $0x21b8] sm:$0xff]  ;;  %599 = vst [vmem:[%s10404_s23 + $0x508] sm:$0xff] %v598_v13  ;;  %v604_v16 = vld [vmem:[%s10408_s26 + $0x24c0] sm:$0xff] }
  0x9b   : >> { %601 = vst [vmem:[%s10404_s23 + $0x580] sm:$0xff] %v600_v14  ;;  %603 = vst [vmem:[%s10404_s23 + $0x588] sm:$0xff] %v602_v15  ;;  %v606_v17 = vld [vmem:[%s10408_s26 + $0x24c8] sm:$0xff]  ;;  %v608_v18 = vld [vmem:[%s10408_s26 + $0x27d0] sm:$0xff] }
  0x9c   : >> { %605 = vst [vmem:[%s10404_s23 + $0x600] sm:$0xff] %v604_v16  ;;  %607 = vst [vmem:[%s10404_s23 + $0x608] sm:$0xff] %v606_v17  ;;  %v610_v19 = vld [vmem:[%s10408_s26 + $0x27d8] sm:$0xff]  ;;  %v612_v20 = vld [vmem:[%s10408_s26 + $0x2ae0] sm:$0xff] }
  0x9d   : >> { %609 = vst [vmem:[%s10404_s23 + $0x680] sm:$0xff] %v608_v18  ;;  %v614_v21 = vld [vmem:[%s10408_s26 + $0x2ae8] sm:$0xff]  ;;  %611 = vst [vmem:[%s10404_s23 + $0x688] sm:$0xff] %v610_v19  ;;  %v616_v22 = vld [vmem:[%s10408_s26 + $0x2df0] sm:$0xff] }
  0x9e   : >> { %613 = vst [vmem:[%s10404_s23 + $0x700] sm:$0xff] %v612_v20  ;;  %615 = vst [vmem:[%s10404_s23 + $0x708] sm:$0xff] %v614_v21  ;;  %v618_v23 = vld [vmem:[%s10408_s26 + $0x2df8] sm:$0xff]  ;;  %v620_v24 = vld [vmem:[%s10408_s26 + $0x3100] sm:$0xff] }
  0x9f   : >> { %617 = vst [vmem:[%s10404_s23 + $0x780] sm:$0xff] %v616_v22  ;;  %619 = vst [vmem:[%s10404_s23 + $0x788] sm:$0xff] %v618_v23  ;;  %v622_v25 = vld [vmem:[%s10408_s26 + $0x3108] sm:$0xff]  ;;  %v624_v26 = vld [vmem:[%s10408_s26 + $0x3410] sm:$0xff] }
  0xa0   : >> { %621 = vst [vmem:[%s10404_s23 + $0x800] sm:$0xff] %v620_v24  ;;  %v626_v27 = vld [vmem:[%s10408_s26 + $0x3418] sm:$0xff]  ;;  %623 = vst [vmem:[%s10404_s23 + $0x808] sm:$0xff] %v622_v25  ;;  %v628_v28 = vld [vmem:[%s10408_s26 + $0x3720] sm:$0xff] }
  0xa1   : >> { %625 = vst [vmem:[%s10404_s23 + $0x880] sm:$0xff] %v624_v26  ;;  %627 = vst [vmem:[%s10404_s23 + $0x888] sm:$0xff] %v626_v27  ;;  %v630_v29 = vld [vmem:[%s10408_s26 + $0x3728] sm:$0xff]  ;;  %v632_v30 = vld [vmem:[%s10408_s26 + $0x3a30] sm:$0xff] }
  0xa2   : >> { %629 = vst [vmem:[%s10404_s23 + $0x900] sm:$0xff] %v628_v28  ;;  %631 = vst [vmem:[%s10404_s23 + $0x908] sm:$0xff] %v630_v29  ;;  %v634_v31 = vld [vmem:[%s10408_s26 + $0x3a38] sm:$0xff]  ;;  %v636_v32 = vld [vmem:[%s10408_s26 + $0x3d40] sm:$0xff] }
  0xa3   : >> { %633 = vst [vmem:[%s10404_s23 + $0x980] sm:$0xff] %v632_v30  ;;  %v638_v33 = vld [vmem:[%s10408_s26 + $0x3d48] sm:$0xff]  ;;  %635 = vst [vmem:[%s10404_s23 + $0x988] sm:$0xff] %v634_v31  ;;  %v640_v34 = vld [vmem:[%s10408_s26 + $0x4050] sm:$0xff] }
  0xa4   : >> { %637 = vst [vmem:[%s10404_s23 + $0xa00] sm:$0xff] %v636_v32  ;;  %639 = vst [vmem:[%s10404_s23 + $0xa08] sm:$0xff] %v638_v33  ;;  %v642_v35 = vld [vmem:[%s10408_s26 + $0x4058] sm:$0xff]  ;;  %v644_v36 = vld [vmem:[%s10408_s26 + $0x4360] sm:$0xff] }
  0xa5   : >> { %641 = vst [vmem:[%s10404_s23 + $0xa80] sm:$0xff] %v640_v34  ;;  %643 = vst [vmem:[%s10404_s23 + $0xa88] sm:$0xff] %v642_v35  ;;  %v646_v37 = vld [vmem:[%s10408_s26 + $0x4368] sm:$0xff]  ;;  %v648_v38 = vld [vmem:[%s10408_s26 + $0x4670] sm:$0xff] }
  0xa6   : >> { %645 = vst [vmem:[%s10404_s23 + $0xb00] sm:$0xff] %v644_v36  ;;  %v650_v39 = vld [vmem:[%s10408_s26 + $0x4678] sm:$0xff]  ;;  %647 = vst [vmem:[%s10404_s23 + $0xb08] sm:$0xff] %v646_v37  ;;  %v652_v40 = vld [vmem:[%s10408_s26 + $0x4980] sm:$0xff] }
  0xa7   : >> { %649 = vst [vmem:[%s10404_s23 + $0xb80] sm:$0xff] %v648_v38  ;;  %651 = vst [vmem:[%s10404_s23 + $0xb88] sm:$0xff] %v650_v39  ;;  %v654_v41 = vld [vmem:[%s10408_s26 + $0x4988] sm:$0xff]  ;;  %v656_v42 = vld [vmem:[%s10408_s26 + $0x4c90] sm:$0xff] }
  0xa8   : >> { %653 = vst [vmem:[%s10404_s23 + $0xc00] sm:$0xff] %v652_v40  ;;  %655 = vst [vmem:[%s10404_s23 + $0xc08] sm:$0xff] %v654_v41  ;;  %v658_v43 = vld [vmem:[%s10408_s26 + $0x4c98] sm:$0xff]  ;;  %v660_v44 = vld [vmem:[%s10408_s26 + $0x4fa0] sm:$0xff] }
  0xa9   : >> { %657 = vst [vmem:[%s10404_s23 + $0xc80] sm:$0xff] %v656_v42  ;;  %v662_v45 = vld [vmem:[%s10408_s26 + $0x4fa8] sm:$0xff]  ;;  %659 = vst [vmem:[%s10404_s23 + $0xc88] sm:$0xff] %v658_v43  ;;  %v664_v46 = vld [vmem:[%s10408_s26 + $0x52b0] sm:$0xff] }
  0xaa   : >> { %661 = vst [vmem:[%s10404_s23 + $0xd00] sm:$0xff] %v660_v44  ;;  %663 = vst [vmem:[%s10404_s23 + $0xd08] sm:$0xff] %v662_v45  ;;  %v666_v47 = vld [vmem:[%s10408_s26 + $0x52b8] sm:$0xff]  ;;  %v668_v48 = vld [vmem:[%s10408_s26 + $0x55c0] sm:$0xff] }
  0xab   : >> { %665 = vst [vmem:[%s10404_s23 + $0xd80] sm:$0xff] %v664_v46  ;;  %667 = vst [vmem:[%s10404_s23 + $0xd88] sm:$0xff] %v666_v47  ;;  %v670_v49 = vld [vmem:[%s10408_s26 + $0x55c8] sm:$0xff]  ;;  %v672_v50 = vld [vmem:[%s10408_s26 + $0x58d0] sm:$0xff] }
  0xac   : >> { %669 = vst [vmem:[%s10404_s23 + $0xe00] sm:$0xff] %v668_v48  ;;  %v674_v51 = vld [vmem:[%s10408_s26 + $0x58d8] sm:$0xff]  ;;  %671 = vst [vmem:[%s10404_s23 + $0xe08] sm:$0xff] %v670_v49  ;;  %v676_v52 = vld [vmem:[%s10408_s26 + $0x5be0] sm:$0xff] }
  0xad   : >> { %673 = vst [vmem:[%s10404_s23 + $0xe80] sm:$0xff] %v672_v50  ;;  %675 = vst [vmem:[%s10404_s23 + $0xe88] sm:$0xff] %v674_v51  ;;  %v678_v53 = vld [vmem:[%s10408_s26 + $0x5be8] sm:$0xff]  ;;  %v680_v54 = vld [vmem:[%s10408_s26 + $0x5ef0] sm:$0xff] }
  0xae   : >> { %677 = vst [vmem:[%s10404_s23 + $0xf00] sm:$0xff] %v676_v52  ;;  %679 = vst [vmem:[%s10404_s23 + $0xf08] sm:$0xff] %v678_v53  ;;  %v682_v55 = vld [vmem:[%s10408_s26 + $0x5ef8] sm:$0xff]  ;;  %v684_v56 = vld [vmem:[%s10408_s26 + $0x6200] sm:$0xff] }
  0xaf   : >> { %681 = vst [vmem:[%s10404_s23 + $0xf80] sm:$0xff] %v680_v54  ;;  %v686_v57 = vld [vmem:[%s10408_s26 + $0x6208] sm:$0xff]  ;;  %683 = vst [vmem:[%s10404_s23 + $0xf88] sm:$0xff] %v682_v55  ;;  %v688_v58 = vld [vmem:[%s10408_s26 + $0x6510] sm:$0xff] }
  0xb0   : >> { %685 = vst [vmem:[%s10404_s23 + $0x1000] sm:$0xff] %v684_v56  ;;  %687 = vst [vmem:[%s10404_s23 + $0x1008] sm:$0xff] %v686_v57  ;;  %v690_v59 = vld [vmem:[%s10408_s26 + $0x6518] sm:$0xff]  ;;  %v692_v60 = vld [vmem:[%s10408_s26 + $0x6820] sm:$0xff] }
  0xb1   : >> { %689 = vst [vmem:[%s10404_s23 + $0x1080] sm:$0xff] %v688_v58  ;;  %691 = vst [vmem:[%s10404_s23 + $0x1088] sm:$0xff] %v690_v59  ;;  %v694_v61 = vld [vmem:[%s10408_s26 + $0x6828] sm:$0xff]  ;;  %v696_v62 = vld [vmem:[%s10408_s26 + $0x6b30] sm:$0xff]  ;;  %552 = sbr.rel (!%p549_p7) target bundleno = 143 (0x8f), region = 260 }
  0xb2   : >> { %693 = vst [vmem:[%s10404_s23 + $0x1100] sm:$0xff] %v692_v60  ;;  %v698_v63 = vld [vmem:[%s10408_s26 + $0x6b38] sm:$0xff]  ;;  %695 = vst [vmem:[%s10404_s23 + $0x1108] sm:$0xff] %v694_v61  ;;  %v700_v0 = vld [vmem:[%s10408_s26 + $0x6e40] sm:$0xff] }
  0xb3   : >> { %697 = vst [vmem:[%s10404_s23 + $0x1180] sm:$0xff] %v696_v62  ;;  %699 = vst [vmem:[%s10404_s23 + $0x1188] sm:$0xff] %v698_v63  ;;  %v702_v1 = vld [vmem:[%s10408_s26 + $0x6e48] sm:$0xff]  ;;  %v704_v2 = vld [vmem:[%s10408_s26 + $0x7150] sm:$0xff] }
  0xb4   : >> { %701 = vst [vmem:[%s10404_s23 + $0x1200] sm:$0xff] %v700_v0  ;;  %703 = vst [vmem:[%s10404_s23 + $0x1208] sm:$0xff] %v702_v1  ;;  %v706_v3 = vld [vmem:[%s10408_s26 + $0x7158] sm:$0xff]  ;;  %v708_v4 = vld [vmem:[%s10408_s26 + $0x7460] sm:$0xff] }
  0xb5   : >> { %705 = vst [vmem:[%s10404_s23 + $0x1280] sm:$0xff] %v704_v2  ;;  %v710_v5 = vld [vmem:[%s10408_s26 + $0x7468] sm:$0xff]  ;;  %707 = vst [vmem:[%s10404_s23 + $0x1288] sm:$0xff] %v706_v3  ;;  %v712_v6 = vld [vmem:[%s10408_s26 + $0x7770] sm:$0xff] }
  0xb6   : >> { %709 = vst [vmem:[%s10404_s23 + $0x1300] sm:$0xff] %v708_v4  ;;  %711 = vst [vmem:[%s10404_s23 + $0x1308] sm:$0xff] %v710_v5  ;;  %v714_v7 = vld [vmem:[%s10408_s26 + $0x7778] sm:$0xff]  ;;  %s13509_s26 = smov %s11002_s10 }
  0xb7   : >> { %713 = vst [vmem:[%s10404_s23 + $0x1380] sm:$0xff] %v712_v6  ;;  %715 = vst [vmem:[%s10404_s23 + $0x1388] sm:$0xff] %v714_v7  ;;  %s13508_s23 = smov %s11005_s6 }
  0xb8 PF: > { %s11143_s7 = sand.u32 1, %s543_s21   ;;  %s9902_s11 = sshll.u32 %s10935_s25, 8 }
  0xb9   : > { %s727_s17 = sshra.s32 %s9902_s11, 4  ;;  %p8664_p8 = scmp.le.s32.totalorder %s11143_s7, 0 }
  0xba   : > { %s11147_s18 = scalar_lea.vmem %s10566_s28, %s727_s17   ;;  %s11150_s9 = scalar_lea.vmem %s10570_s4, %s727_s17 [#allocation2]  }
  0xbb   : > { %8554 = sbr.rel (%p8664_p8) target bundleno = 215 (0xd7), region = 265  ;;  %s13511_s23 = smov (!%p8664_p8), %s11150_s9 }
  0xbc   : > { %s13512_s26 = smov (!%p8664_p8), %s11147_s18  ;;  %s11159_s27 = smov (!%p8664_p8), 0  }
  0xbd   : > { %s11161_s29 = smov (!%p8664_p8), 0  }
  0xc2 LB: >> { %v743_v8 = vld [vmem:[%s10424_s26] sm:$0xff]  ;;  %v745_v9 = vld [vmem:[%s10424_s26 + $0x310] sm:$0xff]  ;;  %s823_s21 = sadd.s32 1, %s10428_s27  ;;  %s737_s29 = sadd.s32 1, %s10432_s29   ;;  %s10432_s29 = sphi %s11161_s29, %s737_s29   ;;  %s10428_s27 = sphi %s11159_s27, %s13515_s27   ;;  %s10424_s26 = sphi %s13512_s26, %s13514_s26   ;;  %s10420_s23 = sphi %s13511_s23, %s13513_s23  }
  0xc3   : >> { %v747_v10 = vld [vmem:[%s10424_s26 + $0x620] sm:$0xff]  ;;  %744 = vst [vmem:[%s10420_s23] sm:$0xff] %v743_v8  ;;  %746 = vst [vmem:[%s10420_s23 + $0x80] sm:$0xff] %v745_v9  ;;  %v749_v11 = vld [vmem:[%s10424_s26 + $0x930] sm:$0xff]  ;;  %p824_p9 = scmp.ge.s32.totalorder %s823_s21, %s11143_s7  ;;  %p736_p10 = scmp.ge.s32.totalorder %s737_s29, %s11143_s7 }
  0xc4   : >> { %748 = vst [vmem:[%s10420_s23 + $0x100] sm:$0xff] %v747_v10  ;;  %v751_v12 = vld [vmem:[%s10424_s26 + $0xc40] sm:$0xff]  ;;  %v753_v13 = vld [vmem:[%s10424_s26 + $0xf50] sm:$0xff]  ;;  %750 = vst [vmem:[%s10420_s23 + $0x180] sm:$0xff] %v749_v11 }
  0xc5   : >> { %752 = vst [vmem:[%s10420_s23 + $0x200] sm:$0xff] %v751_v12  ;;  %754 = vst [vmem:[%s10420_s23 + $0x280] sm:$0xff] %v753_v13  ;;  %v755_v14 = vld [vmem:[%s10424_s26 + $0x1260] sm:$0xff]  ;;  %v757_v15 = vld [vmem:[%s10424_s26 + $0x1570] sm:$0xff]  ;;  %s13627_s21 = smov (%p824_p9, %s823_s21), 0 }
  0xc6   : >> { %v759_v16 = vld [vmem:[%s10424_s26 + $0x1880] sm:$0xff]  ;;  %756 = vst [vmem:[%s10420_s23 + $0x300] sm:$0xff] %v755_v14  ;;  %758 = vst [vmem:[%s10420_s23 + $0x380] sm:$0xff] %v757_v15  ;;  %v761_v17 = vld [vmem:[%s10424_s26 + $0x1b90] sm:$0xff]  ;;  %s8665_s25 = sshll.u32 %s13627_s21, 3  ;;  %s13515_s27 = smov %s13627_s21 }
  0xc7   : >> { %760 = vst [vmem:[%s10420_s23 + $0x400] sm:$0xff] %v759_v16  ;;  %v763_v18 = vld [vmem:[%s10424_s26 + $0x1ea0] sm:$0xff]  ;;  %v765_v19 = vld [vmem:[%s10424_s26 + $0x21b0] sm:$0xff]  ;;  %762 = vst [vmem:[%s10420_s23 + $0x480] sm:$0xff] %v761_v17  ;;  %s11217_s8 = scalar_lea.vmem %s11147_s18, %s8665_s25   ;;  %s11220_s10 = scalar_lea.vmem %s11150_s9, %s8665_s25 [#allocation2]  }
  0xc8   : >> { %764 = vst [vmem:[%s10420_s23 + $0x500] sm:$0xff] %v763_v18  ;;  %766 = vst [vmem:[%s10420_s23 + $0x580] sm:$0xff] %v765_v19  ;;  %v767_v20 = vld [vmem:[%s10424_s26 + $0x24c0] sm:$0xff]  ;;  %v769_v21 = vld [vmem:[%s10424_s26 + $0x27d0] sm:$0xff] }
  0xc9   : >> { %v771_v22 = vld [vmem:[%s10424_s26 + $0x2ae0] sm:$0xff]  ;;  %768 = vst [vmem:[%s10420_s23 + $0x600] sm:$0xff] %v767_v20  ;;  %770 = vst [vmem:[%s10420_s23 + $0x680] sm:$0xff] %v769_v21  ;;  %v773_v23 = vld [vmem:[%s10424_s26 + $0x2df0] sm:$0xff] }
  0xca   : >> { %772 = vst [vmem:[%s10420_s23 + $0x700] sm:$0xff] %v771_v22  ;;  %v775_v24 = vld [vmem:[%s10424_s26 + $0x3100] sm:$0xff]  ;;  %v777_v25 = vld [vmem:[%s10424_s26 + $0x3410] sm:$0xff]  ;;  %774 = vst [vmem:[%s10420_s23 + $0x780] sm:$0xff] %v773_v23 }
  0xcb   : >> { %776 = vst [vmem:[%s10420_s23 + $0x800] sm:$0xff] %v775_v24  ;;  %778 = vst [vmem:[%s10420_s23 + $0x880] sm:$0xff] %v777_v25  ;;  %v779_v26 = vld [vmem:[%s10424_s26 + $0x3720] sm:$0xff]  ;;  %v781_v27 = vld [vmem:[%s10424_s26 + $0x3a30] sm:$0xff] }
  0xcc   : >> { %v783_v28 = vld [vmem:[%s10424_s26 + $0x3d40] sm:$0xff]  ;;  %780 = vst [vmem:[%s10420_s23 + $0x900] sm:$0xff] %v779_v26  ;;  %782 = vst [vmem:[%s10420_s23 + $0x980] sm:$0xff] %v781_v27  ;;  %v785_v29 = vld [vmem:[%s10424_s26 + $0x4050] sm:$0xff] }
  0xcd   : >> { %784 = vst [vmem:[%s10420_s23 + $0xa00] sm:$0xff] %v783_v28  ;;  %v787_v30 = vld [vmem:[%s10424_s26 + $0x4360] sm:$0xff]  ;;  %v789_v31 = vld [vmem:[%s10424_s26 + $0x4670] sm:$0xff]  ;;  %786 = vst [vmem:[%s10420_s23 + $0xa80] sm:$0xff] %v785_v29 }
  0xce   : >> { %788 = vst [vmem:[%s10420_s23 + $0xb00] sm:$0xff] %v787_v30  ;;  %790 = vst [vmem:[%s10420_s23 + $0xb80] sm:$0xff] %v789_v31  ;;  %v791_v32 = vld [vmem:[%s10424_s26 + $0x4980] sm:$0xff]  ;;  %v793_v33 = vld [vmem:[%s10424_s26 + $0x4c90] sm:$0xff] }
  0xcf   : >> { %v795_v34 = vld [vmem:[%s10424_s26 + $0x4fa0] sm:$0xff]  ;;  %792 = vst [vmem:[%s10420_s23 + $0xc00] sm:$0xff] %v791_v32  ;;  %794 = vst [vmem:[%s10420_s23 + $0xc80] sm:$0xff] %v793_v33  ;;  %v797_v35 = vld [vmem:[%s10424_s26 + $0x52b0] sm:$0xff] }
  0xd0   : >> { %796 = vst [vmem:[%s10420_s23 + $0xd00] sm:$0xff] %v795_v34  ;;  %v799_v36 = vld [vmem:[%s10424_s26 + $0x55c0] sm:$0xff]  ;;  %v801_v37 = vld [vmem:[%s10424_s26 + $0x58d0] sm:$0xff]  ;;  %798 = vst [vmem:[%s10420_s23 + $0xd80] sm:$0xff] %v797_v35  ;;  %739 = sbr.rel (!%p736_p10) target bundleno = 194 (0xc2), region = 271 }
  0xd1   : >> { %800 = vst [vmem:[%s10420_s23 + $0xe00] sm:$0xff] %v799_v36  ;;  %802 = vst [vmem:[%s10420_s23 + $0xe80] sm:$0xff] %v801_v37  ;;  %v803_v38 = vld [vmem:[%s10424_s26 + $0x5be0] sm:$0xff]  ;;  %v805_v39 = vld [vmem:[%s10424_s26 + $0x5ef0] sm:$0xff] }
  0xd2   : >> { %v807_v40 = vld [vmem:[%s10424_s26 + $0x6200] sm:$0xff]  ;;  %804 = vst [vmem:[%s10420_s23 + $0xf00] sm:$0xff] %v803_v38  ;;  %806 = vst [vmem:[%s10420_s23 + $0xf80] sm:$0xff] %v805_v39  ;;  %v809_v41 = vld [vmem:[%s10424_s26 + $0x6510] sm:$0xff] }
  0xd3   : >> { %808 = vst [vmem:[%s10420_s23 + $0x1000] sm:$0xff] %v807_v40  ;;  %v811_v42 = vld [vmem:[%s10424_s26 + $0x6820] sm:$0xff]  ;;  %v813_v43 = vld [vmem:[%s10424_s26 + $0x6b30] sm:$0xff]  ;;  %810 = vst [vmem:[%s10420_s23 + $0x1080] sm:$0xff] %v809_v41 }
  0xd4   : >> { %812 = vst [vmem:[%s10420_s23 + $0x1100] sm:$0xff] %v811_v42  ;;  %814 = vst [vmem:[%s10420_s23 + $0x1180] sm:$0xff] %v813_v43  ;;  %v815_v44 = vld [vmem:[%s10424_s26 + $0x6e40] sm:$0xff]  ;;  %v817_v45 = vld [vmem:[%s10424_s26 + $0x7150] sm:$0xff] }
  0xd5   : >> { %v819_v46 = vld [vmem:[%s10424_s26 + $0x7460] sm:$0xff]  ;;  %816 = vst [vmem:[%s10420_s23 + $0x1200] sm:$0xff] %v815_v44  ;;  %818 = vst [vmem:[%s10420_s23 + $0x1280] sm:$0xff] %v817_v45  ;;  %v821_v47 = vld [vmem:[%s10424_s26 + $0x7770] sm:$0xff]  ;;  %s13514_s26 = smov %s11217_s8 }
  0xd6   : >> { %820 = vst [vmem:[%s10420_s23 + $0x1300] sm:$0xff] %v819_v46  ;;  %822 = vst [vmem:[%s10420_s23 + $0x1380] sm:$0xff] %v821_v47  ;;  %s13513_s23 = smov %s11220_s10 }
  0xd7 PF: > { %s10498_s6 = smov 0  }
  0xd8   : > { %s11277_s11 = sshllo.u32 %s10498_s6, %s10574_s5 }
  0xd9   : > { %v839_v48 = vld [vmem:[%s10928_s22] sm:%s11277_s11]  ;;  %v841_v49 = vld [vmem:[%s10928_s22 + $0x310] sm:%s11277_s11] }
  0xda   : > { %840 = vst [vmem:[%s10931_s24] sm:%s11277_s11] %v839_v48  ;;  %842 = vst [vmem:[%s10931_s24 + $0x80] sm:%s11277_s11] %v841_v49 }
  0xdb   : > { %v843_v50 = vld [vmem:[%s10928_s22 + $0x620] sm:%s11277_s11]  ;;  %v845_v51 = vld [vmem:[%s10928_s22 + $0x930] sm:%s11277_s11] }
  0xdc   : > { %844 = vst [vmem:[%s10931_s24 + $0x100] sm:%s11277_s11] %v843_v50  ;;  %846 = vst [vmem:[%s10931_s24 + $0x180] sm:%s11277_s11] %v845_v51 }
  0xdd   : > { %v847_v52 = vld [vmem:[%s10928_s22 + $0xc40] sm:%s11277_s11]  ;;  %v849_v53 = vld [vmem:[%s10928_s22 + $0xf50] sm:%s11277_s11] }
  0xde   : > { %848 = vst [vmem:[%s10931_s24 + $0x200] sm:%s11277_s11] %v847_v52  ;;  %850 = vst [vmem:[%s10931_s24 + $0x280] sm:%s11277_s11] %v849_v53 }
  0xdf   : > { %v851_v54 = vld [vmem:[%s10928_s22 + $0x1260] sm:%s11277_s11]  ;;  %v853_v55 = vld [vmem:[%s10928_s22 + $0x1570] sm:%s11277_s11] }
  0xe0   : > { %852 = vst [vmem:[%s10931_s24 + $0x300] sm:%s11277_s11] %v851_v54  ;;  %854 = vst [vmem:[%s10931_s24 + $0x380] sm:%s11277_s11] %v853_v55 }
  0xe1   : > { %v855_v56 = vld [vmem:[%s10928_s22 + $0x1880] sm:%s11277_s11]  ;;  %v857_v57 = vld [vmem:[%s10928_s22 + $0x1b90] sm:%s11277_s11] }
  0xe2   : > { %856 = vst [vmem:[%s10931_s24 + $0x400] sm:%s11277_s11] %v855_v56  ;;  %858 = vst [vmem:[%s10931_s24 + $0x480] sm:%s11277_s11] %v857_v57 }
  0xe3   : > { %v859_v58 = vld [vmem:[%s10928_s22 + $0x1ea0] sm:%s11277_s11]  ;;  %v861_v59 = vld [vmem:[%s10928_s22 + $0x21b0] sm:%s11277_s11] }
  0xe4   : > { %860 = vst [vmem:[%s10931_s24 + $0x500] sm:%s11277_s11] %v859_v58  ;;  %862 = vst [vmem:[%s10931_s24 + $0x580] sm:%s11277_s11] %v861_v59 }
  0xe5   : > { %v863_v60 = vld [vmem:[%s10928_s22 + $0x24c0] sm:%s11277_s11]  ;;  %v865_v61 = vld [vmem:[%s10928_s22 + $0x27d0] sm:%s11277_s11] }
  0xe6   : > { %864 = vst [vmem:[%s10931_s24 + $0x600] sm:%s11277_s11] %v863_v60  ;;  %866 = vst [vmem:[%s10931_s24 + $0x680] sm:%s11277_s11] %v865_v61 }
  0xe7   : > { %v867_v62 = vld [vmem:[%s10928_s22 + $0x2ae0] sm:%s11277_s11]  ;;  %v869_v63 = vld [vmem:[%s10928_s22 + $0x2df0] sm:%s11277_s11] }
  0xe8   : > { %868 = vst [vmem:[%s10931_s24 + $0x700] sm:%s11277_s11] %v867_v62  ;;  %870 = vst [vmem:[%s10931_s24 + $0x780] sm:%s11277_s11] %v869_v63 }
  0xe9   : > { %v871_v0 = vld [vmem:[%s10928_s22 + $0x3100] sm:%s11277_s11]  ;;  %v873_v1 = vld [vmem:[%s10928_s22 + $0x3410] sm:%s11277_s11] }
  0xea   : > { %872 = vst [vmem:[%s10931_s24 + $0x800] sm:%s11277_s11] %v871_v0  ;;  %874 = vst [vmem:[%s10931_s24 + $0x880] sm:%s11277_s11] %v873_v1 }
  0xeb   : > { %v875_v2 = vld [vmem:[%s10928_s22 + $0x3720] sm:%s11277_s11]  ;;  %v877_v3 = vld [vmem:[%s10928_s22 + $0x3a30] sm:%s11277_s11] }
  0xec   : > { %876 = vst [vmem:[%s10931_s24 + $0x900] sm:%s11277_s11] %v875_v2  ;;  %878 = vst [vmem:[%s10931_s24 + $0x980] sm:%s11277_s11] %v877_v3 }
  0xed   : > { %v879_v4 = vld [vmem:[%s10928_s22 + $0x3d40] sm:%s11277_s11]  ;;  %v881_v5 = vld [vmem:[%s10928_s22 + $0x4050] sm:%s11277_s11] }
  0xee   : > { %880 = vst [vmem:[%s10931_s24 + $0xa00] sm:%s11277_s11] %v879_v4  ;;  %882 = vst [vmem:[%s10931_s24 + $0xa80] sm:%s11277_s11] %v881_v5 }
  0xef   : > { %v883_v6 = vld [vmem:[%s10928_s22 + $0x4360] sm:%s11277_s11]  ;;  %v885_v7 = vld [vmem:[%s10928_s22 + $0x4670] sm:%s11277_s11] }
  0xf0   : > { %884 = vst [vmem:[%s10931_s24 + $0xb00] sm:%s11277_s11] %v883_v6  ;;  %886 = vst [vmem:[%s10931_s24 + $0xb80] sm:%s11277_s11] %v885_v7 }
  0xf1   : > { %v887_v8 = vld [vmem:[%s10928_s22 + $0x4980] sm:%s11277_s11]  ;;  %v889_v9 = vld [vmem:[%s10928_s22 + $0x4c90] sm:%s11277_s11] }
  0xf2   : > { %888 = vst [vmem:[%s10931_s24 + $0xc00] sm:%s11277_s11] %v887_v8  ;;  %890 = vst [vmem:[%s10931_s24 + $0xc80] sm:%s11277_s11] %v889_v9 }
  0xf3   : > { %v891_v10 = vld [vmem:[%s10928_s22 + $0x4fa0] sm:%s11277_s11]  ;;  %v893_v11 = vld [vmem:[%s10928_s22 + $0x52b0] sm:%s11277_s11] }
  0xf4   : > { %892 = vst [vmem:[%s10931_s24 + $0xd00] sm:%s11277_s11] %v891_v10  ;;  %894 = vst [vmem:[%s10931_s24 + $0xd80] sm:%s11277_s11] %v893_v11 }
  0xf5   : > { %v895_v12 = vld [vmem:[%s10928_s22 + $0x55c0] sm:%s11277_s11]  ;;  %v897_v13 = vld [vmem:[%s10928_s22 + $0x58d0] sm:%s11277_s11] }
  0xf6   : > { %896 = vst [vmem:[%s10931_s24 + $0xe00] sm:%s11277_s11] %v895_v12  ;;  %898 = vst [vmem:[%s10931_s24 + $0xe80] sm:%s11277_s11] %v897_v13 }
  0xf7   : > { %v899_v14 = vld [vmem:[%s10928_s22 + $0x5be0] sm:%s11277_s11]  ;;  %v901_v15 = vld [vmem:[%s10928_s22 + $0x5ef0] sm:%s11277_s11] }
  0xf8   : > { %900 = vst [vmem:[%s10931_s24 + $0xf00] sm:%s11277_s11] %v899_v14  ;;  %902 = vst [vmem:[%s10931_s24 + $0xf80] sm:%s11277_s11] %v901_v15 }
  0xf9   : > { %v903_v16 = vld [vmem:[%s10928_s22 + $0x6200] sm:%s11277_s11]  ;;  %v905_v17 = vld [vmem:[%s10928_s22 + $0x6510] sm:%s11277_s11] }
  0xfa   : > { %904 = vst [vmem:[%s10931_s24 + $0x1000] sm:%s11277_s11] %v903_v16  ;;  %906 = vst [vmem:[%s10931_s24 + $0x1080] sm:%s11277_s11] %v905_v17 }
  0xfb   : > { %v907_v18 = vld [vmem:[%s10928_s22 + $0x6820] sm:%s11277_s11]  ;;  %v909_v19 = vld [vmem:[%s10928_s22 + $0x6b30] sm:%s11277_s11] }
  0xfc   : > { %908 = vst [vmem:[%s10931_s24 + $0x1100] sm:%s11277_s11] %v907_v18  ;;  %910 = vst [vmem:[%s10931_s24 + $0x1180] sm:%s11277_s11] %v909_v19 }
  0xfd   : > { %v911_v20 = vld [vmem:[%s10928_s22 + $0x6e40] sm:%s11277_s11]  ;;  %v913_v21 = vld [vmem:[%s10928_s22 + $0x7150] sm:%s11277_s11] }
  0xfe   : > { %912 = vst [vmem:[%s10931_s24 + $0x1200] sm:%s11277_s11] %v911_v20  ;;  %914 = vst [vmem:[%s10931_s24 + $0x1280] sm:%s11277_s11] %v913_v21 }
  0xff   : > { %v915_v22 = vld [vmem:[%s10928_s22 + $0x7460] sm:%s11277_s11]  ;;  %v917_v23 = vld [vmem:[%s10928_s22 + $0x7770] sm:%s11277_s11] }
 0x100   : > { %916 = vst [vmem:[%s10931_s24 + $0x1300] sm:%s11277_s11] %v915_v22  ;;  %918 = vst [vmem:[%s10931_s24 + $0x1380] sm:%s11277_s11] %v917_v23 }
 0x101 PF: > { %p8667_p11 = scmp.ge.u32.totalorder %s10568_s30, 8 }
 0x102   : > { %s10499_s5 = smov (!%p8667_p11), 0  }
 0x103   : > { %153 = sbr.rel (%p8667_p11) target bundleno = 300 (0x12c), region = 40  ;;  %s11441_s22 = sshllo.u32 (!%p8667_p11), %s10499_s5, %s10568_s30 }
 0x104   : > { %v163_v24 = vld [vmem:[%s10566_s28] sm:%s11441_s22] (!%p8667_p11)  ;;  %v165_v25 = vld [vmem:[%s10566_s28 + $0x310] sm:%s11441_s22] (!%p8667_p11) }
 0x105   : > { %164 = vst [vmem:[%s10570_s4] sm:%s11441_s22] (!%p8667_p11), %v163_v24  ;;  %166 = vst [vmem:[%s10570_s4 + $0x80] sm:%s11441_s22] (!%p8667_p11), %v165_v25 }
 0x106   : > { %v167_v26 = vld [vmem:[%s10566_s28 + $0x620] sm:%s11441_s22] (!%p8667_p11)  ;;  %v169_v27 = vld [vmem:[%s10566_s28 + $0x930] sm:%s11441_s22] (!%p8667_p11) }
 0x107   : > { %168 = vst [vmem:[%s10570_s4 + $0x100] sm:%s11441_s22] (!%p8667_p11), %v167_v26  ;;  %170 = vst [vmem:[%s10570_s4 + $0x180] sm:%s11441_s22] (!%p8667_p11), %v169_v27 }
 0x108   : > { %v171_v28 = vld [vmem:[%s10566_s28 + $0xc40] sm:%s11441_s22] (!%p8667_p11)  ;;  %v173_v29 = vld [vmem:[%s10566_s28 + $0xf50] sm:%s11441_s22] (!%p8667_p11) }
 0x109   : > { %172 = vst [vmem:[%s10570_s4 + $0x200] sm:%s11441_s22] (!%p8667_p11), %v171_v28  ;;  %174 = vst [vmem:[%s10570_s4 + $0x280] sm:%s11441_s22] (!%p8667_p11), %v173_v29 }
 0x10a   : > { %v175_v30 = vld [vmem:[%s10566_s28 + $0x1260] sm:%s11441_s22]  ;;  %v177_v31 = vld [vmem:[%s10566_s28 + $0x1570] sm:%s11441_s22] }
 0x10b   : > { %176 = vst [vmem:[%s10570_s4 + $0x300] sm:%s11441_s22] %v175_v30  ;;  %178 = vst [vmem:[%s10570_s4 + $0x380] sm:%s11441_s22] %v177_v31 }
 0x10c   : > { %v179_v32 = vld [vmem:[%s10566_s28 + $0x1880] sm:%s11441_s22]  ;;  %v181_v33 = vld [vmem:[%s10566_s28 + $0x1b90] sm:%s11441_s22] }
 0x10d   : > { %180 = vst [vmem:[%s10570_s4 + $0x400] sm:%s11441_s22] %v179_v32  ;;  %182 = vst [vmem:[%s10570_s4 + $0x480] sm:%s11441_s22] %v181_v33 }
 0x10e   : > { %v183_v34 = vld [vmem:[%s10566_s28 + $0x1ea0] sm:%s11441_s22]  ;;  %v185_v35 = vld [vmem:[%s10566_s28 + $0x21b0] sm:%s11441_s22] }
 0x10f   : > { %184 = vst [vmem:[%s10570_s4 + $0x500] sm:%s11441_s22] %v183_v34  ;;  %186 = vst [vmem:[%s10570_s4 + $0x580] sm:%s11441_s22] %v185_v35 }
 0x110   : > { %v187_v36 = vld [vmem:[%s10566_s28 + $0x24c0] sm:%s11441_s22]  ;;  %v189_v37 = vld [vmem:[%s10566_s28 + $0x27d0] sm:%s11441_s22] }
 0x111   : > { %188 = vst [vmem:[%s10570_s4 + $0x600] sm:%s11441_s22] %v187_v36  ;;  %190 = vst [vmem:[%s10570_s4 + $0x680] sm:%s11441_s22] %v189_v37 }
 0x112   : > { %v191_v38 = vld [vmem:[%s10566_s28 + $0x2ae0] sm:%s11441_s22]  ;;  %v193_v39 = vld [vmem:[%s10566_s28 + $0x2df0] sm:%s11441_s22] }
 0x113   : > { %192 = vst [vmem:[%s10570_s4 + $0x700] sm:%s11441_s22] %v191_v38  ;;  %194 = vst [vmem:[%s10570_s4 + $0x780] sm:%s11441_s22] %v193_v39 }
 0x114   : > { %v195_v40 = vld [vmem:[%s10566_s28 + $0x3100] sm:%s11441_s22]  ;;  %v197_v41 = vld [vmem:[%s10566_s28 + $0x3410] sm:%s11441_s22] }
 0x115   : > { %196 = vst [vmem:[%s10570_s4 + $0x800] sm:%s11441_s22] %v195_v40  ;;  %198 = vst [vmem:[%s10570_s4 + $0x880] sm:%s11441_s22] %v197_v41 }
 0x116   : > { %v199_v42 = vld [vmem:[%s10566_s28 + $0x3720] sm:%s11441_s22]  ;;  %v201_v43 = vld [vmem:[%s10566_s28 + $0x3a30] sm:%s11441_s22] }
 0x117   : > { %200 = vst [vmem:[%s10570_s4 + $0x900] sm:%s11441_s22] %v199_v42  ;;  %202 = vst [vmem:[%s10570_s4 + $0x980] sm:%s11441_s22] %v201_v43 }
 0x118   : > { %v203_v44 = vld [vmem:[%s10566_s28 + $0x3d40] sm:%s11441_s22]  ;;  %v205_v45 = vld [vmem:[%s10566_s28 + $0x4050] sm:%s11441_s22] }
 0x119   : > { %204 = vst [vmem:[%s10570_s4 + $0xa00] sm:%s11441_s22] %v203_v44  ;;  %206 = vst [vmem:[%s10570_s4 + $0xa80] sm:%s11441_s22] %v205_v45 }
 0x11a   : > { %v207_v46 = vld [vmem:[%s10566_s28 + $0x4360] sm:%s11441_s22]  ;;  %v209_v47 = vld [vmem:[%s10566_s28 + $0x4670] sm:%s11441_s22] }
 0x11b   : > { %208 = vst [vmem:[%s10570_s4 + $0xb00] sm:%s11441_s22] %v207_v46  ;;  %210 = vst [vmem:[%s10570_s4 + $0xb80] sm:%s11441_s22] %v209_v47 }
 0x11c   : > { %v211_v48 = vld [vmem:[%s10566_s28 + $0x4980] sm:%s11441_s22]  ;;  %v213_v49 = vld [vmem:[%s10566_s28 + $0x4c90] sm:%s11441_s22] }
 0x11d   : > { %212 = vst [vmem:[%s10570_s4 + $0xc00] sm:%s11441_s22] %v211_v48  ;;  %214 = vst [vmem:[%s10570_s4 + $0xc80] sm:%s11441_s22] %v213_v49 }
 0x11e   : > { %v215_v50 = vld [vmem:[%s10566_s28 + $0x4fa0] sm:%s11441_s22]  ;;  %v217_v51 = vld [vmem:[%s10566_s28 + $0x52b0] sm:%s11441_s22] }
 0x11f   : > { %216 = vst [vmem:[%s10570_s4 + $0xd00] sm:%s11441_s22] %v215_v50  ;;  %218 = vst [vmem:[%s10570_s4 + $0xd80] sm:%s11441_s22] %v217_v51 }
 0x120   : > { %v219_v52 = vld [vmem:[%s10566_s28 + $0x55c0] sm:%s11441_s22]  ;;  %v221_v53 = vld [vmem:[%s10566_s28 + $0x58d0] sm:%s11441_s22] }
 0x121   : > { %220 = vst [vmem:[%s10570_s4 + $0xe00] sm:%s11441_s22] %v219_v52  ;;  %222 = vst [vmem:[%s10570_s4 + $0xe80] sm:%s11441_s22] %v221_v53 }
 0x122   : > { %v223_v54 = vld [vmem:[%s10566_s28 + $0x5be0] sm:%s11441_s22]  ;;  %v225_v55 = vld [vmem:[%s10566_s28 + $0x5ef0] sm:%s11441_s22] }
 0x123   : > { %224 = vst [vmem:[%s10570_s4 + $0xf00] sm:%s11441_s22] %v223_v54  ;;  %226 = vst [vmem:[%s10570_s4 + $0xf80] sm:%s11441_s22] %v225_v55 }
 0x124   : > { %v227_v56 = vld [vmem:[%s10566_s28 + $0x6200] sm:%s11441_s22]  ;;  %v229_v57 = vld [vmem:[%s10566_s28 + $0x6510] sm:%s11441_s22] }
 0x125   : > { %228 = vst [vmem:[%s10570_s4 + $0x1000] sm:%s11441_s22] %v227_v56  ;;  %230 = vst [vmem:[%s10570_s4 + $0x1080] sm:%s11441_s22] %v229_v57 }
 0x126   : > { %v231_v58 = vld [vmem:[%s10566_s28 + $0x6820] sm:%s11441_s22]  ;;  %v233_v59 = vld [vmem:[%s10566_s28 + $0x6b30] sm:%s11441_s22] }
 0x127   : > { %232 = vst [vmem:[%s10570_s4 + $0x1100] sm:%s11441_s22] %v231_v58  ;;  %234 = vst [vmem:[%s10570_s4 + $0x1180] sm:%s11441_s22] %v233_v59 }
 0x128   : > { %v235_v60 = vld [vmem:[%s10566_s28 + $0x6e40] sm:%s11441_s22]  ;;  %v237_v61 = vld [vmem:[%s10566_s28 + $0x7150] sm:%s11441_s22] }
 0x129   : > { %236 = vst [vmem:[%s10570_s4 + $0x1200] sm:%s11441_s22] %v235_v60  ;;  %238 = vst [vmem:[%s10570_s4 + $0x1280] sm:%s11441_s22] %v237_v61 }
 0x12a   : > { %v239_v62 = vld [vmem:[%s10566_s28 + $0x7460] sm:%s11441_s22]  ;;  %v241_v63 = vld [vmem:[%s10566_s28 + $0x7770] sm:%s11441_s22] }
 0x12b   : > { %240 = vst [vmem:[%s10570_s4 + $0x1300] sm:%s11441_s22] %v239_v62  ;;  %242 = vst [vmem:[%s10570_s4 + $0x1380] sm:%s11441_s22] %v241_v63 }
 0x12c PF: > { %p8668_p12 = scmp.ge.s32.totalorder %s10368_s14, 1  ;;  %p921_p13 = scmp.lt.s32.totalorder %s10368_s14, 8 }
 0x12e   : > { %p922_p0 = pnand %p8668_p12, %p921_p13 }
 0x130   : > { %925 = sbr.rel (%p922_p0) target bundleno = 1346 (0x542), region = 94 }
 0x137   : > { %s928_s30 = sand.u32 1, %s10360_s12   ;;  %v13468_v0 = vmov 0   ;;  %vm1894_vm0 = vcmask 1044480   ;;  %vm1895_vm1 = vcmask 1045504   ;;  %v10501_v29 = vmov 65535   ;;  %s9871_s12 = sshll.u32 (%p10555_p5), %s10540_s15, 5 }
 0x138   : > { %s9926_s24 = smul.u32 5120, %s928_s30  ;;  %2026 = vmatprep.mubr.bf16.mxu0 %v13468_v0  ;;  %2067 = vmatprep.mubr.bf16.mxu1 %v13468_v0  ;;  %v1896_v30 = vsel %vm1894_vm0, 4294967295, %v10501_v29  ;;  %v11650_v58 = vld [vmem:[%s13462_s1] sm:$0x7]  ;;  %vm1890_vm2 = vcmask 613376   ;;  %s8669_s8 = sshll.u32 %s928_s30, 7 }
 0x139   : > { %10213 = vset.pattern.permute.xlu0 %v13468_v0  ;;  %v11633_v38 = vsel %vm1895_vm1, %v1896_v30, 0  ;;  %s12965_s10 = scalar_lea.vmem [#allocation3], %s8669_s8   ;;  %s9920_s6 = sshll.u32 (%p10555_p5), %s10540_s15, 7 }
 0x13a   : > { %s11611_s28 = scalar_lea.vmem [#allocation2], %s9926_s24  ;;  %s8011_s11 = ssub.s32 (%p10555_p5), 196, %s9871_s12 }
 0x13b   : > { %v962_v1 = vld [vmem:[%s11611_s28] sm:$0xff]  ;;  %v963_v3 = vld [vmem:[%s11611_s28 + $0x8] sm:$0xff]  ;;  %v964_v46 = vld [vmem:[%s11611_s28 + $0x10] sm:$0xff]  ;;  %s13046_s30 = scalar_lea.vmem (%p10555_p5), %s13464_s3, %s9920_s6   ;;  %p8012_p1 = scmp.lt.s32.totalorder (%p10555_p5), %s8011_s11, 32 }
 0x13c   : > { %v978_v2 = vld [vmem:[%s11611_s28 + $0x80] sm:$0xff]  ;;  %v979_v5 = vld [vmem:[%s11611_s28 + $0x88] sm:$0xff]  ;;  %v980_v47 = vld [vmem:[%s11611_s28 + $0x90] sm:$0xff] }
 0x13d   : > { %v8671_v4 = vcombine.high %v962_v1, %v978_v2  ;;  %v8670_v6 = vcombine.low %v962_v1, %v978_v2  ;;  %v994_v7 = vld [vmem:[%s11611_s28 + $0x100] sm:$0xff]  ;;  %v8673_v9 = vcombine.high %v963_v3, %v979_v5  ;;  %v8672_v10 = vcombine.low %v963_v3, %v979_v5  ;;  %v995_v12 = vld [vmem:[%s11611_s28 + $0x108] sm:$0xff]  ;;  %v965_v48 = vld [vmem:[%s11611_s28 + $0x18] sm:$0xff] }
 0x13e   : > { %v1010_v8 = vld [vmem:[%s11611_s28 + $0x180] sm:$0xff]  ;;  %v1011_v13 = vld [vmem:[%s11611_s28 + $0x188] sm:$0xff]  ;;  %v981_v49 = vld [vmem:[%s11611_s28 + $0x98] sm:$0xff]  ;;  %v8675_v52 = vcombine.high %v964_v46, %v980_v47  ;;  %v8674_v59 = vcombine.low %v964_v46, %v980_v47 }
 0x13f   : > { %v8703_v11 = vcombine.high %v994_v7, %v1010_v8  ;;  %v1026_v14 = vld [vmem:[%s11611_s28 + $0x200] sm:$0xff]  ;;  %1994 = vmatprep.subr.bf16.mxu0 %v8671_v4  ;;  %v8705_v15 = vcombine.high %v995_v12, %v1011_v13  ;;  %v1027_v17 = vld [vmem:[%s11611_s28 + $0x208] sm:$0xff]  ;;  %2035 = vmatprep.subr.bf16.mxu1 %v8673_v9  ;;  %v8702_v19 = vcombine.low %v994_v7, %v1010_v8  ;;  %v996_v54 = vld [vmem:[%s11611_s28 + $0x110] sm:$0xff] }
 0x140   : > { %v1042_v16 = vld [vmem:[%s11611_s28 + $0x280] sm:$0xff]  ;;  %v1043_v18 = vld [vmem:[%s11611_s28 + $0x288] sm:$0xff]  ;;  %1995 = vmatpush1.bf16.msra.mxu0 %v8670_v6  ;;  %2036 = vmatpush1.bf16.msra.mxu1 %v8672_v10  ;;  %v8704_v20 = vcombine.low %v995_v12, %v1011_v13  ;;  %v8677_v53 = vcombine.high %v965_v48, %v981_v49  ;;  %v1012_v55 = vld [vmem:[%s11611_s28 + $0x190] sm:$0xff]  ;;  %v8676_v60 = vcombine.low %v965_v48, %v981_v49 }
 0x141   : > { %1996 = vmatprep.subr.bf16.mxu0 %v8703_v11  ;;  %v8735_v21 = vcombine.high %v1026_v14, %v1042_v16  ;;  %v1058_v22 = vld [vmem:[%s11611_s28 + $0x300] sm:$0xff]  ;;  %2037 = vmatprep.subr.bf16.mxu1 %v8705_v15  ;;  %v8737_v24 = vcombine.high %v1027_v17, %v1043_v18  ;;  %v1059_v25 = vld [vmem:[%s11611_s28 + $0x308] sm:$0xff]  ;;  %v8734_v33 = vcombine.low %v1026_v14, %v1042_v16  ;;  %v997_v56 = vld [vmem:[%s11611_s28 + $0x118] sm:$0xff] }
 0x142   : > { %v1074_v23 = vld [vmem:[%s11611_s28 + $0x380] sm:$0xff]  ;;  %v1075_v28 = vld [vmem:[%s11611_s28 + $0x388] sm:$0xff]  ;;  %v8736_v34 = vcombine.low %v1027_v17, %v1043_v18  ;;  %v1013_v57 = vld [vmem:[%s11611_s28 + $0x198] sm:$0xff]  ;;  %v8707_v61 = vcombine.high %v996_v54, %v1012_v55  ;;  %v8706_v4 = vcombine.low %v996_v54, %v1012_v55 }
 0x143   : > { %v1090_v26 = vld [vmem:[%s11611_s28 + $0x400] sm:$0xff]  ;;  %v1091_v31 = vld [vmem:[%s11611_s28 + $0x408] sm:$0xff]  ;;  %v8767_v35 = vcombine.high %v1058_v22, %v1074_v23  ;;  %v8769_v37 = vcombine.high %v1059_v25, %v1075_v28  ;;  %v8766_v40 = vcombine.low %v1058_v22, %v1074_v23  ;;  %v8768_v42 = vcombine.low %v1059_v25, %v1075_v28  ;;  %v1028_v63 = vld [vmem:[%s11611_s28 + $0x210] sm:$0xff] }
 0x144   : > { %v1106_v27 = vld [vmem:[%s11611_s28 + $0x480] sm:$0x33]  ;;  %v1107_v32 = vld [vmem:[%s11611_s28 + $0x488] sm:$0x33]  ;;  %1997 = vmatpush1.bf16.msra.mxu0 %v8702_v19  ;;  %2038 = vmatpush1.bf16.msra.mxu1 %v8704_v20  ;;  %v8709_v62 = vcombine.high %v997_v56, %v1013_v57  ;;  %v1044_v1 = vld [vmem:[%s11611_s28 + $0x290] sm:$0xff]  ;;  %v8708_v5 = vcombine.low %v997_v56, %v1013_v57 }
 0x145   : > { %1998 = vmatprep.subr.bf16.mxu0 %v8735_v21  ;;  %v8799_v36 = vcombine.high %v1090_v26, %v1106_v27  ;;  %2039 = vmatprep.subr.bf16.mxu1 %v8737_v24  ;;  %v8801_v39 = vcombine.high %v1091_v31, %v1107_v32  ;;  %v8798_v41 = vcombine.low %v1090_v26, %v1106_v27  ;;  %v1029_v2 = vld [vmem:[%s11611_s28 + $0x218] sm:$0xff]  ;;  %v1060_v7 = vld [vmem:[%s11611_s28 + $0x310] sm:$0xff]  ;;  %v966_v28 = vld [vmem:[%s11611_s28 + $0x20] sm:$0xff] }
 0x146   : > { %v8800_v44 = vcombine.low %v1091_v31, %v1107_v32  ;;  %v1045_v3 = vld [vmem:[%s11611_s28 + $0x298] sm:$0xff]  ;;  %v8739_v6 = vcombine.high %v1028_v63, %v1044_v1  ;;  %v1076_v8 = vld [vmem:[%s11611_s28 + $0x390] sm:$0xff]  ;;  %v8738_v16 = vcombine.low %v1028_v63, %v1044_v1  ;;  %v982_v29 = vld [vmem:[%s11611_s28 + $0xa0] sm:$0xff] }
 0x147   : > { %v1902_v43 = vand.u32 %v8799_v36, %v11633_v38  ;;  %v1908_v45 = vand.u32 %v8801_v39, %v11633_v38  ;;  %v1899_v50 = vand.u32 %v8798_v41, %v11633_v38  ;;  %v8741_v9 = vcombine.high %v1029_v2, %v1045_v3  ;;  %v1061_v10 = vld [vmem:[%s11611_s28 + $0x318] sm:$0xff]  ;;  %v1092_v11 = vld [vmem:[%s11611_s28 + $0x410] sm:$0xff]  ;;  %v967_v30 = vld [vmem:[%s11611_s28 + $0x28] sm:$0xff] }
 0x148   : > { %1999 = vmatpush1.bf16.msra.mxu0 %v8734_v33  ;;  %2040 = vmatpush1.bf16.msra.mxu1 %v8736_v34  ;;  %v1905_v51 = vand.u32 %v8800_v44, %v11633_v38  ;;  %v1108_v12 = vld [vmem:[%s11611_s28 + $0x490] sm:$0x33]  ;;  %v1077_v13 = vld [vmem:[%s11611_s28 + $0x398] sm:$0xff]  ;;  %v8740_v17 = vcombine.low %v1029_v2, %v1045_v3  ;;  %v8771_v18 = vcombine.high %v1060_v7, %v1076_v8  ;;  %v983_v31 = vld [vmem:[%s11611_s28 + $0xa8] sm:$0xff] }
 0x149   : > { %2000 = vmatprep.subr.bf16.mxu0 %v8767_v35  ;;  %2041 = vmatprep.subr.bf16.mxu1 %v8769_v37  ;;  %v1093_v14 = vld [vmem:[%s11611_s28 + $0x418] sm:$0xff]  ;;  %v8803_v19 = vcombine.high %v1092_v11, %v1108_v12  ;;  %v8773_v20 = vcombine.high %v1061_v10, %v1077_v13  ;;  %v8770_v22 = vcombine.low %v1060_v7, %v1076_v8  ;;  %v998_v36 = vld [vmem:[%s11611_s28 + $0x120] sm:$0xff]  ;;  %v999_v39 = vld [vmem:[%s11611_s28 + $0x128] sm:$0xff] }
 0x14a   : > { %v1109_v15 = vld [vmem:[%s11611_s28 + $0x498] sm:$0x33]  ;;  %v8802_v23 = vcombine.low %v1092_v11, %v1108_v12  ;;  %v8772_v24 = vcombine.low %v1061_v10, %v1077_v13  ;;  %v8679_v34 = vcombine.high %v966_v28, %v982_v29  ;;  %v8681_v35 = vcombine.high %v967_v30, %v983_v31  ;;  %v1014_v37 = vld [vmem:[%s11611_s28 + $0x1a0] sm:$0xff]  ;;  %v1031_v47 = vld [vmem:[%s11611_s28 + $0x228] sm:$0xff] }
 0x14b   : > { %v8805_v21 = vcombine.high %v1093_v14, %v1109_v15  ;;  %v1914_v25 = vand.u32 %v8803_v19, %v11633_v38  ;;  %v8804_v26 = vcombine.low %v1093_v14, %v1109_v15  ;;  %v8678_v41 = vcombine.low %v966_v28, %v982_v29  ;;  %v1046_v46 = vld [vmem:[%s11611_s28 + $0x2a0] sm:$0xff]  ;;  %v1047_v48 = vld [vmem:[%s11611_s28 + $0x2a8] sm:$0xff]  ;;  %v968_v11 = vld [vmem:[%s11611_s28 + $0x30] sm:$0xff] }
 0x14c   : > { %2001 = vmatpush1.bf16.msra.mxu0 %v8766_v40  ;;  %2042 = vmatpush1.bf16.msra.mxu1 %v8768_v42  ;;  %v1911_v32 = vand.u32 %v8802_v23, %v11633_v38  ;;  %v1015_v40 = vld [vmem:[%s11611_s28 + $0x1a8] sm:$0xff]  ;;  %v8680_v42 = vcombine.low %v967_v30, %v983_v31  ;;  %v8710_v49 = vcombine.low %v998_v36, %v1014_v37  ;;  %v1094_v56 = vld [vmem:[%s11611_s28 + $0x420] sm:$0xff]  ;;  %v984_v12 = vld [vmem:[%s11611_s28 + $0xb0] sm:$0xff] }
 0x14d   : > { %2002 = vmatprep.subr.bf16.mxu0 %v1902_v43  ;;  %2043 = vmatprep.subr.bf16.mxu1 %v1908_v45  ;;  %v1920_v27 = vand.u32 %v8805_v21, %v11633_v38  ;;  %v1917_v33 = vand.u32 %v8804_v26, %v11633_v38  ;;  %v8711_v43 = vcombine.high %v998_v36, %v1014_v37  ;;  %v1030_v45 = vld [vmem:[%s11611_s28 + $0x220] sm:$0xff]  ;;  %v1063_v55 = vld [vmem:[%s11611_s28 + $0x328] sm:$0xff]  ;;  %v969_v13 = vld [vmem:[%s11611_s28 + $0x38] sm:$0xff] }
 0x14e   : > { %v8713_v44 = vcombine.high %v999_v39, %v1015_v40  ;;  %v8745_v54 = vcombine.high %v1031_v47, %v1047_v48  ;;  %v1110_v57 = vld [vmem:[%s11611_s28 + $0x4a0] sm:$0x33]  ;;  %v8744_v63 = vcombine.low %v1031_v47, %v1047_v48  ;;  %v985_v14 = vld [vmem:[%s11611_s28 + $0xb8] sm:$0xff]  ;;  %v1000_v19 = vld [vmem:[%s11611_s28 + $0x130] sm:$0xff]  ;;  %v8682_v23 = vcombine.low %v968_v11, %v984_v12 }
 0x14f   : > { %v8807_v2 = vcombine.high %v1094_v56, %v1110_v57  ;;  %v1001_v21 = vld [vmem:[%s11611_s28 + $0x138] sm:$0xff]  ;;  %v1048_v28 = vld [vmem:[%s11611_s28 + $0x2b0] sm:$0xff] }
 0x150   : > { %2003 = vmatpush1.bf16.msra.mxu0 %v1899_v50  ;;  %2044 = vmatpush1.bf16.msra.mxu1 %v1905_v51  ;;  %v8712_v50 = vcombine.low %v999_v39, %v1015_v40  ;;  %v8743_v51 = vcombine.high %v1030_v45, %v1046_v46  ;;  %v1033_v29 = vld [vmem:[%s11611_s28 + $0x238] sm:$0xff]  ;;  %v1096_v39 = vld [vmem:[%s11611_s28 + $0x430] sm:$0xff] }
 0x151   : > { %2076 = vmatprep.subr.bf16.mxu0 %v8675_v52  ;;  %2117 = vmatprep.subr.bf16.mxu1 %v8677_v53  ;;  %v1062_v52 = vld [vmem:[%s11611_s28 + $0x320] sm:$0xff]  ;;  %v1926_v8 = vand.u32 %v8807_v2, %v11633_v38  ;;  %v1049_v30 = vld [vmem:[%s11611_s28 + $0x2b8] sm:$0xff]  ;;  %v1112_v40 = vld [vmem:[%s11611_s28 + $0x4b0] sm:$0x33] }
 0x152   : > { %v1078_v53 = vld [vmem:[%s11611_s28 + $0x3a0] sm:$0xff]  ;;  %v8749_v36 = vcombine.high %v1033_v29, %v1049_v30  ;;  %v1065_v37 = vld [vmem:[%s11611_s28 + $0x338] sm:$0xff]  ;;  %v8811_v47 = vcombine.high %v1096_v39, %v1112_v40 }
 0x153   : > { %8830 = vmatmul.mubr.msk.bf16.vlgmr.msra.gmra.mrb[0].mxu0 %vm1890_vm2, %v11650_v58  ;;  %8831 = vmatmul.mubr.msk.bf16.vlgmr.msra.gmra.mrb[0].mxu1 %vm1890_vm2, %v11650_v58  ;;  %v8775_v1 = vcombine.high %v1062_v52, %v1078_v53  ;;  %v1002_v2 = vld [vmem:[%s11611_s28 + $0x140] sm:$0xff] }
 0x154   : > { %2077 = vmatpush1.bf16.msra.mxu0 %v8674_v59  ;;  %2118 = vmatpush1.bf16.msra.mxu1 %v8676_v60  ;;  %v1079_v59 = vld [vmem:[%s11611_s28 + $0x3a8] sm:$0xff] }
 0x155   : > { %2078 = vmatprep.subr.bf16.mxu0 %v8707_v61  ;;  %2119 = vmatprep.subr.bf16.mxu1 %v8709_v62  ;;  %v1095_v60 = vld [vmem:[%s11611_s28 + $0x428] sm:$0xff]  ;;  %v8742_v62 = vcombine.low %v1030_v45, %v1046_v46  ;;  %v8777_v3 = vcombine.high %v1063_v55, %v1079_v59  ;;  %v8776_v7 = vcombine.low %v1063_v55, %v1079_v59 }
 0x156   : > { %2108 = vmatprep.mubr.bf16.mxu0 %v13468_v0  ;;  %2149 = vmatprep.mubr.bf16.mxu1 %v13468_v0  ;;  %v1111_v61 = vld [vmem:[%s11611_s28 + $0x4a8] sm:$0x33]  ;;  %v8748_v45 = vcombine.low %v1033_v29, %v1049_v30 }
 0x157   : > { %v971_v59 = vld [vmem:[%s11611_s28 + $0x48] sm:$0xff] }
 0x158   : > { %2079 = vmatpush1.bf16.msra.mxu0 %v8706_v4  ;;  %2120 = vmatpush1.bf16.msra.mxu1 %v8708_v5  ;;  %v8809_v4 = vcombine.high %v1095_v60, %v1111_v61  ;;  %v8774_v5 = vcombine.low %v1062_v52, %v1078_v53  ;;  %v1938_v53 = vand.u32 %v8811_v47, %v11633_v38  ;;  %v1004_v47 = vld [vmem:[%s11611_s28 + $0x150] sm:$0xff] }
 0x159   : > { %2080 = vmatprep.subr.bf16.mxu0 %v8739_v6  ;;  %2121 = vmatprep.subr.bf16.mxu1 %v8741_v9  ;;  %v8806_v6 = vcombine.low %v1094_v56, %v1110_v57  ;;  %v8808_v9 = vcombine.low %v1095_v60, %v1111_v61  ;;  %v970_v56 = vld [vmem:[%s11611_s28 + $0x40] sm:$0xff]  ;;  %v987_v60 = vld [vmem:[%s11611_s28 + $0xc8] sm:$0xff] }
 0x15a   : > { %v1932_v10 = vand.u32 %v8809_v4, %v11633_v38  ;;  %v986_v57 = vld [vmem:[%s11611_s28 + $0xc0] sm:$0xff]  ;;  %v1003_v4 = vld [vmem:[%s11611_s28 + $0x148] sm:$0xff] }
 0x15b   : > { %v1923_v15 = vand.u32 %v8806_v6, %v11633_v38  ;;  %v8686_v6 = vcombine.low %v970_v56, %v986_v57 }
 0x15c   : > { %2081 = vmatpush1.bf16.msra.mxu0 %v8738_v16  ;;  %2122 = vmatpush1.bf16.msra.mxu1 %v8740_v17  ;;  %v1929_v16 = vand.u32 %v8808_v9, %v11633_v38  ;;  %v8683_v17 = vcombine.high %v968_v11, %v984_v12  ;;  %v1050_v11 = vld [vmem:[%s11611_s28 + $0x2c0] sm:$0xff]  ;;  %v1035_v12 = vld [vmem:[%s11611_s28 + $0x248] sm:$0xff] }
 0x15d   : > { %2082 = vmatprep.subr.bf16.mxu0 %v8771_v18  ;;  %2123 = vmatprep.subr.bf16.mxu1 %v8773_v20  ;;  %v8685_v18 = vcombine.high %v969_v13, %v985_v14  ;;  %v1016_v20 = vld [vmem:[%s11611_s28 + $0x1b0] sm:$0xff] }
 0x15e   : > { %v8714_v31 = vcombine.low %v1000_v19, %v1016_v20 }
 0x160   : > { %2083 = vmatpush1.bf16.msra.mxu0 %v8770_v22  ;;  %2124 = vmatpush1.bf16.msra.mxu1 %v8772_v24  ;;  %v1017_v22 = vld [vmem:[%s11611_s28 + $0x1b8] sm:$0xff]  ;;  %v8684_v24 = vcombine.low %v969_v13, %v985_v14  ;;  %v1051_v13 = vld [vmem:[%s11611_s28 + $0x2c8] sm:$0xff] }
 0x161   : > { %2084 = vmatprep.subr.bf16.mxu0 %v1914_v25  ;;  %2125 = vmatprep.subr.bf16.mxu1 %v1920_v27  ;;  %v8715_v25 = vcombine.high %v1000_v19, %v1016_v20  ;;  %v8717_v26 = vcombine.high %v1001_v21, %v1017_v22  ;;  %v1032_v27 = vld [vmem:[%s11611_s28 + $0x230] sm:$0xff]  ;;  %v8753_v19 = vcombine.high %v1035_v12, %v1051_v13  ;;  %v1067_v20 = vld [vmem:[%s11611_s28 + $0x348] sm:$0xff] }
 0x164   : > { %2085 = vmatpush1.bf16.msra.mxu0 %v1911_v32  ;;  %2126 = vmatpush1.bf16.msra.mxu1 %v1917_v33  ;;  %v8716_v32 = vcombine.low %v1001_v21, %v1017_v22  ;;  %v8747_v33 = vcombine.high %v1032_v27, %v1048_v28  ;;  %v1098_v21 = vld [vmem:[%s11611_s28 + $0x440] sm:$0xff] }
 0x165   : > { %2158 = vmatprep.subr.bf16.mxu0 %v8679_v34  ;;  %2199 = vmatprep.subr.bf16.mxu1 %v8681_v35  ;;  %v1064_v34 = vld [vmem:[%s11611_s28 + $0x330] sm:$0xff]  ;;  %v1114_v22 = vld [vmem:[%s11611_s28 + $0x4c0] sm:$0x33] }
 0x166   : > { %v1080_v35 = vld [vmem:[%s11611_s28 + $0x3b0] sm:$0xff]  ;;  %v8815_v29 = vcombine.high %v1098_v21, %v1114_v22 }
 0x167   : > { %8832 = vmatmul.mubr.msk.bf16.vlgmr.msra.gmra.mrb[4].mxu0 %vm1890_vm2, %v11650_v58  ;;  %8833 = vmatmul.mubr.msk.bf16.vlgmr.msra.gmra.mrb[4].mxu1 %vm1890_vm2, %v11650_v58  ;;  %v8779_v46 = vcombine.high %v1064_v34, %v1080_v35 }
 0x168   : > { %2159 = vmatpush1.bf16.msra.mxu0 %v8678_v41  ;;  %2200 = vmatpush1.bf16.msra.mxu1 %v8680_v42  ;;  %v1081_v41 = vld [vmem:[%s11611_s28 + $0x3b8] sm:$0xff] }
 0x169   : > { %2160 = vmatprep.subr.bf16.mxu0 %v8711_v43  ;;  %2201 = vmatprep.subr.bf16.mxu1 %v8713_v44  ;;  %v1097_v42 = vld [vmem:[%s11611_s28 + $0x438] sm:$0xff]  ;;  %v8746_v44 = vcombine.low %v1032_v27, %v1048_v28  ;;  %v8781_v48 = vcombine.high %v1065_v37, %v1081_v41  ;;  %v8780_v52 = vcombine.low %v1065_v37, %v1081_v41 }
 0x16a   : > { %2190 = vmatprep.mubr.bf16.mxu0 %v13468_v0  ;;  %2231 = vmatprep.mubr.bf16.mxu1 %v13468_v0  ;;  %v1113_v43 = vld [vmem:[%s11611_s28 + $0x4b8] sm:$0x33]  ;;  %v8752_v27 = vcombine.low %v1035_v12, %v1051_v13 }
 0x16b   : > { %v973_v41 = vld [vmem:[%s11611_s28 + $0x58] sm:$0xff] }
 0x16c   : > { %2161 = vmatpush1.bf16.msra.mxu0 %v8710_v49  ;;  %2202 = vmatpush1.bf16.msra.mxu1 %v8712_v50  ;;  %v8813_v49 = vcombine.high %v1097_v42, %v1113_v43  ;;  %v8778_v50 = vcombine.low %v1064_v34, %v1080_v35  ;;  %v1950_v35 = vand.u32 %v8815_v29, %v11633_v38  ;;  %v1006_v29 = vld [vmem:[%s11611_s28 + $0x160] sm:$0xff] }
 0x16d   : > { %2162 = vmatprep.subr.bf16.mxu0 %v8743_v51  ;;  %2203 = vmatprep.subr.bf16.mxu1 %v8745_v54  ;;  %v8810_v51 = vcombine.low %v1096_v39, %v1112_v40  ;;  %v8812_v54 = vcombine.low %v1097_v42, %v1113_v43  ;;  %v972_v39 = vld [vmem:[%s11611_s28 + $0x50] sm:$0xff]  ;;  %v989_v42 = vld [vmem:[%s11611_s28 + $0xd8] sm:$0xff] }
 0x16e   : > { %v1944_v55 = vand.u32 %v8813_v49, %v11633_v38  ;;  %v988_v40 = vld [vmem:[%s11611_s28 + $0xd0] sm:$0xff]  ;;  %v1005_v49 = vld [vmem:[%s11611_s28 + $0x158] sm:$0xff] }
 0x16f   : > { %v1935_v61 = vand.u32 %v8810_v51, %v11633_v38  ;;  %v8690_v51 = vcombine.low %v972_v39, %v988_v40 }
 0x170   : > { %2163 = vmatpush1.bf16.msra.mxu0 %v8742_v62  ;;  %2204 = vmatpush1.bf16.msra.mxu1 %v8744_v63  ;;  %v1941_v62 = vand.u32 %v8812_v54, %v11633_v38  ;;  %v8687_v63 = vcombine.high %v970_v56, %v986_v57  ;;  %v1052_v56 = vld [vmem:[%s11611_s28 + $0x2d0] sm:$0xff]  ;;  %v1037_v57 = vld [vmem:[%s11611_s28 + $0x258] sm:$0xff] }
 0x171   : > { %2164 = vmatprep.subr.bf16.mxu0 %v8775_v1  ;;  %2205 = vmatprep.subr.bf16.mxu1 %v8777_v3  ;;  %v8689_v1 = vcombine.high %v971_v59, %v987_v60  ;;  %v1018_v3 = vld [vmem:[%s11611_s28 + $0x1c0] sm:$0xff] }
 0x172   : > { %v8718_v14 = vcombine.low %v1002_v2, %v1018_v3 }
 0x174   : > { %2165 = vmatpush1.bf16.msra.mxu0 %v8774_v5  ;;  %2206 = vmatpush1.bf16.msra.mxu1 %v8776_v7  ;;  %v1019_v5 = vld [vmem:[%s11611_s28 + $0x1c8] sm:$0xff]  ;;  %v8688_v7 = vcombine.low %v971_v59, %v987_v60  ;;  %v1053_v59 = vld [vmem:[%s11611_s28 + $0x2d8] sm:$0xff] }
 0x175   : > { %2166 = vmatprep.subr.bf16.mxu0 %v1926_v8  ;;  %2207 = vmatprep.subr.bf16.mxu1 %v1932_v10  ;;  %v8719_v8 = vcombine.high %v1002_v2, %v1018_v3  ;;  %v8721_v9 = vcombine.high %v1003_v4, %v1019_v5  ;;  %v1034_v10 = vld [vmem:[%s11611_s28 + $0x240] sm:$0xff]  ;;  %v8757_v2 = vcombine.high %v1037_v57, %v1053_v59  ;;  %v1069_v3 = vld [vmem:[%s11611_s28 + $0x358] sm:$0xff] }
 0x178   : > { %2167 = vmatpush1.bf16.msra.mxu0 %v1923_v15  ;;  %2208 = vmatpush1.bf16.msra.mxu1 %v1929_v16  ;;  %v8720_v15 = vcombine.low %v1003_v4, %v1019_v5  ;;  %v8751_v16 = vcombine.high %v1034_v10, %v1050_v11  ;;  %v1100_v4 = vld [vmem:[%s11611_s28 + $0x450] sm:$0xff] }
 0x179   : > { %2240 = vmatprep.subr.bf16.mxu0 %v8683_v17  ;;  %2281 = vmatprep.subr.bf16.mxu1 %v8685_v18  ;;  %v1066_v17 = vld [vmem:[%s11611_s28 + $0x340] sm:$0xff]  ;;  %v1116_v5 = vld [vmem:[%s11611_s28 + $0x4d0] sm:$0x33] }
 0x17a   : > { %v1082_v18 = vld [vmem:[%s11611_s28 + $0x3c0] sm:$0xff]  ;;  %v8819_v12 = vcombine.high %v1100_v4, %v1116_v5 }
 0x17b   : > { %8834 = vmatmul.mubr.msk.bf16.vlgmr.msra.gmra.mrb[8].mxu0 %vm1890_vm2, %v11650_v58  ;;  %8835 = vmatmul.mubr.msk.bf16.vlgmr.msra.gmra.mrb[8].mxu1 %vm1890_vm2, %v11650_v58  ;;  %v8783_v28 = vcombine.high %v1066_v17, %v1082_v18 }
 0x17c   : > { %2241 = vmatpush1.bf16.msra.mxu0 %v8682_v23  ;;  %2282 = vmatpush1.bf16.msra.mxu1 %v8684_v24  ;;  %v1083_v23 = vld [vmem:[%s11611_s28 + $0x3c8] sm:$0xff] }
 0x17d   : > { %2242 = vmatprep.subr.bf16.mxu0 %v8715_v25  ;;  %2283 = vmatprep.subr.bf16.mxu1 %v8717_v26  ;;  %v1099_v24 = vld [vmem:[%s11611_s28 + $0x448] sm:$0xff]  ;;  %v8750_v26 = vcombine.low %v1034_v10, %v1050_v11  ;;  %v8785_v30 = vcombine.high %v1067_v20, %v1083_v23  ;;  %v8784_v34 = vcombine.low %v1067_v20, %v1083_v23 }
 0x17e   : > { %2272 = vmatprep.mubr.bf16.mxu0 %v13468_v0  ;;  %2313 = vmatprep.mubr.bf16.mxu1 %v13468_v0  ;;  %v1115_v25 = vld [vmem:[%s11611_s28 + $0x4c8] sm:$0x33]  ;;  %v8756_v10 = vcombine.low %v1037_v57, %v1053_v59 }
 0x17f   : > { %v975_v23 = vld [vmem:[%s11611_s28 + $0x68] sm:$0xff] }
 0x180   : > { %2243 = vmatpush1.bf16.msra.mxu0 %v8714_v31  ;;  %2284 = vmatpush1.bf16.msra.mxu1 %v8716_v32  ;;  %v8817_v31 = vcombine.high %v1099_v24, %v1115_v25  ;;  %v8782_v32 = vcombine.low %v1066_v17, %v1082_v18  ;;  %v1962_v18 = vand.u32 %v8819_v12, %v11633_v38  ;;  %v1008_v12 = vld [vmem:[%s11611_s28 + $0x170] sm:$0xff] }
 0x181   : > { %2244 = vmatprep.subr.bf16.mxu0 %v8747_v33  ;;  %2285 = vmatprep.subr.bf16.mxu1 %v8749_v36  ;;  %v8814_v33 = vcombine.low %v1098_v21, %v1114_v22  ;;  %v8816_v36 = vcombine.low %v1099_v24, %v1115_v25  ;;  %v974_v21 = vld [vmem:[%s11611_s28 + $0x60] sm:$0xff]  ;;  %v991_v24 = vld [vmem:[%s11611_s28 + $0xe8] sm:$0xff] }
 0x182   : > { %v1956_v37 = vand.u32 %v8817_v31, %v11633_v38  ;;  %v990_v22 = vld [vmem:[%s11611_s28 + $0xe0] sm:$0xff]  ;;  %v1007_v31 = vld [vmem:[%s11611_s28 + $0x168] sm:$0xff] }
 0x183   : > { %v1947_v43 = vand.u32 %v8814_v33, %v11633_v38  ;;  %v8694_v33 = vcombine.low %v974_v21, %v990_v22 }
 0x184   : > { %2245 = vmatpush1.bf16.msra.mxu0 %v8746_v44  ;;  %2286 = vmatpush1.bf16.msra.mxu1 %v8748_v45  ;;  %v1953_v44 = vand.u32 %v8816_v36, %v11633_v38  ;;  %v8691_v45 = vcombine.high %v972_v39, %v988_v40  ;;  %v1054_v39 = vld [vmem:[%s11611_s28 + $0x2e0] sm:$0xff]  ;;  %v1039_v40 = vld [vmem:[%s11611_s28 + $0x268] sm:$0xff] }
 0x185   : > { %2246 = vmatprep.subr.bf16.mxu0 %v8779_v46  ;;  %2287 = vmatprep.subr.bf16.mxu1 %v8781_v48  ;;  %v8693_v46 = vcombine.high %v973_v41, %v989_v42  ;;  %v1020_v48 = vld [vmem:[%s11611_s28 + $0x1d0] sm:$0xff] }
 0x186   : > { %v8722_v60 = vcombine.low %v1004_v47, %v1020_v48 }
 0x188   : > { %2247 = vmatpush1.bf16.msra.mxu0 %v8778_v50  ;;  %2288 = vmatpush1.bf16.msra.mxu1 %v8780_v52  ;;  %v1021_v50 = vld [vmem:[%s11611_s28 + $0x1d8] sm:$0xff]  ;;  %v8692_v52 = vcombine.low %v973_v41, %v989_v42  ;;  %v1055_v41 = vld [vmem:[%s11611_s28 + $0x2e8] sm:$0xff] }
 0x189   : > { %2248 = vmatprep.subr.bf16.mxu0 %v1938_v53  ;;  %2289 = vmatprep.subr.bf16.mxu1 %v1944_v55  ;;  %v8723_v53 = vcombine.high %v1004_v47, %v1020_v48  ;;  %v8725_v54 = vcombine.high %v1005_v49, %v1021_v50  ;;  %v1036_v55 = vld [vmem:[%s11611_s28 + $0x250] sm:$0xff]  ;;  %v8761_v47 = vcombine.high %v1039_v40, %v1055_v41  ;;  %v1071_v48 = vld [vmem:[%s11611_s28 + $0x368] sm:$0xff] }
 0x18c   : > { %2249 = vmatpush1.bf16.msra.mxu0 %v1935_v61  ;;  %2290 = vmatpush1.bf16.msra.mxu1 %v1941_v62  ;;  %v8724_v61 = vcombine.low %v1005_v49, %v1021_v50  ;;  %v8755_v62 = vcombine.high %v1036_v55, %v1052_v56  ;;  %v1102_v49 = vld [vmem:[%s11611_s28 + $0x460] sm:$0xff] }
 0x18d   : > { %2322 = vmatprep.subr.bf16.mxu0 %v8687_v63  ;;  %2363 = vmatprep.subr.bf16.mxu1 %v8689_v1  ;;  %v1068_v63 = vld [vmem:[%s11611_s28 + $0x350] sm:$0xff]  ;;  %v1118_v50 = vld [vmem:[%s11611_s28 + $0x4e0] sm:$0x33] }
 0x18e   : > { %v1084_v1 = vld [vmem:[%s11611_s28 + $0x3d0] sm:$0xff]  ;;  %v8823_v57 = vcombine.high %v1102_v49, %v1118_v50 }
 0x18f   : > { %8836 = vmatmul.mubr.msk.bf16.vlgmr.msra.gmra.mrb[12].mxu0 %vm1890_vm2, %v11650_v58  ;;  %8837 = vmatmul.mubr.msk.bf16.vlgmr.msra.gmra.mrb[12].mxu1 %vm1890_vm2, %v11650_v58  ;;  %v8787_v11 = vcombine.high %v1068_v63, %v1084_v1 }
 0x190   : > { %2323 = vmatpush1.bf16.msra.mxu0 %v8686_v6  ;;  %2364 = vmatpush1.bf16.msra.mxu1 %v8688_v7  ;;  %v1085_v6 = vld [vmem:[%s11611_s28 + $0x3d8] sm:$0xff] }
 0x191   : > { %2324 = vmatprep.subr.bf16.mxu0 %v8719_v8  ;;  %2365 = vmatprep.subr.bf16.mxu1 %v8721_v9  ;;  %v1101_v7 = vld [vmem:[%s11611_s28 + $0x458] sm:$0xff]  ;;  %v8754_v9 = vcombine.low %v1036_v55, %v1052_v56  ;;  %v8789_v13 = vcombine.high %v1069_v3, %v1085_v6  ;;  %v8788_v17 = vcombine.low %v1069_v3, %v1085_v6 }
 0x192   : > { %2354 = vmatprep.mubr.bf16.mxu0 %v13468_v0  ;;  %2395 = vmatprep.mubr.bf16.mxu1 %v13468_v0  ;;  %v1117_v8 = vld [vmem:[%s11611_s28 + $0x4d8] sm:$0x33]  ;;  %v8760_v55 = vcombine.low %v1039_v40, %v1055_v41 }
 0x193   : > { %v977_v6 = vld [vmem:[%s11611_s28 + $0x78] sm:$0xff] }
 0x194   : > { %2325 = vmatpush1.bf16.msra.mxu0 %v8718_v14  ;;  %2366 = vmatpush1.bf16.msra.mxu1 %v8720_v15  ;;  %v8821_v14 = vcombine.high %v1101_v7, %v1117_v8  ;;  %v8786_v15 = vcombine.low %v1068_v63, %v1084_v1  ;;  %v1974_v1 = vand.u32 %v8823_v57, %v11633_v38  ;;  %v8878_v57 = vld [vmem:[%s11611_s28 + $0x600] sm:$0xff] }
 0x195   : > { %2326 = vmatprep.subr.bf16.mxu0 %v8751_v16  ;;  %2367 = vmatprep.subr.bf16.mxu1 %v8753_v19  ;;  %v8818_v16 = vcombine.low %v1100_v4, %v1116_v5  ;;  %v8820_v19 = vcombine.low %v1101_v7, %v1117_v8  ;;  %v976_v4 = vld [vmem:[%s11611_s28 + $0x70] sm:$0xff]  ;;  %v993_v7 = vld [vmem:[%s11611_s28 + $0xf8] sm:$0xff] }
 0x196   : > { %v1968_v20 = vand.u32 %v8821_v14, %v11633_v38  ;;  %v992_v5 = vld [vmem:[%s11611_s28 + $0xf0] sm:$0xff]  ;;  %v1009_v14 = vld [vmem:[%s11611_s28 + $0x178] sm:$0xff] }
 0x197   : > { %v1959_v25 = vand.u32 %v8818_v16, %v11633_v38  ;;  %v8698_v16 = vcombine.low %v976_v4, %v992_v5 }
 0x198   : > { %2327 = vmatpush1.bf16.msra.mxu0 %v8750_v26  ;;  %2368 = vmatpush1.bf16.msra.mxu1 %v8752_v27  ;;  %v1965_v26 = vand.u32 %v8820_v19, %v11633_v38  ;;  %v8695_v27 = vcombine.high %v974_v21, %v990_v22  ;;  %v1056_v21 = vld [vmem:[%s11611_s28 + $0x2f0] sm:$0xff]  ;;  %v1041_v22 = vld [vmem:[%s11611_s28 + $0x278] sm:$0xff] }
 0x199   : > { %2328 = vmatprep.subr.bf16.mxu0 %v8783_v28  ;;  %2369 = vmatprep.subr.bf16.mxu1 %v8785_v30  ;;  %v8697_v28 = vcombine.high %v975_v23, %v991_v24  ;;  %v1022_v30 = vld [vmem:[%s11611_s28 + $0x1e0] sm:$0xff] }
 0x19a   : > { %v8726_v42 = vcombine.low %v1006_v29, %v1022_v30 }
 0x19c   : > { %2329 = vmatpush1.bf16.msra.mxu0 %v8782_v32  ;;  %2370 = vmatpush1.bf16.msra.mxu1 %v8784_v34  ;;  %v1023_v32 = vld [vmem:[%s11611_s28 + $0x1e8] sm:$0xff]  ;;  %v8696_v34 = vcombine.low %v975_v23, %v991_v24  ;;  %v1057_v23 = vld [vmem:[%s11611_s28 + $0x2f8] sm:$0xff] }
 0x19d   : > { %2330 = vmatprep.subr.bf16.mxu0 %v1950_v35  ;;  %2371 = vmatprep.subr.bf16.mxu1 %v1956_v37  ;;  %v8727_v35 = vcombine.high %v1006_v29, %v1022_v30  ;;  %v8729_v36 = vcombine.high %v1007_v31, %v1023_v32  ;;  %v1038_v37 = vld [vmem:[%s11611_s28 + $0x260] sm:$0xff]  ;;  %v8765_v29 = vcombine.high %v1041_v22, %v1057_v23  ;;  %v1073_v30 = vld [vmem:[%s11611_s28 + $0x378] sm:$0xff] }
 0x1a0   : > { %2331 = vmatpush1.bf16.msra.mxu0 %v1947_v43  ;;  %2372 = vmatpush1.bf16.msra.mxu1 %v1953_v44  ;;  %v8728_v43 = vcombine.low %v1007_v31, %v1023_v32  ;;  %v8759_v44 = vcombine.high %v1038_v37, %v1054_v39  ;;  %v1104_v31 = vld [vmem:[%s11611_s28 + $0x470] sm:$0xff] }
 0x1a1   : > { %2404 = vmatprep.subr.bf16.mxu0 %v8691_v45  ;;  %2445 = vmatprep.subr.bf16.mxu1 %v8693_v46  ;;  %v1070_v45 = vld [vmem:[%s11611_s28 + $0x360] sm:$0xff]  ;;  %v1120_v32 = vld [vmem:[%s11611_s28 + $0x4f0] sm:$0x33] }
 0x1a2   : > { %v1086_v46 = vld [vmem:[%s11611_s28 + $0x3e0] sm:$0xff]  ;;  %v8827_v40 = vcombine.high %v1104_v31, %v1120_v32 }
 0x1a3   : > { %8838 = vmatmul.mubr.msk.bf16.vlgmr.msra.gmra.mrb[16].mxu0 %vm1890_vm2, %v11650_v58  ;;  %8839 = vmatmul.mubr.msk.bf16.vlgmr.msra.gmra.mrb[16].mxu1 %vm1890_vm2, %v11650_v58  ;;  %v8791_v56 = vcombine.high %v1070_v45, %v1086_v46 }
 0x1a4   : > { %2405 = vmatpush1.bf16.msra.mxu0 %v8690_v51  ;;  %2446 = vmatpush1.bf16.msra.mxu1 %v8692_v52  ;;  %v1087_v51 = vld [vmem:[%s11611_s28 + $0x3e8] sm:$0xff] }
 0x1a5   : > { %2406 = vmatprep.subr.bf16.mxu0 %v8723_v53  ;;  %2447 = vmatprep.subr.bf16.mxu1 %v8725_v54  ;;  %v1103_v52 = vld [vmem:[%s11611_s28 + $0x468] sm:$0xff]  ;;  %v8758_v54 = vcombine.low %v1038_v37, %v1054_v39  ;;  %v8793_v59 = vcombine.high %v1071_v48, %v1087_v51  ;;  %v8792_v63 = vcombine.low %v1071_v48, %v1087_v51 }
 0x1a6   : > { %2436 = vmatprep.mubr.bf16.mxu0 %v13468_v0  ;;  %2477 = vmatprep.mubr.bf16.mxu1 %v13468_v0  ;;  %v1119_v53 = vld [vmem:[%s11611_s28 + $0x4e8] sm:$0x33]  ;;  %v8764_v37 = vcombine.low %v1041_v22, %v1057_v23 }
 0x1a7   : > { %v8847_v51 = vld [vmem:[%s11611_s28 + $0x508] sm:$0xff] }
 0x1a8   : > { %2407 = vmatpush1.bf16.msra.mxu0 %v8722_v60  ;;  %2448 = vmatpush1.bf16.msra.mxu1 %v8724_v61  ;;  %v8825_v60 = vcombine.high %v1103_v52, %v1119_v53  ;;  %v8790_v61 = vcombine.low %v1070_v45, %v1086_v46  ;;  %v1986_v46 = vand.u32 %v8827_v40, %v11633_v38  ;;  %v8896_v40 = vld [vmem:[%s11611_s28 + $0x690] sm:$0xff] }
 0x1a9   : > { %2408 = vmatprep.subr.bf16.mxu0 %v8755_v62  ;;  %2449 = vmatprep.subr.bf16.mxu1 %v8757_v2  ;;  %v8822_v62 = vcombine.low %v1102_v49, %v1118_v50  ;;  %v8824_v2 = vcombine.low %v1103_v52, %v1119_v53  ;;  %v8846_v49 = vld [vmem:[%s11611_s28 + $0x500] sm:$0xff]  ;;  %v8863_v52 = vld [vmem:[%s11611_s28 + $0x588] sm:$0xff] }
 0x1aa   : > { %v1980_v3 = vand.u32 %v8825_v60, %v11633_v38  ;;  %v8862_v50 = vld [vmem:[%s11611_s28 + $0x580] sm:$0xff]  ;;  %v8879_v60 = vld [vmem:[%s11611_s28 + $0x608] sm:$0xff] }
 0x1ab   : > { %v1971_v8 = vand.u32 %v8822_v62, %v11633_v38  ;;  %v9006_v62 = vcombine.low %v8846_v49, %v8862_v50 }
 0x1ac   : > { %2409 = vmatpush1.bf16.msra.mxu0 %v8754_v9  ;;  %2450 = vmatpush1.bf16.msra.mxu1 %v8756_v10  ;;  %v1977_v9 = vand.u32 %v8824_v2, %v11633_v38  ;;  %v8699_v10 = vcombine.high %v976_v4, %v992_v5  ;;  %v8926_v4 = vld [vmem:[%s11611_s28 + $0x780] sm:$0xff]  ;;  %v8911_v5 = vld [vmem:[%s11611_s28 + $0x708] sm:$0xff] }
 0x1ad   : > { %2410 = vmatprep.subr.bf16.mxu0 %v8787_v11  ;;  %2451 = vmatprep.subr.bf16.mxu1 %v8789_v13  ;;  %v8701_v11 = vcombine.high %v977_v6, %v993_v7  ;;  %v1024_v13 = vld [vmem:[%s11611_s28 + $0x1f0] sm:$0xff] }
 0x1ae   : > { %v8730_v24 = vcombine.low %v1008_v12, %v1024_v13 }
 0x1b0   : > { %2411 = vmatpush1.bf16.msra.mxu0 %v8786_v15  ;;  %2452 = vmatpush1.bf16.msra.mxu1 %v8788_v17  ;;  %v1025_v15 = vld [vmem:[%s11611_s28 + $0x1f8] sm:$0xff]  ;;  %v8700_v17 = vcombine.low %v977_v6, %v993_v7  ;;  %v8927_v6 = vld [vmem:[%s11611_s28 + $0x788] sm:$0xff] }
 0x1b1   : > { %2412 = vmatprep.subr.bf16.mxu0 %v1962_v18  ;;  %2453 = vmatprep.subr.bf16.mxu1 %v1968_v20  ;;  %v8731_v18 = vcombine.high %v1008_v12, %v1024_v13  ;;  %v8733_v19 = vcombine.high %v1009_v14, %v1025_v15  ;;  %v1040_v20 = vld [vmem:[%s11611_s28 + $0x270] sm:$0xff]  ;;  %v9073_v12 = vcombine.high %v8911_v5, %v8927_v6  ;;  %v8943_v13 = vld [vmem:[%s11611_s28 + $0x808] sm:$0xff] }
 0x1b4   : > { %2413 = vmatpush1.bf16.msra.mxu0 %v1959_v25  ;;  %2454 = vmatpush1.bf16.msra.mxu1 %v1965_v26  ;;  %v8732_v25 = vcombine.low %v1009_v14, %v1025_v15  ;;  %v8763_v26 = vcombine.high %v1040_v20, %v1056_v21  ;;  %v8974_v14 = vld [vmem:[%s11611_s28 + $0x900] sm:$0xff] }
 0x1b5   : > { %2486 = vmatprep.subr.bf16.mxu0 %v8695_v27  ;;  %2527 = vmatprep.subr.bf16.mxu1 %v8697_v28  ;;  %v1072_v27 = vld [vmem:[%s11611_s28 + $0x370] sm:$0xff]  ;;  %v8990_v15 = vld [vmem:[%s11611_s28 + $0x980] sm:$0x33] }
 0x1b6   : > { %v1088_v28 = vld [vmem:[%s11611_s28 + $0x3f0] sm:$0xff] }
 0x1b7   : > { %8840 = vmatmul.mubr.msk.bf16.vlgmr.msra.gmra.mrb[20].mxu0 %vm1890_vm2, %v11650_v58  ;;  %8841 = vmatmul.mubr.msk.bf16.vlgmr.msra.gmra.mrb[20].mxu1 %vm1890_vm2, %v11650_v58  ;;  %v8795_v39 = vcombine.high %v1072_v27, %v1088_v28 }
 0x1b8   : > { %2487 = vmatpush1.bf16.msra.mxu0 %v8694_v33  ;;  %2528 = vmatpush1.bf16.msra.mxu1 %v8696_v34  ;;  %v1089_v33 = vld [vmem:[%s11611_s28 + $0x3f8] sm:$0xff] }
 0x1b9   : > { %2488 = vmatprep.subr.bf16.mxu0 %v8727_v35  ;;  %2529 = vmatprep.subr.bf16.mxu1 %v8729_v36  ;;  %v1105_v34 = vld [vmem:[%s11611_s28 + $0x478] sm:$0xff]  ;;  %v8762_v36 = vcombine.low %v1040_v20, %v1056_v21  ;;  %v8797_v41 = vcombine.high %v1073_v30, %v1089_v33  ;;  %v8796_v45 = vcombine.low %v1073_v30, %v1089_v33  ;;  %v8848_v30 = vld [vmem:[%s11611_s28 + $0x510] sm:$0xff] }
 0x1ba   : > { %2518 = vmatprep.mubr.bf16.mxu0 %v13468_v0  ;;  %2559 = vmatprep.mubr.bf16.mxu1 %v13468_v0  ;;  %v1121_v35 = vld [vmem:[%s11611_s28 + $0x4f8] sm:$0x33]  ;;  %v9135_v21 = vcombine.high %v8974_v14, %v8990_v15 }
 0x1bb   : > { %v8865_v33 = vld [vmem:[%s11611_s28 + $0x598] sm:$0xff] }
 0x1bc   : > { %2489 = vmatpush1.bf16.msra.mxu0 %v8726_v42  ;;  %2530 = vmatpush1.bf16.msra.mxu1 %v8728_v43  ;;  %v8829_v42 = vcombine.high %v1105_v34, %v1121_v35  ;;  %v8794_v43 = vcombine.low %v1072_v27, %v1088_v28  ;;  %v3583_v27 = vand.u32 %v9135_v21, %v11633_v38  ;;  %v8882_v21 = vld [vmem:[%s11611_s28 + $0x620] sm:$0xff] }
 0x1bd   : > { %2490 = vmatprep.subr.bf16.mxu0 %v8759_v44  ;;  %2531 = vmatprep.subr.bf16.mxu1 %v8761_v47  ;;  %v8826_v44 = vcombine.low %v1104_v31, %v1120_v32  ;;  %v8828_v47 = vcombine.low %v1105_v34, %v1121_v35  ;;  %v8864_v31 = vld [vmem:[%s11611_s28 + $0x590] sm:$0xff]  ;;  %v8849_v32 = vld [vmem:[%s11611_s28 + $0x518] sm:$0xff] }
 0x1be   : > { %v1992_v48 = vand.u32 %v8829_v42, %v11633_v38  ;;  %v8897_v42 = vld [vmem:[%s11611_s28 + $0x698] sm:$0xff] }
 0x1bf   : > { %v1983_v53 = vand.u32 %v8826_v44, %v11633_v38  ;;  %v9012_v44 = vcombine.low %v8849_v32, %v8865_v33 }
 0x1c0   : > { %2491 = vmatpush1.bf16.msra.mxu0 %v8758_v54  ;;  %2532 = vmatpush1.bf16.msra.mxu1 %v8760_v55  ;;  %v1989_v54 = vand.u32 %v8828_v47, %v11633_v38  ;;  %v9007_v55 = vcombine.high %v8846_v49, %v8862_v50  ;;  %v8912_v47 = vld [vmem:[%s11611_s28 + $0x710] sm:$0xff]  ;;  %v11897_v49 = vld [vmem:[%s13462_s1] sm:$0x7]  ;;  %v8913_v50 = vld [vmem:[%s11611_s28 + $0x718] sm:$0xff] }
 0x1c1   : > { %2492 = vmatprep.subr.bf16.mxu0 %v8791_v56  ;;  %2533 = vmatprep.subr.bf16.mxu1 %v8793_v59  ;;  %v9009_v56 = vcombine.high %v8847_v51, %v8863_v52  ;;  %v8894_v59 = vld [vmem:[%s11611_s28 + $0x680] sm:$0xff] }
 0x1c2   : > { %v9038_v7 = vcombine.low %v8878_v57, %v8894_v59 }
 0x1c4   : > { %2493 = vmatpush1.bf16.msra.mxu0 %v8790_v61  ;;  %2534 = vmatpush1.bf16.msra.mxu1 %v8792_v63  ;;  %v8895_v61 = vld [vmem:[%s11611_s28 + $0x688] sm:$0xff]  ;;  %v9008_v63 = vcombine.low %v8847_v51, %v8863_v52  ;;  %v8929_v51 = vld [vmem:[%s11611_s28 + $0x798] sm:$0xff] }
 0x1c5   : > { %2494 = vmatprep.subr.bf16.mxu0 %v1974_v1  ;;  %2535 = vmatprep.subr.bf16.mxu1 %v1980_v3  ;;  %v9039_v1 = vcombine.high %v8878_v57, %v8894_v59  ;;  %v9041_v2 = vcombine.high %v8879_v60, %v8895_v61  ;;  %v8910_v3 = vld [vmem:[%s11611_s28 + $0x700] sm:$0xff]  ;;  %v9077_v57 = vcombine.high %v8913_v50, %v8929_v51  ;;  %v8945_v59 = vld [vmem:[%s11611_s28 + $0x818] sm:$0xff] }
 0x1c8   : > { %2495 = vmatpush1.bf16.msra.mxu0 %v1971_v8  ;;  %2536 = vmatpush1.bf16.msra.mxu1 %v1977_v9  ;;  %v9040_v8 = vcombine.low %v8879_v60, %v8895_v61  ;;  %v9071_v9 = vcombine.high %v8910_v3, %v8926_v4  ;;  %v8976_v60 = vld [vmem:[%s11611_s28 + $0x910] sm:$0xff] }
 0x1c9   : > { %2568 = vmatprep.subr.bf16.mxu0 %v8699_v10  ;;  %2609 = vmatprep.subr.bf16.mxu1 %v8701_v11  ;;  %v8942_v10 = vld [vmem:[%s11611_s28 + $0x800] sm:$0xff]  ;;  %v8992_v61 = vld [vmem:[%s11611_s28 + $0x990] sm:$0x33] }
 0x1ca   : > { %v8958_v11 = vld [vmem:[%s11611_s28 + $0x880] sm:$0xff] }
 0x1cb   : > { %8842 = vmatmul.mubr.msk.bf16.vlgmr.msra.gmra.mrb[24].mxu0 %vm1890_vm2, %v11650_v58  ;;  %8843 = vmatmul.mubr.msk.bf16.vlgmr.msra.gmra.mrb[24].mxu1 %vm1890_vm2, %v11650_v58  ;;  %v9103_v20 = vcombine.high %v8942_v10, %v8958_v11 }
 0x1cc   : > { %2569 = vmatpush1.bf16.msra.mxu0 %v8698_v16  ;;  %2610 = vmatpush1.bf16.msra.mxu1 %v8700_v17  ;;  %v8959_v16 = vld [vmem:[%s11611_s28 + $0x888] sm:$0xff] }
 0x1cd   : > { %2570 = vmatprep.subr.bf16.mxu0 %v8731_v18  ;;  %2611 = vmatprep.subr.bf16.mxu1 %v8733_v19  ;;  %v8975_v17 = vld [vmem:[%s11611_s28 + $0x908] sm:$0xff]  ;;  %v9070_v18 = vcombine.low %v8910_v3, %v8926_v4  ;;  %v9072_v19 = vcombine.low %v8911_v5, %v8927_v6  ;;  %v9105_v22 = vcombine.high %v8943_v13, %v8959_v16 }
 0x1ce   : > { %2600 = vmatprep.mubr.bf16.mxu0 %v13468_v0  ;;  %2641 = vmatprep.mubr.bf16.mxu1 %v13468_v0  ;;  %v9076_v3 = vcombine.low %v8913_v50, %v8929_v51  ;;  %v9139_v5 = vcombine.high %v8976_v60, %v8992_v61 }
 0x1d0   : > { %2571 = vmatpush1.bf16.msra.mxu0 %v8730_v24  ;;  %2612 = vmatpush1.bf16.msra.mxu1 %v8732_v25  ;;  %v9102_v24 = vcombine.low %v8942_v10, %v8958_v11  ;;  %v9134_v25 = vcombine.low %v8974_v14, %v8990_v15  ;;  %v3595_v11 = vand.u32 %v9139_v5, %v11633_v38  ;;  %v8850_v14 = vld [vmem:[%s11611_s28 + $0x520] sm:$0xff]  ;;  %v8884_v5 = vld [vmem:[%s11611_s28 + $0x630] sm:$0xff] }
 0x1d1   : > { %2572 = vmatprep.subr.bf16.mxu0 %v8763_v26  ;;  %2613 = vmatprep.subr.bf16.mxu1 %v8765_v29  ;;  %v9104_v26 = vcombine.low %v8943_v13, %v8959_v16  ;;  %v8866_v15 = vld [vmem:[%s11611_s28 + $0x5a0] sm:$0xff]  ;;  %v8851_v16 = vld [vmem:[%s11611_s28 + $0x528] sm:$0xff] }
 0x1d2   : > { %v3580_v34 = vand.u32 %v9134_v25, %v11633_v38  ;;  %v9014_v25 = vcombine.low %v8850_v14, %v8866_v15 }
 0x1d4   : > { %2573 = vmatpush1.bf16.msra.mxu0 %v8762_v36  ;;  %2614 = vmatpush1.bf16.msra.mxu1 %v8764_v37  ;;  %v9011_v36 = vcombine.high %v8848_v30, %v8864_v31  ;;  %v9013_v37 = vcombine.high %v8849_v32, %v8865_v33  ;;  %v8931_v32 = vld [vmem:[%s11611_s28 + $0x7a8] sm:$0xff] }
 0x1d5   : > { %2574 = vmatprep.subr.bf16.mxu0 %v8795_v39  ;;  %2615 = vmatprep.subr.bf16.mxu1 %v8797_v41  ;;  %v8880_v39 = vld [vmem:[%s11611_s28 + $0x610] sm:$0xff]  ;;  %v8881_v41 = vld [vmem:[%s11611_s28 + $0x618] sm:$0xff] }
 0x1d6   : > { %v9042_v52 = vcombine.low %v8880_v39, %v8896_v40 }
 0x1d8   : > { %2575 = vmatpush1.bf16.msra.mxu0 %v8794_v43  ;;  %2616 = vmatpush1.bf16.msra.mxu1 %v8796_v45  ;;  %v9010_v43 = vcombine.low %v8848_v30, %v8864_v31  ;;  %v9043_v45 = vcombine.high %v8880_v39, %v8896_v40  ;;  %v8930_v30 = vld [vmem:[%s11611_s28 + $0x7a0] sm:$0xff]  ;;  %v8915_v31 = vld [vmem:[%s11611_s28 + $0x728] sm:$0xff] }
 0x1d9   : > { %2576 = vmatprep.subr.bf16.mxu0 %v1986_v46  ;;  %2617 = vmatprep.subr.bf16.mxu1 %v1992_v48  ;;  %v9045_v46 = vcombine.high %v8881_v41, %v8897_v42  ;;  %v8928_v48 = vld [vmem:[%s11611_s28 + $0x790] sm:$0xff]  ;;  %v9081_v39 = vcombine.high %v8915_v31, %v8931_v32  ;;  %v8947_v40 = vld [vmem:[%s11611_s28 + $0x828] sm:$0xff] }
 0x1dc   : > { %2577 = vmatpush1.bf16.msra.mxu0 %v1983_v53  ;;  %2618 = vmatpush1.bf16.msra.mxu1 %v1989_v54  ;;  %v9044_v53 = vcombine.low %v8881_v41, %v8897_v42  ;;  %v9075_v54 = vcombine.high %v8912_v47, %v8928_v48  ;;  %v8978_v41 = vld [vmem:[%s11611_s28 + $0x920] sm:$0xff] }
 0x1dd   : > { %3675 = vmatprep.subr.bf16.mxu0 %v9007_v55  ;;  %3716 = vmatprep.subr.bf16.mxu1 %v9009_v56  ;;  %v8944_v55 = vld [vmem:[%s11611_s28 + $0x810] sm:$0xff]  ;;  %v8994_v42 = vld [vmem:[%s11611_s28 + $0x9a0] sm:$0x33] }
 0x1de   : > { %v8960_v56 = vld [vmem:[%s11611_s28 + $0x890] sm:$0xff]  ;;  %v9143_v50 = vcombine.high %v8978_v41, %v8994_v42 }
 0x1df   : > { %8844 = vmatmul.mubr.msk.bf16.vlgmr.msra.gmra.mrb[28].mxu0 %vm1890_vm2, %v11650_v58  ;;  %8845 = vmatmul.mubr.msk.bf16.vlgmr.msra.gmra.mrb[28].mxu1 %vm1890_vm2, %v11650_v58  ;;  %v8991_v58 = vld [vmem:[%s11611_s28 + $0x988] sm:$0x33]  ;;  %v9107_v4 = vcombine.high %v8944_v55, %v8960_v56 }
 0x1e0   : > { %3676 = vmatpush1.bf16.msra.mxu0 %v9006_v62  ;;  %3717 = vmatpush1.bf16.msra.mxu1 %v9008_v63  ;;  %v9137_v23 = vcombine.high %v8975_v17, %v8991_v58  ;;  %v9136_v28 = vcombine.low %v8975_v17, %v8991_v58  ;;  %v8961_v62 = vld [vmem:[%s11611_s28 + $0x898] sm:$0xff]  ;;  %v8867_v17 = vld [vmem:[%s11611_s28 + $0x5a8] sm:$0xff] }
 0x1e1   : > { %3677 = vmatprep.subr.bf16.mxu0 %v9039_v1  ;;  %3718 = vmatprep.subr.bf16.mxu1 %v9041_v2  ;;  %v8977_v63 = vld [vmem:[%s11611_s28 + $0x918] sm:$0xff]  ;;  %v9074_v2 = vcombine.low %v8912_v47, %v8928_v48  ;;  %v9109_v6 = vcombine.high %v8945_v59, %v8961_v62  ;;  %v9108_v10 = vcombine.low %v8945_v59, %v8961_v62 }
 0x1e2   : > { %3707 = vmatprep.mubr.bf16.mxu0 %v13468_v0  ;;  %3748 = vmatprep.mubr.bf16.mxu1 %v13468_v0  ;;  %v3589_v29 = vand.u32 %v9137_v23, %v11633_v38  ;;  %v3586_v35 = vand.u32 %v9136_v28, %v11633_v38  ;;  %v8993_v1 = vld [vmem:[%s11611_s28 + $0x998] sm:$0x33]  ;;  %v8883_v23 = vld [vmem:[%s11611_s28 + $0x628] sm:$0xff]  ;;  %v9080_v47 = vcombine.low %v8915_v31, %v8931_v32 }
 0x1e3   : > { %v8853_v62 = vld [vmem:[%s11611_s28 + $0x538] sm:$0xff] }
 0x1e4   : > { %3678 = vmatpush1.bf16.msra.mxu0 %v9038_v7  ;;  %3719 = vmatpush1.bf16.msra.mxu1 %v9040_v8  ;;  %v9141_v7 = vcombine.high %v8977_v63, %v8993_v1  ;;  %v9106_v8 = vcombine.low %v8944_v55, %v8960_v56  ;;  %v3607_v56 = vand.u32 %v9143_v50, %v11633_v38 }
 0x1e5   : > { %3679 = vmatprep.subr.bf16.mxu0 %v9071_v9  ;;  %3720 = vmatprep.subr.bf16.mxu1 %v9073_v12  ;;  %v9138_v9 = vcombine.low %v8976_v60, %v8992_v61  ;;  %v9140_v12 = vcombine.low %v8977_v63, %v8993_v1  ;;  %v8852_v60 = vld [vmem:[%s11611_s28 + $0x530] sm:$0xff]  ;;  %v8869_v63 = vld [vmem:[%s11611_s28 + $0x5b8] sm:$0xff] }
 0x1e6   : > { %v3601_v13 = vand.u32 %v9141_v7, %v11633_v38  ;;  %v8868_v61 = vld [vmem:[%s11611_s28 + $0x5b0] sm:$0xff]  ;;  %v8885_v7 = vld [vmem:[%s11611_s28 + $0x638] sm:$0xff] }
 0x1e7   : > { %v3592_v58 = vand.u32 %v9138_v9, %v11633_v38  ;;  %v9018_v9 = vcombine.low %v8852_v60, %v8868_v61 }
 0x1e8   : > { %3680 = vmatpush1.bf16.msra.mxu0 %v9070_v18  ;;  %3721 = vmatpush1.bf16.msra.mxu1 %v9072_v19  ;;  %v3598_v18 = vand.u32 %v9140_v12, %v11633_v38  ;;  %v9015_v19 = vcombine.high %v8850_v14, %v8866_v15  ;;  %v8932_v14 = vld [vmem:[%s11611_s28 + $0x7b0] sm:$0xff]  ;;  %v8917_v15 = vld [vmem:[%s11611_s28 + $0x738] sm:$0xff] }
 0x1e9   : > { %3681 = vmatprep.subr.bf16.mxu0 %v9103_v20  ;;  %3722 = vmatprep.subr.bf16.mxu1 %v9105_v22  ;;  %v9017_v20 = vcombine.high %v8851_v16, %v8867_v17  ;;  %v8898_v22 = vld [vmem:[%s11611_s28 + $0x6a0] sm:$0xff] }
 0x1ea   : > { %v9046_v33 = vcombine.low %v8882_v21, %v8898_v22 }
 0x1ec   : > { %3682 = vmatpush1.bf16.msra.mxu0 %v9102_v24  ;;  %3723 = vmatpush1.bf16.msra.mxu1 %v9104_v26  ;;  %v8899_v24 = vld [vmem:[%s11611_s28 + $0x6a8] sm:$0xff]  ;;  %v9016_v26 = vcombine.low %v8851_v16, %v8867_v17  ;;  %v8933_v16 = vld [vmem:[%s11611_s28 + $0x7b8] sm:$0xff] }
 0x1ed   : > { %3683 = vmatprep.subr.bf16.mxu0 %v3583_v27  ;;  %3724 = vmatprep.subr.bf16.mxu1 %v3589_v29  ;;  %v9047_v27 = vcombine.high %v8882_v21, %v8898_v22  ;;  %v9049_v28 = vcombine.high %v8883_v23, %v8899_v24  ;;  %v8914_v29 = vld [vmem:[%s11611_s28 + $0x720] sm:$0xff]  ;;  %v9085_v21 = vcombine.high %v8917_v15, %v8933_v16  ;;  %v8949_v22 = vld [vmem:[%s11611_s28 + $0x838] sm:$0xff] }
 0x1f0   : > { %3684 = vmatpush1.bf16.msra.mxu0 %v3580_v34  ;;  %3725 = vmatpush1.bf16.msra.mxu1 %v3586_v35  ;;  %v9048_v34 = vcombine.low %v8883_v23, %v8899_v24  ;;  %v9079_v35 = vcombine.high %v8914_v29, %v8930_v30  ;;  %v8980_v23 = vld [vmem:[%s11611_s28 + $0x930] sm:$0xff] }
 0x1f1   : > { %3757 = vmatprep.subr.bf16.mxu0 %v9011_v36  ;;  %3798 = vmatprep.subr.bf16.mxu1 %v9013_v37  ;;  %v8946_v36 = vld [vmem:[%s11611_s28 + $0x820] sm:$0xff]  ;;  %v8996_v24 = vld [vmem:[%s11611_s28 + $0x9b0] sm:$0x33] }
 0x1f2   : > { %v8962_v37 = vld [vmem:[%s11611_s28 + $0x8a0] sm:$0xff]  ;;  %v9147_v31 = vcombine.high %v8980_v23, %v8996_v24 }
 0x1f3   : > { %9166 = vmatmul.mubr.msk.bf16.vlgmr.msra.gmra.mrb[32].mxu0 %vm1890_vm2, %v11897_v49  ;;  %9167 = vmatmul.mubr.msk.bf16.vlgmr.msra.gmra.mrb[32].mxu1 %vm1890_vm2, %v11897_v49  ;;  %v9111_v48 = vcombine.high %v8946_v36, %v8962_v37 }
 0x1f4   : > { %3758 = vmatpush1.bf16.msra.mxu0 %v9010_v43  ;;  %3799 = vmatpush1.bf16.msra.mxu1 %v9012_v44  ;;  %v8963_v43 = vld [vmem:[%s11611_s28 + $0x8a8] sm:$0xff] }
 0x1f5   : > { %3759 = vmatprep.subr.bf16.mxu0 %v9043_v45  ;;  %3800 = vmatprep.subr.bf16.mxu1 %v9045_v46  ;;  %v8979_v44 = vld [vmem:[%s11611_s28 + $0x928] sm:$0xff]  ;;  %v9078_v46 = vcombine.low %v8914_v29, %v8930_v30  ;;  %v9113_v51 = vcombine.high %v8947_v40, %v8963_v43  ;;  %v9112_v55 = vcombine.low %v8947_v40, %v8963_v43  ;;  %v8870_v43 = vld [vmem:[%s11611_s28 + $0x5c0] sm:$0xff] }
 0x1f6   : > { %3789 = vmatprep.mubr.bf16.mxu0 %v13468_v0  ;;  %3830 = vmatprep.mubr.bf16.mxu1 %v13468_v0  ;;  %v8995_v45 = vld [vmem:[%s11611_s28 + $0x9a8] sm:$0x33]  ;;  %v9084_v29 = vcombine.low %v8917_v15, %v8933_v16  ;;  %v8982_v15 = vld [vmem:[%s11611_s28 + $0x940] sm:$0xff] }
 0x1f7   : > { %v8998_v16 = vld [vmem:[%s11611_s28 + $0x9c0] sm:$0x33] }
 0x1f8   : > { %3760 = vmatpush1.bf16.msra.mxu0 %v9042_v52  ;;  %3801 = vmatpush1.bf16.msra.mxu1 %v9044_v53  ;;  %v9145_v52 = vcombine.high %v8979_v44, %v8995_v45  ;;  %v9110_v53 = vcombine.low %v8946_v36, %v8962_v37  ;;  %v3619_v37 = vand.u32 %v9147_v31, %v11633_v38 }
 0x1f9   : > { %3761 = vmatprep.subr.bf16.mxu0 %v9075_v54  ;;  %3802 = vmatprep.subr.bf16.mxu1 %v9077_v57  ;;  %v9142_v54 = vcombine.low %v8978_v41, %v8994_v42  ;;  %v9144_v57 = vcombine.low %v8979_v44, %v8995_v45  ;;  %v8854_v42 = vld [vmem:[%s11611_s28 + $0x540] sm:$0xff] }
 0x1fa   : > { %v3613_v59 = vand.u32 %v9145_v52, %v11633_v38 }
 0x1fb   : > { %v3604_v1 = vand.u32 %v9142_v54, %v11633_v38 }
 0x1fc   : > { %3762 = vmatpush1.bf16.msra.mxu0 %v9074_v2  ;;  %3803 = vmatpush1.bf16.msra.mxu1 %v9076_v3  ;;  %v3610_v2 = vand.u32 %v9144_v57, %v11633_v38  ;;  %v9019_v3 = vcombine.high %v8852_v60, %v8868_v61  ;;  %v8902_v60 = vld [vmem:[%s11611_s28 + $0x6c0] sm:$0xff]  ;;  %v8887_v61 = vld [vmem:[%s11611_s28 + $0x648] sm:$0xff] }
 0x1fd   : > { %3763 = vmatprep.subr.bf16.mxu0 %v9107_v4  ;;  %3804 = vmatprep.subr.bf16.mxu1 %v9109_v6  ;;  %v9021_v4 = vcombine.high %v8853_v62, %v8869_v63  ;;  %v8900_v6 = vld [vmem:[%s11611_s28 + $0x6b0] sm:$0xff] }
 0x1fe   : > { %v9050_v17 = vcombine.low %v8884_v5, %v8900_v6 }
 0x200   : > { %3764 = vmatpush1.bf16.msra.mxu0 %v9106_v8  ;;  %3805 = vmatpush1.bf16.msra.mxu1 %v9108_v10  ;;  %v8901_v8 = vld [vmem:[%s11611_s28 + $0x6b8] sm:$0xff]  ;;  %v9020_v10 = vcombine.low %v8853_v62, %v8869_v63  ;;  %v8903_v62 = vld [vmem:[%s11611_s28 + $0x6c8] sm:$0xff]  ;;  %v9022_v63 = vcombine.low %v8854_v42, %v8870_v43 }
 0x201   : > { %3765 = vmatprep.subr.bf16.mxu0 %v3595_v11  ;;  %3806 = vmatprep.subr.bf16.mxu1 %v3601_v13  ;;  %v9051_v11 = vcombine.high %v8884_v5, %v8900_v6  ;;  %v9053_v12 = vcombine.high %v8885_v7, %v8901_v8  ;;  %v8916_v13 = vld [vmem:[%s11611_s28 + $0x730] sm:$0xff]  ;;  %v8934_v5 = vld [vmem:[%s11611_s28 + $0x7c0] sm:$0xff]  ;;  %v8919_v6 = vld [vmem:[%s11611_s28 + $0x748] sm:$0xff] }
 0x204   : > { %3766 = vmatpush1.bf16.msra.mxu0 %v3592_v58  ;;  %3807 = vmatpush1.bf16.msra.mxu1 %v3598_v18  ;;  %v9052_v58 = vcombine.low %v8885_v7, %v8901_v8  ;;  %v9083_v18 = vcombine.high %v8916_v13, %v8932_v14  ;;  %v8935_v7 = vld [vmem:[%s11611_s28 + $0x7c8] sm:$0xff] }
 0x205   : > { %3839 = vmatprep.subr.bf16.mxu0 %v9015_v19  ;;  %3880 = vmatprep.subr.bf16.mxu1 %v9017_v20  ;;  %v8948_v19 = vld [vmem:[%s11611_s28 + $0x830] sm:$0xff] }
 0x206   : > { %v8964_v20 = vld [vmem:[%s11611_s28 + $0x8b0] sm:$0xff] }
 0x207   : > { %9168 = vmatmul.mubr.msk.bf16.vlgmr.msra.gmra.mrb[36].mxu0 %vm1890_vm2, %v11897_v49  ;;  %9169 = vmatmul.mubr.msk.bf16.vlgmr.msra.gmra.mrb[36].mxu1 %vm1890_vm2, %v11897_v49  ;;  %v9115_v30 = vcombine.high %v8948_v19, %v8964_v20 }
 0x208   : > { %3840 = vmatpush1.bf16.msra.mxu0 %v9014_v25  ;;  %3881 = vmatpush1.bf16.msra.mxu1 %v9016_v26  ;;  %v8965_v25 = vld [vmem:[%s11611_s28 + $0x8b8] sm:$0xff] }
 0x209   : > { %3841 = vmatprep.subr.bf16.mxu0 %v9047_v27  ;;  %3882 = vmatprep.subr.bf16.mxu1 %v9049_v28  ;;  %v8981_v26 = vld [vmem:[%s11611_s28 + $0x938] sm:$0xff]  ;;  %v9082_v28 = vcombine.low %v8916_v13, %v8932_v14  ;;  %v9117_v32 = vcombine.high %v8949_v22, %v8965_v25  ;;  %v9116_v36 = vcombine.low %v8949_v22, %v8965_v25  ;;  %v8951_v14 = vld [vmem:[%s11611_s28 + $0x848] sm:$0xff] }
 0x20a   : > { %3871 = vmatprep.mubr.bf16.mxu0 %v13468_v0  ;;  %3912 = vmatprep.mubr.bf16.mxu1 %v13468_v0  ;;  %v8997_v27 = vld [vmem:[%s11611_s28 + $0x9b8] sm:$0x33]  ;;  %v9089_v13 = vcombine.high %v8919_v6, %v8935_v7  ;;  %v9151_v22 = vcombine.high %v8982_v15, %v8998_v16 }
 0x20c   : > { %3842 = vmatpush1.bf16.msra.mxu0 %v9046_v33  ;;  %3883 = vmatpush1.bf16.msra.mxu1 %v9048_v34  ;;  %v9149_v33 = vcombine.high %v8981_v26, %v8997_v27  ;;  %v9114_v34 = vcombine.low %v8948_v19, %v8964_v20  ;;  %v9088_v20 = vcombine.low %v8919_v6, %v8935_v7  ;;  %v8952_v6 = vld [vmem:[%s11611_s28 + $0x850] sm:$0xff] }
 0x20d   : > { %3843 = vmatprep.subr.bf16.mxu0 %v9079_v35  ;;  %3884 = vmatprep.subr.bf16.mxu1 %v9081_v39  ;;  %v9146_v35 = vcombine.low %v8980_v23, %v8996_v24  ;;  %v9148_v39 = vcombine.low %v8981_v26, %v8997_v27  ;;  %v9150_v26 = vcombine.low %v8982_v15, %v8998_v16  ;;  %v8968_v7 = vld [vmem:[%s11611_s28 + $0x8d0] sm:$0xff] }
 0x20e   : > { %v3625_v41 = vand.u32 %v9149_v33, %v11633_v38  ;;  %v8872_v33 = vld [vmem:[%s11611_s28 + $0x5d0] sm:$0xff] }
 0x20f   : > { %v3622_v54 = vand.u32 %v9148_v39, %v11633_v38 }
 0x210   : > { %3844 = vmatpush1.bf16.msra.mxu0 %v9078_v46  ;;  %3885 = vmatpush1.bf16.msra.mxu1 %v9080_v47  ;;  %v8855_v46 = vld [vmem:[%s11611_s28 + $0x548] sm:$0xff] }
 0x211   : > { %3845 = vmatprep.subr.bf16.mxu0 %v9111_v48  ;;  %3886 = vmatprep.subr.bf16.mxu1 %v9113_v51  ;;  %v8871_v47 = vld [vmem:[%s11611_s28 + $0x5c8] sm:$0xff]  ;;  %v3616_v51 = vand.u32 %v9146_v35, %v11633_v38 }
 0x212   : > { %v9025_v57 = vcombine.high %v8855_v46, %v8871_v47 }
 0x214   : > { %3846 = vmatpush1.bf16.msra.mxu0 %v9110_v53  ;;  %3887 = vmatpush1.bf16.msra.mxu1 %v9112_v55  ;;  %v9023_v55 = vcombine.high %v8854_v42, %v8870_v43  ;;  %v3628_v42 = vand.u32 %v9150_v26, %v11633_v38 }
 0x215   : > { %3847 = vmatprep.subr.bf16.mxu0 %v3607_v56  ;;  %3888 = vmatprep.subr.bf16.mxu1 %v3613_v59  ;;  %v8886_v59 = vld [vmem:[%s11611_s28 + $0x640] sm:$0xff] }
 0x216   : > { %v9054_v8 = vcombine.low %v8886_v59, %v8902_v60 }
 0x218   : > { %3848 = vmatpush1.bf16.msra.mxu0 %v3604_v1  ;;  %3889 = vmatpush1.bf16.msra.mxu1 %v3610_v2  ;;  %v9024_v1 = vcombine.low %v8855_v46, %v8871_v47  ;;  %v9055_v2 = vcombine.high %v8886_v59, %v8902_v60 }
 0x219   : > { %3921 = vmatprep.subr.bf16.mxu0 %v9019_v3  ;;  %3962 = vmatprep.subr.bf16.mxu1 %v9021_v4  ;;  %v9057_v3 = vcombine.high %v8887_v61, %v8903_v62  ;;  %v8918_v4 = vld [vmem:[%s11611_s28 + $0x740] sm:$0xff] }
 0x21a   : > { %v9086_v19 = vcombine.low %v8918_v4, %v8934_v5 }
 0x21b   : > { %9170 = vmatmul.mubr.msk.bf16.vlgmr.msra.gmra.mrb[40].mxu0 %vm1890_vm2, %v11897_v49  ;;  %9171 = vmatmul.mubr.msk.bf16.vlgmr.msra.gmra.mrb[40].mxu1 %vm1890_vm2, %v11897_v49 }
 0x21c   : > { %3922 = vmatpush1.bf16.msra.mxu0 %v9018_v9  ;;  %3963 = vmatpush1.bf16.msra.mxu1 %v9020_v10  ;;  %v9056_v9 = vcombine.low %v8887_v61, %v8903_v62  ;;  %v9087_v10 = vcombine.high %v8918_v4, %v8934_v5  ;;  %v8920_v62 = vld [vmem:[%s11611_s28 + $0x750] sm:$0xff] }
 0x21d   : > { %3923 = vmatprep.subr.bf16.mxu0 %v9051_v11  ;;  %3964 = vmatprep.subr.bf16.mxu1 %v9053_v12  ;;  %v8950_v11 = vld [vmem:[%s11611_s28 + $0x840] sm:$0xff] }
 0x21e   : > { %3953 = vmatprep.mubr.bf16.mxu0 %v13468_v0  ;;  %3994 = vmatprep.mubr.bf16.mxu1 %v13468_v0  ;;  %v8966_v12 = vld [vmem:[%s11611_s28 + $0x8c0] sm:$0xff] }
 0x21f   : > { %v9118_v25 = vcombine.low %v8950_v11, %v8966_v12 }
 0x220   : > { %3924 = vmatpush1.bf16.msra.mxu0 %v9050_v17  ;;  %3965 = vmatpush1.bf16.msra.mxu1 %v9052_v58  ;;  %v8967_v17 = vld [vmem:[%s11611_s28 + $0x8c8] sm:$0xff] }
 0x221   : > { %3925 = vmatprep.subr.bf16.mxu0 %v9083_v18  ;;  %3966 = vmatprep.subr.bf16.mxu1 %v9085_v21  ;;  %v8983_v58 = vld [vmem:[%s11611_s28 + $0x948] sm:$0xff]  ;;  %v9119_v21 = vcombine.high %v8950_v11, %v8966_v12  ;;  %v9121_v23 = vcombine.high %v8951_v14, %v8967_v17  ;;  %v9120_v27 = vcombine.low %v8951_v14, %v8967_v17  ;;  %v9000_v11 = vld [vmem:[%s11611_s28 + $0x9d0] sm:$0x33]  ;;  %v8969_v12 = vld [vmem:[%s11611_s28 + $0x8d8] sm:$0xff] }
 0x222   : > { %v8999_v18 = vld [vmem:[%s11611_s28 + $0x9c8] sm:$0x33]  ;;  %v9001_v14 = vld [vmem:[%s11611_s28 + $0x9d8] sm:$0x33]  ;;  %v9123_v17 = vcombine.high %v8952_v6, %v8968_v7 }
 0x223   : > { %v9153_v24 = vcombine.high %v8983_v58, %v8999_v18 }
 0x224   : > { %3926 = vmatpush1.bf16.msra.mxu0 %v9082_v28  ;;  %3967 = vmatpush1.bf16.msra.mxu1 %v9084_v29  ;;  %v3631_v28 = vand.u32 %v9151_v22, %v11633_v38  ;;  %v9152_v29 = vcombine.low %v8983_v58, %v8999_v18 }
 0x225   : > { %3927 = vmatprep.subr.bf16.mxu0 %v9115_v30  ;;  %3968 = vmatprep.subr.bf16.mxu1 %v9117_v32  ;;  %v3637_v31 = vand.u32 %v9153_v24, %v11633_v38  ;;  %v8856_v32 = vld [vmem:[%s11611_s28 + $0x550] sm:$0xff] }
 0x226   : > { %v11976_v40 = vpop.f32.mrb[0].mxu0  ;;  %v11981_v44 = vpop.f32.mrb[0].mxu1  ;;  %v3634_v47 = vand.u32 %v9152_v29, %v11633_v38 }
 0x227   : > { %v11983_v45 = vpop.f32.mrb[1].mxu0  ;;  %v11987_v48 = vpop.f32.mrb[1].mxu1 }
 0x228   : > { %v2032_v50 = vpop.f32.mrb[2].mxu0  ;;  %3928 = vmatpush1.bf16.msra.mxu0 %v9114_v34  ;;  %v2073_v52 = vpop.f32.mrb[2].mxu1  ;;  %3969 = vmatpush1.bf16.msra.mxu1 %v9116_v36  ;;  %v8857_v36 = vld [vmem:[%s11611_s28 + $0x558] sm:$0xff] }
 0x229   : > { %v2033_v53 = vpop.f32.mrb[3].mxu0  ;;  %3929 = vmatprep.subr.bf16.mxu0 %v3619_v37  ;;  %v2074_v56 = vpop.f32.mrb[3].mxu1  ;;  %3970 = vmatprep.subr.bf16.mxu1 %v3625_v41  ;;  %v8873_v37 = vld [vmem:[%s11611_s28 + $0x5d8] sm:$0xff]  ;;  %v9027_v50 = vcombine.high %v8856_v32, %v8872_v33 }
 0x22a   : > { %v9029_v52 = vcombine.high %v8857_v36, %v8873_v37  ;;  %v8888_v53 = vld [vmem:[%s11611_s28 + $0x650] sm:$0xff]  ;;  %v8905_v56 = vld [vmem:[%s11611_s28 + $0x6d8] sm:$0xff]  ;;  %v9028_v59 = vcombine.low %v8857_v36, %v8873_v37 }
 0x22c   : > { %3930 = vmatpush1.bf16.msra.mxu0 %v3616_v51  ;;  %3971 = vmatpush1.bf16.msra.mxu1 %v3622_v54  ;;  %v8904_v54 = vld [vmem:[%s11611_s28 + $0x6d0] sm:$0xff] }
 0x22d   : > { %4003 = vmatprep.subr.bf16.mxu0 %v9023_v55  ;;  %4044 = vmatprep.subr.bf16.mxu1 %v9025_v57  ;;  %v8889_v55 = vld [vmem:[%s11611_s28 + $0x658] sm:$0xff]  ;;  %v9026_v57 = vcombine.low %v8856_v32, %v8872_v33  ;;  %v9059_v60 = vcombine.high %v8888_v53, %v8904_v54  ;;  %v8859_v32 = vld [vmem:[%s11611_s28 + $0x568] sm:$0xff] }
 0x22e   : > { %v9061_v61 = vcombine.high %v8889_v55, %v8905_v56  ;;  %v9060_v4 = vcombine.low %v8889_v55, %v8905_v56  ;;  %v8875_v33 = vld [vmem:[%s11611_s28 + $0x5e8] sm:$0xff] }
 0x22f   : > { %9172 = vmatmul.mubr.msk.bf16.vlgmr.msra.gmra.mrb[44].mxu0 %vm1890_vm2, %v11897_v49  ;;  %9173 = vmatmul.mubr.msk.bf16.vlgmr.msra.gmra.mrb[44].mxu1 %vm1890_vm2, %v11897_v49  ;;  %v8907_v55 = vld [vmem:[%s11611_s28 + $0x6e8] sm:$0xff] }
 0x230   : > { %4004 = vmatpush1.bf16.msra.mxu0 %v9022_v63  ;;  %4045 = vmatpush1.bf16.msra.mxu1 %v9024_v1  ;;  %v8936_v63 = vld [vmem:[%s11611_s28 + $0x7d0] sm:$0xff]  ;;  %v8921_v1 = vld [vmem:[%s11611_s28 + $0x758] sm:$0xff] }
 0x231   : > { %4005 = vmatprep.subr.bf16.mxu0 %v9055_v2  ;;  %4046 = vmatprep.subr.bf16.mxu1 %v9057_v3  ;;  %v8937_v2 = vld [vmem:[%s11611_s28 + $0x7d8] sm:$0xff]  ;;  %v9058_v3 = vcombine.low %v8888_v53, %v8904_v54  ;;  %v9091_v5 = vcombine.high %v8920_v62, %v8936_v63  ;;  %v9090_v15 = vcombine.low %v8920_v62, %v8936_v63  ;;  %v8906_v53 = vld [vmem:[%s11611_s28 + $0x6e0] sm:$0xff]  ;;  %v8891_v54 = vld [vmem:[%s11611_s28 + $0x668] sm:$0xff] }
 0x232   : > { %4035 = vmatprep.mubr.bf16.mxu0 %v13468_v0  ;;  %4076 = vmatprep.mubr.bf16.mxu1 %v13468_v0  ;;  %v9092_v16 = vcombine.low %v8921_v1, %v8937_v2  ;;  %v8938_v62 = vld [vmem:[%s11611_s28 + $0x7e0] sm:$0xff]  ;;  %v8923_v63 = vld [vmem:[%s11611_s28 + $0x768] sm:$0xff] }
 0x234   : > { %4006 = vmatpush1.bf16.msra.mxu0 %v9054_v8  ;;  %4047 = vmatpush1.bf16.msra.mxu1 %v9056_v9  ;;  %v9093_v8 = vcombine.high %v8921_v1, %v8937_v2  ;;  %v8953_v9 = vld [vmem:[%s11611_s28 + $0x858] sm:$0xff]  ;;  %v8939_v1 = vld [vmem:[%s11611_s28 + $0x7e8] sm:$0xff] }
 0x235   : > { %4007 = vmatprep.subr.bf16.mxu0 %v9087_v10  ;;  %4048 = vmatprep.subr.bf16.mxu1 %v9089_v13  ;;  %v8984_v10 = vld [vmem:[%s11611_s28 + $0x950] sm:$0xff]  ;;  %v8985_v13 = vld [vmem:[%s11611_s28 + $0x958] sm:$0xff]  ;;  %v9125_v18 = vcombine.high %v8953_v9, %v8969_v12  ;;  %v9124_v22 = vcombine.low %v8953_v9, %v8969_v12  ;;  %v8986_v9 = vld [vmem:[%s11611_s28 + $0x960] sm:$0xff] }
 0x236   : > { %v9155_v58 = vcombine.high %v8984_v10, %v9000_v11  ;;  %v9156_v24 = vcombine.low %v8985_v13, %v9001_v14  ;;  %v8987_v12 = vld [vmem:[%s11611_s28 + $0x968] sm:$0xff] }
 0x238   : > { %4008 = vmatpush1.bf16.msra.mxu0 %v9086_v19  ;;  %4049 = vmatpush1.bf16.msra.mxu1 %v9088_v20  ;;  %v9157_v19 = vcombine.high %v8985_v13, %v9001_v14  ;;  %v9122_v20 = vcombine.low %v8952_v6, %v8968_v7  ;;  %v8970_v6 = vld [vmem:[%s11611_s28 + $0x8e0] sm:$0xff]  ;;  %v9097_v7 = vcombine.high %v8923_v63, %v8939_v1  ;;  %v9003_v13 = vld [vmem:[%s11611_s28 + $0x9e8] sm:$0x33] }
 0x239   : > { %4009 = vmatprep.subr.bf16.mxu0 %v9119_v21  ;;  %4050 = vmatprep.subr.bf16.mxu1 %v9121_v23  ;;  %v9154_v21 = vcombine.low %v8984_v10, %v9000_v11  ;;  %v3643_v23 = vand.u32 %v9155_v58, %v11633_v38  ;;  %v9002_v10 = vld [vmem:[%s11611_s28 + $0x9e0] sm:$0x33]  ;;  %v8971_v11 = vld [vmem:[%s11611_s28 + $0x8e8] sm:$0xff] }
 0x23a   : > { %v12014_v30 = vpop.f32.mrb[4].mxu0  ;;  %v12019_v34 = vpop.f32.mrb[4].mxu1  ;;  %v3649_v26 = vand.u32 %v9157_v19, %v11633_v38 }
 0x23b   : > { %v12021_v35 = vpop.f32.mrb[5].mxu0  ;;  %v12025_v39 = vpop.f32.mrb[5].mxu1 }
 0x23c   : > { %13516 = vst [vmem:[#allocation4_spill] sm:$0xff] %v12025_v39  ;;  %v2114_v41 = vpop.f32.mrb[6].mxu0  ;;  %4010 = vmatpush1.bf16.msra.mxu0 %v9118_v25  ;;  %v2155_v43 = vpop.f32.mrb[6].mxu1  ;;  %4051 = vmatpush1.bf16.msra.mxu1 %v9120_v27  ;;  %v8858_v27 = vld [vmem:[%s11611_s28 + $0x560] sm:$0xff]  ;;  %v9321_v39 = vld [vmem:[%s11611_s28 + $0xe58] sm:$0xff] }
 0x23d   : > { %v2115_v46 = vpop.f32.mrb[7].mxu0  ;;  %4011 = vmatprep.subr.bf16.mxu0 %v3631_v28  ;;  %v2156_v51 = vpop.f32.mrb[7].mxu1  ;;  %4052 = vmatprep.subr.bf16.mxu1 %v3637_v31  ;;  %v8874_v28 = vld [vmem:[%s11611_s28 + $0x5e0] sm:$0xff]  ;;  %v3640_v41 = vand.u32 %v9154_v21, %v11633_v38 }
 0x23e   : > { %v3646_v46 = vand.u32 %v9156_v24, %v11633_v38  ;;  %v9033_v51 = vcombine.high %v8859_v32, %v8875_v33  ;;  %v9030_v56 = vcombine.low %v8858_v27, %v8874_v28 }
 0x240   : > { %4012 = vmatpush1.bf16.msra.mxu0 %v3628_v42  ;;  %4053 = vmatpush1.bf16.msra.mxu1 %v3634_v47  ;;  %v9031_v47 = vcombine.high %v8858_v27, %v8874_v28  ;;  %v8860_v27 = vld [vmem:[%s11611_s28 + $0x570] sm:$0xff] }
 0x241   : > { %4085 = vmatprep.subr.bf16.mxu0 %v9027_v50  ;;  %4126 = vmatprep.subr.bf16.mxu1 %v9029_v52  ;;  %v8890_v52 = vld [vmem:[%s11611_s28 + $0x660] sm:$0xff]  ;;  %v8876_v28 = vld [vmem:[%s11611_s28 + $0x5f0] sm:$0xff] }
 0x242   : > { %v9062_v2 = vcombine.low %v8890_v52, %v8906_v53 }
 0x243   : > { %9174 = vmatmul.mubr.msk.bf16.vlgmr.msra.gmra.mrb[48].mxu0 %vm1890_vm2, %v11897_v49  ;;  %9175 = vmatmul.mubr.msk.bf16.vlgmr.msra.gmra.mrb[48].mxu1 %vm1890_vm2, %v11897_v49 }
 0x244   : > { %4086 = vmatpush1.bf16.msra.mxu0 %v9026_v57  ;;  %4127 = vmatpush1.bf16.msra.mxu1 %v9028_v59  ;;  %v9032_v57 = vcombine.low %v8859_v32, %v8875_v33  ;;  %v9063_v59 = vcombine.high %v8890_v52, %v8906_v53  ;;  %v9035_v52 = vcombine.high %v8860_v27, %v8876_v28 }
 0x245   : > { %4087 = vmatprep.subr.bf16.mxu0 %v9059_v60  ;;  %4128 = vmatprep.subr.bf16.mxu1 %v9061_v61  ;;  %v9065_v60 = vcombine.high %v8891_v54, %v8907_v55  ;;  %v8922_v61 = vld [vmem:[%s11611_s28 + $0x760] sm:$0xff] }
 0x246   : > { %4117 = vmatprep.mubr.bf16.mxu0 %v13468_v0  ;;  %4158 = vmatprep.mubr.bf16.mxu1 %v13468_v0  ;;  %v9094_v14 = vcombine.low %v8922_v61, %v8938_v62 }
 0x248   : > { %4088 = vmatpush1.bf16.msra.mxu0 %v9058_v3  ;;  %4129 = vmatpush1.bf16.msra.mxu1 %v9060_v4  ;;  %v9064_v3 = vcombine.low %v8891_v54, %v8907_v55  ;;  %v9095_v4 = vcombine.high %v8922_v61, %v8938_v62  ;;  %v8892_v55 = vld [vmem:[%s11611_s28 + $0x670] sm:$0xff] }
 0x249   : > { %4089 = vmatprep.subr.bf16.mxu0 %v9091_v5  ;;  %4130 = vmatprep.subr.bf16.mxu1 %v9093_v8  ;;  %v8954_v5 = vld [vmem:[%s11611_s28 + $0x860] sm:$0xff]  ;;  %v8955_v8 = vld [vmem:[%s11611_s28 + $0x868] sm:$0xff] }
 0x24a   : > { %v9129_v58 = vcombine.high %v8955_v8, %v8971_v11  ;;  %v9126_v19 = vcombine.low %v8954_v5, %v8970_v6  ;;  %v9128_v21 = vcombine.low %v8955_v8, %v8971_v11  ;;  %v8956_v8 = vld [vmem:[%s11611_s28 + $0x870] sm:$0xff]  ;;  %v8957_v11 = vld [vmem:[%s11611_s28 + $0x878] sm:$0xff] }
 0x24c   : > { %4090 = vmatpush1.bf16.msra.mxu0 %v9090_v15  ;;  %4131 = vmatpush1.bf16.msra.mxu1 %v9092_v16  ;;  %v9096_v15 = vcombine.low %v8923_v63, %v8939_v1  ;;  %v9127_v16 = vcombine.high %v8954_v5, %v8970_v6  ;;  %v8924_v1 = vld [vmem:[%s11611_s28 + $0x770] sm:$0xff] }
 0x24d   : > { %4091 = vmatprep.subr.bf16.mxu0 %v9123_v17  ;;  %4132 = vmatprep.subr.bf16.mxu1 %v9125_v18  ;;  %v9159_v17 = vcombine.high %v8986_v9, %v9002_v10  ;;  %v9161_v18 = vcombine.high %v8987_v12, %v9003_v13 }
 0x24e   : > { %v12052_v25 = vpop.f32.mrb[8].mxu0  ;;  %v12057_v29 = vpop.f32.mrb[8].mxu1 }
 0x24f   : > { %v12059_v31 = vpop.f32.mrb[9].mxu0  ;;  %v12063_v36 = vpop.f32.mrb[9].mxu1 }
 0x250   : > { %13517 = vst [vmem:[#allocation5_spill] sm:$0xff] %v12059_v31  ;;  %13518 = vst [vmem:[#allocation6_spill] sm:$0xff] %v12063_v36  ;;  %v2196_v37 = vpop.f32.mrb[10].mxu0  ;;  %4092 = vmatpush1.bf16.msra.mxu0 %v9122_v20  ;;  %v2237_v42 = vpop.f32.mrb[10].mxu1  ;;  %4133 = vmatpush1.bf16.msra.mxu1 %v9124_v22  ;;  %v9158_v20 = vcombine.low %v8986_v9, %v9002_v10  ;;  %v3655_v22 = vand.u32 %v9159_v17, %v11633_v38  ;;  %v8972_v9 = vld [vmem:[%s11611_s28 + $0x8f0] sm:$0xff]  ;;  %v9307_v36 = vld [vmem:[%s11611_s28 + $0xde8] sm:$0xff] }
 0x251   : > { %v2197_v43 = vpop.f32.mrb[11].mxu0  ;;  %4093 = vmatprep.subr.bf16.mxu0 %v3643_v23  ;;  %v2238_v50 = vpop.f32.mrb[11].mxu1  ;;  %4134 = vmatprep.subr.bf16.mxu1 %v3649_v26  ;;  %v9160_v23 = vcombine.low %v8987_v12, %v9003_v13  ;;  %v3661_v26 = vand.u32 %v9161_v18, %v11633_v38  ;;  %v8861_v37 = vld [vmem:[%s11611_s28 + $0x578] sm:$0xff]  ;;  %v8988_v12 = vld [vmem:[%s11611_s28 + $0x970] sm:$0xff] }
 0x252   : > { %v9004_v13 = vld [vmem:[%s11611_s28 + $0x9f0] sm:$0x33] }
 0x253   : > { %v9163_v18 = vcombine.high %v8988_v12, %v9004_v13 }
 0x254   : > { %4094 = vmatpush1.bf16.msra.mxu0 %v3640_v41  ;;  %4135 = vmatpush1.bf16.msra.mxu1 %v3646_v46  ;;  %v8877_v41 = vld [vmem:[%s11611_s28 + $0x5f8] sm:$0xff]  ;;  %v3652_v46 = vand.u32 %v9158_v20, %v11633_v38 }
 0x255   : > { %4167 = vmatprep.subr.bf16.mxu0 %v9031_v47  ;;  %4208 = vmatprep.subr.bf16.mxu1 %v9033_v51  ;;  %v3658_v51 = vand.u32 %v9160_v23, %v11633_v38  ;;  %v9037_v54 = vcombine.high %v8861_v37, %v8877_v41  ;;  %v9036_v61 = vcombine.low %v8861_v37, %v8877_v41  ;;  %v9182_v41 = vld [vmem:[%s11611_s28 + $0xa00] sm:$0xff] }
 0x257   : > { %9176 = vmatmul.mubr.msk.bf16.vlgmr.msra.gmra.mrb[52].mxu0 %vm1890_vm2, %v11897_v49  ;;  %9177 = vmatmul.mubr.msk.bf16.vlgmr.msra.gmra.mrb[52].mxu1 %vm1890_vm2, %v11897_v49 }
 0x258   : > { %4168 = vmatpush1.bf16.msra.mxu0 %v9030_v56  ;;  %4209 = vmatpush1.bf16.msra.mxu1 %v9032_v57  ;;  %v8908_v56 = vld [vmem:[%s11611_s28 + $0x6f0] sm:$0xff]  ;;  %v8893_v57 = vld [vmem:[%s11611_s28 + $0x678] sm:$0xff] }
 0x259   : > { %4169 = vmatprep.subr.bf16.mxu0 %v9063_v59  ;;  %4210 = vmatprep.subr.bf16.mxu1 %v9065_v60  ;;  %v8909_v59 = vld [vmem:[%s11611_s28 + $0x6f8] sm:$0xff]  ;;  %v9034_v60 = vcombine.low %v8860_v27, %v8876_v28  ;;  %v9067_v62 = vcombine.high %v8892_v55, %v8908_v56  ;;  %v9066_v5 = vcombine.low %v8892_v55, %v8908_v56 }
 0x25a   : > { %4199 = vmatprep.mubr.bf16.mxu0 %v13468_v0  ;;  %4240 = vmatprep.mubr.bf16.mxu1 %v13468_v0  ;;  %v9069_v63 = vcombine.high %v8893_v57, %v8909_v59  ;;  %v9068_v6 = vcombine.low %v8893_v57, %v8909_v59 }
 0x25c   : > { %4170 = vmatpush1.bf16.msra.mxu0 %v9062_v2  ;;  %4211 = vmatpush1.bf16.msra.mxu1 %v9064_v3  ;;  %v8940_v2 = vld [vmem:[%s11611_s28 + $0x7f0] sm:$0xff]  ;;  %v8925_v3 = vld [vmem:[%s11611_s28 + $0x778] sm:$0xff] }
 0x25d   : > { %4171 = vmatprep.subr.bf16.mxu0 %v9095_v4  ;;  %4212 = vmatprep.subr.bf16.mxu1 %v9097_v7  ;;  %v8941_v4 = vld [vmem:[%s11611_s28 + $0x7f8] sm:$0xff]  ;;  %v9099_v7 = vcombine.high %v8924_v1, %v8940_v2 }
 0x25e   : > { %v9101_v10 = vcombine.high %v8925_v3, %v8941_v4  ;;  %v9100_v17 = vcombine.low %v8925_v3, %v8941_v4 }
 0x260   : > { %4172 = vmatpush1.bf16.msra.mxu0 %v9094_v14  ;;  %4213 = vmatpush1.bf16.msra.mxu1 %v9096_v15  ;;  %v8973_v14 = vld [vmem:[%s11611_s28 + $0x8f8] sm:$0xff] }
 0x261   : > { %4173 = vmatprep.subr.bf16.mxu0 %v9127_v16  ;;  %4214 = vmatprep.subr.bf16.mxu1 %v9129_v58  ;;  %v8989_v15 = vld [vmem:[%s11611_s28 + $0x978] sm:$0xff]  ;;  %v9098_v16 = vcombine.low %v8924_v1, %v8940_v2  ;;  %v9131_v58 = vcombine.high %v8956_v8, %v8972_v9  ;;  %v9132_v23 = vcombine.low %v8957_v11, %v8973_v14  ;;  %v9215_v1 = vld [vmem:[%s11611_s28 + $0xb08] sm:$0xff] }
 0x262   : > { %v12090_v24 = vpop.f32.mrb[12].mxu0  ;;  %v12095_v32 = vpop.f32.mrb[12].mxu1  ;;  %v9231_v2 = vld [vmem:[%s11611_s28 + $0xb88] sm:$0xff] }
 0x263   : > { %v12097_v33 = vpop.f32.mrb[13].mxu0  ;;  %v12101_v42 = vpop.f32.mrb[13].mxu1 }
 0x264   : > { %13519 = vst [vmem:[#allocation7_spill] sm:$0xff] %v12097_v33  ;;  %13520 = vst [vmem:[#allocation8_spill] sm:$0xff] %v12101_v42  ;;  %v2278_v43 = vpop.f32.mrb[14].mxu0  ;;  %4174 = vmatpush1.bf16.msra.mxu0 %v9126_v19  ;;  %v2319_v47 = vpop.f32.mrb[14].mxu1  ;;  %4215 = vmatpush1.bf16.msra.mxu1 %v9128_v21  ;;  %v9133_v19 = vcombine.high %v8957_v11, %v8973_v14  ;;  %v9130_v21 = vcombine.low %v8956_v8, %v8972_v9  ;;  %v9262_v8 = vld [vmem:[%s11611_s28 + $0xc80] sm:$0xff]  ;;  %v9263_v11 = vld [vmem:[%s11611_s28 + $0xc88] sm:$0xff] }
 0x265   : > { %v2279_v50 = vpop.f32.mrb[15].mxu0  ;;  %4175 = vmatprep.subr.bf16.mxu0 %v3655_v22  ;;  %v2320_v53 = vpop.f32.mrb[15].mxu1  ;;  %4216 = vmatprep.subr.bf16.mxu1 %v3661_v26  ;;  %v9162_v22 = vcombine.low %v8988_v12, %v9004_v13  ;;  %v3667_v26 = vand.u32 %v9163_v18, %v11633_v38  ;;  %v9198_v43 = vld [vmem:[%s11611_s28 + $0xa80] sm:$0xff]  ;;  %v9376_v13 = vcombine.low %v9215_v1, %v9231_v2  ;;  %v9309_v42 = vld [vmem:[%s11611_s28 + $0xdf8] sm:$0xff] }
 0x266   : > { %v9183_v50 = vld [vmem:[%s11611_s28 + $0xa08] sm:$0xff]  ;;  %v9343_v59 = vcombine.high %v9182_v41, %v9198_v43  ;;  %v9342_v3 = vcombine.low %v9182_v41, %v9198_v43  ;;  %v12152_v9 = vld [vmem:[%s13462_s1] sm:$0x7]  ;;  %v9341_v33 = vld [vmem:[%s11611_s28 + $0xef8] sm:$0x33] }
 0x267   : > { %v9326_v18 = vld [vmem:[%s11611_s28 + $0xe80] sm:$0x33] }
 0x268   : > { %4176 = vmatpush1.bf16.msra.mxu0 %v3652_v46  ;;  %4217 = vmatpush1.bf16.msra.mxu1 %v3658_v51  ;;  %v9199_v51 = vld [vmem:[%s11611_s28 + $0xa88] sm:$0xff] }
 0x269   : > { %4249 = vmatprep.subr.bf16.mxu0 %v9035_v52  ;;  %4290 = vmatprep.subr.bf16.mxu1 %v9037_v54  ;;  %v3664_v54 = vand.u32 %v9162_v22, %v11633_v38  ;;  %v9344_v4 = vcombine.low %v9183_v50, %v9199_v51 }
 0x26b   : > { %9178 = vmatmul.mubr.msk.bf16.vlgmr.msra.gmra.mrb[56].mxu0 %vm1890_vm2, %v11897_v49  ;;  %9179 = vmatmul.mubr.msk.bf16.vlgmr.msra.gmra.mrb[56].mxu1 %vm1890_vm2, %v11897_v49  ;;  %v9005_v49 = vld [vmem:[%s11611_s28 + $0x9f8] sm:$0x33] }
 0x26c   : > { %4250 = vmatpush1.bf16.msra.mxu0 %v9034_v60  ;;  %4291 = vmatpush1.bf16.msra.mxu1 %v9036_v61  ;;  %v9165_v20 = vcombine.high %v8989_v15, %v9005_v49  ;;  %v9164_v27 = vcombine.low %v8989_v15, %v9005_v49  ;;  %v9345_v61 = vcombine.high %v9183_v50, %v9199_v51  ;;  %v9278_v15 = vld [vmem:[%s11611_s28 + $0xd00] sm:$0xff] }
 0x26d   : > { %4251 = vmatprep.subr.bf16.mxu0 %v9067_v62  ;;  %4292 = vmatprep.subr.bf16.mxu1 %v9069_v63  ;;  %v9214_v62 = vld [vmem:[%s11611_s28 + $0xb00] sm:$0xff] }
 0x26e   : > { %4281 = vmatprep.mubr.bf16.mxu0 %v13468_v0  ;;  %4322 = vmatprep.mubr.bf16.mxu1 %v13468_v0  ;;  %v3673_v37 = vand.u32 %v9165_v20, %v11633_v38  ;;  %v3670_v57 = vand.u32 %v9164_v27, %v11633_v38  ;;  %v9230_v63 = vld [vmem:[%s11611_s28 + $0xb80] sm:$0xff]  ;;  %v9311_v20 = vld [vmem:[%s11611_s28 + $0xe08] sm:$0xff] }
 0x26f   : > { %v9374_v12 = vcombine.low %v9214_v62, %v9230_v63  ;;  %v9294_v49 = vld [vmem:[%s11611_s28 + $0xd80] sm:$0xff] }
 0x270   : > { %4252 = vmatpush1.bf16.msra.mxu0 %v9066_v5  ;;  %4293 = vmatpush1.bf16.msra.mxu1 %v9068_v6  ;;  %v9375_v5 = vcombine.high %v9214_v62, %v9230_v63  ;;  %v9377_v6 = vcombine.high %v9215_v1, %v9231_v2  ;;  %v9438_v43 = vcombine.low %v9278_v15, %v9294_v49  ;;  %v9185_v62 = vld [vmem:[%s11611_s28 + $0xa18] sm:$0xff] }
 0x271   : > { %4253 = vmatprep.subr.bf16.mxu0 %v9099_v7  ;;  %4294 = vmatprep.subr.bf16.mxu1 %v9101_v10  ;;  %v9246_v7 = vld [vmem:[%s11611_s28 + $0xc00] sm:$0xff]  ;;  %v9247_v10 = vld [vmem:[%s11611_s28 + $0xc08] sm:$0xff]  ;;  %v9201_v63 = vld [vmem:[%s11611_s28 + $0xa98] sm:$0xff] }
 0x272   : > { %v9407_v14 = vcombine.high %v9246_v7, %v9262_v8  ;;  %v9406_v22 = vcombine.low %v9246_v7, %v9262_v8 }
 0x274   : > { %4254 = vmatpush1.bf16.msra.mxu0 %v9098_v16  ;;  %4295 = vmatpush1.bf16.msra.mxu1 %v9100_v17  ;;  %v9409_v16 = vcombine.high %v9247_v10, %v9263_v11  ;;  %v9279_v17 = vld [vmem:[%s11611_s28 + $0xd08] sm:$0xff] }
 0x275   : > { %4255 = vmatprep.subr.bf16.mxu0 %v9131_v58  ;;  %4296 = vmatprep.subr.bf16.mxu1 %v9133_v19  ;;  %v9310_v58 = vld [vmem:[%s11611_s28 + $0xe00] sm:$0xff]  ;;  %v9295_v19 = vld [vmem:[%s11611_s28 + $0xd88] sm:$0xff] }
 0x276   : > { %v12128_v28 = vpop.f32.mrb[16].mxu0  ;;  %v12133_v46 = vpop.f32.mrb[16].mxu1  ;;  %v9471_v27 = vcombine.high %v9310_v58, %v9326_v18  ;;  %v9470_v50 = vcombine.low %v9310_v58, %v9326_v18  ;;  %v9440_v51 = vcombine.low %v9279_v17, %v9295_v19  ;;  %v9248_v58 = vld [vmem:[%s11611_s28 + $0xc10] sm:$0xff] }
 0x277   : > { %v12135_v47 = vpop.f32.mrb[17].mxu0  ;;  %v12139_v52 = vpop.f32.mrb[17].mxu1  ;;  %v9264_v18 = vld [vmem:[%s11611_s28 + $0xc90] sm:$0xff] }
 0x278   : > { %13521 = vst [vmem:[#allocation9_spill] sm:$0xff] %v12135_v47  ;;  %13522 = vst [vmem:[#allocation10_spill] sm:$0xff] %v12139_v52  ;;  %v2360_v53 = vpop.f32.mrb[18].mxu0  ;;  %4256 = vmatpush1.bf16.msra.mxu0 %v9130_v21  ;;  %v2401_v55 = vpop.f32.mrb[18].mxu1  ;;  %4297 = vmatpush1.bf16.msra.mxu1 %v9132_v23  ;;  %v9327_v21 = vld [vmem:[%s11611_s28 + $0xe88] sm:$0x33]  ;;  %v9408_v23 = vcombine.low %v9247_v10, %v9263_v11  ;;  %v9349_v10 = vcombine.high %v9185_v62, %v9201_v63 }
 0x279   : > { %v2361_v56 = vpop.f32.mrb[19].mxu0  ;;  %4257 = vmatprep.subr.bf16.mxu0 %v3667_v26  ;;  %v2402_v60 = vpop.f32.mrb[19].mxu1  ;;  %4298 = vmatprep.subr.bf16.mxu1 %v3673_v37  ;;  %v9439_v26 = vcombine.high %v9278_v15, %v9294_v49  ;;  %v9441_v37 = vcombine.high %v9279_v17, %v9295_v19  ;;  %v9473_v41 = vcombine.high %v9311_v20, %v9327_v21  ;;  %v9216_v11 = vld [vmem:[%s11611_s28 + $0xb10] sm:$0xff]  ;;  %v9249_v19 = vld [vmem:[%s11611_s28 + $0xc18] sm:$0xff]  ;;  %v9647_v52 = vld [vmem:[%s11611_s28 + $0x1308] sm:$0xff] }
 0x27a   : > { %v5296_v53 = vand.u32 %v9471_v27, %v11633_v38  ;;  %v9348_v49 = vcombine.low %v9185_v62, %v9201_v63  ;;  %v9296_v27 = vld [vmem:[%s11611_s28 + $0xd90] sm:$0xff] }
 0x27b   : > { %v5302_v56 = vand.u32 %v9473_v41, %v11633_v38  ;;  %v9281_v41 = vld [vmem:[%s11611_s28 + $0xd18] sm:$0xff] }
 0x27c   : > { %4258 = vmatpush1.bf16.msra.mxu0 %v3664_v54  ;;  %4299 = vmatpush1.bf16.msra.mxu1 %v3670_v57  ;;  %v9472_v54 = vcombine.low %v9311_v20, %v9327_v21  ;;  %v9184_v57 = vld [vmem:[%s11611_s28 + $0xa10] sm:$0xff]  ;;  %v9265_v20 = vld [vmem:[%s11611_s28 + $0xc98] sm:$0xff] }
 0x27d   : > { %5388 = vmatprep.subr.bf16.mxu0 %v9343_v59  ;;  %5429 = vmatprep.subr.bf16.mxu1 %v9345_v61  ;;  %v9200_v59 = vld [vmem:[%s11611_s28 + $0xa90] sm:$0xff] }
 0x27e   : > { %v9347_v7 = vcombine.high %v9184_v57, %v9200_v59  ;;  %v9346_v15 = vcombine.low %v9184_v57, %v9200_v59  ;;  %v9412_v57 = vcombine.low %v9249_v19, %v9265_v20 }
 0x27f   : > { %9180 = vmatmul.mubr.msk.bf16.vlgmr.msra.gmra.mrb[60].mxu0 %vm1890_vm2, %v12152_v9  ;;  %9181 = vmatmul.mubr.msk.bf16.vlgmr.msra.gmra.mrb[60].mxu1 %vm1890_vm2, %v12152_v9 }
 0x280   : > { %5389 = vmatpush1.bf16.msra.mxu0 %v9342_v3  ;;  %5430 = vmatpush1.bf16.msra.mxu1 %v9344_v4  ;;  %v5293_v3 = vand.u32 %v9470_v50, %v11633_v38  ;;  %v9328_v50 = vld [vmem:[%s11611_s28 + $0xe90] sm:$0x33] }
 0x281   : > { %5390 = vmatprep.subr.bf16.mxu0 %v9375_v5  ;;  %5431 = vmatprep.subr.bf16.mxu1 %v9377_v6  ;;  %v5299_v6 = vand.u32 %v9472_v54, %v11633_v38  ;;  %v9329_v54 = vld [vmem:[%s11611_s28 + $0xe98] sm:$0x33] }
 0x282   : > { %5420 = vmatprep.mubr.bf16.mxu0 %v13468_v0  ;;  %5461 = vmatprep.mubr.bf16.mxu1 %v13468_v0 }
 0x284   : > { %5391 = vmatpush1.bf16.msra.mxu0 %v9374_v12  ;;  %5432 = vmatpush1.bf16.msra.mxu1 %v9376_v13  ;;  %v9232_v12 = vld [vmem:[%s11611_s28 + $0xb90] sm:$0xff]  ;;  %v9217_v13 = vld [vmem:[%s11611_s28 + $0xb18] sm:$0xff] }
 0x285   : > { %5392 = vmatprep.subr.bf16.mxu0 %v9407_v14  ;;  %5433 = vmatprep.subr.bf16.mxu1 %v9409_v16  ;;  %v9233_v14 = vld [vmem:[%s11611_s28 + $0xb98] sm:$0xff]  ;;  %v9379_v16 = vcombine.high %v9216_v11, %v9232_v12  ;;  %v9378_v21 = vcombine.low %v9216_v11, %v9232_v12  ;;  %v9186_v11 = vld [vmem:[%s11611_s28 + $0xa20] sm:$0xff] }
 0x286   : > { %v9381_v17 = vcombine.high %v9217_v13, %v9233_v14  ;;  %v9202_v12 = vld [vmem:[%s11611_s28 + $0xaa0] sm:$0xff] }
 0x288   : > { %5393 = vmatpush1.bf16.msra.mxu0 %v9406_v22  ;;  %5434 = vmatpush1.bf16.msra.mxu1 %v9408_v23  ;;  %v9380_v22 = vcombine.low %v9217_v13, %v9233_v14  ;;  %v9411_v23 = vcombine.high %v9248_v58, %v9264_v18 }
 0x289   : > { %5394 = vmatprep.subr.bf16.mxu0 %v9439_v26  ;;  %5435 = vmatprep.subr.bf16.mxu1 %v9441_v37  ;;  %v9280_v26 = vld [vmem:[%s11611_s28 + $0xd10] sm:$0xff]  ;;  %v9413_v37 = vcombine.high %v9249_v19, %v9265_v20 }
 0x28a   : > { %v12171_v55 = vpop.f32.mrb[20].mxu0  ;;  %v12176_v60 = vpop.f32.mrb[20].mxu1  ;;  %v9443_v59 = vcombine.high %v9280_v26, %v9296_v27 }
 0x28b   : > { %v12178_v61 = vpop.f32.mrb[21].mxu0  ;;  %v12182_v1 = vpop.f32.mrb[21].mxu1 }
 0x28c   : > { %13523 = vst [vmem:[#allocation11_spill] sm:$0xff] %v12178_v61  ;;  %13524 = vst [vmem:[#allocation12_spill] sm:$0xff] %v12182_v1  ;;  %v2442_v2 = vpop.f32.mrb[22].mxu0  ;;  %5395 = vmatpush1.bf16.msra.mxu0 %v9438_v43  ;;  %v2483_v4 = vpop.f32.mrb[22].mxu1  ;;  %5436 = vmatpush1.bf16.msra.mxu1 %v9440_v51  ;;  %v9312_v43 = vld [vmem:[%s11611_s28 + $0xe10] sm:$0xff]  ;;  %v9297_v51 = vld [vmem:[%s11611_s28 + $0xd98] sm:$0xff] }
 0x28d   : > { %v2443_v5 = vpop.f32.mrb[23].mxu0  ;;  %5396 = vmatprep.subr.bf16.mxu0 %v5296_v53  ;;  %v2484_v8 = vpop.f32.mrb[23].mxu1  ;;  %5437 = vmatprep.subr.bf16.mxu1 %v5302_v56  ;;  %v9313_v53 = vld [vmem:[%s11611_s28 + $0xe18] sm:$0xff]  ;;  %v9410_v56 = vcombine.low %v9248_v58, %v9264_v18  ;;  %v9475_v62 = vcombine.high %v9312_v43, %v9328_v50  ;;  %v9445_v63 = vcombine.high %v9281_v41, %v9297_v51 }
 0x28e   : > { %v9477_v2 = vcombine.high %v9313_v53, %v9329_v54  ;;  %v9474_v4 = vcombine.low %v9312_v43, %v9328_v50  ;;  %v9444_v5 = vcombine.low %v9281_v41, %v9297_v51  ;;  %v9235_v41 = vld [vmem:[%s11611_s28 + $0xba8] sm:$0xff]  ;;  %v9350_v43 = vcombine.low %v9186_v11, %v9202_v12  ;;  %v9649_v1 = vld [vmem:[%s11611_s28 + $0x1318] sm:$0xff] }
 0x290   : > { %5397 = vmatpush1.bf16.msra.mxu0 %v5293_v3  ;;  %5438 = vmatpush1.bf16.msra.mxu1 %v5299_v6  ;;  %v9442_v3 = vcombine.low %v9280_v26, %v9296_v27  ;;  %v5308_v6 = vand.u32 %v9475_v62, %v11633_v38  ;;  %v5305_v58 = vand.u32 %v9474_v4, %v11633_v38  ;;  %v9218_v26 = vld [vmem:[%s11611_s28 + $0xb20] sm:$0xff] }
 0x291   : > { %5470 = vmatprep.subr.bf16.mxu0 %v9347_v7  ;;  %5511 = vmatprep.subr.bf16.mxu1 %v9349_v10  ;;  %v9476_v7 = vcombine.low %v9313_v53, %v9329_v54  ;;  %v5314_v10 = vand.u32 %v9477_v2, %v11633_v38  ;;  %v9234_v27 = vld [vmem:[%s11611_s28 + $0xba0] sm:$0xff] }
 0x292   : > { %v9383_v51 = vcombine.high %v9218_v26, %v9234_v27  ;;  %v9250_v54 = vld [vmem:[%s11611_s28 + $0xc20] sm:$0xff]  ;;  %v9382_v62 = vcombine.low %v9218_v26, %v9234_v27 }
 0x293   : > { %9502 = vmatmul.mubr.msk.bf16.vlgmr.msra.gmra.mrb[64].mxu0 %vm1890_vm2, %v12152_v9  ;;  %9503 = vmatmul.mubr.msk.bf16.vlgmr.msra.gmra.mrb[64].mxu1 %vm1890_vm2, %v12152_v9  ;;  %v5311_v20 = vand.u32 %v9476_v7, %v11633_v38  ;;  %v9298_v4 = vld [vmem:[%s11611_s28 + $0xda0] sm:$0xff] }
 0x294   : > { %5471 = vmatpush1.bf16.msra.mxu0 %v9346_v15  ;;  %5512 = vmatpush1.bf16.msra.mxu1 %v9348_v49  ;;  %v9187_v15 = vld [vmem:[%s11611_s28 + $0xa28] sm:$0xff]  ;;  %v9314_v7 = vld [vmem:[%s11611_s28 + $0xe20] sm:$0xff] }
 0x295   : > { %5472 = vmatprep.subr.bf16.mxu0 %v9379_v16  ;;  %5513 = vmatprep.subr.bf16.mxu1 %v9381_v17  ;;  %v9203_v49 = vld [vmem:[%s11611_s28 + $0xaa8] sm:$0xff] }
 0x296   : > { %5502 = vmatprep.mubr.bf16.mxu0 %v13468_v0  ;;  %5543 = vmatprep.mubr.bf16.mxu1 %v13468_v0  ;;  %v9352_v50 = vcombine.low %v9187_v15, %v9203_v49 }
 0x298   : > { %5473 = vmatpush1.bf16.msra.mxu0 %v9378_v21  ;;  %5514 = vmatpush1.bf16.msra.mxu1 %v9380_v22  ;;  %v9351_v21 = vcombine.high %v9186_v11, %v9202_v12  ;;  %v9299_v11 = vld [vmem:[%s11611_s28 + $0xda8] sm:$0xff] }
 0x299   : > { %5474 = vmatprep.subr.bf16.mxu0 %v9411_v23  ;;  %5515 = vmatprep.subr.bf16.mxu1 %v9413_v37  ;;  %v9353_v23 = vcombine.high %v9187_v15, %v9203_v49  ;;  %v9219_v37 = vld [vmem:[%s11611_s28 + $0xb28] sm:$0xff] }
 0x29a   : > { %v9385_v53 = vcombine.high %v9219_v37, %v9235_v41  ;;  %v9315_v12 = vld [vmem:[%s11611_s28 + $0xe28] sm:$0xff] }
 0x29b   : > { %v9331_v15 = vld [vmem:[%s11611_s28 + $0xea8] sm:$0x33] }
 0x29c   : > { %5475 = vmatpush1.bf16.msra.mxu0 %v9410_v56  ;;  %5516 = vmatpush1.bf16.msra.mxu1 %v9412_v57  ;;  %v9266_v56 = vld [vmem:[%s11611_s28 + $0xca0] sm:$0xff]  ;;  %v9251_v57 = vld [vmem:[%s11611_s28 + $0xc28] sm:$0xff]  ;;  %v9480_v27 = vcombine.low %v9315_v12, %v9331_v15 }
 0x29d   : > { %5476 = vmatprep.subr.bf16.mxu0 %v9443_v59  ;;  %5517 = vmatprep.subr.bf16.mxu1 %v9445_v63  ;;  %v9267_v59 = vld [vmem:[%s11611_s28 + $0xca8] sm:$0xff]  ;;  %v9384_v63 = vcombine.low %v9219_v37, %v9235_v41  ;;  %v9415_v2 = vcombine.high %v9250_v54, %v9266_v56  ;;  %v9414_v49 = vcombine.low %v9250_v54, %v9266_v56  ;;  %v9189_v54 = vld [vmem:[%s11611_s28 + $0xa38] sm:$0xff] }
 0x29e   : > { %v12209_v8 = vpop.f32.mrb[24].mxu0  ;;  %v12214_v13 = vpop.f32.mrb[24].mxu1  ;;  %v9205_v56 = vld [vmem:[%s11611_s28 + $0xab8] sm:$0xff] }
 0x29f   : > { %v12216_v14 = vpop.f32.mrb[25].mxu0  ;;  %v12220_v16 = vpop.f32.mrb[25].mxu1 }
 0x2a0   : > { %13525 = vst [vmem:[#allocation13_spill] sm:$0xff] %v12216_v14  ;;  %13526 = vst [vmem:[#allocation14_spill] sm:$0xff] %v12220_v16  ;;  %v2524_v17 = vpop.f32.mrb[26].mxu0  ;;  %5477 = vmatpush1.bf16.msra.mxu0 %v9442_v3  ;;  %v2565_v18 = vpop.f32.mrb[26].mxu1  ;;  %5518 = vmatpush1.bf16.msra.mxu1 %v9444_v5  ;;  %v9282_v3 = vld [vmem:[%s11611_s28 + $0xd20] sm:$0xff]  ;;  %v9417_v5 = vcombine.high %v9251_v57, %v9267_v59  ;;  %v9651_v16 = vld [vmem:[%s11611_s28 + $0x1328] sm:$0xff] }
 0x2a1   : > { %v2525_v19 = vpop.f32.mrb[27].mxu0  ;;  %5478 = vmatprep.subr.bf16.mxu0 %v5308_v6  ;;  %v2566_v22 = vpop.f32.mrb[27].mxu1  ;;  %5519 = vmatprep.subr.bf16.mxu1 %v5314_v10  ;;  %v9283_v6 = vld [vmem:[%s11611_s28 + $0xd28] sm:$0xff]  ;;  %v9330_v10 = vld [vmem:[%s11611_s28 + $0xea0] sm:$0x33]  ;;  %v9416_v17 = vcombine.low %v9251_v57, %v9267_v59 }
 0x2a2   : > { %v9479_v18 = vcombine.high %v9314_v7, %v9330_v10  ;;  %v9449_v19 = vcombine.high %v9283_v6, %v9299_v11  ;;  %v9478_v22 = vcombine.low %v9314_v7, %v9330_v10  ;;  %v9220_v7 = vld [vmem:[%s11611_s28 + $0xb30] sm:$0xff] }
 0x2a3   : > { %v9236_v10 = vld [vmem:[%s11611_s28 + $0xbb0] sm:$0xff] }
 0x2a4   : > { %5479 = vmatpush1.bf16.msra.mxu0 %v5305_v58  ;;  %5520 = vmatpush1.bf16.msra.mxu1 %v5311_v20  ;;  %v9447_v58 = vcombine.high %v9282_v3, %v9298_v4  ;;  %v9481_v20 = vcombine.high %v9315_v12, %v9331_v15  ;;  %v5320_v26 = vand.u32 %v9479_v18, %v11633_v38  ;;  %v9237_v12 = vld [vmem:[%s11611_s28 + $0xbb8] sm:$0xff]  ;;  %v9252_v18 = vld [vmem:[%s11611_s28 + $0xc30] sm:$0xff] }
 0x2a5   : > { %5552 = vmatprep.subr.bf16.mxu0 %v9351_v21  ;;  %5593 = vmatprep.subr.bf16.mxu1 %v9353_v23  ;;  %v9446_v21 = vcombine.low %v9282_v3, %v9298_v4  ;;  %v9448_v23 = vcombine.low %v9283_v6, %v9299_v11  ;;  %v5323_v3 = vand.u32 %v9480_v27, %v11633_v38  ;;  %v9221_v11 = vld [vmem:[%s11611_s28 + $0xb38] sm:$0xff]  ;;  %v9284_v27 = vld [vmem:[%s11611_s28 + $0xd30] sm:$0xff] }
 0x2a6   : > { %v5326_v41 = vand.u32 %v9481_v20, %v11633_v38  ;;  %v9357_v6 = vcombine.high %v9189_v54, %v9205_v56  ;;  %v9253_v20 = vld [vmem:[%s11611_s28 + $0xc38] sm:$0xff] }
 0x2a7   : > { %9504 = vmatmul.mubr.msk.bf16.vlgmr.msra.gmra.mrb[68].mxu0 %vm1890_vm2, %v12152_v9  ;;  %9505 = vmatmul.mubr.msk.bf16.vlgmr.msra.gmra.mrb[68].mxu1 %vm1890_vm2, %v12152_v9 }
 0x2a8   : > { %5553 = vmatpush1.bf16.msra.mxu0 %v9350_v43  ;;  %5594 = vmatpush1.bf16.msra.mxu1 %v9352_v50  ;;  %v9188_v43 = vld [vmem:[%s11611_s28 + $0xa30] sm:$0xff] }
 0x2a9   : > { %5554 = vmatprep.subr.bf16.mxu0 %v9383_v51  ;;  %5595 = vmatprep.subr.bf16.mxu1 %v9385_v53  ;;  %v9204_v50 = vld [vmem:[%s11611_s28 + $0xab0] sm:$0xff] }
 0x2aa   : > { %5584 = vmatprep.mubr.bf16.mxu0 %v13468_v0  ;;  %5625 = vmatprep.mubr.bf16.mxu1 %v13468_v0  ;;  %v9355_v4 = vcombine.high %v9188_v43, %v9204_v50  ;;  %v9354_v15 = vcombine.low %v9188_v43, %v9204_v50  ;;  %v9285_v50 = vld [vmem:[%s11611_s28 + $0xd38] sm:$0xff] }
 0x2ac   : > { %5555 = vmatpush1.bf16.msra.mxu0 %v9382_v62  ;;  %5596 = vmatpush1.bf16.msra.mxu1 %v9384_v63  ;;  %v5317_v62 = vand.u32 %v9478_v22, %v11633_v38  ;;  %v9386_v22 = vcombine.low %v9220_v7, %v9236_v10 }
 0x2ad   : > { %5556 = vmatprep.subr.bf16.mxu0 %v9415_v2  ;;  %5597 = vmatprep.subr.bf16.mxu1 %v9417_v5 }
 0x2b0   : > { %5557 = vmatpush1.bf16.msra.mxu0 %v9414_v49  ;;  %5598 = vmatpush1.bf16.msra.mxu1 %v9416_v17  ;;  %v9356_v49 = vcombine.low %v9189_v54, %v9205_v56  ;;  %v9387_v17 = vcombine.high %v9220_v7, %v9236_v10  ;;  %v9316_v54 = vld [vmem:[%s11611_s28 + $0xe30] sm:$0xff] }
 0x2b1   : > { %5558 = vmatprep.subr.bf16.mxu0 %v9447_v58  ;;  %5599 = vmatprep.subr.bf16.mxu1 %v9449_v19  ;;  %v9389_v58 = vcombine.high %v9221_v11, %v9237_v12  ;;  %v9268_v19 = vld [vmem:[%s11611_s28 + $0xcb0] sm:$0xff] }
 0x2b2   : > { %v12247_v37 = vpop.f32.mrb[28].mxu0  ;;  %v12252_v51 = vpop.f32.mrb[28].mxu1  ;;  %v9332_v56 = vld [vmem:[%s11611_s28 + $0xeb0] sm:$0x33] }
 0x2b3   : > { %v12254_v53 = vpop.f32.mrb[29].mxu0  ;;  %v12258_v57 = vpop.f32.mrb[29].mxu1 }
 0x2b4   : > { %13527 = vst [vmem:[#allocation15_spill] sm:$0xff] %v12254_v53  ;;  %13528 = vst [vmem:[#allocation16_spill] sm:$0xff] %v12258_v57  ;;  %v2606_v59 = vpop.f32.mrb[30].mxu0  ;;  %5559 = vmatpush1.bf16.msra.mxu0 %v9446_v21  ;;  %v2647_v63 = vpop.f32.mrb[30].mxu1  ;;  %5600 = vmatpush1.bf16.msra.mxu1 %v9448_v23  ;;  %v9269_v21 = vld [vmem:[%s11611_s28 + $0xcb8] sm:$0xff]  ;;  %v9388_v23 = vcombine.low %v9221_v11, %v9237_v12  ;;  %v9482_v11 = vcombine.low %v9316_v54, %v9332_v56 }
 0x2b5   : > { %v2607_v2 = vpop.f32.mrb[31].mxu0  ;;  %5560 = vmatprep.subr.bf16.mxu0 %v5320_v26  ;;  %v2648_v5 = vpop.f32.mrb[31].mxu1  ;;  %5601 = vmatprep.subr.bf16.mxu1 %v5326_v41  ;;  %v9419_v26 = vcombine.high %v9252_v18, %v9268_v19  ;;  %v9300_v41 = vld [vmem:[%s11611_s28 + $0xdb0] sm:$0xff]  ;;  %v9421_v43 = vcombine.high %v9253_v20, %v9269_v21  ;;  %v9301_v59 = vld [vmem:[%s11611_s28 + $0xdb8] sm:$0xff] }
 0x2b6   : > { %v9333_v63 = vld [vmem:[%s11611_s28 + $0xeb8] sm:$0x33]  ;;  %v9418_v2 = vcombine.low %v9252_v18, %v9268_v19  ;;  %v9483_v5 = vcombine.high %v9316_v54, %v9332_v56  ;;  %v9450_v10 = vcombine.low %v9284_v27, %v9300_v41  ;;  %v9452_v12 = vcombine.low %v9285_v50, %v9301_v59  ;;  %v9190_v18 = vld [vmem:[%s11611_s28 + $0xa40] sm:$0xff]  ;;  %v9303_v56 = vld [vmem:[%s11611_s28 + $0xdc8] sm:$0xff] }
 0x2b7   : > { %v9206_v19 = vld [vmem:[%s11611_s28 + $0xac0] sm:$0xff]  ;;  %v5329_v54 = vand.u32 %v9482_v11, %v11633_v38  ;;  %v9653_v57 = vld [vmem:[%s11611_s28 + $0x1338] sm:$0xff] }
 0x2b8   : > { %5561 = vmatpush1.bf16.msra.mxu0 %v5317_v62  ;;  %5602 = vmatpush1.bf16.msra.mxu1 %v5323_v3  ;;  %v9317_v62 = vld [vmem:[%s11611_s28 + $0xe38] sm:$0xff]  ;;  %v9420_v3 = vcombine.low %v9253_v20, %v9269_v21  ;;  %v9358_v11 = vcombine.low %v9190_v18, %v9206_v19 }
 0x2b9   : > { %5634 = vmatprep.subr.bf16.mxu0 %v9355_v4  ;;  %5675 = vmatprep.subr.bf16.mxu1 %v9357_v6  ;;  %v9451_v4 = vcombine.high %v9284_v27, %v9300_v41  ;;  %v9453_v6 = vcombine.high %v9285_v50, %v9301_v59  ;;  %v9485_v7 = vcombine.high %v9317_v62, %v9333_v63  ;;  %v9319_v41 = vld [vmem:[%s11611_s28 + $0xe48] sm:$0xff] }
 0x2ba   : > { %v9335_v27 = vld [vmem:[%s11611_s28 + $0xec8] sm:$0x33] }
 0x2bb   : > { %9506 = vmatmul.mubr.msk.bf16.vlgmr.msra.gmra.mrb[72].mxu0 %vm1890_vm2, %v12152_v9  ;;  %9507 = vmatmul.mubr.msk.bf16.vlgmr.msra.gmra.mrb[72].mxu1 %vm1890_vm2, %v12152_v9 }
 0x2bc   : > { %5635 = vmatpush1.bf16.msra.mxu0 %v9354_v15  ;;  %5676 = vmatpush1.bf16.msra.mxu1 %v9356_v49  ;;  %v5332_v15 = vand.u32 %v9483_v5, %v11633_v38  ;;  %v9484_v49 = vcombine.low %v9317_v62, %v9333_v63  ;;  %v9222_v5 = vld [vmem:[%s11611_s28 + $0xb40] sm:$0xff] }
 0x2bd   : > { %5636 = vmatprep.subr.bf16.mxu0 %v9387_v17  ;;  %5677 = vmatprep.subr.bf16.mxu1 %v9389_v58  ;;  %v5338_v58 = vand.u32 %v9485_v7, %v11633_v38  ;;  %v9223_v7 = vld [vmem:[%s11611_s28 + $0xb48] sm:$0xff] }
 0x2be   : > { %5666 = vmatprep.mubr.bf16.mxu0 %v13468_v0  ;;  %5707 = vmatprep.mubr.bf16.mxu1 %v13468_v0  ;;  %v5335_v63 = vand.u32 %v9484_v49, %v11633_v38 }
 0x2c0   : > { %5637 = vmatpush1.bf16.msra.mxu0 %v9386_v22  ;;  %5678 = vmatpush1.bf16.msra.mxu1 %v9388_v23  ;;  %v9191_v23 = vld [vmem:[%s11611_s28 + $0xa48] sm:$0xff] }
 0x2c1   : > { %5638 = vmatprep.subr.bf16.mxu0 %v9419_v26  ;;  %5679 = vmatprep.subr.bf16.mxu1 %v9421_v43  ;;  %v9207_v26 = vld [vmem:[%s11611_s28 + $0xac8] sm:$0xff] }
 0x2c4   : > { %5639 = vmatpush1.bf16.msra.mxu0 %v9418_v2  ;;  %5680 = vmatpush1.bf16.msra.mxu1 %v9420_v3  ;;  %v9359_v2 = vcombine.high %v9190_v18, %v9206_v19 }
 0x2c5   : > { %5640 = vmatprep.subr.bf16.mxu0 %v9451_v4  ;;  %5681 = vmatprep.subr.bf16.mxu1 %v9453_v6  ;;  %v9361_v4 = vcombine.high %v9191_v23, %v9207_v26  ;;  %v9238_v6 = vld [vmem:[%s11611_s28 + $0xbc0] sm:$0xff] }
 0x2c6   : > { %v12285_v17 = vpop.f32.mrb[32].mxu0  ;;  %v12292_v21 = vpop.f32.mrb[32].mxu1  ;;  %v9390_v18 = vcombine.low %v9222_v5, %v9238_v6 }
 0x2c7   : > { %v12294_v22 = vpop.f32.mrb[33].mxu0  ;;  %v12302_v43 = vpop.f32.mrb[33].mxu1 }
 0x2c8   : > { %v3713_v50 = vpop.f32.mrb[34].mxu0  ;;  %5641 = vmatpush1.bf16.msra.mxu0 %v9450_v10  ;;  %v3754_v59 = vpop.f32.mrb[34].mxu1  ;;  %5682 = vmatpush1.bf16.msra.mxu1 %v9452_v12  ;;  %v9239_v10 = vld [vmem:[%s11611_s28 + $0xbc8] sm:$0xff]  ;;  %v9360_v12 = vcombine.low %v9191_v23, %v9207_v26  ;;  %v9286_v26 = vld [vmem:[%s11611_s28 + $0xd40] sm:$0xff] }
 0x2c9   : > { %v3714_v62 = vpop.f32.mrb[35].mxu0  ;;  %5642 = vmatprep.subr.bf16.mxu0 %v5332_v15  ;;  %v3755_v3 = vpop.f32.mrb[35].mxu1  ;;  %5683 = vmatprep.subr.bf16.mxu1 %v5338_v58  ;;  %v9391_v15 = vcombine.high %v9222_v5, %v9238_v6  ;;  %v9393_v49 = vcombine.high %v9223_v7, %v9239_v10  ;;  %v9254_v50 = vld [vmem:[%s11611_s28 + $0xc40] sm:$0xff]  ;;  %v9255_v59 = vld [vmem:[%s11611_s28 + $0xc48] sm:$0xff]  ;;  %v9392_v19 = vcombine.low %v9223_v7, %v9239_v10 }
 0x2ca   : > { %v9270_v58 = vld [vmem:[%s11611_s28 + $0xcc0] sm:$0xff]  ;;  %v9271_v62 = vld [vmem:[%s11611_s28 + $0xcc8] sm:$0xff] }
 0x2cb   : > { %v9423_v23 = vcombine.high %v9254_v50, %v9270_v58  ;;  %v9318_v3 = vld [vmem:[%s11611_s28 + $0xe40] sm:$0xff]  ;;  %v9422_v5 = vcombine.low %v9254_v50, %v9270_v58  ;;  %v9424_v6 = vcombine.low %v9255_v59, %v9271_v62  ;;  %v9488_v58 = vcombine.low %v9319_v41, %v9335_v27 }
 0x2cc   : > { %5643 = vmatpush1.bf16.msra.mxu0 %v5329_v54  ;;  %5684 = vmatpush1.bf16.msra.mxu1 %v5335_v63  ;;  %v9302_v54 = vld [vmem:[%s11611_s28 + $0xdc0] sm:$0xff]  ;;  %v9425_v63 = vcombine.high %v9255_v59, %v9271_v62  ;;  %v9192_v62 = vld [vmem:[%s11611_s28 + $0xa50] sm:$0xff] }
 0x2cd   : > { %5716 = vmatprep.subr.bf16.mxu0 %v9359_v2  ;;  %5757 = vmatprep.subr.bf16.mxu1 %v9361_v4  ;;  %v9287_v2 = vld [vmem:[%s11611_s28 + $0xd48] sm:$0xff]  ;;  %v9334_v4 = vld [vmem:[%s11611_s28 + $0xec0] sm:$0x33]  ;;  %v9455_v7 = vcombine.high %v9286_v26, %v9302_v54 }
 0x2ce   : > { %v9487_v10 = vcombine.high %v9318_v3, %v9334_v4  ;;  %v9456_v20 = vcombine.low %v9287_v2, %v9303_v56 }
 0x2cf   : > { %9508 = vmatmul.mubr.msk.bf16.vlgmr.msra.gmra.mrb[76].mxu0 %vm1890_vm2, %v12152_v9  ;;  %9509 = vmatmul.mubr.msk.bf16.vlgmr.msra.gmra.mrb[76].mxu1 %vm1890_vm2, %v12152_v9 }
 0x2d0   : > { %5717 = vmatpush1.bf16.msra.mxu0 %v9358_v11  ;;  %5758 = vmatpush1.bf16.msra.mxu1 %v9360_v12  ;;  %v9457_v11 = vcombine.high %v9287_v2, %v9303_v56  ;;  %v9489_v12 = vcombine.high %v9319_v41, %v9335_v27  ;;  %v5344_v50 = vand.u32 %v9487_v10, %v11633_v38  ;;  %v9241_v56 = vld [vmem:[%s11611_s28 + $0xbd8] sm:$0xff] }
 0x2d1   : > { %5718 = vmatprep.subr.bf16.mxu0 %v9391_v15  ;;  %5759 = vmatprep.subr.bf16.mxu1 %v9393_v49  ;;  %v9454_v15 = vcombine.low %v9286_v26, %v9302_v54  ;;  %v9486_v49 = vcombine.low %v9318_v3, %v9334_v4  ;;  %v9193_v54 = vld [vmem:[%s11611_s28 + $0xa58] sm:$0xff]  ;;  %v5347_v10 = vand.u32 %v9488_v58, %v11633_v38 }
 0x2d2   : > { %5748 = vmatprep.mubr.bf16.mxu0 %v13468_v0  ;;  %5789 = vmatprep.mubr.bf16.mxu1 %v13468_v0  ;;  %v5350_v59 = vand.u32 %v9489_v12, %v11633_v38  ;;  %v9209_v3 = vld [vmem:[%s11611_s28 + $0xad8] sm:$0xff] }
 0x2d3   : > { %v5341_v4 = vand.u32 %v9486_v49, %v11633_v38  ;;  %v9365_v27 = vcombine.high %v9193_v54, %v9209_v3  ;;  %v9225_v49 = vld [vmem:[%s11611_s28 + $0xb58] sm:$0xff] }
 0x2d4   : > { %5719 = vmatpush1.bf16.msra.mxu0 %v9390_v18  ;;  %5760 = vmatpush1.bf16.msra.mxu1 %v9392_v19  ;;  %v9208_v19 = vld [vmem:[%s11611_s28 + $0xad0] sm:$0xff]  ;;  %v9397_v58 = vcombine.high %v9225_v49, %v9241_v56 }
 0x2d5   : > { %5720 = vmatprep.subr.bf16.mxu0 %v9423_v23  ;;  %5761 = vmatprep.subr.bf16.mxu1 %v9425_v63  ;;  %v9336_v23 = vld [vmem:[%s11611_s28 + $0xed0] sm:$0x33] }
 0x2d8   : > { %5721 = vmatpush1.bf16.msra.mxu0 %v9422_v5  ;;  %5762 = vmatpush1.bf16.msra.mxu1 %v9424_v6  ;;  %v9362_v5 = vcombine.low %v9192_v62, %v9208_v19 }
 0x2d9   : > { %5722 = vmatprep.subr.bf16.mxu0 %v9455_v7  ;;  %5763 = vmatprep.subr.bf16.mxu1 %v9457_v11  ;;  %v9363_v11 = vcombine.high %v9192_v62, %v9208_v19  ;;  %v9396_v19 = vcombine.low %v9225_v49, %v9241_v56 }
 0x2da   : > { %v12331_v18 = vpop.f32.mrb[36].mxu0  ;;  %v12338_v63 = vpop.f32.mrb[36].mxu1 }
 0x2db   : > { %v12340_v26 = vpop.f32.mrb[37].mxu0  ;;  %v12348_v41 = vpop.f32.mrb[37].mxu1 }
 0x2dc   : > { %13529 = vst [vmem:[#allocation17_spill] sm:$0xff] %v12340_v26  ;;  %13530 = vst [vmem:[#allocation18_spill] sm:$0xff] %v12348_v41  ;;  %v3795_v2 = vpop.f32.mrb[38].mxu0  ;;  %5723 = vmatpush1.bf16.msra.mxu0 %v9454_v15  ;;  %v3836_v6 = vpop.f32.mrb[38].mxu1  ;;  %5764 = vmatpush1.bf16.msra.mxu1 %v9456_v20  ;;  %v9240_v15 = vld [vmem:[%s11611_s28 + $0xbd0] sm:$0xff]  ;;  %v9364_v20 = vcombine.low %v9193_v54, %v9209_v3  ;;  %v9305_v41 = vld [vmem:[%s11611_s28 + $0xdd8] sm:$0xff] }
 0x2dd   : > { %v3796_v7 = vpop.f32.mrb[39].mxu0  ;;  %5724 = vmatprep.subr.bf16.mxu0 %v5344_v50  ;;  %v3837_v12 = vpop.f32.mrb[39].mxu1  ;;  %5765 = vmatprep.subr.bf16.mxu1 %v5350_v59  ;;  %v9224_v2 = vld [vmem:[%s11611_s28 + $0xb50] sm:$0xff]  ;;  %v9337_v26 = vld [vmem:[%s11611_s28 + $0xed8] sm:$0x33] }
 0x2de   : > { %v9395_v50 = vcombine.high %v9224_v2, %v9240_v15  ;;  %v9256_v6 = vld [vmem:[%s11611_s28 + $0xc50] sm:$0xff]  ;;  %v9257_v7 = vld [vmem:[%s11611_s28 + $0xc58] sm:$0xff]  ;;  %v9394_v62 = vcombine.low %v9224_v2, %v9240_v15 }
 0x2df   : > { %v9272_v59 = vld [vmem:[%s11611_s28 + $0xcd0] sm:$0xff]  ;;  %v9273_v12 = vld [vmem:[%s11611_s28 + $0xcd8] sm:$0xff] }
 0x2e0   : > { %5725 = vmatpush1.bf16.msra.mxu0 %v5341_v4  ;;  %5766 = vmatpush1.bf16.msra.mxu1 %v5347_v10  ;;  %v9427_v54 = vcombine.high %v9256_v6, %v9272_v59  ;;  %v9288_v3 = vld [vmem:[%s11611_s28 + $0xd50] sm:$0xff]  ;;  %v9429_v4 = vcombine.high %v9257_v7, %v9273_v12  ;;  %v9289_v10 = vld [vmem:[%s11611_s28 + $0xd58] sm:$0xff]  ;;  %v9428_v56 = vcombine.low %v9257_v7, %v9273_v12  ;;  %v9194_v12 = vld [vmem:[%s11611_s28 + $0xa60] sm:$0xff] }
 0x2e1   : > { %5798 = vmatprep.subr.bf16.mxu0 %v9363_v11  ;;  %5839 = vmatprep.subr.bf16.mxu1 %v9365_v27  ;;  %v9304_v27 = vld [vmem:[%s11611_s28 + $0xdd0] sm:$0xff]  ;;  %v9461_v49 = vcombine.high %v9289_v10, %v9305_v41 }
 0x2e2   : > { %v9320_v11 = vld [vmem:[%s11611_s28 + $0xe50] sm:$0xff]  ;;  %v9459_v2 = vcombine.high %v9288_v3, %v9304_v27 }
 0x2e3   : > { %9510 = vmatmul.mubr.msk.bf16.vlgmr.msra.gmra.mrb[80].mxu0 %vm1890_vm2, %v12152_v9  ;;  %9511 = vmatmul.mubr.msk.bf16.vlgmr.msra.gmra.mrb[80].mxu1 %vm1890_vm2, %v12152_v9  ;;  %v9491_v15 = vcombine.high %v9320_v11, %v9336_v23 }
 0x2e4   : > { %5799 = vmatpush1.bf16.msra.mxu0 %v9362_v5  ;;  %5840 = vmatpush1.bf16.msra.mxu1 %v9364_v20  ;;  %v9426_v5 = vcombine.low %v9256_v6, %v9272_v59  ;;  %v9493_v20 = vcombine.high %v9321_v39, %v9337_v26  ;;  %v9492_v59 = vcombine.low %v9321_v39, %v9337_v26 }
 0x2e5   : > { %5800 = vmatprep.subr.bf16.mxu0 %v9395_v50  ;;  %5841 = vmatprep.subr.bf16.mxu1 %v9397_v58  ;;  %v9458_v50 = vcombine.low %v9288_v3, %v9304_v27  ;;  %v9490_v58 = vcombine.low %v9320_v11, %v9336_v23  ;;  %v5356_v6 = vand.u32 %v9491_v15, %v11633_v38  ;;  %v9195_v23 = vld [vmem:[%s11611_s28 + $0xa68] sm:$0xff] }
 0x2e6   : > { %5830 = vmatprep.mubr.bf16.mxu0 %v13468_v0  ;;  %5871 = vmatprep.mubr.bf16.mxu1 %v13468_v0  ;;  %v9460_v0 = vcombine.low %v9289_v10, %v9305_v41  ;;  %v5362_v7 = vand.u32 %v9493_v20, %v11633_v38  ;;  %v9211_v27 = vld [vmem:[%s11611_s28 + $0xae8] sm:$0xff]  ;;  %v5359_v15 = vand.u32 %v9492_v59, %v11633_v38 }
 0x2e7   : > { %v5353_v11 = vand.u32 %v9490_v58, %v11633_v38  ;;  %v9369_v39 = vcombine.high %v9195_v23, %v9211_v27  ;;  %v9227_v58 = vld [vmem:[%s11611_s28 + $0xb68] sm:$0xff] }
 0x2e8   : > { %5801 = vmatpush1.bf16.msra.mxu0 %v9394_v62  ;;  %5842 = vmatpush1.bf16.msra.mxu1 %v9396_v19  ;;  %v9210_v19 = vld [vmem:[%s11611_s28 + $0xae0] sm:$0xff]  ;;  %v9243_v41 = vld [vmem:[%s11611_s28 + $0xbe8] sm:$0xff] }
 0x2e9   : > { %5802 = vmatprep.subr.bf16.mxu0 %v9427_v54  ;;  %5843 = vmatprep.subr.bf16.mxu1 %v9429_v4  ;;  %v9401_v59 = vcombine.high %v9227_v58, %v9243_v41  ;;  %v9338_v54 = vld [vmem:[%s11611_s28 + $0xee0] sm:$0x33] }
 0x2ec   : > { %5803 = vmatpush1.bf16.msra.mxu0 %v9426_v5  ;;  %5844 = vmatpush1.bf16.msra.mxu1 %v9428_v56  ;;  %v9366_v5 = vcombine.low %v9194_v12, %v9210_v19 }
 0x2ed   : > { %5804 = vmatprep.subr.bf16.mxu0 %v9459_v2  ;;  %5845 = vmatprep.subr.bf16.mxu1 %v9461_v49  ;;  %v9367_v49 = vcombine.high %v9194_v12, %v9210_v19  ;;  %v9400_v19 = vcombine.low %v9227_v58, %v9243_v41 }
 0x2ee   : > { %v12377_v62 = vpop.f32.mrb[40].mxu0  ;;  %v12384_v4 = vpop.f32.mrb[40].mxu1 }
 0x2ef   : > { %v12386_v3 = vpop.f32.mrb[41].mxu0  ;;  %v12394_v26 = vpop.f32.mrb[41].mxu1 }
 0x2f0   : > { %13531 = vst [vmem:[#allocation19_spill] sm:$0xff] %v12386_v3  ;;  %13532 = vst [vmem:[#allocation20_spill] sm:$0xff] %v12394_v26  ;;  %v3877_v10 = vpop.f32.mrb[42].mxu0  ;;  %5805 = vmatpush1.bf16.msra.mxu0 %v9458_v50  ;;  %v3918_v56 = vpop.f32.mrb[42].mxu1  ;;  %5846 = vmatpush1.bf16.msra.mxu1 %v9460_v0  ;;  %v9242_v50 = vld [vmem:[%s11611_s28 + $0xbe0] sm:$0xff]  ;;  %v9368_v0 = vcombine.low %v9195_v23, %v9211_v27  ;;  %v13533_v26 = vmov 0  }
 0x2f1   : > { %v3878_v2 = vpop.f32.mrb[43].mxu0  ;;  %5806 = vmatprep.subr.bf16.mxu0 %v5356_v6  ;;  %v3919_v20 = vpop.f32.mrb[43].mxu1  ;;  %5847 = vmatprep.subr.bf16.mxu1 %v5362_v7  ;;  %v9226_v10 = vld [vmem:[%s11611_s28 + $0xb60] sm:$0xff]  ;;  %v9323_v3 = vld [vmem:[%s11611_s28 + $0xe68] sm:$0xff] }
 0x2f2   : > { %v9399_v6 = vcombine.high %v9226_v10, %v9242_v50  ;;  %v9258_v56 = vld [vmem:[%s11611_s28 + $0xc60] sm:$0xff]  ;;  %v9259_v2 = vld [vmem:[%s11611_s28 + $0xc68] sm:$0xff]  ;;  %v9398_v12 = vcombine.low %v9226_v10, %v9242_v50 }
 0x2f3   : > { %v9274_v7 = vld [vmem:[%s11611_s28 + $0xce0] sm:$0xff]  ;;  %v9275_v20 = vld [vmem:[%s11611_s28 + $0xce8] sm:$0xff] }
 0x2f4   : > { %5807 = vmatpush1.bf16.msra.mxu0 %v5353_v11  ;;  %5848 = vmatpush1.bf16.msra.mxu1 %v5359_v15  ;;  %v9431_v23 = vcombine.high %v9258_v56, %v9274_v7  ;;  %v9290_v27 = vld [vmem:[%s11611_s28 + $0xd60] sm:$0xff]  ;;  %v9433_v11 = vcombine.high %v9259_v2, %v9275_v20  ;;  %v9291_v15 = vld [vmem:[%s11611_s28 + $0xd68] sm:$0xff]  ;;  %v9432_v41 = vcombine.low %v9259_v2, %v9275_v20  ;;  %v9196_v20 = vld [vmem:[%s11611_s28 + $0xa70] sm:$0xff] }
 0x2f5   : > { %5880 = vmatprep.subr.bf16.mxu0 %v9367_v49  ;;  %5921 = vmatprep.subr.bf16.mxu1 %v9369_v39  ;;  %v9306_v39 = vld [vmem:[%s11611_s28 + $0xde0] sm:$0xff]  ;;  %v9465_v58 = vcombine.high %v9291_v15, %v9307_v36  ;;  %v9464_v31 = vcombine.low %v9291_v15, %v9307_v36  ;;  %v9244_v36 = vld [vmem:[%s11611_s28 + $0xbf0] sm:$0xff] }
 0x2f6   : > { %v9322_v49 = vld [vmem:[%s11611_s28 + $0xe60] sm:$0xff]  ;;  %v9463_v10 = vcombine.high %v9290_v27, %v9306_v39 }
 0x2f7   : > { %9512 = vmatmul.mubr.msk.bf16.vlgmr.msra.gmra.mrb[84].mxu0 %vm1890_vm2, %v12152_v9  ;;  %9513 = vmatmul.mubr.msk.bf16.vlgmr.msra.gmra.mrb[84].mxu1 %vm1890_vm2, %v12152_v9  ;;  %v9339_v9 = vld [vmem:[%s11611_s28 + $0xee8] sm:$0x33]  ;;  %v9495_v50 = vcombine.high %v9322_v49, %v9338_v54 }
 0x2f8   : > { %5881 = vmatpush1.bf16.msra.mxu0 %v9366_v5  ;;  %5922 = vmatpush1.bf16.msra.mxu1 %v9368_v0  ;;  %v9430_v5 = vcombine.low %v9258_v56, %v9274_v7  ;;  %v9497_v0 = vcombine.high %v9323_v3, %v9339_v9  ;;  %v9496_v7 = vcombine.low %v9323_v3, %v9339_v9 }
 0x2f9   : > { %5882 = vmatprep.subr.bf16.mxu0 %v9399_v6  ;;  %5923 = vmatprep.subr.bf16.mxu1 %v9401_v59  ;;  %v9462_v6 = vcombine.low %v9290_v27, %v9306_v39  ;;  %v9494_v59 = vcombine.low %v9322_v49, %v9338_v54  ;;  %v5368_v56 = vand.u32 %v9495_v50, %v11633_v38  ;;  %v9197_v54 = vld [vmem:[%s11611_s28 + $0xa78] sm:$0xff] }
 0x2fa   : > { %5912 = vmatprep.mubr.bf16.mxu0 %v13533_v26  ;;  %5953 = vmatprep.mubr.bf16.mxu1 %v13533_v26  ;;  %v5374_v2 = vand.u32 %v9497_v0, %v11633_v38  ;;  %v9213_v39 = vld [vmem:[%s11611_s28 + $0xaf8] sm:$0xff]  ;;  %v5371_v50 = vand.u32 %v9496_v7, %v11633_v38  ;;  %v7789_v7 = vld [vmem:[%s13463_s2] sm:$0x3f] }
 0x2fb   : > { %v5365_v9 = vand.u32 %v9494_v59, %v11633_v38  ;;  %v9373_v3 = vcombine.high %v9197_v54, %v9213_v39  ;;  %v9245_v59 = vld [vmem:[%s11611_s28 + $0xbf8] sm:$0xff]  ;;  %7792 = vperm.xlu0 %10213, %v7789_v7  }
 0x2fc   : > { %5883 = vmatpush1.bf16.msra.mxu0 %v9398_v12  ;;  %5924 = vmatpush1.bf16.msra.mxu1 %v9400_v19  ;;  %v9212_v19 = vld [vmem:[%s11611_s28 + $0xaf0] sm:$0xff]  ;;  %v9293_v7 = vld [vmem:[%s11611_s28 + $0xd78] sm:$0xff] }
 0x2fd   : > { %5884 = vmatprep.subr.bf16.mxu0 %v9431_v23  ;;  %5925 = vmatprep.subr.bf16.mxu1 %v9433_v11  ;;  %v9324_v23 = vld [vmem:[%s11611_s28 + $0xe70] sm:$0xff] }
 0x300   : > { %5885 = vmatpush1.bf16.msra.mxu0 %v9430_v5  ;;  %5926 = vmatpush1.bf16.msra.mxu1 %v9432_v41  ;;  %v9370_v5 = vcombine.low %v9196_v20, %v9212_v19 }
 0x301   : > { %5886 = vmatprep.subr.bf16.mxu0 %v9463_v10  ;;  %5927 = vmatprep.subr.bf16.mxu1 %v9465_v58  ;;  %v9371_v58 = vcombine.high %v9196_v20, %v9212_v19  ;;  %v12458_v20 = vld [vmem:[%s13462_s1] sm:$0x7]  ;;  %v9261_v19 = vld [vmem:[%s11611_s28 + $0xc78] sm:$0xff] }
 0x302   : > { %v12423_v12 = vpop.f32.mrb[44].mxu0  ;;  %v12430_v11 = vpop.f32.mrb[44].mxu1 }
 0x303   : > { %13534 = vst [vmem:[#allocation21_spill] sm:$0xff] %v12430_v11  ;;  %v12432_v27 = vpop.f32.mrb[45].mxu0  ;;  %v12440_v15 = vpop.f32.mrb[45].mxu1  ;;  %v9468_v11 = vcombine.low %v9293_v7, %v9309_v42 }
 0x304   : > { %13535 = vst [vmem:[#allocation22_spill] sm:$0xff] %v12432_v27  ;;  %13536 = vst [vmem:[#allocation23_spill] sm:$0xff] %v12440_v15  ;;  %v3959_v49 = vpop.f32.mrb[46].mxu0  ;;  %5887 = vmatpush1.bf16.msra.mxu0 %v9462_v6  ;;  %v4000_v41 = vpop.f32.mrb[46].mxu1  ;;  %5928 = vmatpush1.bf16.msra.mxu1 %v9464_v31  ;;  %v9229_v6 = vld [vmem:[%s11611_s28 + $0xb78] sm:$0xff]  ;;  %v9372_v31 = vcombine.low %v9197_v54, %v9213_v39 }
 0x305   : > { %v3960_v10 = vpop.f32.mrb[47].mxu0  ;;  %5888 = vmatprep.subr.bf16.mxu0 %v5368_v56  ;;  %v4001_v0 = vpop.f32.mrb[47].mxu1  ;;  %5929 = vmatprep.subr.bf16.mxu1 %v5374_v2  ;;  %v9228_v49 = vld [vmem:[%s11611_s28 + $0xb70] sm:$0xff]  ;;  %v9405_v2 = vcombine.high %v9229_v6, %v9245_v59  ;;  %v9277_v54 = vld [vmem:[%s11611_s28 + $0xcf8] sm:$0xff] }
 0x306   : > { %v9403_v56 = vcombine.high %v9228_v49, %v9244_v36  ;;  %v9260_v41 = vld [vmem:[%s11611_s28 + $0xc70] sm:$0xff]  ;;  %v9402_v39 = vcombine.low %v9228_v49, %v9244_v36  ;;  %v9437_v0 = vcombine.high %v9261_v19, %v9277_v54  ;;  %v9325_v27 = vld [vmem:[%s11611_s28 + $0xe78] sm:$0xff] }
 0x307   : > { %v9276_v10 = vld [vmem:[%s11611_s28 + $0xcf0] sm:$0xff] }
 0x308   : > { %5889 = vmatpush1.bf16.msra.mxu0 %v5365_v9  ;;  %5930 = vmatpush1.bf16.msra.mxu1 %v5371_v50  ;;  %v9435_v9 = vcombine.high %v9260_v41, %v9276_v10  ;;  %v9292_v50 = vld [vmem:[%s11611_s28 + $0xd70] sm:$0xff]  ;;  %v9434_v36 = vcombine.low %v9260_v41, %v9276_v10  ;;  %v9500_v10 = vcombine.low %v9325_v27, %v9341_v33 }
 0x309   : > { %5962 = vmatprep.subr.bf16.mxu0 %v9371_v58  ;;  %6003 = vmatprep.subr.bf16.mxu1 %v9373_v3  ;;  %v9404_v3 = vcombine.low %v9229_v6, %v9245_v59  ;;  %v9308_v58 = vld [vmem:[%s11611_s28 + $0xdf0] sm:$0xff]  ;;  %v9469_v59 = vcombine.high %v9293_v7, %v9309_v42  ;;  %v9567_v42 = vld [vmem:[%s11611_s28 + $0x1088] sm:$0xff] }
 0x30a   : > { %v9340_v15 = vld [vmem:[%s11611_s28 + $0xef0] sm:$0x33]  ;;  %v9467_v49 = vcombine.high %v9292_v50, %v9308_v58 }
 0x30b   : > { %9514 = vmatmul.mubr.msk.bf16.vlgmr.msra.gmra.mrb[88].mxu0 %vm1890_vm2, %v12458_v20  ;;  %9515 = vmatmul.mubr.msk.bf16.vlgmr.msra.gmra.mrb[88].mxu1 %vm1890_vm2, %v12458_v20  ;;  %v9499_v6 = vcombine.high %v9324_v23, %v9340_v15 }
 0x30c   : > { %5963 = vmatpush1.bf16.msra.mxu0 %v9370_v5  ;;  %6004 = vmatpush1.bf16.msra.mxu1 %v9372_v31  ;;  %v9436_v5 = vcombine.low %v9261_v19, %v9277_v54  ;;  %v9501_v31 = vcombine.high %v9325_v27, %v9341_v33  ;;  %v9518_v54 = vld [vmem:[%s11611_s28 + $0xf00] sm:$0xff] }
 0x30d   : > { %5964 = vmatprep.subr.bf16.mxu0 %v9403_v56  ;;  %6005 = vmatprep.subr.bf16.mxu1 %v9405_v2  ;;  %v9466_v56 = vcombine.low %v9292_v50, %v9308_v58  ;;  %v9498_v2 = vcombine.low %v9324_v23, %v9340_v15  ;;  %v5380_v41 = vand.u32 %v9499_v6, %v11633_v38  ;;  %v9519_v23 = vld [vmem:[%s11611_s28 + $0xf08] sm:$0xff] }
 0x30e   : > { %5994 = vmatprep.mubr.bf16.mxu0 %v13533_v26  ;;  %6035 = vmatprep.mubr.bf16.mxu1 %v13533_v26  ;;  %v5386_v19 = vand.u32 %v9501_v31, %v11633_v38  ;;  %v9535_v15 = vld [vmem:[%s11611_s28 + $0xf88] sm:$0xff]  ;;  %v5383_v6 = vand.u32 %v9500_v10, %v11633_v38 }
 0x30f   : > { %v5377_v7 = vand.u32 %v9498_v2, %v11633_v38  ;;  %v9681_v33 = vcombine.high %v9519_v23, %v9535_v15  ;;  %v9551_v2 = vld [vmem:[%s11611_s28 + $0x1008] sm:$0xff] }
 0x310   : > { %5965 = vmatpush1.bf16.msra.mxu0 %v9402_v39  ;;  %6006 = vmatpush1.bf16.msra.mxu1 %v9404_v3  ;;  %v9534_v3 = vld [vmem:[%s11611_s28 + $0xf80] sm:$0xff]  ;;  %v9713_v10 = vcombine.high %v9551_v2, %v9567_v42 }
 0x311   : > { %5966 = vmatprep.subr.bf16.mxu0 %v9435_v9  ;;  %6007 = vmatprep.subr.bf16.mxu1 %v9437_v0  ;;  %v9662_v9 = vld [vmem:[%s11611_s28 + $0x1380] sm:$0x33] }
 0x314   : > { %5967 = vmatpush1.bf16.msra.mxu0 %v9434_v36  ;;  %6008 = vmatpush1.bf16.msra.mxu1 %v9436_v5  ;;  %v9678_v36 = vcombine.low %v9518_v54, %v9534_v3 }
 0x315   : > { %5968 = vmatprep.subr.bf16.mxu0 %v9467_v49  ;;  %6009 = vmatprep.subr.bf16.mxu1 %v9469_v59  ;;  %v9679_v59 = vcombine.high %v9518_v54, %v9534_v3  ;;  %v9712_v3 = vcombine.low %v9551_v2, %v9567_v42 }
 0x316   : > { %v12477_v39 = vpop.f32.mrb[48].mxu0  ;;  %v12484_v0 = vpop.f32.mrb[48].mxu1 }
 0x317   : > { %v12486_v50 = vpop.f32.mrb[49].mxu0  ;;  %v12494_v27 = vpop.f32.mrb[49].mxu1 }
 0x318   : > { %13537 = vst [vmem:[#allocation24_spill] sm:$0xff] %v12486_v50  ;;  %13538 = vst [vmem:[#allocation25_spill] sm:$0xff] %v12494_v27  ;;  %v4041_v58 = vpop.f32.mrb[50].mxu0  ;;  %5969 = vmatpush1.bf16.msra.mxu0 %v9466_v56  ;;  %v4082_v5 = vpop.f32.mrb[50].mxu1  ;;  %6010 = vmatpush1.bf16.msra.mxu1 %v9468_v11  ;;  %v9566_v56 = vld [vmem:[%s11611_s28 + $0x1080] sm:$0xff]  ;;  %v9680_v11 = vcombine.low %v9519_v23, %v9535_v15  ;;  %v9631_v27 = vld [vmem:[%s11611_s28 + $0x1288] sm:$0xff] }
 0x319   : > { %v4042_v49 = vpop.f32.mrb[51].mxu0  ;;  %5970 = vmatprep.subr.bf16.mxu0 %v5380_v41  ;;  %v4083_v31 = vpop.f32.mrb[51].mxu1  ;;  %6011 = vmatprep.subr.bf16.mxu1 %v5386_v19  ;;  %v9550_v58 = vld [vmem:[%s11611_s28 + $0x1000] sm:$0xff]  ;;  %v9663_v50 = vld [vmem:[%s11611_s28 + $0x1388] sm:$0x33] }
 0x31a   : > { %v9711_v41 = vcombine.high %v9550_v58, %v9566_v56  ;;  %v9582_v5 = vld [vmem:[%s11611_s28 + $0x1100] sm:$0xff]  ;;  %v9583_v49 = vld [vmem:[%s11611_s28 + $0x1108] sm:$0xff]  ;;  %v9710_v54 = vcombine.low %v9550_v58, %v9566_v56 }
 0x31b   : > { %v9598_v19 = vld [vmem:[%s11611_s28 + $0x1180] sm:$0xff]  ;;  %v9599_v31 = vld [vmem:[%s11611_s28 + $0x1188] sm:$0xff] }
 0x31c   : > { %5971 = vmatpush1.bf16.msra.mxu0 %v5377_v7  ;;  %6012 = vmatpush1.bf16.msra.mxu1 %v5383_v6  ;;  %v9743_v23 = vcombine.high %v9582_v5, %v9598_v19  ;;  %v9614_v15 = vld [vmem:[%s11611_s28 + $0x1200] sm:$0xff]  ;;  %v9745_v7 = vcombine.high %v9583_v49, %v9599_v31  ;;  %v9615_v6 = vld [vmem:[%s11611_s28 + $0x1208] sm:$0xff]  ;;  %v9744_v42 = vcombine.low %v9583_v49, %v9599_v31  ;;  %v9520_v31 = vld [vmem:[%s11611_s28 + $0xf10] sm:$0xff] }
 0x31d   : > { %7101 = vmatprep.subr.bf16.mxu0 %v9679_v59  ;;  %7142 = vmatprep.subr.bf16.mxu1 %v9681_v33  ;;  %v9630_v33 = vld [vmem:[%s11611_s28 + $0x1280] sm:$0xff]  ;;  %v9777_v2 = vcombine.high %v9615_v6, %v9631_v27  ;;  %v9776_v47 = vcombine.low %v9615_v6, %v9631_v27  ;;  %v9569_v27 = vld [vmem:[%s11611_s28 + $0x1098] sm:$0xff] }
 0x31e   : > { %v9646_v59 = vld [vmem:[%s11611_s28 + $0x1300] sm:$0xff]  ;;  %v9775_v58 = vcombine.high %v9614_v15, %v9630_v33 }
 0x31f   : > { %9516 = vmatmul.mubr.msk.bf16.vlgmr.msra.gmra.mrb[92].mxu0 %vm1890_vm2, %v12458_v20  ;;  %9517 = vmatmul.mubr.msk.bf16.vlgmr.msra.gmra.mrb[92].mxu1 %vm1890_vm2, %v12458_v20  ;;  %v9807_v56 = vcombine.high %v9646_v59, %v9662_v9 }
 0x320   : > { %7102 = vmatpush1.bf16.msra.mxu0 %v9678_v36  ;;  %7143 = vmatpush1.bf16.msra.mxu1 %v9680_v11  ;;  %v9742_v36 = vcombine.low %v9582_v5, %v9598_v19  ;;  %v9809_v11 = vcombine.high %v9647_v52, %v9663_v50  ;;  %v9808_v19 = vcombine.low %v9647_v52, %v9663_v50 }
 0x321   : > { %7103 = vmatprep.subr.bf16.mxu0 %v9711_v41  ;;  %7144 = vmatprep.subr.bf16.mxu1 %v9713_v10  ;;  %v9774_v41 = vcombine.low %v9614_v15, %v9630_v33  ;;  %v9806_v10 = vcombine.low %v9646_v59, %v9662_v9  ;;  %v7009_v5 = vand.u32 %v9807_v56, %v11633_v38  ;;  %v9521_v9 = vld [vmem:[%s11611_s28 + $0xf18] sm:$0xff] }
 0x322   : > { %7133 = vmatprep.mubr.bf16.mxu0 %v13533_v26  ;;  %7174 = vmatprep.mubr.bf16.mxu1 %v13533_v26  ;;  %v7015_v49 = vand.u32 %v9809_v11, %v11633_v38  ;;  %v9537_v33 = vld [vmem:[%s11611_s28 + $0xf98] sm:$0xff]  ;;  %v7012_v56 = vand.u32 %v9808_v19, %v11633_v38 }
 0x323   : > { %v7006_v59 = vand.u32 %v9806_v10, %v11633_v38  ;;  %v9685_v52 = vcombine.high %v9521_v9, %v9537_v33  ;;  %v9553_v10 = vld [vmem:[%s11611_s28 + $0x1018] sm:$0xff] }
 0x324   : > { %7104 = vmatpush1.bf16.msra.mxu0 %v9710_v54  ;;  %7145 = vmatpush1.bf16.msra.mxu1 %v9712_v3  ;;  %v9536_v3 = vld [vmem:[%s11611_s28 + $0xf90] sm:$0xff]  ;;  %v9717_v19 = vcombine.high %v9553_v10, %v9569_v27 }
 0x325   : > { %7105 = vmatprep.subr.bf16.mxu0 %v9743_v23  ;;  %7146 = vmatprep.subr.bf16.mxu1 %v9745_v7  ;;  %v9664_v23 = vld [vmem:[%s11611_s28 + $0x1390] sm:$0x33] }
 0x328   : > { %7106 = vmatpush1.bf16.msra.mxu0 %v9742_v36  ;;  %7147 = vmatpush1.bf16.msra.mxu1 %v9744_v42  ;;  %v9682_v36 = vcombine.low %v9520_v31, %v9536_v3 }
 0x329   : > { %7107 = vmatprep.subr.bf16.mxu0 %v9775_v58  ;;  %7148 = vmatprep.subr.bf16.mxu1 %v9777_v2  ;;  %v9683_v2 = vcombine.high %v9520_v31, %v9536_v3  ;;  %v9716_v3 = vcombine.low %v9553_v10, %v9569_v27 }
 0x32a   : > { %v12523_v54 = vpop.f32.mrb[52].mxu0  ;;  %v12530_v7 = vpop.f32.mrb[52].mxu1 }
 0x32b   : > { %v12532_v15 = vpop.f32.mrb[53].mxu0  ;;  %v12540_v50 = vpop.f32.mrb[53].mxu1 }
 0x32c   : > { %13539 = vst [vmem:[#allocation26_spill] sm:$0xff] %v12532_v15  ;;  %13540 = vst [vmem:[#allocation27_spill] sm:$0xff] %v12540_v50  ;;  %v4123_v6 = vpop.f32.mrb[54].mxu0  ;;  %7108 = vmatpush1.bf16.msra.mxu0 %v9774_v41  ;;  %v4164_v42 = vpop.f32.mrb[54].mxu1  ;;  %7149 = vmatpush1.bf16.msra.mxu1 %v9776_v47  ;;  %v9568_v41 = vld [vmem:[%s11611_s28 + $0x1090] sm:$0xff]  ;;  %v9684_v47 = vcombine.low %v9521_v9, %v9537_v33  ;;  %v9633_v50 = vld [vmem:[%s11611_s28 + $0x1298] sm:$0xff] }
 0x32d   : > { %v4124_v58 = vpop.f32.mrb[55].mxu0  ;;  %7109 = vmatprep.subr.bf16.mxu0 %v7009_v5  ;;  %v4165_v11 = vpop.f32.mrb[55].mxu1  ;;  %7150 = vmatprep.subr.bf16.mxu1 %v7015_v49  ;;  %v9552_v6 = vld [vmem:[%s11611_s28 + $0x1010] sm:$0xff]  ;;  %v9665_v15 = vld [vmem:[%s11611_s28 + $0x1398] sm:$0x33] }
 0x32e   : > { %v9715_v5 = vcombine.high %v9552_v6, %v9568_v41  ;;  %v9584_v42 = vld [vmem:[%s11611_s28 + $0x1110] sm:$0xff]  ;;  %v9585_v58 = vld [vmem:[%s11611_s28 + $0x1118] sm:$0xff]  ;;  %v9714_v31 = vcombine.low %v9552_v6, %v9568_v41 }
 0x32f   : > { %v9600_v49 = vld [vmem:[%s11611_s28 + $0x1190] sm:$0xff]  ;;  %v9601_v11 = vld [vmem:[%s11611_s28 + $0x1198] sm:$0xff] }
 0x330   : > { %7110 = vmatpush1.bf16.msra.mxu0 %v7006_v59  ;;  %7151 = vmatpush1.bf16.msra.mxu1 %v7012_v56  ;;  %v9747_v9 = vcombine.high %v9584_v42, %v9600_v49  ;;  %v9616_v33 = vld [vmem:[%s11611_s28 + $0x1210] sm:$0xff]  ;;  %v9749_v59 = vcombine.high %v9585_v58, %v9601_v11  ;;  %v9617_v56 = vld [vmem:[%s11611_s28 + $0x1218] sm:$0xff]  ;;  %v9748_v27 = vcombine.low %v9585_v58, %v9601_v11  ;;  %v9522_v11 = vld [vmem:[%s11611_s28 + $0xf20] sm:$0xff] }
 0x331   : > { %7183 = vmatprep.subr.bf16.mxu0 %v9683_v2  ;;  %7224 = vmatprep.subr.bf16.mxu1 %v9685_v52  ;;  %v9632_v52 = vld [vmem:[%s11611_s28 + $0x1290] sm:$0xff]  ;;  %v9781_v10 = vcombine.high %v9617_v56, %v9633_v50  ;;  %v9780_v61 = vcombine.low %v9617_v56, %v9633_v50  ;;  %v9571_v50 = vld [vmem:[%s11611_s28 + $0x10a8] sm:$0xff] }
 0x332   : > { %v9648_v2 = vld [vmem:[%s11611_s28 + $0x1310] sm:$0xff]  ;;  %v9779_v6 = vcombine.high %v9616_v33, %v9632_v52 }
 0x333   : > { %9838 = vmatmul.mubr.msk.bf16.vlgmr.msra.gmra.mrb[96].mxu0 %vm1890_vm2, %v12458_v20  ;;  %9839 = vmatmul.mubr.msk.bf16.vlgmr.msra.gmra.mrb[96].mxu1 %vm1890_vm2, %v12458_v20  ;;  %v9811_v41 = vcombine.high %v9648_v2, %v9664_v23 }
 0x334   : > { %7184 = vmatpush1.bf16.msra.mxu0 %v9682_v36  ;;  %7225 = vmatpush1.bf16.msra.mxu1 %v9684_v47  ;;  %v9746_v36 = vcombine.low %v9584_v42, %v9600_v49  ;;  %v9813_v47 = vcombine.high %v9649_v1, %v9665_v15  ;;  %v9812_v49 = vcombine.low %v9649_v1, %v9665_v15 }
 0x335   : > { %7185 = vmatprep.subr.bf16.mxu0 %v9715_v5  ;;  %7226 = vmatprep.subr.bf16.mxu1 %v9717_v19  ;;  %v9778_v5 = vcombine.low %v9616_v33, %v9632_v52  ;;  %v9810_v19 = vcombine.low %v9648_v2, %v9664_v23  ;;  %v7021_v42 = vand.u32 %v9811_v41, %v11633_v38  ;;  %v9523_v23 = vld [vmem:[%s11611_s28 + $0xf28] sm:$0xff] }
 0x336   : > { %7215 = vmatprep.mubr.bf16.mxu0 %v13533_v26  ;;  %7256 = vmatprep.mubr.bf16.mxu1 %v13533_v26  ;;  %v7027_v58 = vand.u32 %v9813_v47, %v11633_v38  ;;  %v9539_v52 = vld [vmem:[%s11611_s28 + $0xfa8] sm:$0xff]  ;;  %v7024_v41 = vand.u32 %v9812_v49, %v11633_v38 }
 0x337   : > { %v7018_v2 = vand.u32 %v9810_v19, %v11633_v38  ;;  %v9689_v1 = vcombine.high %v9523_v23, %v9539_v52  ;;  %v9555_v19 = vld [vmem:[%s11611_s28 + $0x1028] sm:$0xff] }
 0x338   : > { %7186 = vmatpush1.bf16.msra.mxu0 %v9714_v31  ;;  %7227 = vmatpush1.bf16.msra.mxu1 %v9716_v3  ;;  %v9538_v3 = vld [vmem:[%s11611_s28 + $0xfa0] sm:$0xff]  ;;  %v9721_v49 = vcombine.high %v9555_v19, %v9571_v50 }
 0x339   : > { %7187 = vmatprep.subr.bf16.mxu0 %v9747_v9  ;;  %7228 = vmatprep.subr.bf16.mxu1 %v9749_v59  ;;  %v9666_v9 = vld [vmem:[%s11611_s28 + $0x13a0] sm:$0x33] }
 0x33c   : > { %7188 = vmatpush1.bf16.msra.mxu0 %v9746_v36  ;;  %7229 = vmatpush1.bf16.msra.mxu1 %v9748_v27  ;;  %v9686_v36 = vcombine.low %v9522_v11, %v9538_v3 }
 0x33d   : > { %7189 = vmatprep.subr.bf16.mxu0 %v9779_v6  ;;  %7230 = vmatprep.subr.bf16.mxu1 %v9781_v10  ;;  %v9687_v10 = vcombine.high %v9522_v11, %v9538_v3  ;;  %v9720_v3 = vcombine.low %v9555_v19, %v9571_v50 }
 0x33e   : > { %v12569_v31 = vpop.f32.mrb[56].mxu0  ;;  %v12576_v59 = vpop.f32.mrb[56].mxu1 }
 0x33f   : > { %v12578_v33 = vpop.f32.mrb[57].mxu0  ;;  %v12586_v15 = vpop.f32.mrb[57].mxu1 }
 0x340   : > { %13541 = vst [vmem:[#allocation28_spill] sm:$0xff] %v12578_v33  ;;  %13542 = vst [vmem:[#allocation29_spill] sm:$0xff] %v12586_v15  ;;  %v4205_v56 = vpop.f32.mrb[58].mxu0  ;;  %7190 = vmatpush1.bf16.msra.mxu0 %v9778_v5  ;;  %v4246_v27 = vpop.f32.mrb[58].mxu1  ;;  %7231 = vmatpush1.bf16.msra.mxu1 %v9780_v61  ;;  %v9570_v5 = vld [vmem:[%s11611_s28 + $0x10a0] sm:$0xff]  ;;  %v9688_v61 = vcombine.low %v9523_v23, %v9539_v52  ;;  %v9635_v15 = vld [vmem:[%s11611_s28 + $0x12a8] sm:$0xff] }
 0x341   : > { %v4206_v6 = vpop.f32.mrb[59].mxu0  ;;  %7191 = vmatprep.subr.bf16.mxu0 %v7021_v42  ;;  %v4247_v47 = vpop.f32.mrb[59].mxu1  ;;  %7232 = vmatprep.subr.bf16.mxu1 %v7027_v58  ;;  %v9554_v56 = vld [vmem:[%s11611_s28 + $0x1020] sm:$0xff]  ;;  %v9667_v33 = vld [vmem:[%s11611_s28 + $0x13a8] sm:$0x33] }
 0x342   : > { %v9719_v42 = vcombine.high %v9554_v56, %v9570_v5  ;;  %v9586_v27 = vld [vmem:[%s11611_s28 + $0x1120] sm:$0xff]  ;;  %v9587_v6 = vld [vmem:[%s11611_s28 + $0x1128] sm:$0xff]  ;;  %v9718_v11 = vcombine.low %v9554_v56, %v9570_v5 }
 0x343   : > { %v9602_v58 = vld [vmem:[%s11611_s28 + $0x11a0] sm:$0xff]  ;;  %v9603_v47 = vld [vmem:[%s11611_s28 + $0x11a8] sm:$0xff] }
 0x344   : > { %7192 = vmatpush1.bf16.msra.mxu0 %v7018_v2  ;;  %7233 = vmatpush1.bf16.msra.mxu1 %v7024_v41  ;;  %v9751_v23 = vcombine.high %v9586_v27, %v9602_v58  ;;  %v9618_v52 = vld [vmem:[%s11611_s28 + $0x1220] sm:$0xff]  ;;  %v9753_v2 = vcombine.high %v9587_v6, %v9603_v47  ;;  %v9619_v41 = vld [vmem:[%s11611_s28 + $0x1228] sm:$0xff]  ;;  %v9752_v50 = vcombine.low %v9587_v6, %v9603_v47  ;;  %v9524_v47 = vld [vmem:[%s11611_s28 + $0xf30] sm:$0xff] }
 0x345   : > { %7265 = vmatprep.subr.bf16.mxu0 %v9687_v10  ;;  %7306 = vmatprep.subr.bf16.mxu1 %v9689_v1  ;;  %v9634_v1 = vld [vmem:[%s11611_s28 + $0x12a0] sm:$0xff]  ;;  %v9785_v19 = vcombine.high %v9619_v41, %v9635_v15  ;;  %v9784_v14 = vcombine.low %v9619_v41, %v9635_v15  ;;  %v9573_v15 = vld [vmem:[%s11611_s28 + $0x10b8] sm:$0xff] }
 0x346   : > { %v9650_v10 = vld [vmem:[%s11611_s28 + $0x1320] sm:$0xff]  ;;  %v9783_v56 = vcombine.high %v9618_v52, %v9634_v1 }
 0x347   : > { %9840 = vmatmul.mubr.msk.bf16.vlgmr.msra.gmra.mrb[100].mxu0 %vm1890_vm2, %v12458_v20  ;;  %9841 = vmatmul.mubr.msk.bf16.vlgmr.msra.gmra.mrb[100].mxu1 %vm1890_vm2, %v12458_v20  ;;  %v9815_v5 = vcombine.high %v9650_v10, %v9666_v9 }
 0x348   : > { %7266 = vmatpush1.bf16.msra.mxu0 %v9686_v36  ;;  %7307 = vmatpush1.bf16.msra.mxu1 %v9688_v61  ;;  %v9750_v36 = vcombine.low %v9586_v27, %v9602_v58  ;;  %v9817_v61 = vcombine.high %v9651_v16, %v9667_v33  ;;  %v9816_v58 = vcombine.low %v9651_v16, %v9667_v33 }
 0x349   : > { %7267 = vmatprep.subr.bf16.mxu0 %v9719_v42  ;;  %7308 = vmatprep.subr.bf16.mxu1 %v9721_v49  ;;  %v9782_v42 = vcombine.low %v9618_v52, %v9634_v1  ;;  %v9814_v49 = vcombine.low %v9650_v10, %v9666_v9  ;;  %v7033_v27 = vand.u32 %v9815_v5, %v11633_v38  ;;  %v9525_v9 = vld [vmem:[%s11611_s28 + $0xf38] sm:$0xff] }
 0x34a   : > { %7297 = vmatprep.mubr.bf16.mxu0 %v13533_v26  ;;  %7338 = vmatprep.mubr.bf16.mxu1 %v13533_v26  ;;  %v7039_v6 = vand.u32 %v9817_v61, %v11633_v38  ;;  %v9541_v1 = vld [vmem:[%s11611_s28 + $0xfb8] sm:$0xff]  ;;  %v7036_v5 = vand.u32 %v9816_v58, %v11633_v38 }
 0x34b   : > { %v7030_v10 = vand.u32 %v9814_v49, %v11633_v38  ;;  %v9693_v16 = vcombine.high %v9525_v9, %v9541_v1  ;;  %v9557_v49 = vld [vmem:[%s11611_s28 + $0x1038] sm:$0xff] }
 0x34c   : > { %7268 = vmatpush1.bf16.msra.mxu0 %v9718_v11  ;;  %7309 = vmatpush1.bf16.msra.mxu1 %v9720_v3  ;;  %v9540_v3 = vld [vmem:[%s11611_s28 + $0xfb0] sm:$0xff]  ;;  %v9725_v58 = vcombine.high %v9557_v49, %v9573_v15 }
 0x34d   : > { %7269 = vmatprep.subr.bf16.mxu0 %v9751_v23  ;;  %7310 = vmatprep.subr.bf16.mxu1 %v9753_v2  ;;  %v9668_v23 = vld [vmem:[%s11611_s28 + $0x13b0] sm:$0x33] }
 0x350   : > { %7270 = vmatpush1.bf16.msra.mxu0 %v9750_v36  ;;  %7311 = vmatpush1.bf16.msra.mxu1 %v9752_v50  ;;  %v9690_v36 = vcombine.low %v9524_v47, %v9540_v3 }
 0x351   : > { %7271 = vmatprep.subr.bf16.mxu0 %v9783_v56  ;;  %7312 = vmatprep.subr.bf16.mxu1 %v9785_v19  ;;  %v9691_v19 = vcombine.high %v9524_v47, %v9540_v3  ;;  %v9724_v3 = vcombine.low %v9557_v49, %v9573_v15 }
 0x352   : > { %v12615_v11 = vpop.f32.mrb[60].mxu0  ;;  %v12622_v2 = vpop.f32.mrb[60].mxu1 }
 0x353   : > { %v12624_v52 = vpop.f32.mrb[61].mxu0  ;;  %v12632_v33 = vpop.f32.mrb[61].mxu1 }
 0x354   : > { %13543 = vst [vmem:[#allocation30_spill] sm:$0xff] %v12624_v52  ;;  %13544 = vst [vmem:[#allocation31_spill] sm:$0xff] %v12632_v33  ;;  %v4287_v41 = vpop.f32.mrb[62].mxu0  ;;  %7272 = vmatpush1.bf16.msra.mxu0 %v9782_v42  ;;  %v4328_v50 = vpop.f32.mrb[62].mxu1  ;;  %7313 = vmatpush1.bf16.msra.mxu1 %v9784_v14  ;;  %v9572_v42 = vld [vmem:[%s11611_s28 + $0x10b0] sm:$0xff]  ;;  %v9692_v14 = vcombine.low %v9525_v9, %v9541_v1  ;;  %v9637_v33 = vld [vmem:[%s11611_s28 + $0x12b8] sm:$0xff] }
 0x355   : > { %v4288_v56 = vpop.f32.mrb[63].mxu0  ;;  %7273 = vmatprep.subr.bf16.mxu0 %v7033_v27  ;;  %v4329_v61 = vpop.f32.mrb[63].mxu1  ;;  %7314 = vmatprep.subr.bf16.mxu1 %v7039_v6  ;;  %v9556_v41 = vld [vmem:[%s11611_s28 + $0x1030] sm:$0xff]  ;;  %v9669_v52 = vld [vmem:[%s11611_s28 + $0x13b8] sm:$0x33] }
 0x356   : > { %v9723_v27 = vcombine.high %v9556_v41, %v9572_v42  ;;  %v9588_v50 = vld [vmem:[%s11611_s28 + $0x1130] sm:$0xff]  ;;  %v9589_v56 = vld [vmem:[%s11611_s28 + $0x1138] sm:$0xff]  ;;  %v9722_v47 = vcombine.low %v9556_v41, %v9572_v42 }
 0x357   : > { %v9604_v6 = vld [vmem:[%s11611_s28 + $0x11b0] sm:$0xff]  ;;  %v9605_v61 = vld [vmem:[%s11611_s28 + $0x11b8] sm:$0xff] }
 0x358   : > { %7274 = vmatpush1.bf16.msra.mxu0 %v7030_v10  ;;  %7315 = vmatpush1.bf16.msra.mxu1 %v7036_v5  ;;  %v9755_v9 = vcombine.high %v9588_v50, %v9604_v6  ;;  %v9620_v1 = vld [vmem:[%s11611_s28 + $0x1230] sm:$0xff]  ;;  %v9757_v10 = vcombine.high %v9589_v56, %v9605_v61  ;;  %v9621_v5 = vld [vmem:[%s11611_s28 + $0x1238] sm:$0xff]  ;;  %v9756_v15 = vcombine.low %v9589_v56, %v9605_v61  ;;  %v9526_v61 = vld [vmem:[%s11611_s28 + $0xf40] sm:$0xff] }
 0x359   : > { %7347 = vmatprep.subr.bf16.mxu0 %v9691_v19  ;;  %7388 = vmatprep.subr.bf16.mxu1 %v9693_v16  ;;  %v9636_v16 = vld [vmem:[%s11611_s28 + $0x12b0] sm:$0xff]  ;;  %v9789_v49 = vcombine.high %v9621_v5, %v9637_v33  ;;  %v9788_v53 = vcombine.low %v9621_v5, %v9637_v33  ;;  %v13546_v33 = vmax.f32 %v11981_v44, %v12292_v21 }
 0x35a   : > { %v9652_v19 = vld [vmem:[%s11611_s28 + $0x1330] sm:$0xff]  ;;  %v9787_v41 = vcombine.high %v9620_v1, %v9636_v16 }
 0x35b   : > { %9842 = vmatmul.mubr.msk.bf16.vlgmr.msra.gmra.mrb[104].mxu0 %vm1890_vm2, %v12458_v20  ;;  %9843 = vmatmul.mubr.msk.bf16.vlgmr.msra.gmra.mrb[104].mxu1 %vm1890_vm2, %v12458_v20  ;;  %v9819_v42 = vcombine.high %v9652_v19, %v9668_v23 }
 0x35c   : > { %7348 = vmatpush1.bf16.msra.mxu0 %v9690_v36  ;;  %7389 = vmatpush1.bf16.msra.mxu1 %v9692_v14  ;;  %v9754_v36 = vcombine.low %v9588_v50, %v9604_v6  ;;  %v9821_v14 = vcombine.high %v9653_v57, %v9669_v52  ;;  %v9820_v6 = vcombine.low %v9653_v57, %v9669_v52 }
 0x35d   : > { %7349 = vmatprep.subr.bf16.mxu0 %v9723_v27  ;;  %7390 = vmatprep.subr.bf16.mxu1 %v9725_v58  ;;  %v9786_v27 = vcombine.low %v9620_v1, %v9636_v16  ;;  %v9818_v58 = vcombine.low %v9652_v19, %v9668_v23  ;;  %v7045_v50 = vand.u32 %v9819_v42, %v11633_v38  ;;  %v9527_v23 = vld [vmem:[%s11611_s28 + $0xf48] sm:$0xff] }
 0x35e   : > { %7379 = vmatprep.mubr.bf16.mxu0 %v13533_v26  ;;  %7420 = vmatprep.mubr.bf16.mxu1 %v13533_v26  ;;  %v7051_v56 = vand.u32 %v9821_v14, %v11633_v38  ;;  %v9543_v19 = vld [vmem:[%s11611_s28 + $0xfc8] sm:$0xff]  ;;  %v13547_v57 = vmax.f32 %v11983_v45, %v12294_v22  ;;  %v7048_v45 = vand.u32 %v9820_v6, %v11633_v38  ;;  %v9558_v14 = vld [vmem:[%s11611_s28 + $0x1040] sm:$0xff] }
 0x360   : > { %7350 = vmatpush1.bf16.msra.mxu0 %v9722_v47  ;;  %7391 = vmatpush1.bf16.msra.mxu1 %v9724_v3  ;;  %v9542_v3 = vld [vmem:[%s11611_s28 + $0xfc0] sm:$0xff] }
 0x361   : > { %7351 = vmatprep.subr.bf16.mxu0 %v9755_v9  ;;  %7392 = vmatprep.subr.bf16.mxu1 %v9757_v10  ;;  %v13545_v9 = vmax.f32 %v11976_v40, %v12285_v17  ;;  %v7042_v17 = vand.u32 %v9818_v58, %v11633_v38  ;;  %v9695_v22 = vcombine.high %v9526_v61, %v9542_v3  ;;  %v9559_v58 = vld [vmem:[%s11611_s28 + $0x1048] sm:$0xff] }
 0x364   : > { %7352 = vmatpush1.bf16.msra.mxu0 %v9754_v36  ;;  %7393 = vmatpush1.bf16.msra.mxu1 %v9756_v15  ;;  %v13548_v15 = vmax.f32 %v11987_v48, %v12302_v43  ;;  %v9575_v48 = vld [vmem:[%s11611_s28 + $0x10c8] sm:$0xff]  ;;  %v9694_v43 = vcombine.low %v9526_v61, %v9542_v3 }
 0x365   : > { %7353 = vmatprep.subr.bf16.mxu0 %v9787_v41  ;;  %7394 = vmatprep.subr.bf16.mxu1 %v9789_v49  ;;  %v9697_v49 = vcombine.high %v9527_v23, %v9543_v19  ;;  %v9729_v6 = vcombine.high %v9559_v58, %v9575_v48  ;;  %v9728_v3 = vcombine.low %v9559_v58, %v9575_v48 }
 0x366   : > { %v5422_v47 = vpop.f32.mrb[64].mxu0  ;;  %v5463_v1 = vpop.f32.mrb[64].mxu1 }
 0x367   : > { %v12667_v10 = vmax.f32 %v13545_v9, %v5422_v47  ;;  %v5424_v16 = vpop.f32.mrb[65].mxu0  ;;  %v12674_v5 = vmax.f32 %v13546_v33, %v5463_v1  ;;  %v5465_v36 = vpop.f32.mrb[65].mxu1  ;;  %v9590_v47 = vld [vmem:[%s11611_s28 + $0x1140] sm:$0xff]  ;;  %v9591_v9 = vld [vmem:[%s11611_s28 + $0x1148] sm:$0xff] }
 0x368   : > { %v12679_v52 = vmax.f32 %v13547_v57, %v5424_v16  ;;  %v5426_v40 = vpop.f32.mrb[66].mxu0  ;;  %7354 = vmatpush1.bf16.msra.mxu0 %v9786_v27  ;;  %v12685_v44 = vmax.f32 %v13548_v15, %v5465_v36  ;;  %v5467_v21 = vpop.f32.mrb[66].mxu1  ;;  %7395 = vmatpush1.bf16.msra.mxu1 %v9788_v53  ;;  %v9574_v27 = vld [vmem:[%s11611_s28 + $0x10c0] sm:$0xff]  ;;  %v9696_v53 = vcombine.low %v9527_v23, %v9543_v19  ;;  %v9607_v1 = vld [vmem:[%s11611_s28 + $0x11c8] sm:$0xff] }
 0x369   : > { %v5427_v41 = vpop.f32.mrb[67].mxu0  ;;  %7355 = vmatprep.subr.bf16.mxu0 %v7045_v50  ;;  %v5468_v42 = vpop.f32.mrb[67].mxu1  ;;  %7396 = vmatprep.subr.bf16.mxu1 %v7051_v56  ;;  %v9727_v50 = vcombine.high %v9558_v14, %v9574_v27  ;;  %v9606_v56 = vld [vmem:[%s11611_s28 + $0x11c0] sm:$0xff]  ;;  %v9726_v61 = vcombine.low %v9558_v14, %v9574_v27  ;;  %v9761_v33 = vcombine.high %v9591_v9, %v9607_v1  ;;  %v9623_v57 = vld [vmem:[%s11611_s28 + $0x1248] sm:$0xff] }
 0x36a   : > { %v9759_v16 = vcombine.high %v9590_v47, %v9606_v56  ;;  %v9622_v23 = vld [vmem:[%s11611_s28 + $0x1240] sm:$0xff]  ;;  %v9655_v15 = vld [vmem:[%s11611_s28 + $0x1348] sm:$0xff]  ;;  %v9758_v41 = vcombine.low %v9590_v47, %v9606_v56  ;;  %v9528_v47 = vld [vmem:[%s11611_s28 + $0xf50] sm:$0xff] }
 0x36b   : > { %v9638_v19 = vld [vmem:[%s11611_s28 + $0x12c0] sm:$0xff]  ;;  %v9671_v21 = vld [vmem:[%s11611_s28 + $0x13c8] sm:$0x33]  ;;  %v9544_v56 = vld [vmem:[%s11611_s28 + $0xfd0] sm:$0xff] }
 0x36c   : > { %7356 = vmatpush1.bf16.msra.mxu0 %v7042_v17  ;;  %7397 = vmatpush1.bf16.msra.mxu1 %v7048_v45  ;;  %v9654_v36 = vld [vmem:[%s11611_s28 + $0x1340] sm:$0xff]  ;;  %v9639_v17 = vld [vmem:[%s11611_s28 + $0x12c8] sm:$0xff]  ;;  %v9760_v45 = vcombine.low %v9591_v9, %v9607_v1  ;;  %v9825_v14 = vcombine.high %v9655_v15, %v9671_v21  ;;  %v9790_v27 = vcombine.low %v9622_v23, %v9638_v19 }
 0x36d   : > { %7429 = vmatprep.subr.bf16.mxu0 %v9695_v22  ;;  %7470 = vmatprep.subr.bf16.mxu1 %v9697_v49  ;;  %v9670_v40 = vld [vmem:[%s11611_s28 + $0x13c0] sm:$0x33]  ;;  %v9791_v22 = vcombine.high %v9622_v23, %v9638_v19  ;;  %v9793_v49 = vcombine.high %v9623_v57, %v9639_v17  ;;  %v9792_v48 = vcombine.low %v9623_v57, %v9639_v17  ;;  %v9545_v23 = vld [vmem:[%s11611_s28 + $0xfd8] sm:$0xff]  ;;  %v13551_v57 = vld [vmem:[#allocation17_spill] sm:$0xff] }
 0x36e   : > { %v9823_v42 = vcombine.high %v9654_v36, %v9670_v40  ;;  %v9822_v58 = vcombine.low %v9654_v36, %v9670_v40  ;;  %v13549_v9 = vmax.f32 %v12014_v30, %v12331_v18  ;;  %v13550_v19 = vmax.f32 %v12019_v34, %v12338_v63 }
 0x36f   : > { %9844 = vmatmul.mubr.msk.bf16.vlgmr.msra.gmra.mrb[108].mxu0 %vm1890_vm2, %v12458_v20  ;;  %9845 = vmatmul.mubr.msk.bf16.vlgmr.msra.gmra.mrb[108].mxu1 %vm1890_vm2, %v12458_v20  ;;  %v13552_v36 = vmax.f32 %v12021_v35, %v13551_v57  ;;  %v9640_v57 = vld [vmem:[%s11611_s28 + $0x12d0] sm:$0xff] }
 0x370   : > { %7430 = vmatpush1.bf16.msra.mxu0 %v9694_v43  ;;  %7471 = vmatpush1.bf16.msra.mxu1 %v9696_v53  ;;  %v7057_v43 = vand.u32 %v9823_v42, %v11633_v38  ;;  %v9824_v53 = vcombine.low %v9655_v15, %v9671_v21  ;;  %v7054_v18 = vand.u32 %v9822_v58, %v11633_v38  ;;  %v13553_v15 = vld [vmem:[#allocation4_spill] sm:$0xff]  ;;  %v13554_v21 = vld [vmem:[#allocation18_spill] sm:$0xff]  ;;  %v9561_v58 = vld [vmem:[%s11611_s28 + $0x1058] sm:$0xff] }
 0x371   : > { %7431 = vmatprep.subr.bf16.mxu0 %v9727_v50  ;;  %7472 = vmatprep.subr.bf16.mxu1 %v9729_v6  ;;  %v7063_v6 = vand.u32 %v9825_v14, %v11633_v38  ;;  %v9560_v14 = vld [vmem:[%s11611_s28 + $0x1050] sm:$0xff] }
 0x372   : > { %7461 = vmatprep.mubr.bf16.mxu0 %v13533_v26  ;;  %7502 = vmatprep.mubr.bf16.mxu1 %v13533_v26  ;;  %v7060_v35 = vand.u32 %v9824_v53, %v11633_v38 }
 0x374   : > { %7432 = vmatpush1.bf16.msra.mxu0 %v9726_v61  ;;  %7473 = vmatpush1.bf16.msra.mxu1 %v9728_v3 }
 0x375   : > { %7433 = vmatprep.subr.bf16.mxu0 %v9759_v16  ;;  %7474 = vmatprep.subr.bf16.mxu1 %v9761_v33  ;;  %v9529_v16 = vld [vmem:[%s11611_s28 + $0xf58] sm:$0xff] }
 0x378   : > { %7434 = vmatpush1.bf16.msra.mxu0 %v9758_v41  ;;  %7475 = vmatpush1.bf16.msra.mxu1 %v9760_v45  ;;  %v13555_v41 = vmax.f32 %v13553_v15, %v13554_v21  ;;  %v9641_v15 = vld [vmem:[%s11611_s28 + $0x12d8] sm:$0xff] }
 0x379   : > { %7435 = vmatprep.subr.bf16.mxu0 %v9791_v22  ;;  %7476 = vmatprep.subr.bf16.mxu1 %v9793_v49  ;;  %v9699_v22 = vcombine.high %v9528_v47, %v9544_v56  ;;  %v9701_v49 = vcombine.high %v9529_v16, %v9545_v23  ;;  %v9657_v21 = vld [vmem:[%s11611_s28 + $0x1358] sm:$0xff] }
 0x37a   : > { %v5504_v50 = vpop.f32.mrb[68].mxu0  ;;  %v5545_v61 = vpop.f32.mrb[68].mxu1 }
 0x37b   : > { %v12717_v1 = vmax.f32 %v13549_v9, %v5504_v50  ;;  %v5506_v3 = vpop.f32.mrb[69].mxu0  ;;  %v12724_v33 = vmax.f32 %v13550_v19, %v5545_v61  ;;  %v5547_v17 = vpop.f32.mrb[69].mxu1  ;;  %v9577_v50 = vld [vmem:[%s11611_s28 + $0x10d8] sm:$0xff]  ;;  %v9698_v9 = vcombine.low %v9528_v47, %v9544_v56  ;;  %v9592_v61 = vld [vmem:[%s11611_s28 + $0x1150] sm:$0xff] }
 0x37c   : > { %v12729_v40 = vmax.f32 %v13552_v36, %v5506_v3  ;;  %v5508_v30 = vpop.f32.mrb[70].mxu0  ;;  %7436 = vmatpush1.bf16.msra.mxu0 %v9790_v27  ;;  %v12735_v34 = vmax.f32 %v13555_v41, %v5547_v17  ;;  %v5549_v63 = vpop.f32.mrb[70].mxu1  ;;  %7477 = vmatpush1.bf16.msra.mxu1 %v9792_v48  ;;  %v9576_v27 = vld [vmem:[%s11611_s28 + $0x10d0] sm:$0xff]  ;;  %v9700_v48 = vcombine.low %v9529_v16, %v9545_v23  ;;  %v9593_v3 = vld [vmem:[%s11611_s28 + $0x1158] sm:$0xff] }
 0x37d   : > { %v5509_v45 = vpop.f32.mrb[71].mxu0  ;;  %7437 = vmatprep.subr.bf16.mxu0 %v7057_v43  ;;  %v5550_v42 = vpop.f32.mrb[71].mxu1  ;;  %7478 = vmatprep.subr.bf16.mxu1 %v7063_v6  ;;  %v9731_v43 = vcombine.high %v9560_v14, %v9576_v27  ;;  %v9733_v53 = vcombine.high %v9561_v58, %v9577_v50  ;;  %v9608_v6 = vld [vmem:[%s11611_s28 + $0x11d0] sm:$0xff]  ;;  %v9609_v19 = vld [vmem:[%s11611_s28 + $0x11d8] sm:$0xff]  ;;  %v9730_v47 = vcombine.low %v9560_v14, %v9576_v27 }
 0x37e   : > { %v9732_v56 = vcombine.low %v9561_v58, %v9577_v50  ;;  %v9763_v16 = vcombine.high %v9592_v61, %v9608_v6  ;;  %v9624_v23 = vld [vmem:[%s11611_s28 + $0x1250] sm:$0xff]  ;;  %v9765_v36 = vcombine.high %v9593_v3, %v9609_v19  ;;  %v9625_v17 = vld [vmem:[%s11611_s28 + $0x1258] sm:$0xff]  ;;  %v9762_v41 = vcombine.low %v9592_v61, %v9608_v6 }
 0x37f   : > { %v9656_v30 = vld [vmem:[%s11611_s28 + $0x1350] sm:$0xff]  ;;  %v9764_v63 = vcombine.low %v9593_v3, %v9609_v19  ;;  %v9795_v45 = vcombine.high %v9624_v23, %v9640_v57  ;;  %v9796_v27 = vcombine.low %v9625_v17, %v9641_v15  ;;  %v13556_v61 = vmax.f32 %v12052_v25, %v12377_v62 }
 0x380   : > { %7438 = vmatpush1.bf16.msra.mxu0 %v7054_v18  ;;  %7479 = vmatpush1.bf16.msra.mxu1 %v7060_v35  ;;  %v9672_v18 = vld [vmem:[%s11611_s28 + $0x13d0] sm:$0x33] }
 0x381   : > { %7511 = vmatprep.subr.bf16.mxu0 %v9699_v22  ;;  %7552 = vmatprep.subr.bf16.mxu1 %v9701_v49  ;;  %v9827_v35 = vcombine.high %v9656_v30, %v9672_v18  ;;  %v9797_v22 = vcombine.high %v9625_v17, %v9641_v15  ;;  %v9794_v49 = vcombine.low %v9624_v23, %v9640_v57  ;;  %v13558_v57 = vld [vmem:[#allocation5_spill] sm:$0xff]  ;;  %v13561_v15 = vld [vmem:[#allocation6_spill] sm:$0xff] }
 0x382   : > { %v9826_v14 = vcombine.low %v9656_v30, %v9672_v18 }
 0x383   : > { %9846 = vmatmul.mubr.msk.bf16.vlgmr.msra.gmra.mrb[112].mxu0 %vm1890_vm2, %v12458_v20  ;;  %9847 = vmatmul.mubr.msk.bf16.vlgmr.msra.gmra.mrb[112].mxu1 %vm1890_vm2, %v12458_v20  ;;  %v9673_v20 = vld [vmem:[%s11611_s28 + $0x13d8] sm:$0x33]  ;;  %v7069_v58 = vand.u32 %v9827_v35, %v11633_v38 }
 0x384   : > { %7512 = vmatpush1.bf16.msra.mxu0 %v9698_v9  ;;  %7553 = vmatpush1.bf16.msra.mxu1 %v9700_v48  ;;  %v9829_v42 = vcombine.high %v9657_v21, %v9673_v20  ;;  %v9828_v50 = vcombine.low %v9657_v21, %v9673_v20  ;;  %v7066_v62 = vand.u32 %v9826_v14, %v11633_v38  ;;  %v13562_v21 = vld [vmem:[#allocation20_spill] sm:$0xff]  ;;  %v9563_v14 = vld [vmem:[%s11611_s28 + $0x1068] sm:$0xff] }
 0x385   : > { %7513 = vmatprep.subr.bf16.mxu0 %v9731_v43  ;;  %7554 = vmatprep.subr.bf16.mxu1 %v9733_v53  ;;  %v9530_v43 = vld [vmem:[%s11611_s28 + $0xf60] sm:$0xff]  ;;  %v13563_v20 = vmax.f32 %v13561_v15, %v13562_v21  ;;  %v9643_v15 = vld [vmem:[%s11611_s28 + $0x12e8] sm:$0xff] }
 0x386   : > { %7543 = vmatprep.mubr.bf16.mxu0 %v13533_v26  ;;  %7584 = vmatprep.mubr.bf16.mxu1 %v13533_v26  ;;  %v7075_v48 = vand.u32 %v9829_v42, %v11633_v38  ;;  %v9546_v53 = vld [vmem:[%s11611_s28 + $0xfe0] sm:$0xff]  ;;  %v9659_v21 = vld [vmem:[%s11611_s28 + $0x1368] sm:$0xff] }
 0x387   : > { %v9562_v42 = vld [vmem:[%s11611_s28 + $0x1060] sm:$0xff] }
 0x388   : > { %7514 = vmatpush1.bf16.msra.mxu0 %v9730_v47  ;;  %7555 = vmatpush1.bf16.msra.mxu1 %v9732_v56  ;;  %v9531_v47 = vld [vmem:[%s11611_s28 + $0xf68] sm:$0xff] }
 0x389   : > { %7515 = vmatprep.subr.bf16.mxu0 %v9763_v16  ;;  %7556 = vmatprep.subr.bf16.mxu1 %v9765_v36  ;;  %v9547_v56 = vld [vmem:[%s11611_s28 + $0xfe8] sm:$0xff]  ;;  %v13557_v16 = vmax.f32 %v12057_v29, %v12384_v4  ;;  %v13559_v36 = vld [vmem:[#allocation19_spill] sm:$0xff] }
 0x38a   : > { %v13560_v17 = vmax.f32 %v13558_v57, %v13559_v36  ;;  %v9626_v57 = vld [vmem:[%s11611_s28 + $0x1260] sm:$0xff] }
 0x38b   : > { %v9642_v36 = vld [vmem:[%s11611_s28 + $0x12e0] sm:$0xff] }
 0x38c   : > { %7516 = vmatpush1.bf16.msra.mxu0 %v9762_v41  ;;  %7557 = vmatpush1.bf16.msra.mxu1 %v9764_v63  ;;  %v7072_v63 = vand.u32 %v9828_v50, %v11633_v38 }
 0x38d   : > { %7517 = vmatprep.subr.bf16.mxu0 %v9795_v45  ;;  %7558 = vmatprep.subr.bf16.mxu1 %v9797_v22  ;;  %v9703_v45 = vcombine.high %v9530_v43, %v9546_v53  ;;  %v9705_v22 = vcombine.high %v9531_v47, %v9547_v56 }
 0x38e   : > { %v5586_v9 = vpop.f32.mrb[72].mxu0  ;;  %v5627_v3 = vpop.f32.mrb[72].mxu1 }
 0x38f   : > { %v12767_v6 = vmax.f32 %v13556_v61, %v5586_v9  ;;  %v5588_v19 = vpop.f32.mrb[73].mxu0  ;;  %v12774_v23 = vmax.f32 %v13557_v16, %v5627_v3  ;;  %v5629_v18 = vpop.f32.mrb[73].mxu1  ;;  %v9579_v9 = vld [vmem:[%s11611_s28 + $0x10e8] sm:$0xff]  ;;  %v9702_v61 = vcombine.low %v9530_v43, %v9546_v53  ;;  %v9594_v3 = vld [vmem:[%s11611_s28 + $0x1160] sm:$0xff] }
 0x390   : > { %v12779_v30 = vmax.f32 %v13560_v17, %v5588_v19  ;;  %v5590_v25 = vpop.f32.mrb[74].mxu0  ;;  %7518 = vmatpush1.bf16.msra.mxu0 %v9794_v49  ;;  %v12785_v29 = vmax.f32 %v13563_v20, %v5629_v18  ;;  %v5631_v4 = vpop.f32.mrb[74].mxu1  ;;  %7559 = vmatpush1.bf16.msra.mxu1 %v9796_v27  ;;  %v9578_v49 = vld [vmem:[%s11611_s28 + $0x10e0] sm:$0xff]  ;;  %v9704_v27 = vcombine.low %v9531_v47, %v9547_v56  ;;  %v9595_v43 = vld [vmem:[%s11611_s28 + $0x1168] sm:$0xff] }
 0x391   : > { %v5591_v41 = vpop.f32.mrb[75].mxu0  ;;  %7519 = vmatprep.subr.bf16.mxu0 %v7069_v58  ;;  %v5632_v35 = vpop.f32.mrb[75].mxu1  ;;  %7560 = vmatprep.subr.bf16.mxu1 %v7075_v48  ;;  %v9735_v58 = vcombine.high %v9562_v42, %v9578_v49  ;;  %v9737_v50 = vcombine.high %v9563_v14, %v9579_v9  ;;  %v9610_v19 = vld [vmem:[%s11611_s28 + $0x11e0] sm:$0xff]  ;;  %v9611_v53 = vld [vmem:[%s11611_s28 + $0x11e8] sm:$0xff]  ;;  %v9734_v47 = vcombine.low %v9562_v42, %v9578_v49 }
 0x392   : > { %v12797_v48 = vld [vmem:[%s13462_s1] sm:$0x7]  ;;  %v9736_v56 = vcombine.low %v9563_v14, %v9579_v9  ;;  %v9767_v16 = vcombine.high %v9594_v3, %v9610_v19  ;;  %v9769_v17 = vcombine.high %v9595_v43, %v9611_v53  ;;  %v9627_v18 = vld [vmem:[%s11611_s28 + $0x1268] sm:$0xff]  ;;  %v9766_v4 = vcombine.low %v9594_v3, %v9610_v19  ;;  %v9548_v3 = vld [vmem:[%s11611_s28 + $0xff0] sm:$0xff] }
 0x393   : > { %v9658_v25 = vld [vmem:[%s11611_s28 + $0x1360] sm:$0xff]  ;;  %v9675_v20 = vld [vmem:[%s11611_s28 + $0x13e8] sm:$0x33]  ;;  %v9768_v41 = vcombine.low %v9595_v43, %v9611_v53  ;;  %v9801_v35 = vcombine.high %v9627_v18, %v9643_v15  ;;  %v9798_v42 = vcombine.low %v9626_v57, %v9642_v36  ;;  %v9800_v14 = vcombine.low %v9627_v18, %v9643_v15  ;;  %v13567_v18 = vld [vmem:[#allocation7_spill] sm:$0xff] }
 0x394   : > { %7520 = vmatpush1.bf16.msra.mxu0 %v7066_v62  ;;  %7561 = vmatpush1.bf16.msra.mxu1 %v7072_v63  ;;  %v9674_v62 = vld [vmem:[%s11611_s28 + $0x13e0] sm:$0x33]  ;;  %v9799_v63 = vcombine.high %v9626_v57, %v9642_v36  ;;  %v13564_v19 = vmax.f32 %v12090_v24, %v12423_v12  ;;  %v13565_v57 = vld [vmem:[#allocation21_spill] sm:$0xff] }
 0x395   : > { %7593 = vmatprep.subr.bf16.mxu0 %v9703_v45  ;;  %7634 = vmatprep.subr.bf16.mxu1 %v9705_v22  ;;  %v9831_v45 = vcombine.high %v9658_v25, %v9674_v62  ;;  %v9833_v22 = vcombine.high %v9659_v21, %v9675_v20  ;;  %v9830_v49 = vcombine.low %v9658_v25, %v9674_v62  ;;  %v13568_v25 = vld [vmem:[#allocation22_spill] sm:$0xff] }
 0x396   : > { %v13566_v36 = vmax.f32 %v12095_v32, %v13565_v57  ;;  %v13569_v62 = vmax.f32 %v13567_v18, %v13568_v25  ;;  %v9597_v18 = vld [vmem:[%s11611_s28 + $0x1178] sm:$0xff] }
 0x397   : > { %9848 = vmatmul.mubr.msk.bf16.vlgmr.msra.gmra.mrb[116].mxu0 %vm1890_vm2, %v12797_v48  ;;  %9849 = vmatmul.mubr.msk.bf16.vlgmr.msra.gmra.mrb[116].mxu1 %vm1890_vm2, %v12797_v48  ;;  %v7081_v9 = vand.u32 %v9831_v45, %v11633_v38  ;;  %v7078_v12 = vand.u32 %v9830_v49, %v11633_v38  ;;  %v9580_v49 = vld [vmem:[%s11611_s28 + $0x10f0] sm:$0xff]  ;;  %v9613_v25 = vld [vmem:[%s11611_s28 + $0x11f8] sm:$0xff] }
 0x398   : > { %7594 = vmatpush1.bf16.msra.mxu0 %v9702_v61  ;;  %7635 = vmatpush1.bf16.msra.mxu1 %v9704_v27  ;;  %v9832_v61 = vcombine.low %v9659_v21, %v9675_v20  ;;  %v13570_v20 = vld [vmem:[#allocation8_spill] sm:$0xff] }
 0x399   : > { %7595 = vmatprep.subr.bf16.mxu0 %v9735_v58  ;;  %7636 = vmatprep.subr.bf16.mxu1 %v9737_v50  ;;  %v7087_v58 = vand.u32 %v9833_v22, %v11633_v38  ;;  %v9532_v50 = vld [vmem:[%s11611_s28 + $0xf70] sm:$0xff] }
 0x39a   : > { %7625 = vmatprep.mubr.bf16.mxu0 %v13533_v26  ;;  %7666 = vmatprep.mubr.bf16.mxu1 %v13533_v26  ;;  %v9707_v22 = vcombine.high %v9532_v50, %v9548_v3  ;;  %v9706_v57 = vcombine.low %v9532_v50, %v9548_v3 }
 0x39c   : > { %7596 = vmatpush1.bf16.msra.mxu0 %v9734_v47  ;;  %7637 = vmatpush1.bf16.msra.mxu1 %v9736_v56  ;;  %v9533_v56 = vld [vmem:[%s11611_s28 + $0xf78] sm:$0xff] }
 0x39d   : > { %7597 = vmatprep.subr.bf16.mxu0 %v9767_v16  ;;  %7638 = vmatprep.subr.bf16.mxu1 %v9769_v17  ;;  %v9549_v16 = vld [vmem:[%s11611_s28 + $0xff8] sm:$0xff] }
 0x3a0   : > { %7598 = vmatpush1.bf16.msra.mxu0 %v9766_v4  ;;  %7639 = vmatpush1.bf16.msra.mxu1 %v9768_v41  ;;  %v13571_v4 = vld [vmem:[#allocation23_spill] sm:$0xff] }
 0x3a1   : > { %7599 = vmatprep.subr.bf16.mxu0 %v9799_v63  ;;  %7640 = vmatprep.subr.bf16.mxu1 %v9801_v35  ;;  %v13572_v41 = vmax.f32 %v13570_v20, %v13571_v4  ;;  %v7084_v35 = vand.u32 %v9832_v61, %v11633_v38  ;;  %v9676_v20 = vld [vmem:[%s11611_s28 + $0x13f0] sm:$0x33]  ;;  %v9645_v4 = vld [vmem:[%s11611_s28 + $0x12f8] sm:$0xff] }
 0x3a2   : > { %v5668_v27 = vpop.f32.mrb[76].mxu0  ;;  %v5709_v53 = vpop.f32.mrb[76].mxu1 }
 0x3a3   : > { %v12822_v43 = vmax.f32 %v13564_v19, %v5668_v27  ;;  %v5670_v47 = vpop.f32.mrb[77].mxu0  ;;  %v12829_v17 = vmax.f32 %v13566_v36, %v5709_v53  ;;  %v5711_v21 = vpop.f32.mrb[77].mxu1  ;;  %v9709_v19 = vcombine.high %v9533_v56, %v9549_v16  ;;  %v9565_v53 = vld [vmem:[%s11611_s28 + $0x1078] sm:$0xff]  ;;  %v9596_v36 = vld [vmem:[%s11611_s28 + $0x1170] sm:$0xff] }
 0x3a4   : > { %v12834_v15 = vmax.f32 %v13569_v62, %v5670_v47  ;;  %v5672_v24 = vpop.f32.mrb[78].mxu0  ;;  %7600 = vmatpush1.bf16.msra.mxu0 %v9798_v42  ;;  %v12840_v32 = vmax.f32 %v13572_v41, %v5711_v21  ;;  %v5713_v63 = vpop.f32.mrb[78].mxu1  ;;  %7641 = vmatpush1.bf16.msra.mxu1 %v9800_v14  ;;  %v9564_v42 = vld [vmem:[%s11611_s28 + $0x1070] sm:$0xff]  ;;  %v9581_v47 = vld [vmem:[%s11611_s28 + $0x10f8] sm:$0xff]  ;;  %v9708_v14 = vcombine.low %v9533_v56, %v9549_v16 }
 0x3a5   : > { %v5673_v45 = vpop.f32.mrb[79].mxu0  ;;  %7601 = vmatprep.subr.bf16.mxu0 %v7081_v9  ;;  %v5714_v27 = vpop.f32.mrb[79].mxu1  ;;  %7642 = vmatprep.subr.bf16.mxu1 %v7087_v58  ;;  %v9739_v9 = vcombine.high %v9564_v42, %v9580_v49  ;;  %v9741_v61 = vcombine.high %v9565_v53, %v9581_v47  ;;  %v9612_v58 = vld [vmem:[%s11611_s28 + $0x11f0] sm:$0xff]  ;;  %v9738_v50 = vcombine.low %v9564_v42, %v9580_v49  ;;  %v9629_v24 = vld [vmem:[%s11611_s28 + $0x1278] sm:$0xff] }
 0x3a6   : > { %v9740_v3 = vcombine.low %v9565_v53, %v9581_v47  ;;  %v9771_v56 = vcombine.high %v9596_v36, %v9612_v58  ;;  %v9628_v16 = vld [vmem:[%s11611_s28 + $0x1270] sm:$0xff]  ;;  %v9773_v21 = vcombine.high %v9597_v18, %v9613_v25  ;;  %v9661_v41 = vld [vmem:[%s11611_s28 + $0x1378] sm:$0xff]  ;;  %v9770_v45 = vcombine.low %v9596_v36, %v9612_v58 }
 0x3a7   : > { %v9644_v62 = vld [vmem:[%s11611_s28 + $0x12f0] sm:$0xff]  ;;  %v9677_v63 = vld [vmem:[%s11611_s28 + $0x13f8] sm:$0x33]  ;;  %v9804_v47 = vcombine.low %v9629_v24, %v9645_v4 }
 0x3a8   : > { %7602 = vmatpush1.bf16.msra.mxu0 %v7078_v12  ;;  %7643 = vmatpush1.bf16.msra.mxu1 %v7084_v35  ;;  %v9660_v12 = vld [vmem:[%s11611_s28 + $0x1370] sm:$0xff]  ;;  %v9772_v35 = vcombine.low %v9597_v18, %v9613_v25  ;;  %v9837_v42 = vcombine.high %v9661_v41, %v9677_v63  ;;  %v9802_v49 = vcombine.low %v9628_v16, %v9644_v62 }
 0x3a9   : > { %7675 = vmatprep.subr.bf16.mxu0 %v9707_v22  ;;  %7716 = vmatprep.subr.bf16.mxu1 %v9709_v19  ;;  %v9803_v22 = vcombine.high %v9628_v16, %v9644_v62  ;;  %v9835_v27 = vcombine.high %v9660_v12, %v9676_v20  ;;  %v9805_v19 = vcombine.high %v9629_v24, %v9645_v4 }
 0x3aa   : > { %v9834_v53 = vcombine.low %v9660_v12, %v9676_v20  ;;  %v13574_v25 = vmax.f32 %v12133_v46, %v12484_v0 }
 0x3ab   : > { %9850 = vmatmul.mubr.msk.bf16.vlgmr.msra.gmra.mrb[120].mxu0 %vm1890_vm2, %v12797_v48  ;;  %9851 = vmatmul.mubr.msk.bf16.vlgmr.msra.gmra.mrb[120].mxu1 %vm1890_vm2, %v12797_v48 }
 0x3ac   : > { %7676 = vmatpush1.bf16.msra.mxu0 %v9706_v57  ;;  %7717 = vmatpush1.bf16.msra.mxu1 %v9708_v14  ;;  %v7093_v57 = vand.u32 %v9835_v27, %v11633_v38  ;;  %v9836_v14 = vcombine.low %v9661_v41, %v9677_v63  ;;  %v7090_v12 = vand.u32 %v9834_v53, %v11633_v38  ;;  %v13584_v53 = vld [vmem:[#allocation26_spill] sm:$0xff] }
 0x3ad   : > { %7677 = vmatprep.subr.bf16.mxu0 %v9739_v9  ;;  %7718 = vmatprep.subr.bf16.mxu1 %v9741_v61  ;;  %v7099_v9 = vand.u32 %v9837_v42, %v11633_v38  ;;  %v13573_v61 = vmax.f32 %v12128_v28, %v12477_v39  ;;  %v13578_v28 = vld [vmem:[#allocation10_spill] sm:$0xff]  ;;  %v13579_v39 = vld [vmem:[#allocation25_spill] sm:$0xff] }
 0x3ae   : > { %7707 = vmatprep.mubr.bf16.mxu0 %v13533_v26  ;;  %7748 = vmatprep.mubr.bf16.mxu1 %v13533_v26  ;;  %v13580_v20 = vmax.f32 %v13578_v28, %v13579_v39  ;;  %v7096_v0 = vand.u32 %v9836_v14, %v11633_v38  ;;  %v13582_v38 = vmax.f32 %v12176_v60, %v12530_v7 }
 0x3af   : > { %v13589_v60 = vmax.f32 %v12209_v8, %v12569_v31 }
 0x3b0   : > { %7678 = vmatpush1.bf16.msra.mxu0 %v9738_v50  ;;  %7719 = vmatpush1.bf16.msra.mxu1 %v9740_v3  ;;  %v13575_v3 = vld [vmem:[#allocation9_spill] sm:$0xff] }
 0x3b1   : > { %7679 = vmatprep.subr.bf16.mxu0 %v9771_v56  ;;  %7720 = vmatprep.subr.bf16.mxu1 %v9773_v21  ;;  %v13576_v56 = vld [vmem:[#allocation24_spill] sm:$0xff] }
 0x3b2   : > { %v13577_v16 = vmax.f32 %v13575_v3, %v13576_v56 }
 0x3b4   : > { %7680 = vmatpush1.bf16.msra.mxu0 %v9770_v45  ;;  %7721 = vmatpush1.bf16.msra.mxu1 %v9772_v35  ;;  %v13581_v35 = vmax.f32 %v12171_v55, %v12523_v54 }
 0x3b5   : > { %7681 = vmatprep.subr.bf16.mxu0 %v9803_v22  ;;  %7722 = vmatprep.subr.bf16.mxu1 %v9805_v19 }
 0x3b6   : > { %v5750_v26 = vpop.f32.mrb[80].mxu0  ;;  %v5791_v58 = vpop.f32.mrb[80].mxu1 }
 0x3b7   : > { %v12870_v36 = vmax.f32 %v13573_v61, %v5750_v26  ;;  %v5752_v18 = vpop.f32.mrb[81].mxu0  ;;  %v12875_v50 = vmax.f32 %v13574_v25, %v5791_v58  ;;  %v5793_v21 = vpop.f32.mrb[81].mxu1  ;;  %v13586_v26 = vld [vmem:[#allocation12_spill] sm:$0xff] }
 0x3b8   : > { %v12880_v62 = vmax.f32 %v13577_v16, %v5752_v18  ;;  %v5754_v24 = vpop.f32.mrb[82].mxu0  ;;  %7682 = vmatpush1.bf16.msra.mxu0 %v9802_v49  ;;  %v12886_v4 = vmax.f32 %v13580_v20, %v5793_v21  ;;  %v5795_v41 = vpop.f32.mrb[82].mxu1  ;;  %7723 = vmatpush1.bf16.msra.mxu1 %v9804_v47  ;;  %v13583_v49 = vld [vmem:[#allocation11_spill] sm:$0xff]  ;;  %v13590_v16 = vmax.f32 %v12214_v13, %v12576_v59 }
 0x3b9   : > { %v5755_v46 = vpop.f32.mrb[83].mxu0  ;;  %7683 = vmatprep.subr.bf16.mxu0 %v7093_v57  ;;  %v5796_v63 = vpop.f32.mrb[83].mxu1  ;;  %7724 = vmatprep.subr.bf16.mxu1 %v7099_v9  ;;  %v13585_v47 = vmax.f32 %v13583_v49, %v13584_v53  ;;  %v13587_v9 = vld [vmem:[#allocation27_spill] sm:$0xff]  ;;  %v13591_v24 = vld [vmem:[#allocation13_spill] sm:$0xff]  ;;  %v13597_v13 = vmax.f32 %v12247_v37, %v12615_v11  ;;  %v13598_v49 = vmax.f32 %v12252_v51, %v12622_v2 }
 0x3ba   : > { %v13588_v61 = vmax.f32 %v13586_v26, %v13587_v9  ;;  %v13594_v46 = vld [vmem:[#allocation14_spill] sm:$0xff]  ;;  %v12953_v51 = vpop.permute.xlu0 %7792 }
 0x3bc   : > { %7684 = vmatpush1.bf16.msra.mxu0 %v7090_v12  ;;  %7725 = vmatpush1.bf16.msra.mxu1 %v7096_v0  ;;  %v13592_v12 = vld [vmem:[#allocation28_spill] sm:$0xff]  ;;  %v13595_v0 = vld [vmem:[#allocation29_spill] sm:$0xff] }
 0x3bd   : > { %v13593_v28 = vmax.f32 %v13591_v24, %v13592_v12  ;;  %v13596_v63 = vmax.f32 %v13594_v46, %v13595_v0 }
 0x3bf   : > { %9852 = vmatmul.mubr.msk.bf16.vlgmr.msra.gmra.mrb[124].mxu0 %vm1890_vm2, %v12797_v48  ;;  %9853 = vmatmul.mubr.msk.bf16.vlgmr.msra.gmra.mrb[124].mxu1 %vm1890_vm2, %v12797_v48 }
 0x3ca   : > { %v5832_v45 = vpop.f32.mrb[84].mxu0  ;;  %v5873_v27 = vpop.f32.mrb[84].mxu1 }
 0x3cb   : > { %v12896_v22 = vmax.f32 %v13581_v35, %v5832_v45  ;;  %v5834_v19 = vpop.f32.mrb[85].mxu0  ;;  %v12901_v42 = vmax.f32 %v13582_v38, %v5873_v27  ;;  %v5875_v14 = vpop.f32.mrb[85].mxu1 }
 0x3cc   : > { %v12906_v57 = vmax.f32 %v13585_v47, %v5834_v19  ;;  %v5836_v48 = vpop.f32.mrb[86].mxu0  ;;  %v12911_v55 = vmax.f32 %v13588_v61, %v5875_v14  ;;  %v5877_v54 = vpop.f32.mrb[86].mxu1  ;;  %v13599_v47 = vld [vmem:[#allocation15_spill] sm:$0xff]  ;;  %v13600_v14 = vld [vmem:[#allocation30_spill] sm:$0xff] }
 0x3cd   : > { %v5837_v58 = vpop.f32.mrb[87].mxu0  ;;  %v5878_v18 = vpop.f32.mrb[87].mxu1  ;;  %v13601_v48 = vmax.f32 %v13599_v47, %v13600_v14  ;;  %v13602_v54 = vld [vmem:[#allocation16_spill] sm:$0xff] }
 0x3ce   : > { %v13603_v58 = vld [vmem:[#allocation31_spill] sm:$0xff] }
 0x3cf   : > { %v13604_v18 = vmax.f32 %v13602_v54, %v13603_v58 }
 0x3de   : > { %v5914_v25 = vpop.f32.mrb[88].mxu0  ;;  %v5955_v3 = vpop.f32.mrb[88].mxu1 }
 0x3df   : > { %v12916_v7 = vmax.f32 %v13589_v60, %v5914_v25  ;;  %v5916_v56 = vpop.f32.mrb[89].mxu0  ;;  %v12921_v21 = vmax.f32 %v13590_v16, %v5955_v3  ;;  %v5957_v20 = vpop.f32.mrb[89].mxu1 }
 0x3e0   : > { %v12926_v39 = vmax.f32 %v13593_v28, %v5916_v56  ;;  %v5918_v41 = vpop.f32.mrb[90].mxu0  ;;  %v12931_v8 = vmax.f32 %v13596_v63, %v5957_v20  ;;  %v5959_v31 = vpop.f32.mrb[90].mxu1 }
 0x3e1   : > { %v5919_v45 = vpop.f32.mrb[91].mxu0  ;;  %v5960_v35 = vpop.f32.mrb[91].mxu1 }
 0x3f2   : > { %v5996_v27 = vpop.f32.mrb[92].mxu0  ;;  %v6037_v19 = vpop.f32.mrb[92].mxu1 }
 0x3f3   : > { %v12936_v59 = vmax.f32 %v13597_v13, %v5996_v27  ;;  %v5998_v38 = vpop.f32.mrb[93].mxu0  ;;  %v12941_v53 = vmax.f32 %v13598_v49, %v6037_v19  ;;  %v6039_v9 = vpop.f32.mrb[93].mxu1 }
 0x3f4   : > { %v12946_v26 = vmax.f32 %v13601_v48, %v5998_v38  ;;  %v6000_v61 = vpop.f32.mrb[94].mxu0  ;;  %v12951_v37 = vmax.f32 %v13604_v18, %v6039_v9  ;;  %v6041_v11 = vpop.f32.mrb[94].mxu1 }
 0x3f5   : > { %v6001_v25 = vpop.f32.mrb[95].mxu0  ;;  %v6042_v60 = vpop.f32.mrb[95].mxu1 }
 0x406   : > { %v7135_v3 = vpop.f32.mrb[96].mxu0  ;;  %v7176_v56 = vpop.f32.mrb[96].mxu1 }
 0x407   : > { %v7757_v2 = vmax.f32 %v12667_v10, %v7135_v3  ;;  %v7137_v16 = vpop.f32.mrb[97].mxu0  ;;  %v7759_v24 = vmax.f32 %v12674_v5, %v7176_v56  ;;  %v7178_v28 = vpop.f32.mrb[97].mxu1 }
 0x408   : > { %v7758_v12 = vmax.f32 %v12679_v52, %v7137_v16  ;;  %v7139_v20 = vpop.f32.mrb[98].mxu0  ;;  %v7760_v41 = vmax.f32 %v12685_v44, %v7178_v28  ;;  %v7180_v46 = vpop.f32.mrb[98].mxu1 }
 0x409   : > { %v7140_v0 = vpop.f32.mrb[99].mxu0  ;;  %v7795_v63 = vadd.f32 %v12953_v51, %v7757_v2  ;;  %v7181_v31 = vpop.f32.mrb[99].mxu1  ;;  %v7797_v10 = vadd.f32 %v12953_v51, %v7759_v24 }
 0x40a   : > { %v7796_v45 = vadd.f32 %v12953_v51, %v7758_v12  ;;  %v7798_v35 = vadd.f32 %v12953_v51, %v7760_v41 }
 0x40b   : > { %v7827_v5 = vmax.f32 %v7795_v63, 0.0  ;;  %v7829_v52 = vmax.f32 %v7797_v10, 0.0 }
 0x40c   : > { %v7828_v27 = vmax.f32 %v7796_v45, 0.0  ;;  %v7830_v13 = vmax.f32 %v7798_v35, 0.0 }
 0x40e   : > { %v9904_v19 = vpack.c.bf16 %v7828_v27, %v7827_v5  ;;  %v9905_v38 = vpack.c.bf16 %v7830_v13, %v7829_v52 }
 0x410   : > { %7987 = vst [vmem:[%s12965_s10] sm:$0x77] %v9904_v19  ;;  %7988 = vst [vmem:[%s12965_s10 + $0x8] sm:$0x77] %v9905_v38 }
 0x41a   : > { %v7217_v44 = vpop.f32.mrb[100].mxu0  ;;  %v7258_v47 = vpop.f32.mrb[100].mxu1 }
 0x41b   : > { %v7761_v49 = vmax.f32 %v12717_v1, %v7217_v44  ;;  %v7219_v14 = vpop.f32.mrb[101].mxu0  ;;  %v7763_v48 = vmax.f32 %v12724_v33, %v7258_v47  ;;  %v7260_v61 = vpop.f32.mrb[101].mxu1 }
 0x41c   : > { %v7762_v9 = vmax.f32 %v12729_v40, %v7219_v14  ;;  %v7221_v54 = vpop.f32.mrb[102].mxu0  ;;  %v7764_v18 = vmax.f32 %v12735_v34, %v7260_v61  ;;  %v7262_v11 = vpop.f32.mrb[102].mxu1 }
 0x41d   : > { %v7799_v58 = vadd.f32 %v12953_v51, %v7761_v49  ;;  %v7222_v25 = vpop.f32.mrb[103].mxu0  ;;  %v7801_v60 = vadd.f32 %v12953_v51, %v7763_v48  ;;  %v7263_v3 = vpop.f32.mrb[103].mxu1 }
 0x41e   : > { %v7800_v1 = vadd.f32 %v12953_v51, %v7762_v9  ;;  %v7802_v33 = vadd.f32 %v12953_v51, %v7764_v18 }
 0x41f   : > { %v7831_v2 = vmax.f32 %v7799_v58, 0.0  ;;  %v7833_v56 = vmax.f32 %v7801_v60, 0.0 }
 0x420   : > { %v7832_v40 = vmax.f32 %v7800_v1, 0.0  ;;  %v7834_v16 = vmax.f32 %v7802_v33, 0.0 }
 0x422   : > { %v9906_v24 = vpack.c.bf16 %v7832_v40, %v7831_v2  ;;  %v9907_v12 = vpack.c.bf16 %v7834_v16, %v7833_v56 }
 0x424   : > { %7989 = vst [vmem:[%s12965_s10 + $0x10] sm:$0x77] %v9906_v24  ;;  %7990 = vst [vmem:[%s12965_s10 + $0x18] sm:$0x77] %v9907_v12 }
 0x42e   : > { %v7299_v28 = vpop.f32.mrb[104].mxu0  ;;  %v7340_v20 = vpop.f32.mrb[104].mxu1 }
 0x42f   : > { %v7765_v34 = vmax.f32 %v12767_v6, %v7299_v28  ;;  %v7301_v41 = vpop.f32.mrb[105].mxu0  ;;  %v7767_v46 = vmax.f32 %v12774_v23, %v7340_v20  ;;  %v7342_v63 = vpop.f32.mrb[105].mxu1 }
 0x430   : > { %v7766_v0 = vmax.f32 %v12779_v30, %v7301_v41  ;;  %v7303_v31 = vpop.f32.mrb[106].mxu0  ;;  %v7768_v10 = vmax.f32 %v12785_v29, %v7342_v63  ;;  %v7344_v35 = vpop.f32.mrb[106].mxu1 }
 0x431   : > { %v7803_v45 = vadd.f32 %v12953_v51, %v7765_v34  ;;  %v7304_v5 = vpop.f32.mrb[107].mxu0  ;;  %v7805_v27 = vadd.f32 %v12953_v51, %v7767_v46  ;;  %v7345_v52 = vpop.f32.mrb[107].mxu1 }
 0x432   : > { %v7804_v6 = vadd.f32 %v12953_v51, %v7766_v0  ;;  %v7806_v23 = vadd.f32 %v12953_v51, %v7768_v10 }
 0x433   : > { %v7835_v13 = vmax.f32 %v7803_v45, 0.0  ;;  %v7837_v19 = vmax.f32 %v7805_v27, 0.0 }
 0x434   : > { %v7836_v30 = vmax.f32 %v7804_v6, 0.0  ;;  %v7838_v38 = vmax.f32 %v7806_v23, 0.0 }
 0x436   : > { %v9908_v44 = vpack.c.bf16 %v7836_v30, %v7835_v13  ;;  %v9909_v49 = vpack.c.bf16 %v7838_v38, %v7837_v19 }
 0x438   : > { %7991 = vst [vmem:[%s12965_s10 + $0x20] sm:$0x77] %v9908_v44  ;;  %7992 = vst [vmem:[%s12965_s10 + $0x28] sm:$0x77] %v9909_v49 }
 0x442   : > { %v7381_v47 = vpop.f32.mrb[108].mxu0  ;;  %v7422_v14 = vpop.f32.mrb[108].mxu1 }
 0x443   : > { %v7769_v29 = vmax.f32 %v12822_v43, %v7381_v47  ;;  %v7383_v48 = vpop.f32.mrb[109].mxu0  ;;  %v7771_v9 = vmax.f32 %v12829_v17, %v7422_v14  ;;  %v7424_v54 = vpop.f32.mrb[109].mxu1 }
 0x444   : > { %v7770_v61 = vmax.f32 %v12834_v15, %v7383_v48  ;;  %v7385_v58 = vpop.f32.mrb[110].mxu0  ;;  %v7772_v11 = vmax.f32 %v12840_v32, %v7424_v54  ;;  %v7426_v25 = vpop.f32.mrb[110].mxu1 }
 0x445   : > { %v7807_v18 = vadd.f32 %v12953_v51, %v7769_v29  ;;  %v7386_v60 = vpop.f32.mrb[111].mxu0  ;;  %v7809_v1 = vadd.f32 %v12953_v51, %v7771_v9  ;;  %v7427_v3 = vpop.f32.mrb[111].mxu1 }
 0x446   : > { %v7808_v43 = vadd.f32 %v12953_v51, %v7770_v61  ;;  %v7810_v17 = vadd.f32 %v12953_v51, %v7772_v11 }
 0x447   : > { %v7839_v2 = vmax.f32 %v7807_v18, 0.0  ;;  %v7841_v33 = vmax.f32 %v7809_v1, 0.0 }
 0x448   : > { %v7840_v15 = vmax.f32 %v7808_v43, 0.0  ;;  %v7842_v56 = vmax.f32 %v7810_v17, 0.0 }
 0x44a   : > { %v9910_v40 = vpack.c.bf16 %v7840_v15, %v7839_v2  ;;  %v9911_v16 = vpack.c.bf16 %v7842_v56, %v7841_v33 }
 0x44c   : > { %7993 = vst [vmem:[%s12965_s10 + $0x30] sm:$0x77] %v9910_v40  ;;  %7994 = vst [vmem:[%s12965_s10 + $0x38] sm:$0x77] %v9911_v16 }
 0x456   : > { %v7463_v24 = vpop.f32.mrb[112].mxu0  ;;  %v7504_v12 = vpop.f32.mrb[112].mxu1 }
 0x457   : > { %v7773_v32 = vmax.f32 %v12870_v36, %v7463_v24  ;;  %v7465_v28 = vpop.f32.mrb[113].mxu0  ;;  %v7775_v34 = vmax.f32 %v12875_v50, %v7504_v12  ;;  %v7506_v41 = vpop.f32.mrb[113].mxu1 }
 0x458   : > { %v7774_v20 = vmax.f32 %v12880_v62, %v7465_v28  ;;  %v7467_v46 = vpop.f32.mrb[114].mxu0  ;;  %v7776_v63 = vmax.f32 %v12886_v4, %v7506_v41  ;;  %v7508_v31 = vpop.f32.mrb[114].mxu1 }
 0x459   : > { %v7811_v0 = vadd.f32 %v12953_v51, %v7773_v32  ;;  %v7468_v45 = vpop.f32.mrb[115].mxu0  ;;  %v7813_v10 = vadd.f32 %v12953_v51, %v7775_v34  ;;  %v7509_v35 = vpop.f32.mrb[115].mxu1 }
 0x45a   : > { %v7812_v36 = vadd.f32 %v12953_v51, %v7774_v20  ;;  %v7814_v50 = vadd.f32 %v12953_v51, %v7776_v63 }
 0x45b   : > { %v7843_v5 = vmax.f32 %v7811_v0, 0.0  ;;  %v7845_v27 = vmax.f32 %v7813_v10, 0.0 }
 0x45c   : > { %v7844_v62 = vmax.f32 %v7812_v36, 0.0  ;;  %v7846_v6 = vmax.f32 %v7814_v50, 0.0 }
 0x45e   : > { %v9912_v52 = vpack.c.bf16 %v7844_v62, %v7843_v5  ;;  %v9913_v13 = vpack.c.bf16 %v7846_v6, %v7845_v27 }
 0x460   : > { %7995 = vst [vmem:[%s12965_s10 + $0x40] sm:$0x77] %v9912_v52  ;;  %7996 = vst [vmem:[%s12965_s10 + $0x48] sm:$0x77] %v9913_v13 }
 0x46a   : > { %v7545_v23 = vpop.f32.mrb[116].mxu0  ;;  %v7586_v19 = vpop.f32.mrb[116].mxu1 }
 0x46b   : > { %v7777_v4 = vmax.f32 %v12896_v22, %v7545_v23  ;;  %v7547_v30 = vpop.f32.mrb[117].mxu0  ;;  %v7779_v38 = vmax.f32 %v12901_v42, %v7586_v19  ;;  %v7588_v49 = vpop.f32.mrb[117].mxu1 }
 0x46c   : > { %v7778_v44 = vmax.f32 %v12906_v57, %v7547_v30  ;;  %v7549_v47 = vpop.f32.mrb[118].mxu0  ;;  %v7780_v14 = vmax.f32 %v12911_v55, %v7588_v49  ;;  %v7590_v48 = vpop.f32.mrb[118].mxu1 }
 0x46d   : > { %v7815_v29 = vadd.f32 %v12953_v51, %v7777_v4  ;;  %v7550_v9 = vpop.f32.mrb[119].mxu0  ;;  %v7817_v61 = vadd.f32 %v12953_v51, %v7779_v38  ;;  %v7591_v54 = vpop.f32.mrb[119].mxu1 }
 0x46e   : > { %v7816_v22 = vadd.f32 %v12953_v51, %v7778_v44  ;;  %v7818_v42 = vadd.f32 %v12953_v51, %v7780_v14 }
 0x46f   : > { %v7847_v58 = vmax.f32 %v7815_v29, 0.0  ;;  %v7849_v18 = vmax.f32 %v7817_v61, 0.0 }
 0x470   : > { %v7848_v57 = vmax.f32 %v7816_v22, 0.0  ;;  %v7850_v11 = vmax.f32 %v7818_v42, 0.0 }
 0x472   : > { %v9914_v25 = vpack.c.bf16 %v7848_v57, %v7847_v58  ;;  %v9915_v60 = vpack.c.bf16 %v7850_v11, %v7849_v18 }
 0x474   : > { %7997 = vst [vmem:[%s12965_s10 + $0x50] sm:$0x77] %v9914_v25  ;;  %7998 = vst [vmem:[%s12965_s10 + $0x58] sm:$0x77] %v9915_v60 }
 0x47e   : > { %v7627_v1 = vpop.f32.mrb[120].mxu0  ;;  %v7668_v43 = vpop.f32.mrb[120].mxu1 }
 0x47f   : > { %v7781_v55 = vmax.f32 %v12916_v7, %v7627_v1  ;;  %v7629_v3 = vpop.f32.mrb[121].mxu0  ;;  %v7783_v2 = vmax.f32 %v12921_v21, %v7668_v43  ;;  %v7670_v33 = vpop.f32.mrb[121].mxu1 }
 0x480   : > { %v7782_v17 = vmax.f32 %v12926_v39, %v7629_v3  ;;  %v7631_v15 = vpop.f32.mrb[122].mxu0  ;;  %v7784_v40 = vmax.f32 %v12931_v8, %v7670_v33  ;;  %v7672_v16 = vpop.f32.mrb[122].mxu1 }
 0x481   : > { %v7819_v56 = vadd.f32 %v12953_v51, %v7781_v55  ;;  %v7632_v24 = vpop.f32.mrb[123].mxu0  ;;  %v7821_v32 = vadd.f32 %v12953_v51, %v7783_v2  ;;  %v7673_v12 = vpop.f32.mrb[123].mxu1 }
 0x482   : > { %v7820_v7 = vadd.f32 %v12953_v51, %v7782_v17  ;;  %v7822_v21 = vadd.f32 %v12953_v51, %v7784_v40 }
 0x483   : > { %v7851_v28 = vmax.f32 %v7819_v56, 0.0  ;;  %v7853_v34 = vmax.f32 %v7821_v32, 0.0 }
 0x484   : > { %v7852_v39 = vmax.f32 %v7820_v7, 0.0  ;;  %v7854_v20 = vmax.f32 %v7822_v21, 0.0 }
 0x486   : > { %v9916_v41 = vpack.c.bf16 %v7852_v39, %v7851_v28  ;;  %v9917_v46 = vpack.c.bf16 %v7854_v20, %v7853_v34 }
 0x488   : > { %7999 = vst [vmem:[%s12965_s10 + $0x60] sm:$0x77] %v9916_v41  ;;  %8000 = vst [vmem:[%s12965_s10 + $0x68] sm:$0x77] %v9917_v46 }
 0x492   : > { %v7709_v0 = vpop.f32.mrb[124].mxu0  ;;  %v7750_v63 = vpop.f32.mrb[124].mxu1 }
 0x493   : > { %v7785_v8 = vmax.f32 %v12936_v59, %v7709_v0  ;;  %v7711_v31 = vpop.f32.mrb[125].mxu0  ;;  %v7787_v45 = vmax.f32 %v12941_v53, %v7750_v63  ;;  %v7752_v36 = vpop.f32.mrb[125].mxu1 }
 0x494   : > { %v7786_v10 = vmax.f32 %v12946_v26, %v7711_v31  ;;  %v7713_v35 = vpop.f32.mrb[126].mxu0  ;;  %v7788_v50 = vmax.f32 %v12951_v37, %v7752_v36  ;;  %v7754_v27 = vpop.f32.mrb[126].mxu1 }
 0x495   : > { %v7823_v5 = vadd.f32 %v12953_v51, %v7785_v8  ;;  %v7714_v62 = vpop.f32.mrb[127].mxu0  ;;  %v7825_v6 = vadd.f32 %v12953_v51, %v7787_v45  ;;  %v7755_v52 = vpop.f32.mrb[127].mxu1 }
 0x496   : > { %v7824_v59 = vadd.f32 %v12953_v51, %v7786_v10  ;;  %v7826_v53 = vadd.f32 %v12953_v51, %v7788_v50  ;;  %8009 = sbr.rel (!%p10555_p5) target bundleno = 1346 (0x542), region = 102 }
 0x497   : > { %v7855_v13 = vmax.f32 %v7823_v5, 0.0  ;;  %v7857_v23 = vmax.f32 %v7825_v6, 0.0 }
 0x498   : > { %v7856_v26 = vmax.f32 %v7824_v59, 0.0  ;;  %v7858_v4 = vmax.f32 %v7826_v53, 0.0 }
 0x49a   : > { %v9918_v19 = vpack.c.bf16 %v7856_v26, %v7855_v13  ;;  %v9919_v30 = vpack.c.bf16 %v7858_v4, %v7857_v23 }
 0x49c   : > { %8001 = vst [vmem:[%s12965_s10 + $0x70] sm:$0x77] %v9918_v19  ;;  %8002 = vst [vmem:[%s12965_s10 + $0x78] sm:$0x77] %v9919_v30 }
 0x49d   : > { %s13629_s11 = smov (!%p8012_p1, %s8011_s11), 32 }
 0x49e   : > { %s9872_s24 = sshll.u32 %s13629_s11, 6  ;;  %s13048_s28 = sshll.u32 %s13629_s11, 2 }
 0x49f   : > { %p9876_p2 = scmp.eq.s32.totalorder %s9872_s24, 0 }
 0x4a0   : > { %p8022_p3 = scmp.lt.u32.totalorder (!%p9876_p2), %s13048_s28, 8 }
 0x4a1   : > { %8021 = sbr.rel (%p9876_p2) target bundleno = 1346 (0x542), region = 106 }
 0x4a8   : > { %8025 = sbr.rel (%p8022_p3) target bundleno = 1337 (0x539), region = 110  ;;  %s13052_s20 = sand.u32 (!%p8022_p3), 7, %s13048_s28  }
 0x4a9   : > { %p8041_p5 = scmp.eq.s32.totalorder (!%p8022_p3), %s13052_s20, 0  ;;  %p9877_p4 = scmp.ne.s32.totalorder (!%p8022_p3), %s13052_s20, 0 }
 0x4af   : > { %8044 = sbr.rel (%p9877_p4) target bundleno = 1266 (0x4f2), region = 125  ;;  %s8045_s15 = sshrl.u32 (!%p9877_p4), %s13048_s28, 3 }
 0x4b0   : > { %s13059_s14 = sshrl.u32 (!%p9877_p4), %s8045_s15, 6 }
 0x4b1   : > { %p9878_p6 = scmp.le.s32.totalorder (!%p9877_p4), %s13059_s14, 0 }
 0x4b6   : > { %8568 = sbr.rel (%p9878_p6) target bundleno = 1246 (0x4de), region = 276  ;;  %s13605_s4 = smov (!%p9878_p6), %s13046_s30 }
 0x4b7   : > { %s13606_s7 = smov (!%p9878_p6), %s12965_s10  ;;  %s13068_s17 = smov (!%p9878_p6), 0  }
 0x4b8   : > { %s13070_s18 = smov (!%p9878_p6), 0  }
 0x4bd LB: >> { %v8058_v37 = vld [vmem:[%s10440_s7] sm:$0xff]  ;;  %v8060_v51 = vld [vmem:[%s10440_s7 + $0x8] sm:$0xff]  ;;  %v8062_v38 = vld [vmem:[%s10440_s7 + $0x10] sm:$0xff]  ;;  %s8186_s9 = sadd.s32 1, %s10444_s17  ;;  %s8052_s18 = sadd.s32 1, %s10448_s18   ;;  %s10448_s18 = sphi %s13070_s18, %s8052_s18   ;;  %s10444_s17 = sphi %s13068_s17, %s13609_s17   ;;  %s10440_s7 = sphi %s13606_s7, %s13608_s7   ;;  %s10436_s4 = sphi %s13605_s4, %s13607_s4  }
 0x4be   : >> { %8059 = vst [vmem:[%s10436_s4] sm:$0xff] %v8058_v37  ;;  %8061 = vst [vmem:[%s10436_s4 + $0x8] sm:$0xff] %v8060_v51  ;;  %v8064_v44 = vld [vmem:[%s10440_s7 + $0x18] sm:$0xff]  ;;  %v8066_v49 = vld [vmem:[%s10440_s7 + $0x20] sm:$0xff]  ;;  %p8187_p7 = scmp.ge.s32.totalorder %s8186_s9, %s13059_s14  ;;  %p8051_p8 = scmp.ge.s32.totalorder %s8052_s18, %s13059_s14 }
 0x4bf   : >> { %8063 = vst [vmem:[%s10436_s4 + $0x10] sm:$0xff] %v8062_v38  ;;  %v8068_v47 = vld [vmem:[%s10440_s7 + $0x28] sm:$0xff]  ;;  %8065 = vst [vmem:[%s10436_s4 + $0x18] sm:$0xff] %v8064_v44  ;;  %v8070_v29 = vld [vmem:[%s10440_s7 + $0x30] sm:$0xff] }
 0x4c0   : >> { %8067 = vst [vmem:[%s10436_s4 + $0x20] sm:$0xff] %v8066_v49  ;;  %8069 = vst [vmem:[%s10436_s4 + $0x28] sm:$0xff] %v8068_v47  ;;  %v8072_v14 = vld [vmem:[%s10440_s7 + $0x38] sm:$0xff]  ;;  %v8074_v48 = vld [vmem:[%s10440_s7 + $0x40] sm:$0xff]  ;;  %s13631_s9 = smov (%p8187_p7, %s8186_s9), 0 }
 0x4c1   : >> { %8071 = vst [vmem:[%s10436_s4 + $0x30] sm:$0xff] %v8070_v29  ;;  %8073 = vst [vmem:[%s10436_s4 + $0x38] sm:$0xff] %v8072_v14  ;;  %v8076_v9 = vld [vmem:[%s10440_s7 + $0x48] sm:$0xff]  ;;  %v8078_v61 = vld [vmem:[%s10440_s7 + $0x50] sm:$0xff]  ;;  %s9879_s23 = sshll.u32 %s13631_s9, 9  ;;  %s13609_s17 = smov %s13631_s9 }
 0x4c2   : >> { %8075 = vst [vmem:[%s10436_s4 + $0x40] sm:$0xff] %v8074_v48  ;;  %v8080_v22 = vld [vmem:[%s10440_s7 + $0x58] sm:$0xff]  ;;  %8077 = vst [vmem:[%s10436_s4 + $0x48] sm:$0xff] %v8076_v9  ;;  %v8082_v54 = vld [vmem:[%s10440_s7 + $0x60] sm:$0xff]  ;;  %s13126_s26 = scalar_lea.vmem %s12965_s10, %s9879_s23 [#allocation3]   ;;  %s13129_s27 = scalar_lea.vmem %s13046_s30, %s9879_s23  }
 0x4c3   : >> { %8079 = vst [vmem:[%s10436_s4 + $0x50] sm:$0xff] %v8078_v61  ;;  %8081 = vst [vmem:[%s10436_s4 + $0x58] sm:$0xff] %v8080_v22  ;;  %v8084_v58 = vld [vmem:[%s10440_s7 + $0x68] sm:$0xff]  ;;  %v8086_v42 = vld [vmem:[%s10440_s7 + $0x70] sm:$0xff] }
 0x4c4   : >> { %8083 = vst [vmem:[%s10436_s4 + $0x60] sm:$0xff] %v8082_v54  ;;  %8085 = vst [vmem:[%s10436_s4 + $0x68] sm:$0xff] %v8084_v58  ;;  %v8088_v18 = vld [vmem:[%s10440_s7 + $0x78] sm:$0xff]  ;;  %v8090_v57 = vld [vmem:[%s10440_s7 + $0x80] sm:$0xff] }
 0x4c5   : >> { %8087 = vst [vmem:[%s10436_s4 + $0x70] sm:$0xff] %v8086_v42  ;;  %v8092_v11 = vld [vmem:[%s10440_s7 + $0x88] sm:$0xff]  ;;  %8089 = vst [vmem:[%s10436_s4 + $0x78] sm:$0xff] %v8088_v18  ;;  %v8094_v25 = vld [vmem:[%s10440_s7 + $0x90] sm:$0xff] }
 0x4c6   : >> { %8091 = vst [vmem:[%s10436_s4 + $0x80] sm:$0xff] %v8090_v57  ;;  %8093 = vst [vmem:[%s10436_s4 + $0x88] sm:$0xff] %v8092_v11  ;;  %v8096_v60 = vld [vmem:[%s10440_s7 + $0x98] sm:$0xff]  ;;  %v8098_v1 = vld [vmem:[%s10440_s7 + $0xa0] sm:$0xff] }
 0x4c7   : >> { %8095 = vst [vmem:[%s10436_s4 + $0x90] sm:$0xff] %v8094_v25  ;;  %8097 = vst [vmem:[%s10436_s4 + $0x98] sm:$0xff] %v8096_v60  ;;  %v8100_v55 = vld [vmem:[%s10440_s7 + $0xa8] sm:$0xff]  ;;  %v8102_v43 = vld [vmem:[%s10440_s7 + $0xb0] sm:$0xff] }
 0x4c8   : >> { %8099 = vst [vmem:[%s10436_s4 + $0xa0] sm:$0xff] %v8098_v1  ;;  %v8104_v3 = vld [vmem:[%s10440_s7 + $0xb8] sm:$0xff]  ;;  %8101 = vst [vmem:[%s10436_s4 + $0xa8] sm:$0xff] %v8100_v55  ;;  %v8106_v2 = vld [vmem:[%s10440_s7 + $0xc0] sm:$0xff] }
 0x4c9   : >> { %8103 = vst [vmem:[%s10436_s4 + $0xb0] sm:$0xff] %v8102_v43  ;;  %8105 = vst [vmem:[%s10436_s4 + $0xb8] sm:$0xff] %v8104_v3  ;;  %v8108_v17 = vld [vmem:[%s10440_s7 + $0xc8] sm:$0xff]  ;;  %v8110_v33 = vld [vmem:[%s10440_s7 + $0xd0] sm:$0xff] }
 0x4ca   : >> { %8107 = vst [vmem:[%s10436_s4 + $0xc0] sm:$0xff] %v8106_v2  ;;  %8109 = vst [vmem:[%s10436_s4 + $0xc8] sm:$0xff] %v8108_v17  ;;  %v8112_v15 = vld [vmem:[%s10440_s7 + $0xd8] sm:$0xff]  ;;  %v8114_v56 = vld [vmem:[%s10440_s7 + $0xe0] sm:$0xff] }
 0x4cb   : >> { %8111 = vst [vmem:[%s10436_s4 + $0xd0] sm:$0xff] %v8110_v33  ;;  %v8116_v40 = vld [vmem:[%s10440_s7 + $0xe8] sm:$0xff]  ;;  %8113 = vst [vmem:[%s10436_s4 + $0xd8] sm:$0xff] %v8112_v15  ;;  %v8118_v16 = vld [vmem:[%s10440_s7 + $0xf0] sm:$0xff] }
 0x4cc   : >> { %8115 = vst [vmem:[%s10436_s4 + $0xe0] sm:$0xff] %v8114_v56  ;;  %8117 = vst [vmem:[%s10436_s4 + $0xe8] sm:$0xff] %v8116_v40  ;;  %v8120_v24 = vld [vmem:[%s10440_s7 + $0xf8] sm:$0xff]  ;;  %v8122_v32 = vld [vmem:[%s10440_s7 + $0x100] sm:$0xff] }
 0x4cd   : >> { %8119 = vst [vmem:[%s10436_s4 + $0xf0] sm:$0xff] %v8118_v16  ;;  %8121 = vst [vmem:[%s10436_s4 + $0xf8] sm:$0xff] %v8120_v24  ;;  %v8124_v7 = vld [vmem:[%s10440_s7 + $0x108] sm:$0xff]  ;;  %v8126_v12 = vld [vmem:[%s10440_s7 + $0x110] sm:$0xff] }
 0x4ce   : >> { %8123 = vst [vmem:[%s10436_s4 + $0x100] sm:$0xff] %v8122_v32  ;;  %v8128_v28 = vld [vmem:[%s10440_s7 + $0x118] sm:$0xff]  ;;  %8125 = vst [vmem:[%s10436_s4 + $0x108] sm:$0xff] %v8124_v7  ;;  %v8130_v21 = vld [vmem:[%s10440_s7 + $0x120] sm:$0xff] }
 0x4cf   : >> { %8127 = vst [vmem:[%s10436_s4 + $0x110] sm:$0xff] %v8126_v12  ;;  %8129 = vst [vmem:[%s10436_s4 + $0x118] sm:$0xff] %v8128_v28  ;;  %v8132_v34 = vld [vmem:[%s10440_s7 + $0x128] sm:$0xff]  ;;  %v8134_v39 = vld [vmem:[%s10440_s7 + $0x130] sm:$0xff] }
 0x4d0   : >> { %8131 = vst [vmem:[%s10436_s4 + $0x120] sm:$0xff] %v8130_v21  ;;  %8133 = vst [vmem:[%s10436_s4 + $0x128] sm:$0xff] %v8132_v34  ;;  %v8136_v20 = vld [vmem:[%s10440_s7 + $0x138] sm:$0xff]  ;;  %v8138_v41 = vld [vmem:[%s10440_s7 + $0x140] sm:$0xff] }
 0x4d1   : >> { %8135 = vst [vmem:[%s10436_s4 + $0x130] sm:$0xff] %v8134_v39  ;;  %v8140_v46 = vld [vmem:[%s10440_s7 + $0x148] sm:$0xff]  ;;  %8137 = vst [vmem:[%s10436_s4 + $0x138] sm:$0xff] %v8136_v20  ;;  %v8142_v0 = vld [vmem:[%s10440_s7 + $0x150] sm:$0xff] }
 0x4d2   : >> { %8139 = vst [vmem:[%s10436_s4 + $0x140] sm:$0xff] %v8138_v41  ;;  %8141 = vst [vmem:[%s10436_s4 + $0x148] sm:$0xff] %v8140_v46  ;;  %v8144_v8 = vld [vmem:[%s10440_s7 + $0x158] sm:$0xff]  ;;  %v8146_v63 = vld [vmem:[%s10440_s7 + $0x160] sm:$0xff] }
 0x4d3   : >> { %8143 = vst [vmem:[%s10436_s4 + $0x150] sm:$0xff] %v8142_v0  ;;  %8145 = vst [vmem:[%s10436_s4 + $0x158] sm:$0xff] %v8144_v8  ;;  %v8148_v31 = vld [vmem:[%s10440_s7 + $0x168] sm:$0xff]  ;;  %v8150_v45 = vld [vmem:[%s10440_s7 + $0x170] sm:$0xff] }
 0x4d4   : >> { %8147 = vst [vmem:[%s10436_s4 + $0x160] sm:$0xff] %v8146_v63  ;;  %v8152_v10 = vld [vmem:[%s10440_s7 + $0x178] sm:$0xff]  ;;  %8149 = vst [vmem:[%s10436_s4 + $0x168] sm:$0xff] %v8148_v31  ;;  %v8154_v36 = vld [vmem:[%s10440_s7 + $0x180] sm:$0xff] }
 0x4d5   : >> { %8151 = vst [vmem:[%s10436_s4 + $0x170] sm:$0xff] %v8150_v45  ;;  %8153 = vst [vmem:[%s10436_s4 + $0x178] sm:$0xff] %v8152_v10  ;;  %v8156_v35 = vld [vmem:[%s10440_s7 + $0x188] sm:$0xff]  ;;  %v8158_v5 = vld [vmem:[%s10440_s7 + $0x190] sm:$0xff] }
 0x4d6   : >> { %8155 = vst [vmem:[%s10436_s4 + $0x180] sm:$0xff] %v8154_v36  ;;  %8157 = vst [vmem:[%s10436_s4 + $0x188] sm:$0xff] %v8156_v35  ;;  %v8160_v50 = vld [vmem:[%s10440_s7 + $0x198] sm:$0xff]  ;;  %v8162_v27 = vld [vmem:[%s10440_s7 + $0x1a0] sm:$0xff] }
 0x4d7   : >> { %8159 = vst [vmem:[%s10436_s4 + $0x190] sm:$0xff] %v8158_v5  ;;  %v8164_v62 = vld [vmem:[%s10440_s7 + $0x1a8] sm:$0xff]  ;;  %8161 = vst [vmem:[%s10436_s4 + $0x198] sm:$0xff] %v8160_v50  ;;  %v8166_v6 = vld [vmem:[%s10440_s7 + $0x1b0] sm:$0xff]  ;;  %8054 = sbr.rel (!%p8051_p8) target bundleno = 1213 (0x4bd), region = 282 }
 0x4d8   : >> { %8163 = vst [vmem:[%s10436_s4 + $0x1a0] sm:$0xff] %v8162_v27  ;;  %8165 = vst [vmem:[%s10436_s4 + $0x1a8] sm:$0xff] %v8164_v62  ;;  %v8168_v59 = vld [vmem:[%s10440_s7 + $0x1b8] sm:$0xff]  ;;  %v8170_v52 = vld [vmem:[%s10440_s7 + $0x1c0] sm:$0xff] }
 0x4d9   : >> { %8167 = vst [vmem:[%s10436_s4 + $0x1b0] sm:$0xff] %v8166_v6  ;;  %8169 = vst [vmem:[%s10436_s4 + $0x1b8] sm:$0xff] %v8168_v59  ;;  %v8172_v13 = vld [vmem:[%s10440_s7 + $0x1c8] sm:$0xff]  ;;  %v8174_v53 = vld [vmem:[%s10440_s7 + $0x1d0] sm:$0xff] }
 0x4da   : >> { %8171 = vst [vmem:[%s10436_s4 + $0x1c0] sm:$0xff] %v8170_v52  ;;  %v8176_v23 = vld [vmem:[%s10440_s7 + $0x1d8] sm:$0xff]  ;;  %8173 = vst [vmem:[%s10436_s4 + $0x1c8] sm:$0xff] %v8172_v13  ;;  %v8178_v26 = vld [vmem:[%s10440_s7 + $0x1e0] sm:$0xff] }
 0x4db   : >> { %8175 = vst [vmem:[%s10436_s4 + $0x1d0] sm:$0xff] %v8174_v53  ;;  %8177 = vst [vmem:[%s10436_s4 + $0x1d8] sm:$0xff] %v8176_v23  ;;  %v8180_v4 = vld [vmem:[%s10440_s7 + $0x1e8] sm:$0xff]  ;;  %v8182_v19 = vld [vmem:[%s10440_s7 + $0x1f0] sm:$0xff] }
 0x4dc   : >> { %8179 = vst [vmem:[%s10436_s4 + $0x1e0] sm:$0xff] %v8178_v26  ;;  %8181 = vst [vmem:[%s10436_s4 + $0x1e8] sm:$0xff] %v8180_v4  ;;  %v8184_v30 = vld [vmem:[%s10440_s7 + $0x1f8] sm:$0xff]  ;;  %s13608_s7 = smov %s13126_s26 }
 0x4dd   : >> { %8183 = vst [vmem:[%s10436_s4 + $0x1f0] sm:$0xff] %v8182_v19  ;;  %8185 = vst [vmem:[%s10436_s4 + $0x1f8] sm:$0xff] %v8184_v30  ;;  %s13607_s4 = smov %s13129_s27 }
 0x4de PF: > { %s13235_s29 = sand.u32 63, %s8045_s15   ;;  %s9921_s21 = sshll.u32 %s13059_s14, 13 }
 0x4df   : > { %s8197_s25 = sshra.s32 %s9921_s21, 4  ;;  %p9884_p9 = scmp.le.s32.totalorder %s13235_s29, 0 }
 0x4e0   : > { %s8198_s8 = scalar_lea.vmem %s12965_s10, %s8197_s25 [#allocation3]   ;;  %s8201_s12 = scalar_lea.vmem %s13046_s30, %s8197_s25  }
 0x4e1   : > { %8582 = sbr.rel (%p9884_p9) target bundleno = 1266 (0x4f2), region = 287  ;;  %s10450_s6 = smov (!%p9884_p9), %s8201_s12  }
 0x4e2   : > { %s10454_s11 = smov (!%p9884_p9), %s8198_s8   ;;  %s10458_s5 = smov (!%p9884_p9), 0  }
 0x4e3   : > { %s10462_s22 = smov (!%p9884_p9), 0  }
 0x4e8 LB: >> { %v8213_v37 = vld [vmem:[%s10456_s11] sm:$0xff]  ;;  %s8215_s24 = sadd.s32 1, %s10460_s5  ;;  %s8207_s22 = sadd.s32 1, %s10464_s22   ;;  %s10464_s22 = sphi %s10462_s22, %s8207_s22   ;;  %s10460_s5 = sphi %s10458_s5, %s10459_s5   ;;  %s10456_s11 = sphi %s10454_s11, %s8220_s11   ;;  %s10452_s6 = sphi %s10450_s6, %s8221_s6  }
 0x4e9   : >> { %8214 = vst [vmem:[%s10452_s6] sm:$0xff] %v8213_v37  ;;  %p8216_p10 = scmp.ge.s32.totalorder %s8215_s24, %s13235_s29  ;;  %p8206_p11 = scmp.ge.s32.totalorder %s8207_s22, %s13235_s29 }
 0x4eb   : >> { %s13633_s24 = smov (%p8216_p10, %s8215_s24), 0  ;;  %8209 = sbr.rel (!%p8206_p11) target bundleno = 1256 (0x4e8), region = 293 }
 0x4ec   : >> { %s9885_s15 = sshll.u32 %s13633_s24, 3  ;;  %s10459_s5 = smov %s13633_s24  }
 0x4ed   : >> { %s8220_s11 = scalar_lea.vmem %s8198_s8, %s9885_s15 [#allocation3]   ;;  %s8221_s6 = scalar_lea.vmem %s8201_s12, %s9885_s15  }
 0x4f2 PF: > { %8224 = sbr.rel (%p8041_p5) target bundleno = 1337 (0x539), region = 143  ;;  %s13247_s14 = ssub.s32 (!%p8041_p5), %s13048_s28, %s13052_s20 }
 0x4f3   : > { %s8230_s4 = sshrl.u32 (!%p8041_p5), %s13048_s28, 3  ;;  %s8227_s7 = scalar_lea.vmem (!%p8041_p5), %s12965_s10, %s13247_s14 [#allocation3] }
 0x4f4   : > { %s8229_s17 = scalar_lea.vmem (!%p8041_p5), %s13046_s30, %s13247_s14  ;;  %s13256_s18 = sshrl.u32 (!%p8041_p5), %s8230_s4, 6 }
 0x4f5   : > { %p9887_p12 = scmp.le.s32.totalorder (!%p8041_p5), %s13256_s18, 0 }
 0x4f9   : > { %8596 = sbr.rel (%p9887_p12) target bundleno = 1313 (0x521), region = 298  ;;  %s13610_s9 = smov (!%p9887_p12), %s13046_s30 }
 0x4fa   : > { %s13611_s23 = smov (!%p9887_p12), %s12965_s10  ;;  %s13265_s26 = smov (!%p9887_p12), 0  }
 0x4fb   : > { %s13267_s27 = smov (!%p9887_p12), 0  }
 0x500 LB: >> { %v8243_v51 = vld [vmem:[%s10472_s23] sm:$0xff]  ;;  %v8245_v38 = vld [vmem:[%s10472_s23 + $0x8] sm:$0xff]  ;;  %v8247_v44 = vld [vmem:[%s10472_s23 + $0x10] sm:$0xff]  ;;  %s8371_s29 = sadd.s32 1, %s10476_s26  ;;  %s8237_s27 = sadd.s32 1, %s10480_s27   ;;  %s10480_s27 = sphi %s13267_s27, %s8237_s27   ;;  %s10476_s26 = sphi %s13265_s26, %s13614_s26   ;;  %s10472_s23 = sphi %s13611_s23, %s13613_s23   ;;  %s10468_s9 = sphi %s13610_s9, %s13612_s9  }
 0x501   : >> { %8244 = vst [vmem:[%s10468_s9] sm:$0xff] %v8243_v51  ;;  %8246 = vst [vmem:[%s10468_s9 + $0x8] sm:$0xff] %v8245_v38  ;;  %v8249_v49 = vld [vmem:[%s10472_s23 + $0x18] sm:$0xff]  ;;  %v8251_v47 = vld [vmem:[%s10472_s23 + $0x20] sm:$0xff]  ;;  %p8372_p13 = scmp.ge.s32.totalorder %s8371_s29, %s13256_s18  ;;  %p8236_p0 = scmp.ge.s32.totalorder %s8237_s27, %s13256_s18 }
 0x502   : >> { %8248 = vst [vmem:[%s10468_s9 + $0x10] sm:$0xff] %v8247_v44  ;;  %v8253_v29 = vld [vmem:[%s10472_s23 + $0x28] sm:$0xff]  ;;  %8250 = vst [vmem:[%s10468_s9 + $0x18] sm:$0xff] %v8249_v49  ;;  %v8255_v14 = vld [vmem:[%s10472_s23 + $0x30] sm:$0xff] }
 0x503   : >> { %8252 = vst [vmem:[%s10468_s9 + $0x20] sm:$0xff] %v8251_v47  ;;  %8254 = vst [vmem:[%s10468_s9 + $0x28] sm:$0xff] %v8253_v29  ;;  %v8257_v48 = vld [vmem:[%s10472_s23 + $0x38] sm:$0xff]  ;;  %v8259_v9 = vld [vmem:[%s10472_s23 + $0x40] sm:$0xff]  ;;  %s13635_s29 = smov (%p8372_p13, %s8371_s29), 0 }
 0x504   : >> { %8256 = vst [vmem:[%s10468_s9 + $0x30] sm:$0xff] %v8255_v14  ;;  %8258 = vst [vmem:[%s10468_s9 + $0x38] sm:$0xff] %v8257_v48  ;;  %v8261_v61 = vld [vmem:[%s10472_s23 + $0x48] sm:$0xff]  ;;  %v8263_v22 = vld [vmem:[%s10472_s23 + $0x50] sm:$0xff]  ;;  %s9888_s21 = sshll.u32 %s13635_s29, 9  ;;  %s13614_s26 = smov %s13635_s29 }
 0x505   : >> { %8260 = vst [vmem:[%s10468_s9 + $0x40] sm:$0xff] %v8259_v9  ;;  %v8265_v54 = vld [vmem:[%s10472_s23 + $0x58] sm:$0xff]  ;;  %8262 = vst [vmem:[%s10468_s9 + $0x48] sm:$0xff] %v8261_v61  ;;  %v8267_v58 = vld [vmem:[%s10472_s23 + $0x60] sm:$0xff]  ;;  %s13323_s25 = scalar_lea.vmem %s12965_s10, %s9888_s21 [#allocation3]   ;;  %s13326_s8 = scalar_lea.vmem %s13046_s30, %s9888_s21  }
 0x506   : >> { %8264 = vst [vmem:[%s10468_s9 + $0x50] sm:$0xff] %v8263_v22  ;;  %8266 = vst [vmem:[%s10468_s9 + $0x58] sm:$0xff] %v8265_v54  ;;  %v8269_v42 = vld [vmem:[%s10472_s23 + $0x68] sm:$0xff]  ;;  %v8271_v18 = vld [vmem:[%s10472_s23 + $0x70] sm:$0xff] }
 0x507   : >> { %8268 = vst [vmem:[%s10468_s9 + $0x60] sm:$0xff] %v8267_v58  ;;  %8270 = vst [vmem:[%s10468_s9 + $0x68] sm:$0xff] %v8269_v42  ;;  %v8273_v57 = vld [vmem:[%s10472_s23 + $0x78] sm:$0xff]  ;;  %v8275_v11 = vld [vmem:[%s10472_s23 + $0x80] sm:$0xff] }
 0x508   : >> { %8272 = vst [vmem:[%s10468_s9 + $0x70] sm:$0xff] %v8271_v18  ;;  %v8277_v25 = vld [vmem:[%s10472_s23 + $0x88] sm:$0xff]  ;;  %8274 = vst [vmem:[%s10468_s9 + $0x78] sm:$0xff] %v8273_v57  ;;  %v8279_v60 = vld [vmem:[%s10472_s23 + $0x90] sm:$0xff] }
 0x509   : >> { %8276 = vst [vmem:[%s10468_s9 + $0x80] sm:$0xff] %v8275_v11  ;;  %8278 = vst [vmem:[%s10468_s9 + $0x88] sm:$0xff] %v8277_v25  ;;  %v8281_v1 = vld [vmem:[%s10472_s23 + $0x98] sm:$0xff]  ;;  %v8283_v55 = vld [vmem:[%s10472_s23 + $0xa0] sm:$0xff] }
 0x50a   : >> { %8280 = vst [vmem:[%s10468_s9 + $0x90] sm:$0xff] %v8279_v60  ;;  %8282 = vst [vmem:[%s10468_s9 + $0x98] sm:$0xff] %v8281_v1  ;;  %v8285_v43 = vld [vmem:[%s10472_s23 + $0xa8] sm:$0xff]  ;;  %v8287_v3 = vld [vmem:[%s10472_s23 + $0xb0] sm:$0xff] }
 0x50b   : >> { %8284 = vst [vmem:[%s10468_s9 + $0xa0] sm:$0xff] %v8283_v55  ;;  %v8289_v2 = vld [vmem:[%s10472_s23 + $0xb8] sm:$0xff]  ;;  %8286 = vst [vmem:[%s10468_s9 + $0xa8] sm:$0xff] %v8285_v43  ;;  %v8291_v17 = vld [vmem:[%s10472_s23 + $0xc0] sm:$0xff] }
 0x50c   : >> { %8288 = vst [vmem:[%s10468_s9 + $0xb0] sm:$0xff] %v8287_v3  ;;  %8290 = vst [vmem:[%s10468_s9 + $0xb8] sm:$0xff] %v8289_v2  ;;  %v8293_v33 = vld [vmem:[%s10472_s23 + $0xc8] sm:$0xff]  ;;  %v8295_v15 = vld [vmem:[%s10472_s23 + $0xd0] sm:$0xff] }
 0x50d   : >> { %8292 = vst [vmem:[%s10468_s9 + $0xc0] sm:$0xff] %v8291_v17  ;;  %8294 = vst [vmem:[%s10468_s9 + $0xc8] sm:$0xff] %v8293_v33  ;;  %v8297_v56 = vld [vmem:[%s10472_s23 + $0xd8] sm:$0xff]  ;;  %v8299_v40 = vld [vmem:[%s10472_s23 + $0xe0] sm:$0xff] }
 0x50e   : >> { %8296 = vst [vmem:[%s10468_s9 + $0xd0] sm:$0xff] %v8295_v15  ;;  %v8301_v16 = vld [vmem:[%s10472_s23 + $0xe8] sm:$0xff]  ;;  %8298 = vst [vmem:[%s10468_s9 + $0xd8] sm:$0xff] %v8297_v56  ;;  %v8303_v24 = vld [vmem:[%s10472_s23 + $0xf0] sm:$0xff] }
 0x50f   : >> { %8300 = vst [vmem:[%s10468_s9 + $0xe0] sm:$0xff] %v8299_v40  ;;  %8302 = vst [vmem:[%s10468_s9 + $0xe8] sm:$0xff] %v8301_v16  ;;  %v8305_v32 = vld [vmem:[%s10472_s23 + $0xf8] sm:$0xff]  ;;  %v8307_v7 = vld [vmem:[%s10472_s23 + $0x100] sm:$0xff] }
 0x510   : >> { %8304 = vst [vmem:[%s10468_s9 + $0xf0] sm:$0xff] %v8303_v24  ;;  %8306 = vst [vmem:[%s10468_s9 + $0xf8] sm:$0xff] %v8305_v32  ;;  %v8309_v12 = vld [vmem:[%s10472_s23 + $0x108] sm:$0xff]  ;;  %v8311_v28 = vld [vmem:[%s10472_s23 + $0x110] sm:$0xff] }
 0x511   : >> { %8308 = vst [vmem:[%s10468_s9 + $0x100] sm:$0xff] %v8307_v7  ;;  %v8313_v21 = vld [vmem:[%s10472_s23 + $0x118] sm:$0xff]  ;;  %8310 = vst [vmem:[%s10468_s9 + $0x108] sm:$0xff] %v8309_v12  ;;  %v8315_v34 = vld [vmem:[%s10472_s23 + $0x120] sm:$0xff] }
 0x512   : >> { %8312 = vst [vmem:[%s10468_s9 + $0x110] sm:$0xff] %v8311_v28  ;;  %8314 = vst [vmem:[%s10468_s9 + $0x118] sm:$0xff] %v8313_v21  ;;  %v8317_v39 = vld [vmem:[%s10472_s23 + $0x128] sm:$0xff]  ;;  %v8319_v20 = vld [vmem:[%s10472_s23 + $0x130] sm:$0xff] }
 0x513   : >> { %8316 = vst [vmem:[%s10468_s9 + $0x120] sm:$0xff] %v8315_v34  ;;  %8318 = vst [vmem:[%s10468_s9 + $0x128] sm:$0xff] %v8317_v39  ;;  %v8321_v41 = vld [vmem:[%s10472_s23 + $0x138] sm:$0xff]  ;;  %v8323_v46 = vld [vmem:[%s10472_s23 + $0x140] sm:$0xff] }
 0x514   : >> { %8320 = vst [vmem:[%s10468_s9 + $0x130] sm:$0xff] %v8319_v20  ;;  %v8325_v0 = vld [vmem:[%s10472_s23 + $0x148] sm:$0xff]  ;;  %8322 = vst [vmem:[%s10468_s9 + $0x138] sm:$0xff] %v8321_v41  ;;  %v8327_v8 = vld [vmem:[%s10472_s23 + $0x150] sm:$0xff] }
 0x515   : >> { %8324 = vst [vmem:[%s10468_s9 + $0x140] sm:$0xff] %v8323_v46  ;;  %8326 = vst [vmem:[%s10468_s9 + $0x148] sm:$0xff] %v8325_v0  ;;  %v8329_v63 = vld [vmem:[%s10472_s23 + $0x158] sm:$0xff]  ;;  %v8331_v31 = vld [vmem:[%s10472_s23 + $0x160] sm:$0xff] }
 0x516   : >> { %8328 = vst [vmem:[%s10468_s9 + $0x150] sm:$0xff] %v8327_v8  ;;  %8330 = vst [vmem:[%s10468_s9 + $0x158] sm:$0xff] %v8329_v63  ;;  %v8333_v45 = vld [vmem:[%s10472_s23 + $0x168] sm:$0xff]  ;;  %v8335_v10 = vld [vmem:[%s10472_s23 + $0x170] sm:$0xff] }
 0x517   : >> { %8332 = vst [vmem:[%s10468_s9 + $0x160] sm:$0xff] %v8331_v31  ;;  %v8337_v36 = vld [vmem:[%s10472_s23 + $0x178] sm:$0xff]  ;;  %8334 = vst [vmem:[%s10468_s9 + $0x168] sm:$0xff] %v8333_v45  ;;  %v8339_v35 = vld [vmem:[%s10472_s23 + $0x180] sm:$0xff] }
 0x518   : >> { %8336 = vst [vmem:[%s10468_s9 + $0x170] sm:$0xff] %v8335_v10  ;;  %8338 = vst [vmem:[%s10468_s9 + $0x178] sm:$0xff] %v8337_v36  ;;  %v8341_v5 = vld [vmem:[%s10472_s23 + $0x188] sm:$0xff]  ;;  %v8343_v50 = vld [vmem:[%s10472_s23 + $0x190] sm:$0xff] }
 0x519   : >> { %8340 = vst [vmem:[%s10468_s9 + $0x180] sm:$0xff] %v8339_v35  ;;  %8342 = vst [vmem:[%s10468_s9 + $0x188] sm:$0xff] %v8341_v5  ;;  %v8345_v27 = vld [vmem:[%s10472_s23 + $0x198] sm:$0xff]  ;;  %v8347_v62 = vld [vmem:[%s10472_s23 + $0x1a0] sm:$0xff] }
 0x51a   : >> { %8344 = vst [vmem:[%s10468_s9 + $0x190] sm:$0xff] %v8343_v50  ;;  %v8349_v6 = vld [vmem:[%s10472_s23 + $0x1a8] sm:$0xff]  ;;  %8346 = vst [vmem:[%s10468_s9 + $0x198] sm:$0xff] %v8345_v27  ;;  %v8351_v59 = vld [vmem:[%s10472_s23 + $0x1b0] sm:$0xff]  ;;  %8239 = sbr.rel (!%p8236_p0) target bundleno = 1280 (0x500), region = 304 }
 0x51b   : >> { %8348 = vst [vmem:[%s10468_s9 + $0x1a0] sm:$0xff] %v8347_v62  ;;  %8350 = vst [vmem:[%s10468_s9 + $0x1a8] sm:$0xff] %v8349_v6  ;;  %v8353_v52 = vld [vmem:[%s10472_s23 + $0x1b8] sm:$0xff]  ;;  %v8355_v13 = vld [vmem:[%s10472_s23 + $0x1c0] sm:$0xff] }
 0x51c   : >> { %8352 = vst [vmem:[%s10468_s9 + $0x1b0] sm:$0xff] %v8351_v59  ;;  %8354 = vst [vmem:[%s10468_s9 + $0x1b8] sm:$0xff] %v8353_v52  ;;  %v8357_v53 = vld [vmem:[%s10472_s23 + $0x1c8] sm:$0xff]  ;;  %v8359_v23 = vld [vmem:[%s10472_s23 + $0x1d0] sm:$0xff] }
 0x51d   : >> { %8356 = vst [vmem:[%s10468_s9 + $0x1c0] sm:$0xff] %v8355_v13  ;;  %v8361_v26 = vld [vmem:[%s10472_s23 + $0x1d8] sm:$0xff]  ;;  %8358 = vst [vmem:[%s10468_s9 + $0x1c8] sm:$0xff] %v8357_v53  ;;  %v8363_v4 = vld [vmem:[%s10472_s23 + $0x1e0] sm:$0xff] }
 0x51e   : >> { %8360 = vst [vmem:[%s10468_s9 + $0x1d0] sm:$0xff] %v8359_v23  ;;  %8362 = vst [vmem:[%s10468_s9 + $0x1d8] sm:$0xff] %v8361_v26  ;;  %v8365_v19 = vld [vmem:[%s10472_s23 + $0x1e8] sm:$0xff]  ;;  %v8367_v30 = vld [vmem:[%s10472_s23 + $0x1f0] sm:$0xff] }
 0x51f   : >> { %8364 = vst [vmem:[%s10468_s9 + $0x1e0] sm:$0xff] %v8363_v4  ;;  %8366 = vst [vmem:[%s10468_s9 + $0x1e8] sm:$0xff] %v8365_v19  ;;  %v8369_v37 = vld [vmem:[%s10472_s23 + $0x1f8] sm:$0xff]  ;;  %s13613_s23 = smov %s13323_s25 }
 0x520   : >> { %8368 = vst [vmem:[%s10468_s9 + $0x1f0] sm:$0xff] %v8367_v30  ;;  %8370 = vst [vmem:[%s10468_s9 + $0x1f8] sm:$0xff] %v8369_v37  ;;  %s13612_s9 = smov %s13326_s8 }
 0x521 PF: > { %s13432_s12 = sand.u32 63, %s8230_s4   ;;  %s9923_s6 = sshll.u32 %s13256_s18, 13 }
 0x522   : > { %s8382_s11 = sshra.s32 %s9923_s6, 4  ;;  %p9893_p1 = scmp.le.s32.totalorder %s13432_s12, 0 }
 0x523   : > { %s8383_s5 = scalar_lea.vmem %s12965_s10, %s8382_s11 [#allocation3]   ;;  %s8386_s22 = scalar_lea.vmem %s13046_s30, %s8382_s11  }
 0x524   : > { %8610 = sbr.rel (%p9893_p1) target bundleno = 1333 (0x535), region = 309  ;;  %s10482_s24 = smov (!%p9893_p1), %s8386_s22  }
 0x525   : > { %s10486_s15 = smov (!%p9893_p1), %s8383_s5   ;;  %s10490_s29 = smov (!%p9893_p1), 0  }
 0x526   : > { %s10494_s27 = smov (!%p9893_p1), 0  }
 0x52b LB: >> { %v8398_v51 = vld [vmem:[%s10488_s15] sm:$0xff]  ;;  %s8400_s4 = sadd.s32 1, %s10492_s29  ;;  %s8392_s27 = sadd.s32 1, %s10496_s27   ;;  %s10496_s27 = sphi %s10494_s27, %s8392_s27   ;;  %s10492_s29 = sphi %s10490_s29, %s10491_s29   ;;  %s10488_s15 = sphi %s10486_s15, %s8405_s15   ;;  %s10484_s24 = sphi %s10482_s24, %s8406_s24  }
 0x52c   : >> { %8399 = vst [vmem:[%s10484_s24] sm:$0xff] %v8398_v51  ;;  %p8401_p2 = scmp.ge.s32.totalorder %s8400_s4, %s13432_s12  ;;  %p8391_p3 = scmp.ge.s32.totalorder %s8392_s27, %s13432_s12 }
 0x52e   : >> { %s13637_s4 = smov (%p8401_p2, %s8400_s4), 0  ;;  %8394 = sbr.rel (!%p8391_p3) target bundleno = 1323 (0x52b), region = 315 }
 0x52f   : >> { %s9894_s18 = sshll.u32 %s13637_s4, 3  ;;  %s10491_s29 = smov %s13637_s4  }
 0x530   : >> { %s8405_s15 = scalar_lea.vmem %s8383_s5, %s9894_s18 [#allocation3]   ;;  %s8406_s24 = scalar_lea.vmem %s8386_s22, %s9894_s18  }
 0x535 PF: > { %s10502_s9 = smov 0  }
 0x536   : > { %s8407_s23 = sshllo.u32 %s10502_s9, %s13052_s20 }
 0x537   : > { %v8416_v38 = vld [vmem:[%s8227_s7] sm:%s8407_s23] }
 0x538   : > { %8417 = vst [vmem:[%s8229_s17] sm:%s8407_s23] %v8416_v38 }
 0x539 PF: > { %p9896_p5 = scmp.ge.u32.totalorder %s13048_s28, 8 }
 0x53a   : > { %s10503_s26 = smov (!%p9896_p5), 0  }
 0x53b   : > { %8028 = sbr.rel (%p9896_p5) target bundleno = 1346 (0x542), region = 114  ;;  %s8029_s21 = sshllo.u32 (!%p9896_p5), %s10503_s26, %s13048_s28 }
 0x53c   : > { %v8038_v44 = vld [vmem:[%s12965_s10] sm:%s8029_s21] (!%p9896_p5) }
 0x53d   : > { %8039 = vst [vmem:[%s13046_s30] sm:%s8029_s21] (!%p9896_p5), %v8038_v44 }
 0x542 PF: > { %p10_p4 = scmp.ge.s32.totalorder %s10543_s16, 9   ;;  %s13615_s12 = smov %s10364_s13 }
 0x543   : > { %s13616_s13 = smov %s10553_s19  ;;  %s13617_s14 = smov %s10543_s16 }
 0x544   :  { %12 = sbr.rel (!%p10_p4) target bundleno = 2 (0x2), region = 326 }

// kernel: cnn_cifar_forward.4
= control target key start
LH: loop header
LB: loop body
LE: loop exit
PB: predicated region body
PF: predicated region fallthrough
CT: control target
= control target key end

     0   :  { %s7655_s12 = smov 0   ;;  %s7657_s13 = smov 0   ;;  %s10077_s0 = inlined_call_operand.vmem [shape: bf16[4,150,3200], index: 0, kind: input, shape index: {}]   ;;  %s10078_s1 = inlined_call_operand.vmem [shape: bf16[16,150], index: 1, kind: input, shape index: {}]   ;;  %s10079_s2 = inlined_call_operand.vmem [shape: f32[16,1], index: 2, kind: input, shape index: {}]   ;;  %s10080_s3 = inlined_call_operand.vmem [shape: f32[16,3200], index: 3, kind: output, shape index: {}]  }
   0x1   :  { %s7659_s14 = smov 0  }
   0x2 LB: > { %s7671_s15 = sadd.s32 4294967295, %s7532_s14   ;;  %s7674_s16 = sadd.s32 1, %s7532_s14   ;;  %s7532_s14 = sphi %s7659_s14, %s10133_s14   ;;  %s7528_s13 = sphi %s7657_s13, %s10132_s13   ;;  %s7524_s12 = sphi %s7655_s12, %s10131_s12  }
   0x3   : > { %s17_s17 = ssub.s32 %s7532_s14, %s7674_s16  ;;  %s20_s18 = sadd.s32 1, %s7528_s13 }
   0x4   : > { %p18_p0 = scmp.eq.s32.totalorder %s17_s17, 0  ;;  %p27_p1 = scmp.ne.s32.totalorder %s7528_s13, %s7524_s12 }
   0x5   : > { %p28_p2 = scmp.eq.s32.totalorder %s7532_s14, 0  ;;  %p99_p3 = scmp.eq.s32.totalorder %s7671_s15, 2 }
   0x6   : > { %s7684_s19 = scalar_select %p18_p0, %s7528_s13, %s20_s18  }
   0x7   : > { %p29_p4 = por %p28_p2, %p27_p1  ;;  %p7686_p5 = por %p99_p3, %p27_p1 }
   0x8   : > { %p5567_p6 = scmp.ge.s32.totalorder %s7532_s14, 3 }
   0xa   : > { %127 = sbr.rel (%p5567_p6) target bundleno = 306 (0x132), region = 24 }
  0x11   : > { %130 = sbr.rel (!%p29_p4) target bundleno = 306 (0x132), region = 28  ;;  %s132_s21 = sand.u32 (%p29_p4), 1, %s7528_s13  }
  0x12   : > { %s135_s22 = smul.u32 (%p29_p4), 12, %s7532_s14 }
  0x13   : > { %s6486_s23 = smul.u32 (%p29_p4), 3648, %s132_s21 }
  0x14   : > { %s136_s24 = ssub.s32 (%p29_p4), 25, %s135_s22  ;;  %s6480_s25 = smul.u32 (%p29_p4), 48, %s7532_s14 }
  0x15   : > { %p137_p7 = scmp.lt.s32.totalorder (%p29_p4), %s136_s24, 12  ;;  %s7701_s4 = scalar_lea.vmem (%p29_p4), [#allocation2], %s6486_s23  }
  0x16   : > { %s7697_s28 = scalar_lea.vmem (%p29_p4), %s10077_s0, %s6480_s25  }
  0x18   : > { %s10135_s24 = smov (!%p137_p7, %s136_s24), 12 }
  0x19   : > { %s139_s29 = smul.u32 4864, %s10135_s24  ;;  %s7699_s30 = sshll.u32 %s10135_s24, 2 }
  0x1b   : > { %p5571_p8 = scmp.eq.s32.totalorder %s139_s29, 0 }
  0x1c   : > { %p147_p9 = scmp.lt.u32.totalorder (!%p5571_p8), %s7699_s30, 8 }
  0x1d   : > { %146 = sbr.rel (%p5571_p8) target bundleno = 306 (0x132), region = 32 }
  0x24   : > { %150 = sbr.rel (%p147_p9) target bundleno = 227 (0xe3), region = 36  ;;  %s7705_s5 = sand.u32 (!%p147_p9), 7, %s7699_s30  }
  0x25   : > { %p316_p10 = scmp.eq.s32.totalorder (!%p147_p9), %s7705_s5, 0  ;;  %p5572_p11 = scmp.ne.s32.totalorder (!%p147_p9), %s7705_s5, 0 }
  0x2b   : > { %319 = sbr.rel (%p5572_p11) target bundleno = 96 (0x60), region = 51  ;;  %s7710_s6 = sshrl.u32 (!%p5572_p11), %s7699_s30, 3 }
  0x2c   : > { %p5573_p12 = scmp.le.s32.totalorder (!%p5572_p11), %s7710_s6, 0 }
  0x32   : > { %5465 = sbr.rel (%p5573_p12) target bundleno = 96 (0x60), region = 210  ;;  %s10083_s7 = smov (!%p5573_p12), %s7701_s4 }
  0x33   : > { %s10084_s8 = smov (!%p5573_p12), %s7697_s28  ;;  %s7719_s9 = smov (!%p5573_p12), 0  }
  0x34   : > { %s7721_s10 = smov (!%p5573_p12), 0  }
  0x39 LB: >> { %v332_v0 = vld [vmem:[%s7540_s8] sm:$0xff]  ;;  %v336_v2 = vld [vmem:[%s7540_s8 + $0xc8] sm:$0xff]  ;;  %s484_s11 = sadd.s32 1, %s7544_s9  ;;  %v340_v4 = vld [vmem:[%s7540_s8 + $0x190] sm:$0xff]  ;;  %s326_s10 = sadd.s32 1, %s7548_s10   ;;  %s7548_s10 = sphi %s7721_s10, %s326_s10   ;;  %s7544_s9 = sphi %s7719_s9, %s10087_s9   ;;  %s7540_s8 = sphi %s10084_s8, %s10086_s8   ;;  %s7536_s7 = sphi %s10083_s7, %s10085_s7  }
  0x3a   : >> { %v334_v1 = vld [vmem:[%s7540_s8 + $0x64] sm:$0xff]  ;;  %333 = vst [vmem:[%s7536_s7] sm:$0xff] %v332_v0  ;;  %337 = vst [vmem:[%s7536_s7 + $0x60] sm:$0xff] %v336_v2  ;;  %v338_v3 = vld [vmem:[%s7540_s8 + $0x12c] sm:$0xff]  ;;  %p485_p13 = scmp.ge.s32.totalorder %s484_s11, %s7710_s6  ;;  %p325_p0 = scmp.ge.s32.totalorder %s326_s10, %s7710_s6 }
  0x3b   : >> { %335 = vst [vmem:[%s7536_s7 + $0x30] sm:$0xff] %v334_v1  ;;  %v342_v5 = vld [vmem:[%s7540_s8 + $0x1f4] sm:$0xff]  ;;  %339 = vst [vmem:[%s7536_s7 + $0x90] sm:$0xff] %v338_v3  ;;  %v346_v7 = vld [vmem:[%s7540_s8 + $0x2bc] sm:$0xff] }
  0x3c   : >> { %341 = vst [vmem:[%s7536_s7 + $0xc0] sm:$0xff] %v340_v4  ;;  %343 = vst [vmem:[%s7536_s7 + $0xf0] sm:$0xff] %v342_v5  ;;  %v344_v6 = vld [vmem:[%s7540_s8 + $0x258] sm:$0xff]  ;;  %v348_v8 = vld [vmem:[%s7540_s8 + $0x320] sm:$0xff]  ;;  %s10137_s11 = smov (%p485_p13, %s484_s11), 0 }
  0x3d   : >> { %345 = vst [vmem:[%s7536_s7 + $0x120] sm:$0xff] %v344_v6  ;;  %347 = vst [vmem:[%s7536_s7 + $0x150] sm:$0xff] %v346_v7  ;;  %v350_v9 = vld [vmem:[%s7540_s8 + $0x384] sm:$0xff]  ;;  %v354_v11 = vld [vmem:[%s7540_s8 + $0x44c] sm:$0xff]  ;;  %s5574_s17 = sshll.u32 %s10137_s11, 3  ;;  %s10087_s9 = smov %s10137_s11 }
  0x3e   : >> { %349 = vst [vmem:[%s7536_s7 + $0x180] sm:$0xff] %v348_v8  ;;  %v352_v10 = vld [vmem:[%s7540_s8 + $0x3e8] sm:$0xff]  ;;  %351 = vst [vmem:[%s7536_s7 + $0x1b0] sm:$0xff] %v350_v9  ;;  %v356_v12 = vld [vmem:[%s7540_s8 + $0x4b0] sm:$0xff]  ;;  %s7777_s18 = scalar_lea.vmem %s7697_s28, %s5574_s17   ;;  %s7780_s21 = scalar_lea.vmem %s7701_s4, %s5574_s17 [#allocation2]  }
  0x3f   : >> { %353 = vst [vmem:[%s7536_s7 + $0x1e0] sm:$0xff] %v352_v10  ;;  %355 = vst [vmem:[%s7536_s7 + $0x210] sm:$0xff] %v354_v11  ;;  %v358_v13 = vld [vmem:[%s7540_s8 + $0x514] sm:$0xff]  ;;  %v362_v15 = vld [vmem:[%s7540_s8 + $0x5dc] sm:$0xff] }
  0x40   : >> { %v360_v14 = vld [vmem:[%s7540_s8 + $0x578] sm:$0xff]  ;;  %357 = vst [vmem:[%s7536_s7 + $0x240] sm:$0xff] %v356_v12  ;;  %359 = vst [vmem:[%s7536_s7 + $0x270] sm:$0xff] %v358_v13  ;;  %v364_v16 = vld [vmem:[%s7540_s8 + $0x640] sm:$0xff] }
  0x41   : >> { %361 = vst [vmem:[%s7536_s7 + $0x2a0] sm:$0xff] %v360_v14  ;;  %v366_v17 = vld [vmem:[%s7540_s8 + $0x6a4] sm:$0xff]  ;;  %363 = vst [vmem:[%s7536_s7 + $0x2d0] sm:$0xff] %v362_v15  ;;  %v370_v19 = vld [vmem:[%s7540_s8 + $0x76c] sm:$0xff] }
  0x42   : >> { %365 = vst [vmem:[%s7536_s7 + $0x300] sm:$0xff] %v364_v16  ;;  %367 = vst [vmem:[%s7536_s7 + $0x330] sm:$0xff] %v366_v17  ;;  %v368_v18 = vld [vmem:[%s7540_s8 + $0x708] sm:$0xff]  ;;  %v372_v20 = vld [vmem:[%s7540_s8 + $0x7d0] sm:$0xff] }
  0x43   : >> { %369 = vst [vmem:[%s7536_s7 + $0x360] sm:$0xff] %v368_v18  ;;  %371 = vst [vmem:[%s7536_s7 + $0x390] sm:$0xff] %v370_v19  ;;  %v374_v21 = vld [vmem:[%s7540_s8 + $0x834] sm:$0xff]  ;;  %v378_v23 = vld [vmem:[%s7540_s8 + $0x8fc] sm:$0xff] }
  0x44   : >> { %373 = vst [vmem:[%s7536_s7 + $0x3c0] sm:$0xff] %v372_v20  ;;  %v376_v22 = vld [vmem:[%s7540_s8 + $0x898] sm:$0xff]  ;;  %375 = vst [vmem:[%s7536_s7 + $0x3f0] sm:$0xff] %v374_v21  ;;  %v380_v24 = vld [vmem:[%s7540_s8 + $0x960] sm:$0xff] }
  0x45   : >> { %377 = vst [vmem:[%s7536_s7 + $0x420] sm:$0xff] %v376_v22  ;;  %379 = vst [vmem:[%s7536_s7 + $0x450] sm:$0xff] %v378_v23  ;;  %v382_v25 = vld [vmem:[%s7540_s8 + $0x9c4] sm:$0xff]  ;;  %v386_v27 = vld [vmem:[%s7540_s8 + $0xa8c] sm:$0xff] }
  0x46   : >> { %v384_v26 = vld [vmem:[%s7540_s8 + $0xa28] sm:$0xff]  ;;  %381 = vst [vmem:[%s7536_s7 + $0x480] sm:$0xff] %v380_v24  ;;  %383 = vst [vmem:[%s7536_s7 + $0x4b0] sm:$0xff] %v382_v25  ;;  %v388_v28 = vld [vmem:[%s7540_s8 + $0xaf0] sm:$0xff] }
  0x47   : >> { %385 = vst [vmem:[%s7536_s7 + $0x4e0] sm:$0xff] %v384_v26  ;;  %v390_v29 = vld [vmem:[%s7540_s8 + $0xb54] sm:$0xff]  ;;  %387 = vst [vmem:[%s7536_s7 + $0x510] sm:$0xff] %v386_v27  ;;  %v394_v31 = vld [vmem:[%s7540_s8 + $0xc1c] sm:$0xff] }
  0x48   : >> { %389 = vst [vmem:[%s7536_s7 + $0x540] sm:$0xff] %v388_v28  ;;  %391 = vst [vmem:[%s7536_s7 + $0x570] sm:$0xff] %v390_v29  ;;  %v392_v30 = vld [vmem:[%s7540_s8 + $0xbb8] sm:$0xff]  ;;  %v396_v32 = vld [vmem:[%s7540_s8 + $0xc80] sm:$0xff] }
  0x49   : >> { %393 = vst [vmem:[%s7536_s7 + $0x5a0] sm:$0xff] %v392_v30  ;;  %395 = vst [vmem:[%s7536_s7 + $0x5d0] sm:$0xff] %v394_v31  ;;  %v398_v33 = vld [vmem:[%s7540_s8 + $0xce4] sm:$0xff]  ;;  %v402_v35 = vld [vmem:[%s7540_s8 + $0xdac] sm:$0xff] }
  0x4a   : >> { %397 = vst [vmem:[%s7536_s7 + $0x600] sm:$0xff] %v396_v32  ;;  %v400_v34 = vld [vmem:[%s7540_s8 + $0xd48] sm:$0xff]  ;;  %399 = vst [vmem:[%s7536_s7 + $0x630] sm:$0xff] %v398_v33  ;;  %v404_v36 = vld [vmem:[%s7540_s8 + $0xe10] sm:$0xff] }
  0x4b   : >> { %401 = vst [vmem:[%s7536_s7 + $0x660] sm:$0xff] %v400_v34  ;;  %403 = vst [vmem:[%s7536_s7 + $0x690] sm:$0xff] %v402_v35  ;;  %v406_v37 = vld [vmem:[%s7540_s8 + $0xe74] sm:$0xff]  ;;  %v410_v39 = vld [vmem:[%s7540_s8 + $0xf3c] sm:$0xff] }
  0x4c   : >> { %v408_v38 = vld [vmem:[%s7540_s8 + $0xed8] sm:$0xff]  ;;  %405 = vst [vmem:[%s7536_s7 + $0x6c0] sm:$0xff] %v404_v36  ;;  %407 = vst [vmem:[%s7536_s7 + $0x6f0] sm:$0xff] %v406_v37  ;;  %v412_v40 = vld [vmem:[%s7540_s8 + $0xfa0] sm:$0xff] }
  0x4d   : >> { %409 = vst [vmem:[%s7536_s7 + $0x720] sm:$0xff] %v408_v38  ;;  %v414_v41 = vld [vmem:[%s7540_s8 + $0x1004] sm:$0xff]  ;;  %411 = vst [vmem:[%s7536_s7 + $0x750] sm:$0xff] %v410_v39  ;;  %v418_v43 = vld [vmem:[%s7540_s8 + $0x10cc] sm:$0xff] }
  0x4e   : >> { %413 = vst [vmem:[%s7536_s7 + $0x780] sm:$0xff] %v412_v40  ;;  %415 = vst [vmem:[%s7536_s7 + $0x7b0] sm:$0xff] %v414_v41  ;;  %v416_v42 = vld [vmem:[%s7540_s8 + $0x1068] sm:$0xff]  ;;  %v420_v44 = vld [vmem:[%s7540_s8 + $0x1130] sm:$0xff] }
  0x4f   : >> { %417 = vst [vmem:[%s7536_s7 + $0x7e0] sm:$0xff] %v416_v42  ;;  %419 = vst [vmem:[%s7536_s7 + $0x810] sm:$0xff] %v418_v43  ;;  %v422_v45 = vld [vmem:[%s7540_s8 + $0x1194] sm:$0xff]  ;;  %v426_v47 = vld [vmem:[%s7540_s8 + $0x125c] sm:$0xff] }
  0x50   : >> { %421 = vst [vmem:[%s7536_s7 + $0x840] sm:$0xff] %v420_v44  ;;  %v424_v46 = vld [vmem:[%s7540_s8 + $0x11f8] sm:$0xff]  ;;  %423 = vst [vmem:[%s7536_s7 + $0x870] sm:$0xff] %v422_v45  ;;  %v428_v48 = vld [vmem:[%s7540_s8 + $0x12c0] sm:$0xff] }
  0x51   : >> { %425 = vst [vmem:[%s7536_s7 + $0x8a0] sm:$0xff] %v424_v46  ;;  %427 = vst [vmem:[%s7536_s7 + $0x8d0] sm:$0xff] %v426_v47  ;;  %v430_v49 = vld [vmem:[%s7540_s8 + $0x1324] sm:$0xff]  ;;  %v434_v51 = vld [vmem:[%s7540_s8 + $0x13ec] sm:$0xff] }
  0x52   : >> { %v432_v50 = vld [vmem:[%s7540_s8 + $0x1388] sm:$0xff]  ;;  %429 = vst [vmem:[%s7536_s7 + $0x900] sm:$0xff] %v428_v48  ;;  %431 = vst [vmem:[%s7536_s7 + $0x930] sm:$0xff] %v430_v49  ;;  %v436_v52 = vld [vmem:[%s7540_s8 + $0x1450] sm:$0xff] }
  0x53   : >> { %433 = vst [vmem:[%s7536_s7 + $0x960] sm:$0xff] %v432_v50  ;;  %v438_v53 = vld [vmem:[%s7540_s8 + $0x14b4] sm:$0xff]  ;;  %435 = vst [vmem:[%s7536_s7 + $0x990] sm:$0xff] %v434_v51  ;;  %v442_v55 = vld [vmem:[%s7540_s8 + $0x157c] sm:$0xff] }
  0x54   : >> { %437 = vst [vmem:[%s7536_s7 + $0x9c0] sm:$0xff] %v436_v52  ;;  %439 = vst [vmem:[%s7536_s7 + $0x9f0] sm:$0xff] %v438_v53  ;;  %v440_v54 = vld [vmem:[%s7540_s8 + $0x1518] sm:$0xff]  ;;  %v444_v56 = vld [vmem:[%s7540_s8 + $0x15e0] sm:$0xff] }
  0x55   : >> { %441 = vst [vmem:[%s7536_s7 + $0xa20] sm:$0xff] %v440_v54  ;;  %443 = vst [vmem:[%s7536_s7 + $0xa50] sm:$0xff] %v442_v55  ;;  %v446_v57 = vld [vmem:[%s7540_s8 + $0x1644] sm:$0xff]  ;;  %v450_v59 = vld [vmem:[%s7540_s8 + $0x170c] sm:$0xff] }
  0x56   : >> { %445 = vst [vmem:[%s7536_s7 + $0xa80] sm:$0xff] %v444_v56  ;;  %v448_v58 = vld [vmem:[%s7540_s8 + $0x16a8] sm:$0xff]  ;;  %447 = vst [vmem:[%s7536_s7 + $0xab0] sm:$0xff] %v446_v57  ;;  %v452_v60 = vld [vmem:[%s7540_s8 + $0x1770] sm:$0xff] }
  0x57   : >> { %449 = vst [vmem:[%s7536_s7 + $0xae0] sm:$0xff] %v448_v58  ;;  %451 = vst [vmem:[%s7536_s7 + $0xb10] sm:$0xff] %v450_v59  ;;  %v454_v61 = vld [vmem:[%s7540_s8 + $0x17d4] sm:$0xff]  ;;  %v458_v63 = vld [vmem:[%s7540_s8 + $0x189c] sm:$0xff] }
  0x58   : >> { %v456_v62 = vld [vmem:[%s7540_s8 + $0x1838] sm:$0xff]  ;;  %453 = vst [vmem:[%s7536_s7 + $0xb40] sm:$0xff] %v452_v60  ;;  %455 = vst [vmem:[%s7536_s7 + $0xb70] sm:$0xff] %v454_v61  ;;  %v460_v0 = vld [vmem:[%s7540_s8 + $0x1900] sm:$0xff] }
  0x59   : >> { %457 = vst [vmem:[%s7536_s7 + $0xba0] sm:$0xff] %v456_v62  ;;  %v462_v1 = vld [vmem:[%s7540_s8 + $0x1964] sm:$0xff]  ;;  %459 = vst [vmem:[%s7536_s7 + $0xbd0] sm:$0xff] %v458_v63  ;;  %v466_v3 = vld [vmem:[%s7540_s8 + $0x1a2c] sm:$0xff]  ;;  %328 = sbr.rel (!%p325_p0) target bundleno = 57 (0x39), region = 216 }
  0x5a   : >> { %461 = vst [vmem:[%s7536_s7 + $0xc00] sm:$0xff] %v460_v0  ;;  %463 = vst [vmem:[%s7536_s7 + $0xc30] sm:$0xff] %v462_v1  ;;  %v464_v2 = vld [vmem:[%s7540_s8 + $0x19c8] sm:$0xff]  ;;  %v468_v4 = vld [vmem:[%s7540_s8 + $0x1a90] sm:$0xff] }
  0x5b   : >> { %465 = vst [vmem:[%s7536_s7 + $0xc60] sm:$0xff] %v464_v2  ;;  %467 = vst [vmem:[%s7536_s7 + $0xc90] sm:$0xff] %v466_v3  ;;  %v470_v5 = vld [vmem:[%s7540_s8 + $0x1af4] sm:$0xff]  ;;  %v474_v7 = vld [vmem:[%s7540_s8 + $0x1bbc] sm:$0xff] }
  0x5c   : >> { %469 = vst [vmem:[%s7536_s7 + $0xcc0] sm:$0xff] %v468_v4  ;;  %v472_v6 = vld [vmem:[%s7540_s8 + $0x1b58] sm:$0xff]  ;;  %471 = vst [vmem:[%s7536_s7 + $0xcf0] sm:$0xff] %v470_v5  ;;  %v476_v8 = vld [vmem:[%s7540_s8 + $0x1c20] sm:$0xff] }
  0x5d   : >> { %473 = vst [vmem:[%s7536_s7 + $0xd20] sm:$0xff] %v472_v6  ;;  %475 = vst [vmem:[%s7536_s7 + $0xd50] sm:$0xff] %v474_v7  ;;  %v478_v9 = vld [vmem:[%s7540_s8 + $0x1c84] sm:$0xff]  ;;  %v482_v11 = vld [vmem:[%s7540_s8 + $0x1d4c] sm:$0xff] }
  0x5e   : >> { %v480_v10 = vld [vmem:[%s7540_s8 + $0x1ce8] sm:$0xff]  ;;  %477 = vst [vmem:[%s7536_s7 + $0xd80] sm:$0xff] %v476_v8  ;;  %479 = vst [vmem:[%s7536_s7 + $0xdb0] sm:$0xff] %v478_v9  ;;  %s10086_s8 = smov %s7777_s18 }
  0x5f   : >> { %481 = vst [vmem:[%s7536_s7 + $0xde0] sm:$0xff] %v480_v10  ;;  %483 = vst [vmem:[%s7536_s7 + $0xe10] sm:$0xff] %v482_v11  ;;  %s10085_s7 = smov %s7780_s21 }
  0x60 PF: > { %493 = sbr.rel (%p316_p10) target bundleno = 227 (0xe3), region = 62  ;;  %s495_s22 = ssub.s32 (!%p316_p10), %s7699_s30, %s7705_s5 }
  0x61   : > { %s7913_s23 = sshrl.u32 (!%p316_p10), %s7699_s30, 3  ;;  %s7916_s24 = scalar_lea.vmem (!%p316_p10), %s7697_s28, %s495_s22 }
  0x62   : > { %s7919_s25 = scalar_lea.vmem (!%p316_p10), %s7701_s4, %s495_s22 [#allocation2]  ;;  %p5576_p1 = scmp.le.s32.totalorder (!%p316_p10), %s7913_s23, 0 }
  0x67   : > { %5479 = sbr.rel (%p5576_p1) target bundleno = 149 (0x95), region = 221  ;;  %s10088_s26 = smov (!%p5576_p1), %s7701_s4 }
  0x68   : > { %s10089_s27 = smov (!%p5576_p1), %s7697_s28  ;;  %s7928_s29 = smov (!%p5576_p1), 0  }
  0x69   : > { %s7930_s6 = smov (!%p5576_p1), 0  }
  0x6e LB: >> { %v511_v12 = vld [vmem:[%s7556_s27] sm:$0xff]  ;;  %v515_v14 = vld [vmem:[%s7556_s27 + $0xc8] sm:$0xff]  ;;  %s663_s7 = sadd.s32 1, %s7560_s29  ;;  %v519_v16 = vld [vmem:[%s7556_s27 + $0x190] sm:$0xff]  ;;  %s505_s6 = sadd.s32 1, %s7564_s6   ;;  %s7564_s6 = sphi %s7930_s6, %s505_s6   ;;  %s7560_s29 = sphi %s7928_s29, %s10092_s29   ;;  %s7556_s27 = sphi %s10089_s27, %s10091_s27   ;;  %s7552_s26 = sphi %s10088_s26, %s10090_s26  }
  0x6f   : >> { %v513_v13 = vld [vmem:[%s7556_s27 + $0x64] sm:$0xff]  ;;  %512 = vst [vmem:[%s7552_s26] sm:$0xff] %v511_v12  ;;  %516 = vst [vmem:[%s7552_s26 + $0x60] sm:$0xff] %v515_v14  ;;  %v517_v15 = vld [vmem:[%s7556_s27 + $0x12c] sm:$0xff]  ;;  %p664_p2 = scmp.ge.s32.totalorder %s663_s7, %s7913_s23  ;;  %p504_p3 = scmp.ge.s32.totalorder %s505_s6, %s7913_s23 }
  0x70   : >> { %514 = vst [vmem:[%s7552_s26 + $0x30] sm:$0xff] %v513_v13  ;;  %v521_v17 = vld [vmem:[%s7556_s27 + $0x1f4] sm:$0xff]  ;;  %518 = vst [vmem:[%s7552_s26 + $0x90] sm:$0xff] %v517_v15  ;;  %v525_v19 = vld [vmem:[%s7556_s27 + $0x2bc] sm:$0xff] }
  0x71   : >> { %520 = vst [vmem:[%s7552_s26 + $0xc0] sm:$0xff] %v519_v16  ;;  %522 = vst [vmem:[%s7552_s26 + $0xf0] sm:$0xff] %v521_v17  ;;  %v523_v18 = vld [vmem:[%s7556_s27 + $0x258] sm:$0xff]  ;;  %v527_v20 = vld [vmem:[%s7556_s27 + $0x320] sm:$0xff]  ;;  %s10139_s7 = smov (%p664_p2, %s663_s7), 0 }
  0x72   : >> { %524 = vst [vmem:[%s7552_s26 + $0x120] sm:$0xff] %v523_v18  ;;  %526 = vst [vmem:[%s7552_s26 + $0x150] sm:$0xff] %v525_v19  ;;  %v529_v21 = vld [vmem:[%s7556_s27 + $0x384] sm:$0xff]  ;;  %v533_v23 = vld [vmem:[%s7556_s27 + $0x44c] sm:$0xff]  ;;  %s5577_s8 = sshll.u32 %s10139_s7, 3  ;;  %s10092_s29 = smov %s10139_s7 }
  0x73   : >> { %528 = vst [vmem:[%s7552_s26 + $0x180] sm:$0xff] %v527_v20  ;;  %v531_v22 = vld [vmem:[%s7556_s27 + $0x3e8] sm:$0xff]  ;;  %530 = vst [vmem:[%s7552_s26 + $0x1b0] sm:$0xff] %v529_v21  ;;  %v535_v24 = vld [vmem:[%s7556_s27 + $0x4b0] sm:$0xff]  ;;  %s7986_s9 = scalar_lea.vmem %s7697_s28, %s5577_s8   ;;  %s7989_s10 = scalar_lea.vmem %s7701_s4, %s5577_s8 [#allocation2]  }
  0x74   : >> { %532 = vst [vmem:[%s7552_s26 + $0x1e0] sm:$0xff] %v531_v22  ;;  %534 = vst [vmem:[%s7552_s26 + $0x210] sm:$0xff] %v533_v23  ;;  %v537_v25 = vld [vmem:[%s7556_s27 + $0x514] sm:$0xff]  ;;  %v541_v27 = vld [vmem:[%s7556_s27 + $0x5dc] sm:$0xff] }
  0x75   : >> { %v539_v26 = vld [vmem:[%s7556_s27 + $0x578] sm:$0xff]  ;;  %536 = vst [vmem:[%s7552_s26 + $0x240] sm:$0xff] %v535_v24  ;;  %538 = vst [vmem:[%s7552_s26 + $0x270] sm:$0xff] %v537_v25  ;;  %v543_v28 = vld [vmem:[%s7556_s27 + $0x640] sm:$0xff] }
  0x76   : >> { %540 = vst [vmem:[%s7552_s26 + $0x2a0] sm:$0xff] %v539_v26  ;;  %v545_v29 = vld [vmem:[%s7556_s27 + $0x6a4] sm:$0xff]  ;;  %542 = vst [vmem:[%s7552_s26 + $0x2d0] sm:$0xff] %v541_v27  ;;  %v549_v31 = vld [vmem:[%s7556_s27 + $0x76c] sm:$0xff] }
  0x77   : >> { %544 = vst [vmem:[%s7552_s26 + $0x300] sm:$0xff] %v543_v28  ;;  %546 = vst [vmem:[%s7552_s26 + $0x330] sm:$0xff] %v545_v29  ;;  %v547_v30 = vld [vmem:[%s7556_s27 + $0x708] sm:$0xff]  ;;  %v551_v32 = vld [vmem:[%s7556_s27 + $0x7d0] sm:$0xff] }
  0x78   : >> { %548 = vst [vmem:[%s7552_s26 + $0x360] sm:$0xff] %v547_v30  ;;  %550 = vst [vmem:[%s7552_s26 + $0x390] sm:$0xff] %v549_v31  ;;  %v553_v33 = vld [vmem:[%s7556_s27 + $0x834] sm:$0xff]  ;;  %v557_v35 = vld [vmem:[%s7556_s27 + $0x8fc] sm:$0xff] }
  0x79   : >> { %552 = vst [vmem:[%s7552_s26 + $0x3c0] sm:$0xff] %v551_v32  ;;  %v555_v34 = vld [vmem:[%s7556_s27 + $0x898] sm:$0xff]  ;;  %554 = vst [vmem:[%s7552_s26 + $0x3f0] sm:$0xff] %v553_v33  ;;  %v559_v36 = vld [vmem:[%s7556_s27 + $0x960] sm:$0xff] }
  0x7a   : >> { %556 = vst [vmem:[%s7552_s26 + $0x420] sm:$0xff] %v555_v34  ;;  %558 = vst [vmem:[%s7552_s26 + $0x450] sm:$0xff] %v557_v35  ;;  %v561_v37 = vld [vmem:[%s7556_s27 + $0x9c4] sm:$0xff]  ;;  %v565_v39 = vld [vmem:[%s7556_s27 + $0xa8c] sm:$0xff] }
  0x7b   : >> { %v563_v38 = vld [vmem:[%s7556_s27 + $0xa28] sm:$0xff]  ;;  %560 = vst [vmem:[%s7552_s26 + $0x480] sm:$0xff] %v559_v36  ;;  %562 = vst [vmem:[%s7552_s26 + $0x4b0] sm:$0xff] %v561_v37  ;;  %v567_v40 = vld [vmem:[%s7556_s27 + $0xaf0] sm:$0xff] }
  0x7c   : >> { %564 = vst [vmem:[%s7552_s26 + $0x4e0] sm:$0xff] %v563_v38  ;;  %v569_v41 = vld [vmem:[%s7556_s27 + $0xb54] sm:$0xff]  ;;  %566 = vst [vmem:[%s7552_s26 + $0x510] sm:$0xff] %v565_v39  ;;  %v573_v43 = vld [vmem:[%s7556_s27 + $0xc1c] sm:$0xff] }
  0x7d   : >> { %568 = vst [vmem:[%s7552_s26 + $0x540] sm:$0xff] %v567_v40  ;;  %570 = vst [vmem:[%s7552_s26 + $0x570] sm:$0xff] %v569_v41  ;;  %v571_v42 = vld [vmem:[%s7556_s27 + $0xbb8] sm:$0xff]  ;;  %v575_v44 = vld [vmem:[%s7556_s27 + $0xc80] sm:$0xff] }
  0x7e   : >> { %572 = vst [vmem:[%s7552_s26 + $0x5a0] sm:$0xff] %v571_v42  ;;  %574 = vst [vmem:[%s7552_s26 + $0x5d0] sm:$0xff] %v573_v43  ;;  %v577_v45 = vld [vmem:[%s7556_s27 + $0xce4] sm:$0xff]  ;;  %v581_v47 = vld [vmem:[%s7556_s27 + $0xdac] sm:$0xff] }
  0x7f   : >> { %576 = vst [vmem:[%s7552_s26 + $0x600] sm:$0xff] %v575_v44  ;;  %v579_v46 = vld [vmem:[%s7556_s27 + $0xd48] sm:$0xff]  ;;  %578 = vst [vmem:[%s7552_s26 + $0x630] sm:$0xff] %v577_v45  ;;  %v583_v48 = vld [vmem:[%s7556_s27 + $0xe10] sm:$0xff] }
  0x80   : >> { %580 = vst [vmem:[%s7552_s26 + $0x660] sm:$0xff] %v579_v46  ;;  %582 = vst [vmem:[%s7552_s26 + $0x690] sm:$0xff] %v581_v47  ;;  %v585_v49 = vld [vmem:[%s7556_s27 + $0xe74] sm:$0xff]  ;;  %v589_v51 = vld [vmem:[%s7556_s27 + $0xf3c] sm:$0xff] }
  0x81   : >> { %v587_v50 = vld [vmem:[%s7556_s27 + $0xed8] sm:$0xff]  ;;  %584 = vst [vmem:[%s7552_s26 + $0x6c0] sm:$0xff] %v583_v48  ;;  %586 = vst [vmem:[%s7552_s26 + $0x6f0] sm:$0xff] %v585_v49  ;;  %v591_v52 = vld [vmem:[%s7556_s27 + $0xfa0] sm:$0xff] }
  0x82   : >> { %588 = vst [vmem:[%s7552_s26 + $0x720] sm:$0xff] %v587_v50  ;;  %v593_v53 = vld [vmem:[%s7556_s27 + $0x1004] sm:$0xff]  ;;  %590 = vst [vmem:[%s7552_s26 + $0x750] sm:$0xff] %v589_v51  ;;  %v597_v55 = vld [vmem:[%s7556_s27 + $0x10cc] sm:$0xff] }
  0x83   : >> { %592 = vst [vmem:[%s7552_s26 + $0x780] sm:$0xff] %v591_v52  ;;  %594 = vst [vmem:[%s7552_s26 + $0x7b0] sm:$0xff] %v593_v53  ;;  %v595_v54 = vld [vmem:[%s7556_s27 + $0x1068] sm:$0xff]  ;;  %v599_v56 = vld [vmem:[%s7556_s27 + $0x1130] sm:$0xff] }
  0x84   : >> { %596 = vst [vmem:[%s7552_s26 + $0x7e0] sm:$0xff] %v595_v54  ;;  %598 = vst [vmem:[%s7552_s26 + $0x810] sm:$0xff] %v597_v55  ;;  %v601_v57 = vld [vmem:[%s7556_s27 + $0x1194] sm:$0xff]  ;;  %v605_v59 = vld [vmem:[%s7556_s27 + $0x125c] sm:$0xff] }
  0x85   : >> { %600 = vst [vmem:[%s7552_s26 + $0x840] sm:$0xff] %v599_v56  ;;  %v603_v58 = vld [vmem:[%s7556_s27 + $0x11f8] sm:$0xff]  ;;  %602 = vst [vmem:[%s7552_s26 + $0x870] sm:$0xff] %v601_v57  ;;  %v607_v60 = vld [vmem:[%s7556_s27 + $0x12c0] sm:$0xff] }
  0x86   : >> { %604 = vst [vmem:[%s7552_s26 + $0x8a0] sm:$0xff] %v603_v58  ;;  %606 = vst [vmem:[%s7552_s26 + $0x8d0] sm:$0xff] %v605_v59  ;;  %v609_v61 = vld [vmem:[%s7556_s27 + $0x1324] sm:$0xff]  ;;  %v613_v63 = vld [vmem:[%s7556_s27 + $0x13ec] sm:$0xff] }
  0x87   : >> { %v611_v62 = vld [vmem:[%s7556_s27 + $0x1388] sm:$0xff]  ;;  %608 = vst [vmem:[%s7552_s26 + $0x900] sm:$0xff] %v607_v60  ;;  %610 = vst [vmem:[%s7552_s26 + $0x930] sm:$0xff] %v609_v61  ;;  %v615_v0 = vld [vmem:[%s7556_s27 + $0x1450] sm:$0xff] }
  0x88   : >> { %612 = vst [vmem:[%s7552_s26 + $0x960] sm:$0xff] %v611_v62  ;;  %v617_v1 = vld [vmem:[%s7556_s27 + $0x14b4] sm:$0xff]  ;;  %614 = vst [vmem:[%s7552_s26 + $0x990] sm:$0xff] %v613_v63  ;;  %v621_v3 = vld [vmem:[%s7556_s27 + $0x157c] sm:$0xff] }
  0x89   : >> { %616 = vst [vmem:[%s7552_s26 + $0x9c0] sm:$0xff] %v615_v0  ;;  %618 = vst [vmem:[%s7552_s26 + $0x9f0] sm:$0xff] %v617_v1  ;;  %v619_v2 = vld [vmem:[%s7556_s27 + $0x1518] sm:$0xff]  ;;  %v623_v4 = vld [vmem:[%s7556_s27 + $0x15e0] sm:$0xff] }
  0x8a   : >> { %620 = vst [vmem:[%s7552_s26 + $0xa20] sm:$0xff] %v619_v2  ;;  %622 = vst [vmem:[%s7552_s26 + $0xa50] sm:$0xff] %v621_v3  ;;  %v625_v5 = vld [vmem:[%s7556_s27 + $0x1644] sm:$0xff]  ;;  %v629_v7 = vld [vmem:[%s7556_s27 + $0x170c] sm:$0xff] }
  0x8b   : >> { %624 = vst [vmem:[%s7552_s26 + $0xa80] sm:$0xff] %v623_v4  ;;  %v627_v6 = vld [vmem:[%s7556_s27 + $0x16a8] sm:$0xff]  ;;  %626 = vst [vmem:[%s7552_s26 + $0xab0] sm:$0xff] %v625_v5  ;;  %v631_v8 = vld [vmem:[%s7556_s27 + $0x1770] sm:$0xff] }
  0x8c   : >> { %628 = vst [vmem:[%s7552_s26 + $0xae0] sm:$0xff] %v627_v6  ;;  %630 = vst [vmem:[%s7552_s26 + $0xb10] sm:$0xff] %v629_v7  ;;  %v633_v9 = vld [vmem:[%s7556_s27 + $0x17d4] sm:$0xff]  ;;  %v637_v11 = vld [vmem:[%s7556_s27 + $0x189c] sm:$0xff] }
  0x8d   : >> { %v635_v10 = vld [vmem:[%s7556_s27 + $0x1838] sm:$0xff]  ;;  %632 = vst [vmem:[%s7552_s26 + $0xb40] sm:$0xff] %v631_v8  ;;  %634 = vst [vmem:[%s7552_s26 + $0xb70] sm:$0xff] %v633_v9  ;;  %v639_v12 = vld [vmem:[%s7556_s27 + $0x1900] sm:$0xff] }
  0x8e   : >> { %636 = vst [vmem:[%s7552_s26 + $0xba0] sm:$0xff] %v635_v10  ;;  %v641_v13 = vld [vmem:[%s7556_s27 + $0x1964] sm:$0xff]  ;;  %638 = vst [vmem:[%s7552_s26 + $0xbd0] sm:$0xff] %v637_v11  ;;  %v645_v15 = vld [vmem:[%s7556_s27 + $0x1a2c] sm:$0xff]  ;;  %507 = sbr.rel (!%p504_p3) target bundleno = 110 (0x6e), region = 227 }
  0x8f   : >> { %640 = vst [vmem:[%s7552_s26 + $0xc00] sm:$0xff] %v639_v12  ;;  %642 = vst [vmem:[%s7552_s26 + $0xc30] sm:$0xff] %v641_v13  ;;  %v643_v14 = vld [vmem:[%s7556_s27 + $0x19c8] sm:$0xff]  ;;  %v647_v16 = vld [vmem:[%s7556_s27 + $0x1a90] sm:$0xff] }
  0x90   : >> { %644 = vst [vmem:[%s7552_s26 + $0xc60] sm:$0xff] %v643_v14  ;;  %646 = vst [vmem:[%s7552_s26 + $0xc90] sm:$0xff] %v645_v15  ;;  %v649_v17 = vld [vmem:[%s7556_s27 + $0x1af4] sm:$0xff]  ;;  %v653_v19 = vld [vmem:[%s7556_s27 + $0x1bbc] sm:$0xff] }
  0x91   : >> { %648 = vst [vmem:[%s7552_s26 + $0xcc0] sm:$0xff] %v647_v16  ;;  %v651_v18 = vld [vmem:[%s7556_s27 + $0x1b58] sm:$0xff]  ;;  %650 = vst [vmem:[%s7552_s26 + $0xcf0] sm:$0xff] %v649_v17  ;;  %v655_v20 = vld [vmem:[%s7556_s27 + $0x1c20] sm:$0xff] }
  0x92   : >> { %652 = vst [vmem:[%s7552_s26 + $0xd20] sm:$0xff] %v651_v18  ;;  %654 = vst [vmem:[%s7552_s26 + $0xd50] sm:$0xff] %v653_v19  ;;  %v657_v21 = vld [vmem:[%s7556_s27 + $0x1c84] sm:$0xff]  ;;  %v661_v23 = vld [vmem:[%s7556_s27 + $0x1d4c] sm:$0xff] }
  0x93   : >> { %v659_v22 = vld [vmem:[%s7556_s27 + $0x1ce8] sm:$0xff]  ;;  %656 = vst [vmem:[%s7552_s26 + $0xd80] sm:$0xff] %v655_v20  ;;  %658 = vst [vmem:[%s7552_s26 + $0xdb0] sm:$0xff] %v657_v21  ;;  %s10091_s27 = smov %s7986_s9 }
  0x94   : >> { %660 = vst [vmem:[%s7552_s26 + $0xde0] sm:$0xff] %v659_v22  ;;  %662 = vst [vmem:[%s7552_s26 + $0xe10] sm:$0xff] %v661_v23  ;;  %s10090_s26 = smov %s7989_s10 }
  0x95 PF: > { %s7630_s11 = smov 0  }
  0x96   : > { %s8118_s17 = sshllo.u32 %s7630_s11, %s7705_s5 }
  0x97   : > { %v679_v24 = vld [vmem:[%s7916_s24] sm:%s8118_s17]  ;;  %v683_v26 = vld [vmem:[%s7916_s24 + $0xc8] sm:%s8118_s17] }
  0x98   : > { %v681_v25 = vld [vmem:[%s7916_s24 + $0x64] sm:%s8118_s17]  ;;  %680 = vst [vmem:[%s7919_s25] sm:%s8118_s17] %v679_v24 }
  0x99   : > { %682 = vst [vmem:[%s7919_s25 + $0x30] sm:%s8118_s17] %v681_v25  ;;  %v685_v27 = vld [vmem:[%s7916_s24 + $0x12c] sm:%s8118_s17] }
  0x9a   : > { %684 = vst [vmem:[%s7919_s25 + $0x60] sm:%s8118_s17] %v683_v26  ;;  %686 = vst [vmem:[%s7919_s25 + $0x90] sm:%s8118_s17] %v685_v27 }
  0x9b   : > { %v687_v28 = vld [vmem:[%s7916_s24 + $0x190] sm:%s8118_s17]  ;;  %v691_v30 = vld [vmem:[%s7916_s24 + $0x258] sm:%s8118_s17] }
  0x9c   : > { %v689_v29 = vld [vmem:[%s7916_s24 + $0x1f4] sm:%s8118_s17]  ;;  %688 = vst [vmem:[%s7919_s25 + $0xc0] sm:%s8118_s17] %v687_v28 }
  0x9d   : > { %690 = vst [vmem:[%s7919_s25 + $0xf0] sm:%s8118_s17] %v689_v29  ;;  %v693_v31 = vld [vmem:[%s7916_s24 + $0x2bc] sm:%s8118_s17] }
  0x9e   : > { %692 = vst [vmem:[%s7919_s25 + $0x120] sm:%s8118_s17] %v691_v30  ;;  %694 = vst [vmem:[%s7919_s25 + $0x150] sm:%s8118_s17] %v693_v31 }
  0x9f   : > { %v695_v32 = vld [vmem:[%s7916_s24 + $0x320] sm:%s8118_s17]  ;;  %v699_v34 = vld [vmem:[%s7916_s24 + $0x3e8] sm:%s8118_s17] }
  0xa0   : > { %v697_v33 = vld [vmem:[%s7916_s24 + $0x384] sm:%s8118_s17]  ;;  %696 = vst [vmem:[%s7919_s25 + $0x180] sm:%s8118_s17] %v695_v32 }
  0xa1   : > { %698 = vst [vmem:[%s7919_s25 + $0x1b0] sm:%s8118_s17] %v697_v33  ;;  %v701_v35 = vld [vmem:[%s7916_s24 + $0x44c] sm:%s8118_s17] }
  0xa2   : > { %700 = vst [vmem:[%s7919_s25 + $0x1e0] sm:%s8118_s17] %v699_v34  ;;  %702 = vst [vmem:[%s7919_s25 + $0x210] sm:%s8118_s17] %v701_v35 }
  0xa3   : > { %v703_v36 = vld [vmem:[%s7916_s24 + $0x4b0] sm:%s8118_s17]  ;;  %v707_v38 = vld [vmem:[%s7916_s24 + $0x578] sm:%s8118_s17] }
  0xa4   : > { %v705_v37 = vld [vmem:[%s7916_s24 + $0x514] sm:%s8118_s17]  ;;  %704 = vst [vmem:[%s7919_s25 + $0x240] sm:%s8118_s17] %v703_v36 }
  0xa5   : > { %706 = vst [vmem:[%s7919_s25 + $0x270] sm:%s8118_s17] %v705_v37  ;;  %v709_v39 = vld [vmem:[%s7916_s24 + $0x5dc] sm:%s8118_s17] }
  0xa6   : > { %708 = vst [vmem:[%s7919_s25 + $0x2a0] sm:%s8118_s17] %v707_v38  ;;  %710 = vst [vmem:[%s7919_s25 + $0x2d0] sm:%s8118_s17] %v709_v39 }
  0xa7   : > { %v711_v40 = vld [vmem:[%s7916_s24 + $0x640] sm:%s8118_s17]  ;;  %v715_v42 = vld [vmem:[%s7916_s24 + $0x708] sm:%s8118_s17] }
  0xa8   : > { %v713_v41 = vld [vmem:[%s7916_s24 + $0x6a4] sm:%s8118_s17]  ;;  %712 = vst [vmem:[%s7919_s25 + $0x300] sm:%s8118_s17] %v711_v40 }
  0xa9   : > { %714 = vst [vmem:[%s7919_s25 + $0x330] sm:%s8118_s17] %v713_v41  ;;  %v717_v43 = vld [vmem:[%s7916_s24 + $0x76c] sm:%s8118_s17] }
  0xaa   : > { %716 = vst [vmem:[%s7919_s25 + $0x360] sm:%s8118_s17] %v715_v42  ;;  %718 = vst [vmem:[%s7919_s25 + $0x390] sm:%s8118_s17] %v717_v43 }
  0xab   : > { %v719_v44 = vld [vmem:[%s7916_s24 + $0x7d0] sm:%s8118_s17]  ;;  %v723_v46 = vld [vmem:[%s7916_s24 + $0x898] sm:%s8118_s17] }
  0xac   : > { %v721_v45 = vld [vmem:[%s7916_s24 + $0x834] sm:%s8118_s17]  ;;  %720 = vst [vmem:[%s7919_s25 + $0x3c0] sm:%s8118_s17] %v719_v44 }
  0xad   : > { %722 = vst [vmem:[%s7919_s25 + $0x3f0] sm:%s8118_s17] %v721_v45  ;;  %v725_v47 = vld [vmem:[%s7916_s24 + $0x8fc] sm:%s8118_s17] }
  0xae   : > { %724 = vst [vmem:[%s7919_s25 + $0x420] sm:%s8118_s17] %v723_v46  ;;  %726 = vst [vmem:[%s7919_s25 + $0x450] sm:%s8118_s17] %v725_v47 }
  0xaf   : > { %v727_v48 = vld [vmem:[%s7916_s24 + $0x960] sm:%s8118_s17]  ;;  %v731_v50 = vld [vmem:[%s7916_s24 + $0xa28] sm:%s8118_s17] }
  0xb0   : > { %v729_v49 = vld [vmem:[%s7916_s24 + $0x9c4] sm:%s8118_s17]  ;;  %728 = vst [vmem:[%s7919_s25 + $0x480] sm:%s8118_s17] %v727_v48 }
  0xb1   : > { %730 = vst [vmem:[%s7919_s25 + $0x4b0] sm:%s8118_s17] %v729_v49  ;;  %v733_v51 = vld [vmem:[%s7916_s24 + $0xa8c] sm:%s8118_s17] }
  0xb2   : > { %732 = vst [vmem:[%s7919_s25 + $0x4e0] sm:%s8118_s17] %v731_v50  ;;  %734 = vst [vmem:[%s7919_s25 + $0x510] sm:%s8118_s17] %v733_v51 }
  0xb3   : > { %v735_v52 = vld [vmem:[%s7916_s24 + $0xaf0] sm:%s8118_s17]  ;;  %v739_v54 = vld [vmem:[%s7916_s24 + $0xbb8] sm:%s8118_s17] }
  0xb4   : > { %v737_v53 = vld [vmem:[%s7916_s24 + $0xb54] sm:%s8118_s17]  ;;  %736 = vst [vmem:[%s7919_s25 + $0x540] sm:%s8118_s17] %v735_v52 }
  0xb5   : > { %738 = vst [vmem:[%s7919_s25 + $0x570] sm:%s8118_s17] %v737_v53  ;;  %v741_v55 = vld [vmem:[%s7916_s24 + $0xc1c] sm:%s8118_s17] }
  0xb6   : > { %740 = vst [vmem:[%s7919_s25 + $0x5a0] sm:%s8118_s17] %v739_v54  ;;  %742 = vst [vmem:[%s7919_s25 + $0x5d0] sm:%s8118_s17] %v741_v55 }
  0xb7   : > { %v743_v56 = vld [vmem:[%s7916_s24 + $0xc80] sm:%s8118_s17]  ;;  %v747_v58 = vld [vmem:[%s7916_s24 + $0xd48] sm:%s8118_s17] }
  0xb8   : > { %v745_v57 = vld [vmem:[%s7916_s24 + $0xce4] sm:%s8118_s17]  ;;  %744 = vst [vmem:[%s7919_s25 + $0x600] sm:%s8118_s17] %v743_v56 }
  0xb9   : > { %746 = vst [vmem:[%s7919_s25 + $0x630] sm:%s8118_s17] %v745_v57  ;;  %v749_v59 = vld [vmem:[%s7916_s24 + $0xdac] sm:%s8118_s17] }
  0xba   : > { %748 = vst [vmem:[%s7919_s25 + $0x660] sm:%s8118_s17] %v747_v58  ;;  %750 = vst [vmem:[%s7919_s25 + $0x690] sm:%s8118_s17] %v749_v59 }
  0xbb   : > { %v751_v60 = vld [vmem:[%s7916_s24 + $0xe10] sm:%s8118_s17]  ;;  %v755_v62 = vld [vmem:[%s7916_s24 + $0xed8] sm:%s8118_s17] }
  0xbc   : > { %v753_v61 = vld [vmem:[%s7916_s24 + $0xe74] sm:%s8118_s17]  ;;  %752 = vst [vmem:[%s7919_s25 + $0x6c0] sm:%s8118_s17] %v751_v60 }
  0xbd   : > { %754 = vst [vmem:[%s7919_s25 + $0x6f0] sm:%s8118_s17] %v753_v61  ;;  %v757_v63 = vld [vmem:[%s7916_s24 + $0xf3c] sm:%s8118_s17] }
  0xbe   : > { %756 = vst [vmem:[%s7919_s25 + $0x720] sm:%s8118_s17] %v755_v62  ;;  %758 = vst [vmem:[%s7919_s25 + $0x750] sm:%s8118_s17] %v757_v63 }
  0xbf   : > { %v759_v0 = vld [vmem:[%s7916_s24 + $0xfa0] sm:%s8118_s17]  ;;  %v763_v2 = vld [vmem:[%s7916_s24 + $0x1068] sm:%s8118_s17] }
  0xc0   : > { %v761_v1 = vld [vmem:[%s7916_s24 + $0x1004] sm:%s8118_s17]  ;;  %760 = vst [vmem:[%s7919_s25 + $0x780] sm:%s8118_s17] %v759_v0 }
  0xc1   : > { %762 = vst [vmem:[%s7919_s25 + $0x7b0] sm:%s8118_s17] %v761_v1  ;;  %v765_v3 = vld [vmem:[%s7916_s24 + $0x10cc] sm:%s8118_s17] }
  0xc2   : > { %764 = vst [vmem:[%s7919_s25 + $0x7e0] sm:%s8118_s17] %v763_v2  ;;  %766 = vst [vmem:[%s7919_s25 + $0x810] sm:%s8118_s17] %v765_v3 }
  0xc3   : > { %v767_v4 = vld [vmem:[%s7916_s24 + $0x1130] sm:%s8118_s17]  ;;  %v771_v6 = vld [vmem:[%s7916_s24 + $0x11f8] sm:%s8118_s17] }
  0xc4   : > { %v769_v5 = vld [vmem:[%s7916_s24 + $0x1194] sm:%s8118_s17]  ;;  %768 = vst [vmem:[%s7919_s25 + $0x840] sm:%s8118_s17] %v767_v4 }
  0xc5   : > { %770 = vst [vmem:[%s7919_s25 + $0x870] sm:%s8118_s17] %v769_v5  ;;  %v773_v7 = vld [vmem:[%s7916_s24 + $0x125c] sm:%s8118_s17] }
  0xc6   : > { %772 = vst [vmem:[%s7919_s25 + $0x8a0] sm:%s8118_s17] %v771_v6  ;;  %774 = vst [vmem:[%s7919_s25 + $0x8d0] sm:%s8118_s17] %v773_v7 }
  0xc7   : > { %v775_v8 = vld [vmem:[%s7916_s24 + $0x12c0] sm:%s8118_s17]  ;;  %v779_v10 = vld [vmem:[%s7916_s24 + $0x1388] sm:%s8118_s17] }
  0xc8   : > { %v777_v9 = vld [vmem:[%s7916_s24 + $0x1324] sm:%s8118_s17]  ;;  %776 = vst [vmem:[%s7919_s25 + $0x900] sm:%s8118_s17] %v775_v8 }
  0xc9   : > { %778 = vst [vmem:[%s7919_s25 + $0x930] sm:%s8118_s17] %v777_v9  ;;  %v781_v11 = vld [vmem:[%s7916_s24 + $0x13ec] sm:%s8118_s17] }
  0xca   : > { %780 = vst [vmem:[%s7919_s25 + $0x960] sm:%s8118_s17] %v779_v10  ;;  %782 = vst [vmem:[%s7919_s25 + $0x990] sm:%s8118_s17] %v781_v11 }
  0xcb   : > { %v783_v12 = vld [vmem:[%s7916_s24 + $0x1450] sm:%s8118_s17]  ;;  %v787_v14 = vld [vmem:[%s7916_s24 + $0x1518] sm:%s8118_s17] }
  0xcc   : > { %v785_v13 = vld [vmem:[%s7916_s24 + $0x14b4] sm:%s8118_s17]  ;;  %784 = vst [vmem:[%s7919_s25 + $0x9c0] sm:%s8118_s17] %v783_v12 }
  0xcd   : > { %786 = vst [vmem:[%s7919_s25 + $0x9f0] sm:%s8118_s17] %v785_v13  ;;  %v789_v15 = vld [vmem:[%s7916_s24 + $0x157c] sm:%s8118_s17] }
  0xce   : > { %788 = vst [vmem:[%s7919_s25 + $0xa20] sm:%s8118_s17] %v787_v14  ;;  %790 = vst [vmem:[%s7919_s25 + $0xa50] sm:%s8118_s17] %v789_v15 }
  0xcf   : > { %v791_v16 = vld [vmem:[%s7916_s24 + $0x15e0] sm:%s8118_s17]  ;;  %v795_v18 = vld [vmem:[%s7916_s24 + $0x16a8] sm:%s8118_s17] }
  0xd0   : > { %v793_v17 = vld [vmem:[%s7916_s24 + $0x1644] sm:%s8118_s17]  ;;  %792 = vst [vmem:[%s7919_s25 + $0xa80] sm:%s8118_s17] %v791_v16 }
  0xd1   : > { %794 = vst [vmem:[%s7919_s25 + $0xab0] sm:%s8118_s17] %v793_v17  ;;  %v797_v19 = vld [vmem:[%s7916_s24 + $0x170c] sm:%s8118_s17] }
  0xd2   : > { %796 = vst [vmem:[%s7919_s25 + $0xae0] sm:%s8118_s17] %v795_v18  ;;  %798 = vst [vmem:[%s7919_s25 + $0xb10] sm:%s8118_s17] %v797_v19 }
  0xd3   : > { %v799_v20 = vld [vmem:[%s7916_s24 + $0x1770] sm:%s8118_s17]  ;;  %v803_v22 = vld [vmem:[%s7916_s24 + $0x1838] sm:%s8118_s17] }
  0xd4   : > { %v801_v21 = vld [vmem:[%s7916_s24 + $0x17d4] sm:%s8118_s17]  ;;  %800 = vst [vmem:[%s7919_s25 + $0xb40] sm:%s8118_s17] %v799_v20 }
  0xd5   : > { %802 = vst [vmem:[%s7919_s25 + $0xb70] sm:%s8118_s17] %v801_v21  ;;  %v805_v23 = vld [vmem:[%s7916_s24 + $0x189c] sm:%s8118_s17] }
  0xd6   : > { %804 = vst [vmem:[%s7919_s25 + $0xba0] sm:%s8118_s17] %v803_v22  ;;  %806 = vst [vmem:[%s7919_s25 + $0xbd0] sm:%s8118_s17] %v805_v23 }
  0xd7   : > { %v807_v24 = vld [vmem:[%s7916_s24 + $0x1900] sm:%s8118_s17]  ;;  %v811_v26 = vld [vmem:[%s7916_s24 + $0x19c8] sm:%s8118_s17] }
  0xd8   : > { %v809_v25 = vld [vmem:[%s7916_s24 + $0x1964] sm:%s8118_s17]  ;;  %808 = vst [vmem:[%s7919_s25 + $0xc00] sm:%s8118_s17] %v807_v24 }
  0xd9   : > { %810 = vst [vmem:[%s7919_s25 + $0xc30] sm:%s8118_s17] %v809_v25  ;;  %v813_v27 = vld [vmem:[%s7916_s24 + $0x1a2c] sm:%s8118_s17] }
  0xda   : > { %812 = vst [vmem:[%s7919_s25 + $0xc60] sm:%s8118_s17] %v811_v26  ;;  %814 = vst [vmem:[%s7919_s25 + $0xc90] sm:%s8118_s17] %v813_v27 }
  0xdb   : > { %v815_v28 = vld [vmem:[%s7916_s24 + $0x1a90] sm:%s8118_s17]  ;;  %v819_v30 = vld [vmem:[%s7916_s24 + $0x1b58] sm:%s8118_s17] }
  0xdc   : > { %v817_v29 = vld [vmem:[%s7916_s24 + $0x1af4] sm:%s8118_s17]  ;;  %816 = vst [vmem:[%s7919_s25 + $0xcc0] sm:%s8118_s17] %v815_v28 }
  0xdd   : > { %818 = vst [vmem:[%s7919_s25 + $0xcf0] sm:%s8118_s17] %v817_v29  ;;  %v821_v31 = vld [vmem:[%s7916_s24 + $0x1bbc] sm:%s8118_s17] }
  0xde   : > { %820 = vst [vmem:[%s7919_s25 + $0xd20] sm:%s8118_s17] %v819_v30  ;;  %822 = vst [vmem:[%s7919_s25 + $0xd50] sm:%s8118_s17] %v821_v31 }
  0xdf   : > { %v823_v32 = vld [vmem:[%s7916_s24 + $0x1c20] sm:%s8118_s17]  ;;  %v827_v34 = vld [vmem:[%s7916_s24 + $0x1ce8] sm:%s8118_s17] }
  0xe0   : > { %v825_v33 = vld [vmem:[%s7916_s24 + $0x1c84] sm:%s8118_s17]  ;;  %824 = vst [vmem:[%s7919_s25 + $0xd80] sm:%s8118_s17] %v823_v32 }
  0xe1   : > { %826 = vst [vmem:[%s7919_s25 + $0xdb0] sm:%s8118_s17] %v825_v33  ;;  %v829_v35 = vld [vmem:[%s7916_s24 + $0x1d4c] sm:%s8118_s17] }
  0xe2   : > { %828 = vst [vmem:[%s7919_s25 + $0xde0] sm:%s8118_s17] %v827_v34  ;;  %830 = vst [vmem:[%s7919_s25 + $0xe10] sm:%s8118_s17] %v829_v35 }
  0xe3 PF: > { %p5579_p4 = scmp.ge.u32.totalorder %s7699_s30, 8 }
  0xe4   : > { %s7631_s5 = smov (!%p5579_p4), 0  }
  0xe5   : > { %153 = sbr.rel (%p5579_p4) target bundleno = 306 (0x132), region = 40  ;;  %s8426_s18 = sshllo.u32 (!%p5579_p4), %s7631_s5, %s7699_s30 }
  0xe6   : > { %v163_v36 = vld [vmem:[%s7697_s28] sm:%s8426_s18] (!%p5579_p4)  ;;  %v167_v38 = vld [vmem:[%s7697_s28 + $0xc8] sm:%s8426_s18] (!%p5579_p4) }
  0xe7   : > { %v165_v37 = vld [vmem:[%s7697_s28 + $0x64] sm:%s8426_s18] (!%p5579_p4)  ;;  %164 = vst [vmem:[%s7701_s4] sm:%s8426_s18] (!%p5579_p4), %v163_v36 }
  0xe8   : > { %166 = vst [vmem:[%s7701_s4 + $0x30] sm:%s8426_s18] (!%p5579_p4), %v165_v37  ;;  %v169_v39 = vld [vmem:[%s7697_s28 + $0x12c] sm:%s8426_s18] (!%p5579_p4) }
  0xe9   : > { %168 = vst [vmem:[%s7701_s4 + $0x60] sm:%s8426_s18] (!%p5579_p4), %v167_v38  ;;  %170 = vst [vmem:[%s7701_s4 + $0x90] sm:%s8426_s18] (!%p5579_p4), %v169_v39 }
  0xea   : > { %v171_v40 = vld [vmem:[%s7697_s28 + $0x190] sm:%s8426_s18] (!%p5579_p4)  ;;  %v175_v42 = vld [vmem:[%s7697_s28 + $0x258] sm:%s8426_s18] (!%p5579_p4) }
  0xeb   : > { %v173_v41 = vld [vmem:[%s7697_s28 + $0x1f4] sm:%s8426_s18] (!%p5579_p4)  ;;  %172 = vst [vmem:[%s7701_s4 + $0xc0] sm:%s8426_s18] (!%p5579_p4), %v171_v40 }
  0xec   : > { %174 = vst [vmem:[%s7701_s4 + $0xf0] sm:%s8426_s18] %v173_v41  ;;  %v177_v43 = vld [vmem:[%s7697_s28 + $0x2bc] sm:%s8426_s18] }
  0xed   : > { %176 = vst [vmem:[%s7701_s4 + $0x120] sm:%s8426_s18] %v175_v42  ;;  %178 = vst [vmem:[%s7701_s4 + $0x150] sm:%s8426_s18] %v177_v43 }
  0xee   : > { %v179_v44 = vld [vmem:[%s7697_s28 + $0x320] sm:%s8426_s18]  ;;  %v183_v46 = vld [vmem:[%s7697_s28 + $0x3e8] sm:%s8426_s18] }
  0xef   : > { %v181_v45 = vld [vmem:[%s7697_s28 + $0x384] sm:%s8426_s18]  ;;  %180 = vst [vmem:[%s7701_s4 + $0x180] sm:%s8426_s18] %v179_v44 }
  0xf0   : > { %182 = vst [vmem:[%s7701_s4 + $0x1b0] sm:%s8426_s18] %v181_v45  ;;  %v185_v47 = vld [vmem:[%s7697_s28 + $0x44c] sm:%s8426_s18] }
  0xf1   : > { %184 = vst [vmem:[%s7701_s4 + $0x1e0] sm:%s8426_s18] %v183_v46  ;;  %186 = vst [vmem:[%s7701_s4 + $0x210] sm:%s8426_s18] %v185_v47 }
  0xf2   : > { %v187_v48 = vld [vmem:[%s7697_s28 + $0x4b0] sm:%s8426_s18]  ;;  %v191_v50 = vld [vmem:[%s7697_s28 + $0x578] sm:%s8426_s18] }
  0xf3   : > { %v189_v49 = vld [vmem:[%s7697_s28 + $0x514] sm:%s8426_s18]  ;;  %188 = vst [vmem:[%s7701_s4 + $0x240] sm:%s8426_s18] %v187_v48 }
  0xf4   : > { %190 = vst [vmem:[%s7701_s4 + $0x270] sm:%s8426_s18] %v189_v49  ;;  %v193_v51 = vld [vmem:[%s7697_s28 + $0x5dc] sm:%s8426_s18] }
  0xf5   : > { %192 = vst [vmem:[%s7701_s4 + $0x2a0] sm:%s8426_s18] %v191_v50  ;;  %194 = vst [vmem:[%s7701_s4 + $0x2d0] sm:%s8426_s18] %v193_v51 }
  0xf6   : > { %v195_v52 = vld [vmem:[%s7697_s28 + $0x640] sm:%s8426_s18]  ;;  %v199_v54 = vld [vmem:[%s7697_s28 + $0x708] sm:%s8426_s18] }
  0xf7   : > { %v197_v53 = vld [vmem:[%s7697_s28 + $0x6a4] sm:%s8426_s18]  ;;  %196 = vst [vmem:[%s7701_s4 + $0x300] sm:%s8426_s18] %v195_v52 }
  0xf8   : > { %198 = vst [vmem:[%s7701_s4 + $0x330] sm:%s8426_s18] %v197_v53  ;;  %v201_v55 = vld [vmem:[%s7697_s28 + $0x76c] sm:%s8426_s18] }
  0xf9   : > { %200 = vst [vmem:[%s7701_s4 + $0x360] sm:%s8426_s18] %v199_v54  ;;  %202 = vst [vmem:[%s7701_s4 + $0x390] sm:%s8426_s18] %v201_v55 }
  0xfa   : > { %v203_v56 = vld [vmem:[%s7697_s28 + $0x7d0] sm:%s8426_s18]  ;;  %v207_v58 = vld [vmem:[%s7697_s28 + $0x898] sm:%s8426_s18] }
  0xfb   : > { %v205_v57 = vld [vmem:[%s7697_s28 + $0x834] sm:%s8426_s18]  ;;  %204 = vst [vmem:[%s7701_s4 + $0x3c0] sm:%s8426_s18] %v203_v56 }
  0xfc   : > { %206 = vst [vmem:[%s7701_s4 + $0x3f0] sm:%s8426_s18] %v205_v57  ;;  %v209_v59 = vld [vmem:[%s7697_s28 + $0x8fc] sm:%s8426_s18] }
  0xfd   : > { %208 = vst [vmem:[%s7701_s4 + $0x420] sm:%s8426_s18] %v207_v58  ;;  %210 = vst [vmem:[%s7701_s4 + $0x450] sm:%s8426_s18] %v209_v59 }
  0xfe   : > { %v211_v60 = vld [vmem:[%s7697_s28 + $0x960] sm:%s8426_s18]  ;;  %v215_v62 = vld [vmem:[%s7697_s28 + $0xa28] sm:%s8426_s18] }
  0xff   : > { %v213_v61 = vld [vmem:[%s7697_s28 + $0x9c4] sm:%s8426_s18]  ;;  %212 = vst [vmem:[%s7701_s4 + $0x480] sm:%s8426_s18] %v211_v60 }
 0x100   : > { %214 = vst [vmem:[%s7701_s4 + $0x4b0] sm:%s8426_s18] %v213_v61  ;;  %v217_v63 = vld [vmem:[%s7697_s28 + $0xa8c] sm:%s8426_s18] }
 0x101   : > { %216 = vst [vmem:[%s7701_s4 + $0x4e0] sm:%s8426_s18] %v215_v62  ;;  %218 = vst [vmem:[%s7701_s4 + $0x510] sm:%s8426_s18] %v217_v63 }
 0x102   : > { %v219_v0 = vld [vmem:[%s7697_s28 + $0xaf0] sm:%s8426_s18]  ;;  %v223_v2 = vld [vmem:[%s7697_s28 + $0xbb8] sm:%s8426_s18] }
 0x103   : > { %v221_v1 = vld [vmem:[%s7697_s28 + $0xb54] sm:%s8426_s18]  ;;  %220 = vst [vmem:[%s7701_s4 + $0x540] sm:%s8426_s18] %v219_v0 }
 0x104   : > { %222 = vst [vmem:[%s7701_s4 + $0x570] sm:%s8426_s18] %v221_v1  ;;  %v225_v3 = vld [vmem:[%s7697_s28 + $0xc1c] sm:%s8426_s18] }
 0x105   : > { %224 = vst [vmem:[%s7701_s4 + $0x5a0] sm:%s8426_s18] %v223_v2  ;;  %226 = vst [vmem:[%s7701_s4 + $0x5d0] sm:%s8426_s18] %v225_v3 }
 0x106   : > { %v227_v4 = vld [vmem:[%s7697_s28 + $0xc80] sm:%s8426_s18]  ;;  %v231_v6 = vld [vmem:[%s7697_s28 + $0xd48] sm:%s8426_s18] }
 0x107   : > { %v229_v5 = vld [vmem:[%s7697_s28 + $0xce4] sm:%s8426_s18]  ;;  %228 = vst [vmem:[%s7701_s4 + $0x600] sm:%s8426_s18] %v227_v4 }
 0x108   : > { %230 = vst [vmem:[%s7701_s4 + $0x630] sm:%s8426_s18] %v229_v5  ;;  %v233_v7 = vld [vmem:[%s7697_s28 + $0xdac] sm:%s8426_s18] }
 0x109   : > { %232 = vst [vmem:[%s7701_s4 + $0x660] sm:%s8426_s18] %v231_v6  ;;  %234 = vst [vmem:[%s7701_s4 + $0x690] sm:%s8426_s18] %v233_v7 }
 0x10a   : > { %v235_v8 = vld [vmem:[%s7697_s28 + $0xe10] sm:%s8426_s18]  ;;  %v239_v10 = vld [vmem:[%s7697_s28 + $0xed8] sm:%s8426_s18] }
 0x10b   : > { %v237_v9 = vld [vmem:[%s7697_s28 + $0xe74] sm:%s8426_s18]  ;;  %236 = vst [vmem:[%s7701_s4 + $0x6c0] sm:%s8426_s18] %v235_v8 }
 0x10c   : > { %238 = vst [vmem:[%s7701_s4 + $0x6f0] sm:%s8426_s18] %v237_v9  ;;  %v241_v11 = vld [vmem:[%s7697_s28 + $0xf3c] sm:%s8426_s18] }
 0x10d   : > { %240 = vst [vmem:[%s7701_s4 + $0x720] sm:%s8426_s18] %v239_v10  ;;  %242 = vst [vmem:[%s7701_s4 + $0x750] sm:%s8426_s18] %v241_v11 }
 0x10e   : > { %v243_v12 = vld [vmem:[%s7697_s28 + $0xfa0] sm:%s8426_s18]  ;;  %v247_v14 = vld [vmem:[%s7697_s28 + $0x1068] sm:%s8426_s18] }
 0x10f   : > { %v245_v13 = vld [vmem:[%s7697_s28 + $0x1004] sm:%s8426_s18]  ;;  %244 = vst [vmem:[%s7701_s4 + $0x780] sm:%s8426_s18] %v243_v12 }
 0x110   : > { %246 = vst [vmem:[%s7701_s4 + $0x7b0] sm:%s8426_s18] %v245_v13  ;;  %v249_v15 = vld [vmem:[%s7697_s28 + $0x10cc] sm:%s8426_s18] }
 0x111   : > { %248 = vst [vmem:[%s7701_s4 + $0x7e0] sm:%s8426_s18] %v247_v14  ;;  %250 = vst [vmem:[%s7701_s4 + $0x810] sm:%s8426_s18] %v249_v15 }
 0x112   : > { %v251_v16 = vld [vmem:[%s7697_s28 + $0x1130] sm:%s8426_s18]  ;;  %v255_v18 = vld [vmem:[%s7697_s28 + $0x11f8] sm:%s8426_s18] }
 0x113   : > { %v253_v17 = vld [vmem:[%s7697_s28 + $0x1194] sm:%s8426_s18]  ;;  %252 = vst [vmem:[%s7701_s4 + $0x840] sm:%s8426_s18] %v251_v16 }
 0x114   : > { %254 = vst [vmem:[%s7701_s4 + $0x870] sm:%s8426_s18] %v253_v17  ;;  %v257_v19 = vld [vmem:[%s7697_s28 + $0x125c] sm:%s8426_s18] }
 0x115   : > { %256 = vst [vmem:[%s7701_s4 + $0x8a0] sm:%s8426_s18] %v255_v18  ;;  %258 = vst [vmem:[%s7701_s4 + $0x8d0] sm:%s8426_s18] %v257_v19 }
 0x116   : > { %v259_v20 = vld [vmem:[%s7697_s28 + $0x12c0] sm:%s8426_s18]  ;;  %v263_v22 = vld [vmem:[%s7697_s28 + $0x1388] sm:%s8426_s18] }
 0x117   : > { %v261_v21 = vld [vmem:[%s7697_s28 + $0x1324] sm:%s8426_s18]  ;;  %260 = vst [vmem:[%s7701_s4 + $0x900] sm:%s8426_s18] %v259_v20 }
 0x118   : > { %262 = vst [vmem:[%s7701_s4 + $0x930] sm:%s8426_s18] %v261_v21  ;;  %v265_v23 = vld [vmem:[%s7697_s28 + $0x13ec] sm:%s8426_s18] }
 0x119   : > { %264 = vst [vmem:[%s7701_s4 + $0x960] sm:%s8426_s18] %v263_v22  ;;  %266 = vst [vmem:[%s7701_s4 + $0x990] sm:%s8426_s18] %v265_v23 }
 0x11a   : > { %v267_v24 = vld [vmem:[%s7697_s28 + $0x1450] sm:%s8426_s18]  ;;  %v271_v26 = vld [vmem:[%s7697_s28 + $0x1518] sm:%s8426_s18] }
 0x11b   : > { %v269_v25 = vld [vmem:[%s7697_s28 + $0x14b4] sm:%s8426_s18]  ;;  %268 = vst [vmem:[%s7701_s4 + $0x9c0] sm:%s8426_s18] %v267_v24 }
 0x11c   : > { %270 = vst [vmem:[%s7701_s4 + $0x9f0] sm:%s8426_s18] %v269_v25  ;;  %v273_v27 = vld [vmem:[%s7697_s28 + $0x157c] sm:%s8426_s18] }
 0x11d   : > { %272 = vst [vmem:[%s7701_s4 + $0xa20] sm:%s8426_s18] %v271_v26  ;;  %274 = vst [vmem:[%s7701_s4 + $0xa50] sm:%s8426_s18] %v273_v27 }
 0x11e   : > { %v275_v28 = vld [vmem:[%s7697_s28 + $0x15e0] sm:%s8426_s18]  ;;  %v279_v30 = vld [vmem:[%s7697_s28 + $0x16a8] sm:%s8426_s18] }
 0x11f   : > { %v277_v29 = vld [vmem:[%s7697_s28 + $0x1644] sm:%s8426_s18]  ;;  %276 = vst [vmem:[%s7701_s4 + $0xa80] sm:%s8426_s18] %v275_v28 }
 0x120   : > { %278 = vst [vmem:[%s7701_s4 + $0xab0] sm:%s8426_s18] %v277_v29  ;;  %v281_v31 = vld [vmem:[%s7697_s28 + $0x170c] sm:%s8426_s18] }
 0x121   : > { %280 = vst [vmem:[%s7701_s4 + $0xae0] sm:%s8426_s18] %v279_v30  ;;  %282 = vst [vmem:[%s7701_s4 + $0xb10] sm:%s8426_s18] %v281_v31 }
 0x122   : > { %v283_v32 = vld [vmem:[%s7697_s28 + $0x1770] sm:%s8426_s18]  ;;  %v287_v34 = vld [vmem:[%s7697_s28 + $0x1838] sm:%s8426_s18] }
 0x123   : > { %v285_v33 = vld [vmem:[%s7697_s28 + $0x17d4] sm:%s8426_s18]  ;;  %284 = vst [vmem:[%s7701_s4 + $0xb40] sm:%s8426_s18] %v283_v32 }
 0x124   : > { %286 = vst [vmem:[%s7701_s4 + $0xb70] sm:%s8426_s18] %v285_v33  ;;  %v289_v35 = vld [vmem:[%s7697_s28 + $0x189c] sm:%s8426_s18] }
 0x125   : > { %288 = vst [vmem:[%s7701_s4 + $0xba0] sm:%s8426_s18] %v287_v34  ;;  %290 = vst [vmem:[%s7701_s4 + $0xbd0] sm:%s8426_s18] %v289_v35 }
 0x126   : > { %v291_v36 = vld [vmem:[%s7697_s28 + $0x1900] sm:%s8426_s18]  ;;  %v295_v38 = vld [vmem:[%s7697_s28 + $0x19c8] sm:%s8426_s18] }
 0x127   : > { %v293_v37 = vld [vmem:[%s7697_s28 + $0x1964] sm:%s8426_s18]  ;;  %292 = vst [vmem:[%s7701_s4 + $0xc00] sm:%s8426_s18] %v291_v36 }
 0x128   : > { %294 = vst [vmem:[%s7701_s4 + $0xc30] sm:%s8426_s18] %v293_v37  ;;  %v297_v39 = vld [vmem:[%s7697_s28 + $0x1a2c] sm:%s8426_s18] }
 0x129   : > { %296 = vst [vmem:[%s7701_s4 + $0xc60] sm:%s8426_s18] %v295_v38  ;;  %298 = vst [vmem:[%s7701_s4 + $0xc90] sm:%s8426_s18] %v297_v39 }
 0x12a   : > { %v299_v40 = vld [vmem:[%s7697_s28 + $0x1a90] sm:%s8426_s18]  ;;  %v303_v42 = vld [vmem:[%s7697_s28 + $0x1b58] sm:%s8426_s18] }
 0x12b   : > { %v301_v41 = vld [vmem:[%s7697_s28 + $0x1af4] sm:%s8426_s18]  ;;  %300 = vst [vmem:[%s7701_s4 + $0xcc0] sm:%s8426_s18] %v299_v40 }
 0x12c   : > { %302 = vst [vmem:[%s7701_s4 + $0xcf0] sm:%s8426_s18] %v301_v41  ;;  %v305_v43 = vld [vmem:[%s7697_s28 + $0x1bbc] sm:%s8426_s18] }
 0x12d   : > { %304 = vst [vmem:[%s7701_s4 + $0xd20] sm:%s8426_s18] %v303_v42  ;;  %306 = vst [vmem:[%s7701_s4 + $0xd50] sm:%s8426_s18] %v305_v43 }
 0x12e   : > { %v307_v44 = vld [vmem:[%s7697_s28 + $0x1c20] sm:%s8426_s18]  ;;  %v311_v46 = vld [vmem:[%s7697_s28 + $0x1ce8] sm:%s8426_s18] }
 0x12f   : > { %v309_v45 = vld [vmem:[%s7697_s28 + $0x1c84] sm:%s8426_s18]  ;;  %308 = vst [vmem:[%s7701_s4 + $0xd80] sm:%s8426_s18] %v307_v44 }
 0x130   : > { %310 = vst [vmem:[%s7701_s4 + $0xdb0] sm:%s8426_s18] %v309_v45  ;;  %v313_v47 = vld [vmem:[%s7697_s28 + $0x1d4c] sm:%s8426_s18] }
 0x131   : > { %312 = vst [vmem:[%s7701_s4 + $0xde0] sm:%s8426_s18] %v311_v46  ;;  %314 = vst [vmem:[%s7701_s4 + $0xe10] sm:%s8426_s18] %v313_v47 }
 0x132 PF: > { %p5580_p6 = scmp.ge.s32.totalorder %s7532_s14, 1  ;;  %p833_p7 = scmp.lt.s32.totalorder %s7532_s14, 4 }
 0x134   : > { %p834_p8 = pnand %p5580_p6, %p833_p7 }
 0x136   : > { %837 = sbr.rel (%p834_p8) target bundleno = 1184 (0x4a0), region = 80 }
 0x13d   : > { %s840_s30 = sand.u32 1, %s7524_s12   ;;  %v8738_v48 = vld [vmem:[%s10078_s1 + $0x4] ss:$8 sps:$4 sm:$0xff]   ;;  %vm1568_vm0 = vcmask 179200   ;;  %vm1572_vm1 = vcmask 1042432   ;;  %s4967_s18 = smul.u32 (%p7686_p5), 12, %s7671_s15 }
 0x13e   : > { %s6487_s28 = smul.u32 3648, %s840_s30  ;;  %5704 = vmatprep.mubr.msk.bf16.mxu0 %vm1568_vm0, %v8738_v48  ;;  %5706 = vmatprep.mubr.msk.bf16.mxu1 %vm1568_vm0, %v8738_v48  ;;  %v8795_v31 = vld [vmem:[%s10078_s1] ss:$8 sps:$4 sm:$0xff]  }
 0x13f   : > { %s6488_s5 = smul.u32 192, %s840_s30  ;;  %s4968_s21 = ssub.s32 (%p7686_p5), 25, %s4967_s18 }
 0x140   : > { %s8746_s14 = scalar_lea.vmem [#allocation2], %s6487_s28  ;;  %s6481_s30 = smul.u32 (%p7686_p5), 96, %s7671_s15 }
 0x141   : > { %v6711_v49 = vld [vmem:[%s8746_s14 + $0x4] ss:$48 sps:$4 sm:$0xff]   ;;  %v6713_v50 = vld [vmem:[%s8746_s14 + $0xc] ss:$48 sps:$4 sm:$0xff]   ;;  %v6715_v51 = vld [vmem:[%s8746_s14] ss:$48 sps:$4 sm:$0xff]  }
 0x142   : > { %1609 = vmatprep.subr.bf16.mxu0 %v6711_v49  ;;  %v6716_v52 = vld [vmem:[%s8746_s14 + $0x8] ss:$48 sps:$4 sm:$0xff]   ;;  %1652 = vmatprep.subr.bf16.mxu1 %v6713_v50  ;;  %v6717_v53 = vld [vmem:[%s8746_s14 + $0x64] ss:$48 sps:$4 sm:$0xff]   ;;  %v6719_v54 = vld [vmem:[%s8746_s14 + $0x6c] ss:$48 sps:$4 sm:$0xff]  }
 0x143   : > { %1610 = vmatpush1.bf16.msra.mxu0 %v6715_v51  ;;  %1653 = vmatpush1.bf16.msra.mxu1 %v6716_v52  ;;  %v6721_v55 = vld [vmem:[%s8746_s14 + $0x60] ss:$48 sps:$4 sm:$0xff]   ;;  %v6722_v56 = vld [vmem:[%s8746_s14 + $0x68] ss:$48 sps:$4 sm:$0xff]   ;;  %v6723_v57 = vld [vmem:[%s8746_s14 + $0xc4] ss:$48 sps:$4 sm:$0xff]  }
 0x144   : > { %1611 = vmatprep.subr.bf16.mxu0 %v6717_v53  ;;  %1654 = vmatprep.subr.bf16.mxu1 %v6719_v54  ;;  %v6725_v58 = vld [vmem:[%s8746_s14 + $0xcc] ss:$48 sps:$4 sm:$0xff]   ;;  %v6727_v59 = vld [vmem:[%s8746_s14 + $0xc0] ss:$48 sps:$4 sm:$0xff]   ;;  %v6728_v60 = vld [vmem:[%s8746_s14 + $0xc8] ss:$48 sps:$4 sm:$0xff]  }
 0x145   : > { %v6729_v61 = vld [vmem:[%s8746_s14 + $0x124] ss:$48 sps:$4 sm:$0xff]   ;;  %v6731_v62 = vld [vmem:[%s8746_s14 + $0x12c] ss:$48 sps:$4 sm:$0xff]   ;;  %v6733_v63 = vld [vmem:[%s8746_s14 + $0x120] ss:$48 sps:$4 sm:$0xff]  }
 0x146   : > { %v6734_v0 = vld [vmem:[%s8746_s14 + $0x128] ss:$48 sps:$4 sm:$0xff]   ;;  %v6735_v1 = vld [vmem:[%s8746_s14 + $0x184] ss:$48 sps:$4 sm:$0xff]   ;;  %v6737_v2 = vld [vmem:[%s8746_s14 + $0x18c] ss:$48 sps:$4 sm:$0xff]  }
 0x147   : > { %1612 = vmatpush1.bf16.msra.mxu0 %v6721_v55  ;;  %1655 = vmatpush1.bf16.msra.mxu1 %v6722_v56  ;;  %v6739_v3 = vld [vmem:[%s8746_s14 + $0x180] ss:$48 sps:$4 sm:$0xff]   ;;  %v6740_v4 = vld [vmem:[%s8746_s14 + $0x188] ss:$48 sps:$4 sm:$0xff]   ;;  %v6741_v5 = vld [vmem:[%s8746_s14 + $0x1e4] ss:$48 sps:$4 sm:$0xff]  }
 0x148   : > { %1613 = vmatprep.subr.bf16.mxu0 %v6723_v57  ;;  %1656 = vmatprep.subr.bf16.mxu1 %v6725_v58  ;;  %v6743_v6 = vld [vmem:[%s8746_s14 + $0x1ec] ss:$48 sps:$4 sm:$0xff]   ;;  %v6745_v7 = vld [vmem:[%s8746_s14 + $0x1e0] ss:$48 sps:$4 sm:$0xff]   ;;  %v6746_v8 = vld [vmem:[%s8746_s14 + $0x1e8] ss:$48 sps:$4 sm:$0xff]  }
 0x149   : > { %v6747_v9 = vld [vmem:[%s8746_s14 + $0x244] ss:$48 sps:$4 sm:$0xff]   ;;  %v6749_v10 = vld [vmem:[%s8746_s14 + $0x24c] ss:$48 sps:$4 sm:$0xff]   ;;  %v6751_v11 = vld [vmem:[%s8746_s14 + $0x240] ss:$48 sps:$4 sm:$0xff]  }
 0x14a   : > { %v6752_v12 = vld [vmem:[%s8746_s14 + $0x248] ss:$48 sps:$4 sm:$0xff]   ;;  %v6753_v13 = vld [vmem:[%s8746_s14 + $0x2a4] ss:$48 sps:$4 sm:$0xff]   ;;  %v6755_v14 = vld [vmem:[%s8746_s14 + $0x2ac] ss:$48 sps:$4 sm:$0xff]  }
 0x14b   : > { %1614 = vmatpush1.bf16.msra.mxu0 %v6727_v59  ;;  %1657 = vmatpush1.bf16.msra.mxu1 %v6728_v60  ;;  %v6757_v15 = vld [vmem:[%s8746_s14 + $0x2a0] ss:$48 sps:$4 sm:$0xff]   ;;  %v6758_v16 = vld [vmem:[%s8746_s14 + $0x2a8] ss:$48 sps:$4 sm:$0xff]   ;;  %v6759_v17 = vld [vmem:[%s8746_s14 + $0x304] ss:$48 sps:$4 sm:$0xff]  }
 0x14c   : > { %1615 = vmatprep.subr.bf16.mxu0 %v6729_v61  ;;  %1658 = vmatprep.subr.bf16.mxu1 %v6731_v62  ;;  %v6761_v18 = vld [vmem:[%s8746_s14 + $0x30c] ss:$48 sps:$4 sm:$0xff]   ;;  %v983_v19 = vld [vmem:[%s8746_s14 + $0x360] sm:$0x77]  ;;  %v6764_v22 = vld [vmem:[%s8746_s14 + $0x308] ss:$48 sps:$4 sm:$0xff]  }
 0x14d   : > { %v984_v20 = vld [vmem:[%s8746_s14 + $0x368] sm:$0x77]  ;;  %v6763_v21 = vld [vmem:[%s8746_s14 + $0x300] ss:$48 sps:$4 sm:$0xff]   ;;  %v5692_v23 = vcombine.high %v983_v19, %v983_v19  ;;  %v5691_v25 = vcombine.low %v983_v19, %v983_v19  ;;  %v6774_v27 = vld [vmem:[%s8746_s14 + $0x14] ss:$48 sps:$4 sm:$0xff]  }
 0x14e   : > { %v5694_v24 = vcombine.high %v984_v20, %v984_v20  ;;  %v5693_v26 = vcombine.low %v984_v20, %v984_v20  ;;  %v6777_v30 = vld [vmem:[%s8746_s14 + $0x1c] ss:$48 sps:$4 sm:$0xff]   ;;  %v6772_v32 = vld [vmem:[%s8746_s14 + $0x10] ss:$48 sps:$4 sm:$0xff]   ;;  %v6775_v33 = vld [vmem:[%s8746_s14 + $0x18] ss:$48 sps:$4 sm:$0xff]  }
 0x14f   : > { %1616 = vmatpush1.bf16.msra.mxu0 %v6733_v63  ;;  %1659 = vmatpush1.bf16.msra.mxu1 %v6734_v0  ;;  %v1574_v28 = vsel %vm1572_vm1, %v5691_v25, 0  ;;  %v6780_v34 = vld [vmem:[%s8746_s14 + $0x74] ss:$48 sps:$4 sm:$0xff]   ;;  %v6783_v35 = vld [vmem:[%s8746_s14 + $0x7c] ss:$48 sps:$4 sm:$0xff]   ;;  %s9625_s12 = scalar_lea.vmem [#allocation3], %s6488_s5  }
 0x150   : > { %1617 = vmatprep.subr.bf16.mxu0 %v6735_v1  ;;  %1660 = vmatprep.subr.bf16.mxu1 %v6737_v2  ;;  %v1580_v29 = vsel %vm1572_vm1, %v5693_v26, 0  ;;  %v6778_v36 = vld [vmem:[%s8746_s14 + $0x70] ss:$48 sps:$4 sm:$0xff]   ;;  %v6781_v37 = vld [vmem:[%s8746_s14 + $0x78] ss:$48 sps:$4 sm:$0xff]   ;;  %p4969_p9 = scmp.lt.s32.totalorder (%p7686_p5), %s4968_s21, 12 }
 0x151   : > { %v6786_v38 = vld [vmem:[%s8746_s14 + $0xd4] ss:$48 sps:$4 sm:$0xff]   ;;  %v6789_v39 = vld [vmem:[%s8746_s14 + $0xdc] ss:$48 sps:$4 sm:$0xff]   ;;  %v6784_v40 = vld [vmem:[%s8746_s14 + $0xd0] ss:$48 sps:$4 sm:$0xff]  }
 0x152   : > { %v6787_v41 = vld [vmem:[%s8746_s14 + $0xd8] ss:$48 sps:$4 sm:$0xff]   ;;  %v6792_v42 = vld [vmem:[%s8746_s14 + $0x134] ss:$48 sps:$4 sm:$0xff]   ;;  %v6795_v43 = vld [vmem:[%s8746_s14 + $0x13c] ss:$48 sps:$4 sm:$0xff]  }
 0x153   : > { %1618 = vmatpush1.bf16.msra.mxu0 %v6739_v3  ;;  %1661 = vmatpush1.bf16.msra.mxu1 %v6740_v4  ;;  %v6790_v44 = vld [vmem:[%s8746_s14 + $0x130] ss:$48 sps:$4 sm:$0xff]   ;;  %v6793_v45 = vld [vmem:[%s8746_s14 + $0x138] ss:$48 sps:$4 sm:$0xff]   ;;  %v6798_v46 = vld [vmem:[%s8746_s14 + $0x194] ss:$48 sps:$4 sm:$0xff]  }
 0x154   : > { %1619 = vmatprep.subr.bf16.mxu0 %v6741_v5  ;;  %1662 = vmatprep.subr.bf16.mxu1 %v6743_v6  ;;  %v6801_v47 = vld [vmem:[%s8746_s14 + $0x19c] ss:$48 sps:$4 sm:$0xff]   ;;  %v6796_v49 = vld [vmem:[%s8746_s14 + $0x190] ss:$48 sps:$4 sm:$0xff]   ;;  %v6799_v50 = vld [vmem:[%s8746_s14 + $0x198] ss:$48 sps:$4 sm:$0xff]  }
 0x155   : > { %v6804_v51 = vld [vmem:[%s8746_s14 + $0x1f4] ss:$48 sps:$4 sm:$0xff]   ;;  %v6807_v52 = vld [vmem:[%s8746_s14 + $0x1fc] ss:$48 sps:$4 sm:$0xff]   ;;  %v6802_v53 = vld [vmem:[%s8746_s14 + $0x1f0] ss:$48 sps:$4 sm:$0xff]  }
 0x156   : > { %v6805_v54 = vld [vmem:[%s8746_s14 + $0x1f8] ss:$48 sps:$4 sm:$0xff]   ;;  %v6810_v55 = vld [vmem:[%s8746_s14 + $0x254] ss:$48 sps:$4 sm:$0xff]   ;;  %v6813_v56 = vld [vmem:[%s8746_s14 + $0x25c] ss:$48 sps:$4 sm:$0xff]  }
 0x157   : > { %1620 = vmatpush1.bf16.msra.mxu0 %v6745_v7  ;;  %1663 = vmatpush1.bf16.msra.mxu1 %v6746_v8  ;;  %v6808_v57 = vld [vmem:[%s8746_s14 + $0x250] ss:$48 sps:$4 sm:$0xff]   ;;  %v6811_v58 = vld [vmem:[%s8746_s14 + $0x258] ss:$48 sps:$4 sm:$0xff]   ;;  %v6816_v59 = vld [vmem:[%s8746_s14 + $0x2b4] ss:$48 sps:$4 sm:$0xff]  }
 0x158   : > { %1621 = vmatprep.subr.bf16.mxu0 %v6747_v9  ;;  %1664 = vmatprep.subr.bf16.mxu1 %v6749_v10  ;;  %v6819_v60 = vld [vmem:[%s8746_s14 + $0x2bc] ss:$48 sps:$4 sm:$0xff]   ;;  %v6814_v61 = vld [vmem:[%s8746_s14 + $0x2b0] ss:$48 sps:$4 sm:$0xff]   ;;  %v6817_v62 = vld [vmem:[%s8746_s14 + $0x2b8] ss:$48 sps:$4 sm:$0xff]  }
 0x159   : > { %v6822_v63 = vld [vmem:[%s8746_s14 + $0x314] ss:$48 sps:$4 sm:$0xff]   ;;  %v6825_v0 = vld [vmem:[%s8746_s14 + $0x31c] ss:$48 sps:$4 sm:$0xff]   ;;  %v6820_v3 = vld [vmem:[%s8746_s14 + $0x310] ss:$48 sps:$4 sm:$0xff]  }
 0x15a   : > { %v985_v1 = vld [vmem:[%s8746_s14 + $0x370] sm:$0x77]  ;;  %v986_v2 = vld [vmem:[%s8746_s14 + $0x378] sm:$0x77] }
 0x15b   : > { %1622 = vmatpush1.bf16.msra.mxu0 %v6751_v11  ;;  %1665 = vmatpush1.bf16.msra.mxu1 %v6752_v12  ;;  %v6823_v4 = vld [vmem:[%s8746_s14 + $0x318] ss:$48 sps:$4 sm:$0xff]   ;;  %v5696_v5 = vcombine.high %v985_v1, %v985_v1  ;;  %v5698_v6 = vcombine.high %v986_v2, %v986_v2  ;;  %v5695_v7 = vcombine.low %v985_v1, %v985_v1  ;;  %v6832_v9 = vld [vmem:[%s8746_s14 + $0x24] ss:$48 sps:$4 sm:$0xff]   ;;  %v6835_v12 = vld [vmem:[%s8746_s14 + $0x2c] ss:$48 sps:$4 sm:$0xff]  }
 0x15c   : > { %1623 = vmatprep.subr.bf16.mxu0 %v6753_v13  ;;  %1666 = vmatprep.subr.bf16.mxu1 %v6755_v14  ;;  %v5697_v8 = vcombine.low %v986_v2, %v986_v2  ;;  %v6830_v13 = vld [vmem:[%s8746_s14 + $0x20] ss:$48 sps:$4 sm:$0xff]   ;;  %v6833_v14 = vld [vmem:[%s8746_s14 + $0x28] ss:$48 sps:$4 sm:$0xff]   ;;  %v6844_v19 = vld [vmem:[%s8746_s14 + $0xe4] ss:$48 sps:$4 sm:$0xff]  }
 0x15d   : > { %v1586_v10 = vsel %vm1572_vm1, %v5695_v7, 0  ;;  %v6847_v20 = vld [vmem:[%s8746_s14 + $0xec] ss:$48 sps:$4 sm:$0xff]   ;;  %v6848_v25 = vld [vmem:[%s8746_s14 + $0x140] ss:$48 sps:$4 sm:$0xff]  }
 0x15e   : > { %v1592_v11 = vsel %vm1572_vm1, %v5697_v8, 0  ;;  %v6851_v26 = vld [vmem:[%s8746_s14 + $0x148] ss:$48 sps:$4 sm:$0xff]   ;;  %v6902_v1 = vld [vmem:[%s8746_s14 + $0x454] ss:$48 sps:$4 sm:$0xff]  }
 0x15f   : > { %1624 = vmatpush1.bf16.msra.mxu0 %v6757_v15  ;;  %1667 = vmatpush1.bf16.msra.mxu1 %v6758_v16  ;;  %v6838_v15 = vld [vmem:[%s8746_s14 + $0x84] ss:$48 sps:$4 sm:$0xff]   ;;  %v6841_v16 = vld [vmem:[%s8746_s14 + $0x8c] ss:$48 sps:$4 sm:$0xff]   ;;  %v6906_v7 = vld [vmem:[%s8746_s14 + $0x4b0] ss:$48 sps:$4 sm:$0xff]  }
 0x160   : > { %1625 = vmatprep.subr.bf16.mxu0 %v6759_v17  ;;  %1668 = vmatprep.subr.bf16.mxu1 %v6761_v18  ;;  %v6836_v17 = vld [vmem:[%s8746_s14 + $0x80] ss:$48 sps:$4 sm:$0xff]   ;;  %v6839_v18 = vld [vmem:[%s8746_s14 + $0x88] ss:$48 sps:$4 sm:$0xff]   ;;  %v6905_v2 = vld [vmem:[%s8746_s14 + $0x45c] ss:$48 sps:$4 sm:$0xff]  }
 0x161   : > { %v6909_v8 = vld [vmem:[%s8746_s14 + $0x4b8] ss:$48 sps:$4 sm:$0xff]  }
 0x163   : > { %1626 = vmatpush1.bf16.msra.mxu0 %v6763_v21  ;;  %1669 = vmatpush1.bf16.msra.mxu1 %v6764_v22  ;;  %v6842_v21 = vld [vmem:[%s8746_s14 + $0xe0] ss:$48 sps:$4 sm:$0xff]   ;;  %v6845_v22 = vld [vmem:[%s8746_s14 + $0xe8] ss:$48 sps:$4 sm:$0xff]  }
 0x164   : > { %5703 = vmatprep.subr.msk.bf16.mxu0 %vm1572_vm1, %v5692_v23  ;;  %5705 = vmatprep.subr.msk.bf16.mxu1 %vm1572_vm1, %v5694_v24  ;;  %v6850_v23 = vld [vmem:[%s8746_s14 + $0x144] ss:$48 sps:$4 sm:$0xff]   ;;  %v6853_v24 = vld [vmem:[%s8746_s14 + $0x14c] ss:$48 sps:$4 sm:$0xff]  }
 0x167   : > { %1628 = vmatpush1.bf16.msra.mxu0 %v1574_v28  ;;  %1671 = vmatpush1.bf16.msra.mxu1 %v1580_v29  ;;  %v6859_v28 = vld [vmem:[%s8746_s14 + $0x1ac] ss:$48 sps:$4 sm:$0xff]   ;;  %v6854_v29 = vld [vmem:[%s8746_s14 + $0x1a0] ss:$48 sps:$4 sm:$0xff]  }
 0x168   : > { %1695 = vmatprep.subr.bf16.mxu0 %v6774_v27  ;;  %1738 = vmatprep.subr.bf16.mxu1 %v6777_v30  ;;  %v6856_v27 = vld [vmem:[%s8746_s14 + $0x1a4] ss:$48 sps:$4 sm:$0xff]   ;;  %v6857_v30 = vld [vmem:[%s8746_s14 + $0x1a8] ss:$48 sps:$4 sm:$0xff]  }
 0x16a   : > { %1642 = vmatmul.mubr.bf16.vlgmr.msra.gmra.mrb[0].mxu0 %v8795_v31  ;;  %1685 = vmatmul.mubr.bf16.vlgmr.msra.gmra.mrb[0].mxu1 %v8795_v31 }
 0x16b   : > { %1696 = vmatpush1.bf16.msra.mxu0 %v6772_v32  ;;  %1739 = vmatpush1.bf16.msra.mxu1 %v6775_v33  ;;  %v6862_v32 = vld [vmem:[%s8746_s14 + $0x204] ss:$48 sps:$4 sm:$0xff]   ;;  %v6865_v33 = vld [vmem:[%s8746_s14 + $0x20c] ss:$48 sps:$4 sm:$0xff]  }
 0x16c   : > { %1697 = vmatprep.subr.bf16.mxu0 %v6780_v34  ;;  %1740 = vmatprep.subr.bf16.mxu1 %v6783_v35  ;;  %v6860_v34 = vld [vmem:[%s8746_s14 + $0x200] ss:$48 sps:$4 sm:$0xff]   ;;  %v6863_v35 = vld [vmem:[%s8746_s14 + $0x208] ss:$48 sps:$4 sm:$0xff]  }
 0x16d   : > { %5708 = vmatprep.mubr.msk.bf16.mxu0 %vm1568_vm0, %v8738_v48  ;;  %5710 = vmatprep.mubr.msk.bf16.mxu1 %vm1568_vm0, %v8738_v48 }
 0x16f   : > { %1698 = vmatpush1.bf16.msra.mxu0 %v6778_v36  ;;  %1741 = vmatpush1.bf16.msra.mxu1 %v6781_v37  ;;  %v6868_v36 = vld [vmem:[%s8746_s14 + $0x264] ss:$48 sps:$4 sm:$0xff]   ;;  %v6871_v37 = vld [vmem:[%s8746_s14 + $0x26c] ss:$48 sps:$4 sm:$0xff]  }
 0x170   : > { %1699 = vmatprep.subr.bf16.mxu0 %v6786_v38  ;;  %1742 = vmatprep.subr.bf16.mxu1 %v6789_v39  ;;  %v6866_v38 = vld [vmem:[%s8746_s14 + $0x260] ss:$48 sps:$4 sm:$0xff]   ;;  %v6869_v39 = vld [vmem:[%s8746_s14 + $0x268] ss:$48 sps:$4 sm:$0xff]  }
 0x173   : > { %1700 = vmatpush1.bf16.msra.mxu0 %v6784_v40  ;;  %1743 = vmatpush1.bf16.msra.mxu1 %v6787_v41  ;;  %v6874_v40 = vld [vmem:[%s8746_s14 + $0x2c4] ss:$48 sps:$4 sm:$0xff]   ;;  %v6877_v41 = vld [vmem:[%s8746_s14 + $0x2cc] ss:$48 sps:$4 sm:$0xff]  }
 0x174   : > { %1701 = vmatprep.subr.bf16.mxu0 %v6792_v42  ;;  %1744 = vmatprep.subr.bf16.mxu1 %v6795_v43  ;;  %v6872_v42 = vld [vmem:[%s8746_s14 + $0x2c0] ss:$48 sps:$4 sm:$0xff]   ;;  %v6875_v43 = vld [vmem:[%s8746_s14 + $0x2c8] ss:$48 sps:$4 sm:$0xff]  }
 0x177   : > { %1702 = vmatpush1.bf16.msra.mxu0 %v6790_v44  ;;  %1745 = vmatpush1.bf16.msra.mxu1 %v6793_v45  ;;  %v6880_v44 = vld [vmem:[%s8746_s14 + $0x324] ss:$48 sps:$4 sm:$0xff]   ;;  %v6883_v45 = vld [vmem:[%s8746_s14 + $0x32c] ss:$48 sps:$4 sm:$0xff]  }
 0x178   : > { %1703 = vmatprep.subr.bf16.mxu0 %v6798_v46  ;;  %1746 = vmatprep.subr.bf16.mxu1 %v6801_v47  ;;  %v987_v46 = vld [vmem:[%s8746_s14 + $0x380] sm:$0x77]  ;;  %v988_v47 = vld [vmem:[%s8746_s14 + $0x388] sm:$0x77] }
 0x17b   : > { %1704 = vmatpush1.bf16.msra.mxu0 %v6796_v49  ;;  %1747 = vmatpush1.bf16.msra.mxu1 %v6799_v50  ;;  %v6878_v49 = vld [vmem:[%s8746_s14 + $0x320] ss:$48 sps:$4 sm:$0xff]   ;;  %v6881_v50 = vld [vmem:[%s8746_s14 + $0x328] ss:$48 sps:$4 sm:$0xff]  }
 0x17c   : > { %1705 = vmatprep.subr.bf16.mxu0 %v6804_v51  ;;  %1748 = vmatprep.subr.bf16.mxu1 %v6807_v52  ;;  %v5700_v51 = vcombine.high %v987_v46, %v987_v46  ;;  %v5702_v52 = vcombine.high %v988_v47, %v988_v47 }
 0x17f   : > { %1706 = vmatpush1.bf16.msra.mxu0 %v6802_v53  ;;  %1749 = vmatpush1.bf16.msra.mxu1 %v6805_v54  ;;  %v5699_v53 = vcombine.low %v987_v46, %v987_v46  ;;  %v5701_v54 = vcombine.low %v988_v47, %v988_v47  ;;  %v6963_v46 = vld [vmem:[%s8746_s14 + $0x46c] ss:$48 sps:$4 sm:$0xff]  }
 0x180   : > { %1707 = vmatprep.subr.bf16.mxu0 %v6810_v55  ;;  %1750 = vmatprep.subr.bf16.mxu1 %v6813_v56  ;;  %v6890_v55 = vld [vmem:[%s8746_s14 + $0x394] ss:$48 sps:$4 sm:$0xff]  }
 0x181   : > { %v1598_v56 = vsel %vm1572_vm1, %v5699_v53, 0  ;;  %v8954_v47 = vld [vmem:[%s10078_s1 + $0x4] ss:$8 sps:$4 sm:$0xff]   ;;  %v6967_v53 = vld [vmem:[%s8746_s14 + $0x4c8] ss:$48 sps:$4 sm:$0xff]  }
 0x183   : > { %1708 = vmatpush1.bf16.msra.mxu0 %v6808_v57  ;;  %1751 = vmatpush1.bf16.msra.mxu1 %v6811_v58  ;;  %v1604_v57 = vsel %vm1572_vm1, %v5701_v54, 0  ;;  %v6893_v58 = vld [vmem:[%s8746_s14 + $0x39c] ss:$48 sps:$4 sm:$0xff]   ;;  %v6972_v54 = vld [vmem:[%s8746_s14 + $0x524] ss:$48 sps:$4 sm:$0xff]  }
 0x184   : > { %1709 = vmatprep.subr.bf16.mxu0 %v6816_v59  ;;  %1752 = vmatprep.subr.bf16.mxu1 %v6819_v60  ;;  %v6888_v59 = vld [vmem:[%s8746_s14 + $0x390] ss:$48 sps:$4 sm:$0xff]   ;;  %v6891_v60 = vld [vmem:[%s8746_s14 + $0x398] ss:$48 sps:$4 sm:$0xff]  }
 0x187   : > { %1710 = vmatpush1.bf16.msra.mxu0 %v6814_v61  ;;  %1753 = vmatpush1.bf16.msra.mxu1 %v6817_v62  ;;  %v6896_v61 = vld [vmem:[%s8746_s14 + $0x3f4] ss:$48 sps:$4 sm:$0xff]   ;;  %v6899_v62 = vld [vmem:[%s8746_s14 + $0x3fc] ss:$48 sps:$4 sm:$0xff]  }
 0x188   : > { %1711 = vmatprep.subr.bf16.mxu0 %v6822_v63  ;;  %1754 = vmatprep.subr.bf16.mxu1 %v6825_v0  ;;  %v6894_v63 = vld [vmem:[%s8746_s14 + $0x3f0] ss:$48 sps:$4 sm:$0xff]   ;;  %v6897_v0 = vld [vmem:[%s8746_s14 + $0x3f8] ss:$48 sps:$4 sm:$0xff]  }
 0x18b   : > { %1712 = vmatpush1.bf16.msra.mxu0 %v6820_v3  ;;  %1755 = vmatpush1.bf16.msra.mxu1 %v6823_v4  ;;  %v6900_v3 = vld [vmem:[%s8746_s14 + $0x450] ss:$48 sps:$4 sm:$0xff]   ;;  %v6903_v4 = vld [vmem:[%s8746_s14 + $0x458] ss:$48 sps:$4 sm:$0xff]  }
 0x18c   : > { %5707 = vmatprep.subr.msk.bf16.mxu0 %vm1572_vm1, %v5696_v5  ;;  %5709 = vmatprep.subr.msk.bf16.mxu1 %vm1572_vm1, %v5698_v6  ;;  %v6908_v5 = vld [vmem:[%s8746_s14 + $0x4b4] ss:$48 sps:$4 sm:$0xff]   ;;  %v6911_v6 = vld [vmem:[%s8746_s14 + $0x4bc] ss:$48 sps:$4 sm:$0xff]  }
 0x18f   : > { %1714 = vmatpush1.bf16.msra.mxu0 %v1586_v10  ;;  %1757 = vmatpush1.bf16.msra.mxu1 %v1592_v11  ;;  %v6912_v10 = vld [vmem:[%s8746_s14 + $0x510] ss:$48 sps:$4 sm:$0xff]   ;;  %v6915_v11 = vld [vmem:[%s8746_s14 + $0x518] ss:$48 sps:$4 sm:$0xff]  }
 0x190   : > { %1781 = vmatprep.subr.bf16.mxu0 %v6832_v9  ;;  %1824 = vmatprep.subr.bf16.mxu1 %v6835_v12  ;;  %v6917_v9 = vld [vmem:[%s8746_s14 + $0x51c] ss:$48 sps:$4 sm:$0xff]   ;;  %v6920_v12 = vld [vmem:[%s8746_s14 + $0x574] ss:$48 sps:$4 sm:$0xff]  }
 0x192   : > { %1728 = vmatmul.mubr.bf16.vlgmr.msra.gmra.mrb[4].mxu0 %v8795_v31  ;;  %1771 = vmatmul.mubr.bf16.vlgmr.msra.gmra.mrb[4].mxu1 %v8795_v31 }
 0x193   : > { %1782 = vmatpush1.bf16.msra.mxu0 %v6830_v13  ;;  %1825 = vmatpush1.bf16.msra.mxu1 %v6833_v14  ;;  %v6923_v13 = vld [vmem:[%s8746_s14 + $0x57c] ss:$48 sps:$4 sm:$0xff]   ;;  %v6918_v14 = vld [vmem:[%s8746_s14 + $0x570] ss:$48 sps:$4 sm:$0xff]  }
 0x194   : > { %1783 = vmatprep.subr.bf16.mxu0 %v6838_v15  ;;  %1826 = vmatprep.subr.bf16.mxu1 %v6841_v16  ;;  %v6921_v15 = vld [vmem:[%s8746_s14 + $0x578] ss:$48 sps:$4 sm:$0xff]   ;;  %v6926_v16 = vld [vmem:[%s8746_s14 + $0x5d4] ss:$48 sps:$4 sm:$0xff]  }
 0x195   : > { %5712 = vmatprep.mubr.msk.bf16.mxu0 %vm1568_vm0, %v8738_v48  ;;  %5714 = vmatprep.mubr.msk.bf16.mxu1 %vm1568_vm0, %v8738_v48 }
 0x197   : > { %1784 = vmatpush1.bf16.msra.mxu0 %v6836_v17  ;;  %1827 = vmatpush1.bf16.msra.mxu1 %v6839_v18  ;;  %v6929_v17 = vld [vmem:[%s8746_s14 + $0x5dc] ss:$48 sps:$4 sm:$0xff]   ;;  %v6924_v18 = vld [vmem:[%s8746_s14 + $0x5d0] ss:$48 sps:$4 sm:$0xff]  }
 0x198   : > { %1785 = vmatprep.subr.bf16.mxu0 %v6844_v19  ;;  %1828 = vmatprep.subr.bf16.mxu1 %v6847_v20  ;;  %v6927_v19 = vld [vmem:[%s8746_s14 + $0x5d8] ss:$48 sps:$4 sm:$0xff]   ;;  %v6932_v20 = vld [vmem:[%s8746_s14 + $0x634] ss:$48 sps:$4 sm:$0xff]  }
 0x19b   : > { %1786 = vmatpush1.bf16.msra.mxu0 %v6842_v21  ;;  %1829 = vmatpush1.bf16.msra.mxu1 %v6845_v22  ;;  %v6935_v21 = vld [vmem:[%s8746_s14 + $0x63c] ss:$48 sps:$4 sm:$0xff]   ;;  %v6930_v22 = vld [vmem:[%s8746_s14 + $0x630] ss:$48 sps:$4 sm:$0xff]  }
 0x19c   : > { %1787 = vmatprep.subr.bf16.mxu0 %v6850_v23  ;;  %1830 = vmatprep.subr.bf16.mxu1 %v6853_v24  ;;  %v6933_v23 = vld [vmem:[%s8746_s14 + $0x638] ss:$48 sps:$4 sm:$0xff]   ;;  %v6938_v24 = vld [vmem:[%s8746_s14 + $0x694] ss:$48 sps:$4 sm:$0xff]  }
 0x19f   : > { %1788 = vmatpush1.bf16.msra.mxu0 %v6848_v25  ;;  %1831 = vmatpush1.bf16.msra.mxu1 %v6851_v26  ;;  %v6941_v25 = vld [vmem:[%s8746_s14 + $0x69c] ss:$48 sps:$4 sm:$0xff]   ;;  %v5823_v26 = vld [vmem:[%s8746_s14 + $0x6f0] sm:$0x77] }
 0x1a0   : > { %1789 = vmatprep.subr.bf16.mxu0 %v6856_v27  ;;  %1832 = vmatprep.subr.bf16.mxu1 %v6859_v28  ;;  %v5824_v27 = vld [vmem:[%s8746_s14 + $0x6f8] sm:$0x77]  ;;  %v6936_v28 = vld [vmem:[%s8746_s14 + $0x690] ss:$48 sps:$4 sm:$0xff]  }
 0x1a3   : > { %1790 = vmatpush1.bf16.msra.mxu0 %v6854_v29  ;;  %1833 = vmatpush1.bf16.msra.mxu1 %v6857_v30  ;;  %v6939_v29 = vld [vmem:[%s8746_s14 + $0x698] ss:$48 sps:$4 sm:$0xff]   ;;  %v5938_v30 = vcombine.high %v5823_v26, %v5823_v26 }
 0x1a4   : > { %1791 = vmatprep.subr.bf16.mxu0 %v6862_v32  ;;  %1834 = vmatprep.subr.bf16.mxu1 %v6865_v33  ;;  %v5940_v32 = vcombine.high %v5824_v27, %v5824_v27  ;;  %v5937_v33 = vcombine.low %v5823_v26, %v5823_v26  ;;  %v7018_v26 = vld [vmem:[%s8746_s14 + $0x474] ss:$48 sps:$4 sm:$0xff]  }
 0x1a7   : > { %1792 = vmatpush1.bf16.msra.mxu0 %v6860_v34  ;;  %1835 = vmatpush1.bf16.msra.mxu1 %v6863_v35  ;;  %v5939_v34 = vcombine.low %v5824_v27, %v5824_v27  ;;  %v6948_v35 = vld [vmem:[%s8746_s14 + $0x3a4] ss:$48 sps:$4 sm:$0xff]   ;;  %v7021_v27 = vld [vmem:[%s8746_s14 + $0x47c] ss:$48 sps:$4 sm:$0xff]  }
 0x1a8   : > { %1793 = vmatprep.subr.bf16.mxu0 %v6868_v36  ;;  %1836 = vmatprep.subr.bf16.mxu1 %v6871_v37  ;;  %v2553_v36 = vsel %vm1572_vm1, %v5937_v33, 0  ;;  %v7022_v33 = vld [vmem:[%s8746_s14 + $0x4d0] ss:$48 sps:$4 sm:$0xff]  }
 0x1a9   : > { %v2559_v37 = vsel %vm1572_vm1, %v5939_v34, 0  ;;  %v7025_v34 = vld [vmem:[%s8746_s14 + $0x4d8] ss:$48 sps:$4 sm:$0xff]  }
 0x1ab   : > { %1794 = vmatpush1.bf16.msra.mxu0 %v6866_v38  ;;  %1837 = vmatpush1.bf16.msra.mxu1 %v6869_v39  ;;  %v6951_v38 = vld [vmem:[%s8746_s14 + $0x3ac] ss:$48 sps:$4 sm:$0xff]   ;;  %v6946_v39 = vld [vmem:[%s8746_s14 + $0x3a0] ss:$48 sps:$4 sm:$0xff]  }
 0x1ac   : > { %1795 = vmatprep.subr.bf16.mxu0 %v6874_v40  ;;  %1838 = vmatprep.subr.bf16.mxu1 %v6877_v41  ;;  %v6949_v40 = vld [vmem:[%s8746_s14 + $0x3a8] ss:$48 sps:$4 sm:$0xff]   ;;  %v6954_v41 = vld [vmem:[%s8746_s14 + $0x404] ss:$48 sps:$4 sm:$0xff]  }
 0x1af   : > { %1796 = vmatpush1.bf16.msra.mxu0 %v6872_v42  ;;  %1839 = vmatpush1.bf16.msra.mxu1 %v6875_v43  ;;  %v6957_v42 = vld [vmem:[%s8746_s14 + $0x40c] ss:$48 sps:$4 sm:$0xff]   ;;  %v6952_v43 = vld [vmem:[%s8746_s14 + $0x400] ss:$48 sps:$4 sm:$0xff]  }
 0x1b0   : > { %1797 = vmatprep.subr.bf16.mxu0 %v6880_v44  ;;  %1840 = vmatprep.subr.bf16.mxu1 %v6883_v45  ;;  %v6955_v44 = vld [vmem:[%s8746_s14 + $0x408] ss:$48 sps:$4 sm:$0xff]   ;;  %v6960_v45 = vld [vmem:[%s8746_s14 + $0x464] ss:$48 sps:$4 sm:$0xff]  }
 0x1b3   : > { %1798 = vmatpush1.bf16.msra.mxu0 %v6878_v49  ;;  %1841 = vmatpush1.bf16.msra.mxu1 %v6881_v50  ;;  %v6961_v49 = vld [vmem:[%s8746_s14 + $0x468] ss:$48 sps:$4 sm:$0xff]   ;;  %v6966_v50 = vld [vmem:[%s8746_s14 + $0x4c4] ss:$48 sps:$4 sm:$0xff]  }
 0x1b4   : > { %5711 = vmatprep.subr.msk.bf16.mxu0 %vm1572_vm1, %v5700_v51  ;;  %5713 = vmatprep.subr.msk.bf16.mxu1 %vm1572_vm1, %v5702_v52  ;;  %v6969_v51 = vld [vmem:[%s8746_s14 + $0x4cc] ss:$48 sps:$4 sm:$0xff]   ;;  %v6964_v52 = vld [vmem:[%s8746_s14 + $0x4c0] ss:$48 sps:$4 sm:$0xff]  }
 0x1b7   : > { %1800 = vmatpush1.bf16.msra.mxu0 %v1598_v56  ;;  %1843 = vmatpush1.bf16.msra.mxu1 %v1604_v57  ;;  %v6970_v56 = vld [vmem:[%s8746_s14 + $0x520] ss:$48 sps:$4 sm:$0xff]   ;;  %v6973_v57 = vld [vmem:[%s8746_s14 + $0x528] ss:$48 sps:$4 sm:$0xff]  }
 0x1b8   : > { %2588 = vmatprep.subr.bf16.mxu0 %v6890_v55  ;;  %2631 = vmatprep.subr.bf16.mxu1 %v6893_v58  ;;  %v6975_v55 = vld [vmem:[%s8746_s14 + $0x52c] ss:$48 sps:$4 sm:$0xff]   ;;  %v6978_v58 = vld [vmem:[%s8746_s14 + $0x584] ss:$48 sps:$4 sm:$0xff]  }
 0x1ba   : > { %1814 = vmatmul.mubr.bf16.vlgmr.msra.gmra.mrb[8].mxu0 %v8795_v31  ;;  %1857 = vmatmul.mubr.bf16.vlgmr.msra.gmra.mrb[8].mxu1 %v8795_v31 }
 0x1bb   : > { %2589 = vmatpush1.bf16.msra.mxu0 %v6888_v59  ;;  %2632 = vmatpush1.bf16.msra.mxu1 %v6891_v60  ;;  %v6981_v59 = vld [vmem:[%s8746_s14 + $0x58c] ss:$48 sps:$4 sm:$0xff]   ;;  %v6976_v60 = vld [vmem:[%s8746_s14 + $0x580] ss:$48 sps:$4 sm:$0xff]  }
 0x1bc   : > { %2590 = vmatprep.subr.bf16.mxu0 %v6896_v61  ;;  %2633 = vmatprep.subr.bf16.mxu1 %v6899_v62  ;;  %v6979_v61 = vld [vmem:[%s8746_s14 + $0x588] ss:$48 sps:$4 sm:$0xff]   ;;  %v6984_v62 = vld [vmem:[%s8746_s14 + $0x5e4] ss:$48 sps:$4 sm:$0xff]  }
 0x1bd   : > { %5950 = vmatprep.mubr.msk.bf16.mxu0 %vm1568_vm0, %v8738_v48  ;;  %5952 = vmatprep.mubr.msk.bf16.mxu1 %vm1568_vm0, %v8738_v48  ;;  %v6914_v48 = vld [vmem:[%s8746_s14 + $0x514] ss:$48 sps:$4 sm:$0xff]  }
 0x1bf   : > { %2591 = vmatpush1.bf16.msra.mxu0 %v6894_v63  ;;  %2634 = vmatpush1.bf16.msra.mxu1 %v6897_v0  ;;  %v6987_v63 = vld [vmem:[%s8746_s14 + $0x5ec] ss:$48 sps:$4 sm:$0xff]   ;;  %v6982_v0 = vld [vmem:[%s8746_s14 + $0x5e0] ss:$48 sps:$4 sm:$0xff]  }
 0x1c0   : > { %2592 = vmatprep.subr.bf16.mxu0 %v6902_v1  ;;  %2635 = vmatprep.subr.bf16.mxu1 %v6905_v2  ;;  %v6985_v1 = vld [vmem:[%s8746_s14 + $0x5e8] ss:$48 sps:$4 sm:$0xff]   ;;  %v6990_v2 = vld [vmem:[%s8746_s14 + $0x644] ss:$48 sps:$4 sm:$0xff]  }
 0x1c3   : > { %2593 = vmatpush1.bf16.msra.mxu0 %v6900_v3  ;;  %2636 = vmatpush1.bf16.msra.mxu1 %v6903_v4  ;;  %v6993_v3 = vld [vmem:[%s8746_s14 + $0x64c] ss:$48 sps:$4 sm:$0xff]   ;;  %v6988_v4 = vld [vmem:[%s8746_s14 + $0x640] ss:$48 sps:$4 sm:$0xff]  }
 0x1c4   : > { %2594 = vmatprep.subr.bf16.mxu0 %v6908_v5  ;;  %2637 = vmatprep.subr.bf16.mxu1 %v6911_v6  ;;  %v6991_v5 = vld [vmem:[%s8746_s14 + $0x648] ss:$48 sps:$4 sm:$0xff]   ;;  %v6996_v6 = vld [vmem:[%s8746_s14 + $0x6a4] ss:$48 sps:$4 sm:$0xff]  }
 0x1c7   : > { %2595 = vmatpush1.bf16.msra.mxu0 %v6906_v7  ;;  %2638 = vmatpush1.bf16.msra.mxu1 %v6909_v8  ;;  %v6999_v7 = vld [vmem:[%s8746_s14 + $0x6ac] ss:$48 sps:$4 sm:$0xff]   ;;  %v5825_v8 = vld [vmem:[%s8746_s14 + $0x700] sm:$0x77] }
 0x1c8   : > { %2596 = vmatprep.subr.bf16.mxu0 %v6914_v48  ;;  %2639 = vmatprep.subr.bf16.mxu1 %v6917_v9  ;;  %v5826_v48 = vld [vmem:[%s8746_s14 + $0x708] sm:$0x77]  ;;  %v6994_v9 = vld [vmem:[%s8746_s14 + $0x6a0] ss:$48 sps:$4 sm:$0xff]  }
 0x1cb   : > { %2597 = vmatpush1.bf16.msra.mxu0 %v6912_v10  ;;  %2640 = vmatpush1.bf16.msra.mxu1 %v6915_v11  ;;  %v6997_v10 = vld [vmem:[%s8746_s14 + $0x6a8] ss:$48 sps:$4 sm:$0xff]   ;;  %v5942_v11 = vcombine.high %v5825_v8, %v5825_v8 }
 0x1cc   : > { %2598 = vmatprep.subr.bf16.mxu0 %v6920_v12  ;;  %2641 = vmatprep.subr.bf16.mxu1 %v6923_v13  ;;  %v5944_v12 = vcombine.high %v5826_v48, %v5826_v48  ;;  %v5941_v13 = vcombine.low %v5825_v8, %v5825_v8  ;;  %v7076_v8 = vld [vmem:[%s8746_s14 + $0x7e4] ss:$48 sps:$4 sm:$0xff]  }
 0x1cf   : > { %2599 = vmatpush1.bf16.msra.mxu0 %v6918_v14  ;;  %2642 = vmatpush1.bf16.msra.mxu1 %v6921_v15  ;;  %v5943_v14 = vcombine.low %v5826_v48, %v5826_v48  ;;  %v2565_v15 = vsel %vm1572_vm1, %v5941_v13, 0  ;;  %v7079_v48 = vld [vmem:[%s8746_s14 + $0x7ec] ss:$48 sps:$4 sm:$0xff]   ;;  %v7080_v13 = vld [vmem:[%s8746_s14 + $0x840] ss:$48 sps:$4 sm:$0xff]  }
 0x1d0   : > { %2600 = vmatprep.subr.bf16.mxu0 %v6926_v16  ;;  %2643 = vmatprep.subr.bf16.mxu1 %v6929_v17  ;;  %v7006_v17 = vld [vmem:[%s8746_s14 + $0x3b4] ss:$48 sps:$4 sm:$0xff]  }
 0x1d1   : > { %v2571_v16 = vsel %vm1572_vm1, %v5943_v14, 0  ;;  %v7083_v14 = vld [vmem:[%s8746_s14 + $0x848] ss:$48 sps:$4 sm:$0xff]  }
 0x1d3   : > { %2601 = vmatpush1.bf16.msra.mxu0 %v6924_v18  ;;  %2644 = vmatpush1.bf16.msra.mxu1 %v6927_v19  ;;  %v7009_v18 = vld [vmem:[%s8746_s14 + $0x3bc] ss:$48 sps:$4 sm:$0xff]   ;;  %v7004_v19 = vld [vmem:[%s8746_s14 + $0x3b0] ss:$48 sps:$4 sm:$0xff]  }
 0x1d4   : > { %2602 = vmatprep.subr.bf16.mxu0 %v6932_v20  ;;  %2645 = vmatprep.subr.bf16.mxu1 %v6935_v21  ;;  %v7007_v20 = vld [vmem:[%s8746_s14 + $0x3b8] ss:$48 sps:$4 sm:$0xff]   ;;  %v7012_v21 = vld [vmem:[%s8746_s14 + $0x414] ss:$48 sps:$4 sm:$0xff]  }
 0x1d7   : > { %2603 = vmatpush1.bf16.msra.mxu0 %v6930_v22  ;;  %2646 = vmatpush1.bf16.msra.mxu1 %v6933_v23  ;;  %v7015_v22 = vld [vmem:[%s8746_s14 + $0x41c] ss:$48 sps:$4 sm:$0xff]   ;;  %v9001_v23 = vld [vmem:[%s10078_s1] ss:$8 sps:$4 sm:$0xff]  }
 0x1d8   : > { %2604 = vmatprep.subr.bf16.mxu0 %v6938_v24  ;;  %2647 = vmatprep.subr.bf16.mxu1 %v6941_v25  ;;  %v7010_v24 = vld [vmem:[%s8746_s14 + $0x410] ss:$48 sps:$4 sm:$0xff]   ;;  %v7013_v25 = vld [vmem:[%s8746_s14 + $0x418] ss:$48 sps:$4 sm:$0xff]  }
 0x1db   : > { %2605 = vmatpush1.bf16.msra.mxu0 %v6936_v28  ;;  %2648 = vmatpush1.bf16.msra.mxu1 %v6939_v29  ;;  %v7016_v28 = vld [vmem:[%s8746_s14 + $0x470] ss:$48 sps:$4 sm:$0xff]   ;;  %v7019_v29 = vld [vmem:[%s8746_s14 + $0x478] ss:$48 sps:$4 sm:$0xff]  }
 0x1dc   : > { %5949 = vmatprep.subr.msk.bf16.mxu0 %vm1572_vm1, %v5938_v30  ;;  %5951 = vmatprep.subr.msk.bf16.mxu1 %vm1572_vm1, %v5940_v32  ;;  %v7024_v30 = vld [vmem:[%s8746_s14 + $0x4d4] ss:$48 sps:$4 sm:$0xff]   ;;  %v7027_v32 = vld [vmem:[%s8746_s14 + $0x4dc] ss:$48 sps:$4 sm:$0xff]  }
 0x1df   : > { %2607 = vmatpush1.bf16.msra.mxu0 %v2553_v36  ;;  %2650 = vmatpush1.bf16.msra.mxu1 %v2559_v37  ;;  %v7033_v36 = vld [vmem:[%s8746_s14 + $0x53c] ss:$48 sps:$4 sm:$0xff]   ;;  %v7028_v37 = vld [vmem:[%s8746_s14 + $0x530] ss:$48 sps:$4 sm:$0xff]  }
 0x1e0   : > { %2674 = vmatprep.subr.bf16.mxu0 %v6948_v35  ;;  %2717 = vmatprep.subr.bf16.mxu1 %v6951_v38  ;;  %v7030_v35 = vld [vmem:[%s8746_s14 + $0x534] ss:$48 sps:$4 sm:$0xff]   ;;  %v7031_v38 = vld [vmem:[%s8746_s14 + $0x538] ss:$48 sps:$4 sm:$0xff]  }
 0x1e2   : > { %2621 = vmatmul.mubr.bf16.vlgmr.msra.gmra.mrb[12].mxu0 %v8795_v31  ;;  %2664 = vmatmul.mubr.bf16.vlgmr.msra.gmra.mrb[12].mxu1 %v8795_v31  ;;  %v6958_v31 = vld [vmem:[%s8746_s14 + $0x460] ss:$48 sps:$4 sm:$0xff]  }
 0x1e3   : > { %2675 = vmatpush1.bf16.msra.mxu0 %v6946_v39  ;;  %2718 = vmatpush1.bf16.msra.mxu1 %v6949_v40  ;;  %v7036_v39 = vld [vmem:[%s8746_s14 + $0x594] ss:$48 sps:$4 sm:$0xff]   ;;  %v7039_v40 = vld [vmem:[%s8746_s14 + $0x59c] ss:$48 sps:$4 sm:$0xff]  }
 0x1e4   : > { %2676 = vmatprep.subr.bf16.mxu0 %v6954_v41  ;;  %2719 = vmatprep.subr.bf16.mxu1 %v6957_v42  ;;  %v7034_v41 = vld [vmem:[%s8746_s14 + $0x590] ss:$48 sps:$4 sm:$0xff]   ;;  %v7037_v42 = vld [vmem:[%s8746_s14 + $0x598] ss:$48 sps:$4 sm:$0xff]  }
 0x1e5   : > { %5954 = vmatprep.mubr.msk.bf16.mxu0 %vm1568_vm0, %v8954_v47  ;;  %5956 = vmatprep.mubr.msk.bf16.mxu1 %vm1568_vm0, %v8954_v47 }
 0x1e7   : > { %2677 = vmatpush1.bf16.msra.mxu0 %v6952_v43  ;;  %2720 = vmatpush1.bf16.msra.mxu1 %v6955_v44  ;;  %v7042_v43 = vld [vmem:[%s8746_s14 + $0x5f4] ss:$48 sps:$4 sm:$0xff]   ;;  %v7045_v44 = vld [vmem:[%s8746_s14 + $0x5fc] ss:$48 sps:$4 sm:$0xff]  }
 0x1e8   : > { %2678 = vmatprep.subr.bf16.mxu0 %v6960_v45  ;;  %2721 = vmatprep.subr.bf16.mxu1 %v6963_v46  ;;  %v7040_v45 = vld [vmem:[%s8746_s14 + $0x5f0] ss:$48 sps:$4 sm:$0xff]   ;;  %v7043_v46 = vld [vmem:[%s8746_s14 + $0x5f8] ss:$48 sps:$4 sm:$0xff]  }
 0x1eb   : > { %2679 = vmatpush1.bf16.msra.mxu0 %v6958_v31  ;;  %2722 = vmatpush1.bf16.msra.mxu1 %v6961_v49  ;;  %v7048_v31 = vld [vmem:[%s8746_s14 + $0x654] ss:$48 sps:$4 sm:$0xff]   ;;  %v7051_v49 = vld [vmem:[%s8746_s14 + $0x65c] ss:$48 sps:$4 sm:$0xff]  }
 0x1ec   : > { %2680 = vmatprep.subr.bf16.mxu0 %v6966_v50  ;;  %2723 = vmatprep.subr.bf16.mxu1 %v6969_v51  ;;  %v7046_v50 = vld [vmem:[%s8746_s14 + $0x650] ss:$48 sps:$4 sm:$0xff]   ;;  %v7049_v51 = vld [vmem:[%s8746_s14 + $0x658] ss:$48 sps:$4 sm:$0xff]  }
 0x1ef   : > { %2681 = vmatpush1.bf16.msra.mxu0 %v6964_v52  ;;  %2724 = vmatpush1.bf16.msra.mxu1 %v6967_v53  ;;  %v7054_v52 = vld [vmem:[%s8746_s14 + $0x6b4] ss:$48 sps:$4 sm:$0xff]   ;;  %v7057_v53 = vld [vmem:[%s8746_s14 + $0x6bc] ss:$48 sps:$4 sm:$0xff]  }
 0x1f0   : > { %2682 = vmatprep.subr.bf16.mxu0 %v6972_v54  ;;  %2725 = vmatprep.subr.bf16.mxu1 %v6975_v55  ;;  %v5827_v54 = vld [vmem:[%s8746_s14 + $0x710] sm:$0x77]  ;;  %v5828_v55 = vld [vmem:[%s8746_s14 + $0x718] sm:$0x77] }
 0x1f3   : > { %2683 = vmatpush1.bf16.msra.mxu0 %v6970_v56  ;;  %2726 = vmatpush1.bf16.msra.mxu1 %v6973_v57  ;;  %v7052_v56 = vld [vmem:[%s8746_s14 + $0x6b0] ss:$48 sps:$4 sm:$0xff]   ;;  %v7055_v57 = vld [vmem:[%s8746_s14 + $0x6b8] ss:$48 sps:$4 sm:$0xff]  }
 0x1f4   : > { %2684 = vmatprep.subr.bf16.mxu0 %v6978_v58  ;;  %2727 = vmatprep.subr.bf16.mxu1 %v6981_v59  ;;  %v5946_v58 = vcombine.high %v5827_v54, %v5827_v54  ;;  %v5948_v59 = vcombine.high %v5828_v55, %v5828_v55 }
 0x1f7   : > { %2685 = vmatpush1.bf16.msra.mxu0 %v6976_v60  ;;  %2728 = vmatpush1.bf16.msra.mxu1 %v6979_v61  ;;  %v5945_v60 = vcombine.low %v5827_v54, %v5827_v54  ;;  %v5947_v61 = vcombine.low %v5828_v55, %v5828_v55  ;;  %v7122_v54 = vld [vmem:[%s8746_s14 + $0x734] ss:$48 sps:$4 sm:$0xff]   ;;  %v7125_v55 = vld [vmem:[%s8746_s14 + $0x73c] ss:$48 sps:$4 sm:$0xff]  }
 0x1f8   : > { %2686 = vmatprep.subr.bf16.mxu0 %v6984_v62  ;;  %2729 = vmatprep.subr.bf16.mxu1 %v6987_v63  ;;  %v7064_v62 = vld [vmem:[%s8746_s14 + $0x724] ss:$48 sps:$4 sm:$0xff]  }
 0x1f9   : > { %v2577_v63 = vsel %vm1572_vm1, %v5945_v60, 0  ;;  %v7126_v60 = vld [vmem:[%s8746_s14 + $0x790] ss:$48 sps:$4 sm:$0xff]  }
 0x1fb   : > { %2687 = vmatpush1.bf16.msra.mxu0 %v6982_v0  ;;  %2730 = vmatpush1.bf16.msra.mxu1 %v6985_v1  ;;  %v2583_v0 = vsel %vm1572_vm1, %v5947_v61, 0  ;;  %v7067_v1 = vld [vmem:[%s8746_s14 + $0x72c] ss:$48 sps:$4 sm:$0xff]   ;;  %v7129_v61 = vld [vmem:[%s8746_s14 + $0x798] ss:$48 sps:$4 sm:$0xff]  }
 0x1fc   : > { %2688 = vmatprep.subr.bf16.mxu0 %v6990_v2  ;;  %2731 = vmatprep.subr.bf16.mxu1 %v6993_v3  ;;  %v7062_v2 = vld [vmem:[%s8746_s14 + $0x720] ss:$48 sps:$4 sm:$0xff]   ;;  %v7065_v3 = vld [vmem:[%s8746_s14 + $0x728] ss:$48 sps:$4 sm:$0xff]  }
 0x1ff   : > { %2689 = vmatpush1.bf16.msra.mxu0 %v6988_v4  ;;  %2732 = vmatpush1.bf16.msra.mxu1 %v6991_v5  ;;  %v7070_v4 = vld [vmem:[%s8746_s14 + $0x784] ss:$48 sps:$4 sm:$0xff]   ;;  %v7073_v5 = vld [vmem:[%s8746_s14 + $0x78c] ss:$48 sps:$4 sm:$0xff]  }
 0x200   : > { %2690 = vmatprep.subr.bf16.mxu0 %v6996_v6  ;;  %2733 = vmatprep.subr.bf16.mxu1 %v6999_v7  ;;  %v7068_v6 = vld [vmem:[%s8746_s14 + $0x780] ss:$48 sps:$4 sm:$0xff]   ;;  %v7071_v7 = vld [vmem:[%s8746_s14 + $0x788] ss:$48 sps:$4 sm:$0xff]  }
 0x203   : > { %2691 = vmatpush1.bf16.msra.mxu0 %v6994_v9  ;;  %2734 = vmatpush1.bf16.msra.mxu1 %v6997_v10  ;;  %v7074_v9 = vld [vmem:[%s8746_s14 + $0x7e0] ss:$48 sps:$4 sm:$0xff]   ;;  %v7077_v10 = vld [vmem:[%s8746_s14 + $0x7e8] ss:$48 sps:$4 sm:$0xff]  }
 0x204   : > { %5953 = vmatprep.subr.msk.bf16.mxu0 %vm1572_vm1, %v5942_v11  ;;  %5955 = vmatprep.subr.msk.bf16.mxu1 %vm1572_vm1, %v5944_v12  ;;  %v7082_v11 = vld [vmem:[%s8746_s14 + $0x844] ss:$48 sps:$4 sm:$0xff]   ;;  %v7085_v12 = vld [vmem:[%s8746_s14 + $0x84c] ss:$48 sps:$4 sm:$0xff]  }
 0x207   : > { %2693 = vmatpush1.bf16.msra.mxu0 %v2565_v15  ;;  %2736 = vmatpush1.bf16.msra.mxu1 %v2571_v16  ;;  %v7088_v15 = vld [vmem:[%s8746_s14 + $0x8a4] ss:$48 sps:$4 sm:$0xff]   ;;  %v7091_v16 = vld [vmem:[%s8746_s14 + $0x8ac] ss:$48 sps:$4 sm:$0xff]  }
 0x208   : > { %2760 = vmatprep.subr.bf16.mxu0 %v7006_v17  ;;  %2803 = vmatprep.subr.bf16.mxu1 %v7009_v18 }
 0x20a   : > { %2707 = vmatmul.mubr.bf16.vlgmr.msra.gmra.mrb[16].mxu0 %v9001_v23  ;;  %2750 = vmatmul.mubr.bf16.vlgmr.msra.gmra.mrb[16].mxu1 %v9001_v23 }
 0x20b   : > { %2761 = vmatpush1.bf16.msra.mxu0 %v7004_v19  ;;  %2804 = vmatpush1.bf16.msra.mxu1 %v7007_v20 }
 0x20c   : > { %2762 = vmatprep.subr.bf16.mxu0 %v7012_v21  ;;  %2805 = vmatprep.subr.bf16.mxu1 %v7015_v22 }
 0x20d   : > { %5958 = vmatprep.mubr.msk.bf16.mxu0 %vm1568_vm0, %v8954_v47  ;;  %5960 = vmatprep.mubr.msk.bf16.mxu1 %vm1568_vm0, %v8954_v47 }
 0x20f   : > { %2763 = vmatpush1.bf16.msra.mxu0 %v7010_v24  ;;  %2806 = vmatpush1.bf16.msra.mxu1 %v7013_v25  ;;  %v7086_v24 = vld [vmem:[%s8746_s14 + $0x8a0] ss:$48 sps:$4 sm:$0xff]   ;;  %v7089_v25 = vld [vmem:[%s8746_s14 + $0x8a8] ss:$48 sps:$4 sm:$0xff]  }
 0x210   : > { %2764 = vmatprep.subr.bf16.mxu0 %v7018_v26  ;;  %2807 = vmatprep.subr.bf16.mxu1 %v7021_v27 }
 0x213   : > { %2765 = vmatpush1.bf16.msra.mxu0 %v7016_v28  ;;  %2808 = vmatpush1.bf16.msra.mxu1 %v7019_v29  ;;  %v7094_v28 = vld [vmem:[%s8746_s14 + $0x904] ss:$48 sps:$4 sm:$0xff]   ;;  %v7097_v29 = vld [vmem:[%s8746_s14 + $0x90c] ss:$48 sps:$4 sm:$0xff]  }
 0x214   : > { %2766 = vmatprep.subr.bf16.mxu0 %v7024_v30  ;;  %2809 = vmatprep.subr.bf16.mxu1 %v7027_v32  ;;  %v7092_v30 = vld [vmem:[%s8746_s14 + $0x900] ss:$48 sps:$4 sm:$0xff]   ;;  %v7095_v32 = vld [vmem:[%s8746_s14 + $0x908] ss:$48 sps:$4 sm:$0xff]  }
 0x217   : > { %2767 = vmatpush1.bf16.msra.mxu0 %v7022_v33  ;;  %2810 = vmatpush1.bf16.msra.mxu1 %v7025_v34  ;;  %v7100_v33 = vld [vmem:[%s8746_s14 + $0x964] ss:$48 sps:$4 sm:$0xff]   ;;  %v7103_v34 = vld [vmem:[%s8746_s14 + $0x96c] ss:$48 sps:$4 sm:$0xff]  }
 0x218   : > { %2768 = vmatprep.subr.bf16.mxu0 %v7030_v35  ;;  %2811 = vmatprep.subr.bf16.mxu1 %v7033_v36  ;;  %v7098_v35 = vld [vmem:[%s8746_s14 + $0x960] ss:$48 sps:$4 sm:$0xff]   ;;  %v7101_v36 = vld [vmem:[%s8746_s14 + $0x968] ss:$48 sps:$4 sm:$0xff]  }
 0x21b   : > { %2769 = vmatpush1.bf16.msra.mxu0 %v7028_v37  ;;  %2812 = vmatpush1.bf16.msra.mxu1 %v7031_v38  ;;  %v7106_v37 = vld [vmem:[%s8746_s14 + $0x9c4] ss:$48 sps:$4 sm:$0xff]   ;;  %v7109_v38 = vld [vmem:[%s8746_s14 + $0x9cc] ss:$48 sps:$4 sm:$0xff]  }
 0x21c   : > { %2770 = vmatprep.subr.bf16.mxu0 %v7036_v39  ;;  %2813 = vmatprep.subr.bf16.mxu1 %v7039_v40  ;;  %v7104_v39 = vld [vmem:[%s8746_s14 + $0x9c0] ss:$48 sps:$4 sm:$0xff]   ;;  %v7107_v40 = vld [vmem:[%s8746_s14 + $0x9c8] ss:$48 sps:$4 sm:$0xff]  }
 0x21f   : > { %2771 = vmatpush1.bf16.msra.mxu0 %v7034_v41  ;;  %2814 = vmatpush1.bf16.msra.mxu1 %v7037_v42  ;;  %v7112_v41 = vld [vmem:[%s8746_s14 + $0xa24] ss:$48 sps:$4 sm:$0xff]   ;;  %v7115_v42 = vld [vmem:[%s8746_s14 + $0xa2c] ss:$48 sps:$4 sm:$0xff]  }
 0x220   : > { %2772 = vmatprep.subr.bf16.mxu0 %v7042_v43  ;;  %2815 = vmatprep.subr.bf16.mxu1 %v7045_v44  ;;  %v6069_v43 = vld [vmem:[%s8746_s14 + $0xa80] sm:$0x77]  ;;  %v6070_v44 = vld [vmem:[%s8746_s14 + $0xa88] sm:$0x77] }
 0x223   : > { %2773 = vmatpush1.bf16.msra.mxu0 %v7040_v45  ;;  %2816 = vmatpush1.bf16.msra.mxu1 %v7043_v46  ;;  %v7110_v45 = vld [vmem:[%s8746_s14 + $0xa20] ss:$48 sps:$4 sm:$0xff]   ;;  %v7113_v46 = vld [vmem:[%s8746_s14 + $0xa28] ss:$48 sps:$4 sm:$0xff]  }
 0x224   : > { %2774 = vmatprep.subr.bf16.mxu0 %v7048_v31  ;;  %2817 = vmatprep.subr.bf16.mxu1 %v7051_v49  ;;  %v6184_v31 = vcombine.high %v6069_v43, %v6069_v43  ;;  %v6186_v49 = vcombine.high %v6070_v44, %v6070_v44 }
 0x227   : > { %2775 = vmatpush1.bf16.msra.mxu0 %v7046_v50  ;;  %2818 = vmatpush1.bf16.msra.mxu1 %v7049_v51  ;;  %v6183_v50 = vcombine.low %v6069_v43, %v6069_v43  ;;  %v6185_v51 = vcombine.low %v6070_v44, %v6070_v44  ;;  %v7171_v43 = vld [vmem:[%s8746_s14 + $0xa38] ss:$48 sps:$4 sm:$0xff]  }
 0x228   : > { %2776 = vmatprep.subr.bf16.mxu0 %v7054_v52  ;;  %2819 = vmatprep.subr.bf16.mxu1 %v7057_v53 }
 0x229   : > { %v3556_v52 = vsel %vm1572_vm1, %v6183_v50, 0  ;;  %v3562_v53 = vsel %vm1572_vm1, %v6185_v51, 0  ;;  %v7180_v51 = vld [vmem:[%s8746_s14 + $0x744] ss:$48 sps:$4 sm:$0xff]  }
 0x22b   : > { %2777 = vmatpush1.bf16.msra.mxu0 %v7052_v56  ;;  %2820 = vmatpush1.bf16.msra.mxu1 %v7055_v57  ;;  %v7120_v56 = vld [vmem:[%s8746_s14 + $0x730] ss:$48 sps:$4 sm:$0xff]   ;;  %v7123_v57 = vld [vmem:[%s8746_s14 + $0x738] ss:$48 sps:$4 sm:$0xff]  }
 0x22c   : > { %5957 = vmatprep.subr.msk.bf16.mxu0 %vm1572_vm1, %v5946_v58  ;;  %5959 = vmatprep.subr.msk.bf16.mxu1 %vm1572_vm1, %v5948_v59  ;;  %v7128_v58 = vld [vmem:[%s8746_s14 + $0x794] ss:$48 sps:$4 sm:$0xff]   ;;  %v7131_v59 = vld [vmem:[%s8746_s14 + $0x79c] ss:$48 sps:$4 sm:$0xff]  }
 0x22f   : > { %2779 = vmatpush1.bf16.msra.mxu0 %v2577_v63  ;;  %2822 = vmatpush1.bf16.msra.mxu1 %v2583_v0  ;;  %v7137_v63 = vld [vmem:[%s8746_s14 + $0x7fc] ss:$48 sps:$4 sm:$0xff]   ;;  %v7132_v0 = vld [vmem:[%s8746_s14 + $0x7f0] ss:$48 sps:$4 sm:$0xff]  }
 0x230   : > { %3591 = vmatprep.subr.bf16.mxu0 %v7064_v62  ;;  %3634 = vmatprep.subr.bf16.mxu1 %v7067_v1  ;;  %v7134_v62 = vld [vmem:[%s8746_s14 + $0x7f4] ss:$48 sps:$4 sm:$0xff]   ;;  %v7135_v1 = vld [vmem:[%s8746_s14 + $0x7f8] ss:$48 sps:$4 sm:$0xff]  }
 0x232   : > { %2793 = vmatmul.mubr.bf16.vlgmr.msra.gmra.mrb[20].mxu0 %v9001_v23  ;;  %2836 = vmatmul.mubr.bf16.vlgmr.msra.gmra.mrb[20].mxu1 %v9001_v23 }
 0x233   : > { %3592 = vmatpush1.bf16.msra.mxu0 %v7062_v2  ;;  %3635 = vmatpush1.bf16.msra.mxu1 %v7065_v3  ;;  %v7140_v2 = vld [vmem:[%s8746_s14 + $0x854] ss:$48 sps:$4 sm:$0xff]   ;;  %v7143_v3 = vld [vmem:[%s8746_s14 + $0x85c] ss:$48 sps:$4 sm:$0xff]  }
 0x234   : > { %3593 = vmatprep.subr.bf16.mxu0 %v7070_v4  ;;  %3636 = vmatprep.subr.bf16.mxu1 %v7073_v5  ;;  %v7138_v4 = vld [vmem:[%s8746_s14 + $0x850] ss:$48 sps:$4 sm:$0xff]   ;;  %v7141_v5 = vld [vmem:[%s8746_s14 + $0x858] ss:$48 sps:$4 sm:$0xff]  }
 0x235   : > { %6196 = vmatprep.mubr.msk.bf16.mxu0 %vm1568_vm0, %v8954_v47  ;;  %6198 = vmatprep.mubr.msk.bf16.mxu1 %vm1568_vm0, %v8954_v47 }
 0x237   : > { %3594 = vmatpush1.bf16.msra.mxu0 %v7068_v6  ;;  %3637 = vmatpush1.bf16.msra.mxu1 %v7071_v7  ;;  %v7146_v6 = vld [vmem:[%s8746_s14 + $0x8b4] ss:$48 sps:$4 sm:$0xff]  }
 0x238   : > { %3595 = vmatprep.subr.bf16.mxu0 %v7076_v8  ;;  %3638 = vmatprep.subr.bf16.mxu1 %v7079_v48 }
 0x23b   : > { %3596 = vmatpush1.bf16.msra.mxu0 %v7074_v9  ;;  %3639 = vmatpush1.bf16.msra.mxu1 %v7077_v10 }
 0x23c   : > { %3597 = vmatprep.subr.bf16.mxu0 %v7082_v11  ;;  %3640 = vmatprep.subr.bf16.mxu1 %v7085_v12  ;;  %v7144_v12 = vld [vmem:[%s8746_s14 + $0x8b0] ss:$48 sps:$4 sm:$0xff]  }
 0x23d   : > { %v9069_v17 = vpop.f32.mrb[0].mxu0  ;;  %v9071_v18 = vpop.f32.mrb[0].mxu1 }
 0x23e   : > { %v9073_v19 = vpop.f32.mrb[1].mxu0  ;;  %v9075_v20 = vpop.f32.mrb[1].mxu1 }
 0x23f   : > { %v9077_v21 = vpop.f32.mrb[2].mxu0  ;;  %v9079_v22 = vpop.f32.mrb[2].mxu1  ;;  %3598 = vmatpush1.bf16.msra.mxu0 %v7080_v13  ;;  %3641 = vmatpush1.bf16.msra.mxu1 %v7083_v14  ;;  %v7147_v13 = vld [vmem:[%s8746_s14 + $0x8b8] ss:$48 sps:$4 sm:$0xff]  }
 0x240   : > { %v9083_v26 = vpop.f32.mrb[3].mxu0  ;;  %v9085_v27 = vpop.f32.mrb[3].mxu1  ;;  %3599 = vmatprep.subr.bf16.mxu0 %v7088_v15  ;;  %3642 = vmatprep.subr.bf16.mxu1 %v7091_v16  ;;  %v7152_v16 = vld [vmem:[%s8746_s14 + $0x914] ss:$48 sps:$4 sm:$0xff]  }
 0x243   : > { %3600 = vmatpush1.bf16.msra.mxu0 %v7086_v24  ;;  %3643 = vmatpush1.bf16.msra.mxu1 %v7089_v25  ;;  %v7155_v24 = vld [vmem:[%s8746_s14 + $0x91c] ss:$48 sps:$4 sm:$0xff]   ;;  %v7150_v25 = vld [vmem:[%s8746_s14 + $0x910] ss:$48 sps:$4 sm:$0xff]  }
 0x244   : > { %3601 = vmatprep.subr.bf16.mxu0 %v7094_v28  ;;  %3644 = vmatprep.subr.bf16.mxu1 %v7097_v29  ;;  %v7153_v28 = vld [vmem:[%s8746_s14 + $0x918] ss:$48 sps:$4 sm:$0xff]   ;;  %v7158_v29 = vld [vmem:[%s8746_s14 + $0x974] ss:$48 sps:$4 sm:$0xff]  }
 0x247   : > { %3602 = vmatpush1.bf16.msra.mxu0 %v7092_v30  ;;  %3645 = vmatpush1.bf16.msra.mxu1 %v7095_v32  ;;  %v7161_v30 = vld [vmem:[%s8746_s14 + $0x97c] ss:$48 sps:$4 sm:$0xff]   ;;  %v7156_v32 = vld [vmem:[%s8746_s14 + $0x970] ss:$48 sps:$4 sm:$0xff]  }
 0x248   : > { %3603 = vmatprep.subr.bf16.mxu0 %v7100_v33  ;;  %3646 = vmatprep.subr.bf16.mxu1 %v7103_v34  ;;  %v7159_v33 = vld [vmem:[%s8746_s14 + $0x978] ss:$48 sps:$4 sm:$0xff]   ;;  %v7164_v34 = vld [vmem:[%s8746_s14 + $0x9d4] ss:$48 sps:$4 sm:$0xff]  }
 0x24b   : > { %3604 = vmatpush1.bf16.msra.mxu0 %v7098_v35  ;;  %3647 = vmatpush1.bf16.msra.mxu1 %v7101_v36  ;;  %v7167_v35 = vld [vmem:[%s8746_s14 + $0x9dc] ss:$48 sps:$4 sm:$0xff]   ;;  %v7162_v36 = vld [vmem:[%s8746_s14 + $0x9d0] ss:$48 sps:$4 sm:$0xff]  }
 0x24c   : > { %3605 = vmatprep.subr.bf16.mxu0 %v7106_v37  ;;  %3648 = vmatprep.subr.bf16.mxu1 %v7109_v38  ;;  %v7165_v37 = vld [vmem:[%s8746_s14 + $0x9d8] ss:$48 sps:$4 sm:$0xff]   ;;  %v7170_v38 = vld [vmem:[%s8746_s14 + $0xa34] ss:$48 sps:$4 sm:$0xff]  }
 0x24f   : > { %3606 = vmatpush1.bf16.msra.mxu0 %v7104_v39  ;;  %3649 = vmatpush1.bf16.msra.mxu1 %v7107_v40  ;;  %v7173_v39 = vld [vmem:[%s8746_s14 + $0xa3c] ss:$48 sps:$4 sm:$0xff]   ;;  %v6071_v40 = vld [vmem:[%s8746_s14 + $0xa90] sm:$0x77] }
 0x250   : > { %3607 = vmatprep.subr.bf16.mxu0 %v7112_v41  ;;  %3650 = vmatprep.subr.bf16.mxu1 %v7115_v42  ;;  %v6072_v41 = vld [vmem:[%s8746_s14 + $0xa98] sm:$0x77]  ;;  %v7168_v42 = vld [vmem:[%s8746_s14 + $0xa30] ss:$48 sps:$4 sm:$0xff]   ;;  %v6188_v44 = vcombine.high %v6071_v40, %v6071_v40 }
 0x253   : > { %3608 = vmatpush1.bf16.msra.mxu0 %v7110_v45  ;;  %3651 = vmatpush1.bf16.msra.mxu1 %v7113_v46  ;;  %v6190_v45 = vcombine.high %v6072_v41, %v6072_v41  ;;  %v6187_v46 = vcombine.low %v6071_v40, %v6071_v40  ;;  %v7225_v40 = vld [vmem:[%s8746_s14 + $0x9ec] ss:$48 sps:$4 sm:$0xff]  }
 0x254   : > { %6195 = vmatprep.subr.msk.bf16.mxu0 %vm1572_vm1, %v6184_v31  ;;  %6197 = vmatprep.subr.msk.bf16.mxu1 %vm1572_vm1, %v6186_v49  ;;  %v6189_v31 = vcombine.low %v6072_v41, %v6072_v41  ;;  %v7220_v41 = vld [vmem:[%s8746_s14 + $0x9e0] ss:$48 sps:$4 sm:$0xff]  }
 0x255   : > { %v3568_v49 = vsel %vm1572_vm1, %v6187_v46, 0  ;;  %v6074_v46 = vld [vmem:[%s8746_s14 + $0xaa8] sm:$0x77] }
 0x256   : > { %v3574_v50 = vsel %vm1572_vm1, %v6189_v31, 0  ;;  %v7226_v31 = vld [vmem:[%s8746_s14 + $0xa40] ss:$48 sps:$4 sm:$0xff]  }
 0x257   : > { %3610 = vmatpush1.bf16.msra.mxu0 %v3556_v52  ;;  %3653 = vmatpush1.bf16.msra.mxu1 %v3562_v53  ;;  %v7183_v52 = vld [vmem:[%s8746_s14 + $0x74c] ss:$48 sps:$4 sm:$0xff]   ;;  %v7178_v53 = vld [vmem:[%s8746_s14 + $0x740] ss:$48 sps:$4 sm:$0xff]  }
 0x258   : > { %3677 = vmatprep.subr.bf16.mxu0 %v7122_v54  ;;  %3720 = vmatprep.subr.bf16.mxu1 %v7125_v55  ;;  %v7181_v54 = vld [vmem:[%s8746_s14 + $0x748] ss:$48 sps:$4 sm:$0xff]   ;;  %v7186_v55 = vld [vmem:[%s8746_s14 + $0x7a4] ss:$48 sps:$4 sm:$0xff]  }
 0x25a   : > { %3624 = vmatmul.mubr.bf16.vlgmr.msra.gmra.mrb[24].mxu0 %v9001_v23  ;;  %3667 = vmatmul.mubr.bf16.vlgmr.msra.gmra.mrb[24].mxu1 %v9001_v23 }
 0x25b   : > { %3678 = vmatpush1.bf16.msra.mxu0 %v7120_v56  ;;  %3721 = vmatpush1.bf16.msra.mxu1 %v7123_v57  ;;  %v7189_v56 = vld [vmem:[%s8746_s14 + $0x7ac] ss:$48 sps:$4 sm:$0xff]   ;;  %v7184_v57 = vld [vmem:[%s8746_s14 + $0x7a0] ss:$48 sps:$4 sm:$0xff]  }
 0x25c   : > { %3679 = vmatprep.subr.bf16.mxu0 %v7128_v58  ;;  %3722 = vmatprep.subr.bf16.mxu1 %v7131_v59  ;;  %v7187_v58 = vld [vmem:[%s8746_s14 + $0x7a8] ss:$48 sps:$4 sm:$0xff]   ;;  %v7192_v59 = vld [vmem:[%s8746_s14 + $0x804] ss:$48 sps:$4 sm:$0xff]  }
 0x25d   : > { %6200 = vmatprep.mubr.msk.bf16.mxu0 %vm1568_vm0, %v8954_v47  ;;  %6202 = vmatprep.mubr.msk.bf16.mxu1 %vm1568_vm0, %v8954_v47  ;;  %v7149_v47 = vld [vmem:[%s8746_s14 + $0x8bc] ss:$48 sps:$4 sm:$0xff]  }
 0x25f   : > { %3680 = vmatpush1.bf16.msra.mxu0 %v7126_v60  ;;  %3723 = vmatpush1.bf16.msra.mxu1 %v7129_v61  ;;  %v7195_v60 = vld [vmem:[%s8746_s14 + $0x80c] ss:$48 sps:$4 sm:$0xff]  }
 0x260   : > { %3681 = vmatprep.subr.bf16.mxu0 %v7134_v62  ;;  %3724 = vmatprep.subr.bf16.mxu1 %v7137_v63  ;;  %v9188_v61 = vld [vmem:[%s10078_s1 + $0x4] ss:$8 sps:$4 sm:$0xff]   ;;  %v7193_v62 = vld [vmem:[%s8746_s14 + $0x808] ss:$48 sps:$4 sm:$0xff]  }
 0x261   : > { %v7198_v63 = vld [vmem:[%s8746_s14 + $0x864] ss:$48 sps:$4 sm:$0xff]  }
 0x263   : > { %3682 = vmatpush1.bf16.msra.mxu0 %v7132_v0  ;;  %3725 = vmatpush1.bf16.msra.mxu1 %v7135_v1  ;;  %v7201_v0 = vld [vmem:[%s8746_s14 + $0x86c] ss:$48 sps:$4 sm:$0xff]   ;;  %v7196_v1 = vld [vmem:[%s8746_s14 + $0x860] ss:$48 sps:$4 sm:$0xff]  }
 0x264   : > { %3683 = vmatprep.subr.bf16.mxu0 %v7140_v2  ;;  %3726 = vmatprep.subr.bf16.mxu1 %v7143_v3  ;;  %v7199_v2 = vld [vmem:[%s8746_s14 + $0x868] ss:$48 sps:$4 sm:$0xff]   ;;  %v7204_v3 = vld [vmem:[%s8746_s14 + $0x8c4] ss:$48 sps:$4 sm:$0xff]  }
 0x265   : > { %v9133_v7 = vpop.f32.mrb[4].mxu0  ;;  %v9135_v8 = vpop.f32.mrb[4].mxu1 }
 0x266   : > { %v9137_v48 = vpop.f32.mrb[5].mxu0  ;;  %v9139_v9 = vpop.f32.mrb[5].mxu1 }
 0x267   : > { %v9141_v10 = vpop.f32.mrb[6].mxu0  ;;  %v9143_v11 = vpop.f32.mrb[6].mxu1  ;;  %3684 = vmatpush1.bf16.msra.mxu0 %v7138_v4  ;;  %3727 = vmatpush1.bf16.msra.mxu1 %v7141_v5  ;;  %v7207_v4 = vld [vmem:[%s8746_s14 + $0x8cc] ss:$48 sps:$4 sm:$0xff]  }
 0x268   : > { %v9147_v14 = vpop.f32.mrb[7].mxu0  ;;  %v9149_v15 = vpop.f32.mrb[7].mxu1  ;;  %3685 = vmatprep.subr.bf16.mxu0 %v7146_v6  ;;  %3728 = vmatprep.subr.bf16.mxu1 %v7149_v47 }
 0x26b   : > { %3686 = vmatpush1.bf16.msra.mxu0 %v7144_v12  ;;  %3729 = vmatpush1.bf16.msra.mxu1 %v7147_v13 }
 0x26c   : > { %3687 = vmatprep.subr.bf16.mxu0 %v7152_v16  ;;  %3730 = vmatprep.subr.bf16.mxu1 %v7155_v24  ;;  %v7202_v24 = vld [vmem:[%s8746_s14 + $0x8c0] ss:$48 sps:$4 sm:$0xff]  }
 0x26f   : > { %3688 = vmatpush1.bf16.msra.mxu0 %v7150_v25  ;;  %3731 = vmatpush1.bf16.msra.mxu1 %v7153_v28  ;;  %v7205_v25 = vld [vmem:[%s8746_s14 + $0x8c8] ss:$48 sps:$4 sm:$0xff]  }
 0x270   : > { %3689 = vmatprep.subr.bf16.mxu0 %v7158_v29  ;;  %3732 = vmatprep.subr.bf16.mxu1 %v7161_v30  ;;  %v7210_v30 = vld [vmem:[%s8746_s14 + $0x924] ss:$48 sps:$4 sm:$0xff]  }
 0x273   : > { %3690 = vmatpush1.bf16.msra.mxu0 %v7156_v32  ;;  %3733 = vmatpush1.bf16.msra.mxu1 %v7159_v33  ;;  %v7213_v32 = vld [vmem:[%s8746_s14 + $0x92c] ss:$48 sps:$4 sm:$0xff]   ;;  %v7208_v33 = vld [vmem:[%s8746_s14 + $0x920] ss:$48 sps:$4 sm:$0xff]  }
 0x274   : > { %3691 = vmatprep.subr.bf16.mxu0 %v7164_v34  ;;  %3734 = vmatprep.subr.bf16.mxu1 %v7167_v35  ;;  %v7211_v34 = vld [vmem:[%s8746_s14 + $0x928] ss:$48 sps:$4 sm:$0xff]   ;;  %v7216_v35 = vld [vmem:[%s8746_s14 + $0x984] ss:$48 sps:$4 sm:$0xff]  }
 0x277   : > { %3692 = vmatpush1.bf16.msra.mxu0 %v7162_v36  ;;  %3735 = vmatpush1.bf16.msra.mxu1 %v7165_v37  ;;  %v7219_v36 = vld [vmem:[%s8746_s14 + $0x98c] ss:$48 sps:$4 sm:$0xff]   ;;  %v7214_v37 = vld [vmem:[%s8746_s14 + $0x980] ss:$48 sps:$4 sm:$0xff]  }
 0x278   : > { %3693 = vmatprep.subr.bf16.mxu0 %v7170_v38  ;;  %3736 = vmatprep.subr.bf16.mxu1 %v7173_v39  ;;  %v7217_v38 = vld [vmem:[%s8746_s14 + $0x988] ss:$48 sps:$4 sm:$0xff]   ;;  %v7222_v39 = vld [vmem:[%s8746_s14 + $0x9e4] ss:$48 sps:$4 sm:$0xff]  }
 0x27b   : > { %3694 = vmatpush1.bf16.msra.mxu0 %v7168_v42  ;;  %3737 = vmatpush1.bf16.msra.mxu1 %v7171_v43  ;;  %v7223_v42 = vld [vmem:[%s8746_s14 + $0x9e8] ss:$48 sps:$4 sm:$0xff]   ;;  %v7228_v43 = vld [vmem:[%s8746_s14 + $0xa44] ss:$48 sps:$4 sm:$0xff]  }
 0x27c   : > { %6199 = vmatprep.subr.msk.bf16.mxu0 %vm1572_vm1, %v6188_v44  ;;  %6201 = vmatprep.subr.msk.bf16.mxu1 %vm1572_vm1, %v6190_v45  ;;  %v7231_v44 = vld [vmem:[%s8746_s14 + $0xa4c] ss:$48 sps:$4 sm:$0xff]   ;;  %v6073_v45 = vld [vmem:[%s8746_s14 + $0xaa0] sm:$0x77] }
 0x27f   : > { %3696 = vmatpush1.bf16.msra.mxu0 %v3568_v49  ;;  %3739 = vmatpush1.bf16.msra.mxu1 %v3574_v50  ;;  %v7229_v49 = vld [vmem:[%s8746_s14 + $0xa48] ss:$48 sps:$4 sm:$0xff]   ;;  %v6192_v50 = vcombine.high %v6073_v45, %v6073_v45 }
 0x280   : > { %3763 = vmatprep.subr.bf16.mxu0 %v7180_v51  ;;  %3806 = vmatprep.subr.bf16.mxu1 %v7183_v52  ;;  %v6194_v51 = vcombine.high %v6074_v46, %v6074_v46  ;;  %v6191_v52 = vcombine.low %v6073_v45, %v6073_v45  ;;  %v7405_v45 = vld [vmem:[%s8746_s14 + $0xddc] ss:$48 sps:$4 sm:$0xff]  }
 0x282   : > { %3710 = vmatmul.mubr.bf16.vlgmr.msra.gmra.mrb[28].mxu0 %v9001_v23  ;;  %3753 = vmatmul.mubr.bf16.vlgmr.msra.gmra.mrb[28].mxu1 %v9001_v23  ;;  %v7190_v23 = vld [vmem:[%s8746_s14 + $0x800] ss:$48 sps:$4 sm:$0xff]  }
 0x283   : > { %3764 = vmatpush1.bf16.msra.mxu0 %v7178_v53  ;;  %3807 = vmatpush1.bf16.msra.mxu1 %v7181_v54  ;;  %v6193_v53 = vcombine.low %v6074_v46, %v6074_v46  ;;  %v4876_v54 = vld [vmem:[%s10079_s2] sm:$0xff] }
 0x284   : > { %3765 = vmatprep.subr.bf16.mxu0 %v7186_v55  ;;  %3808 = vmatprep.subr.bf16.mxu1 %v7189_v56  ;;  %v3580_v55 = vsel %vm1572_vm1, %v6191_v52, 0  ;;  %v7385_v52 = vld [vmem:[%s8746_s14 + $0xcb8] ss:$48 sps:$4 sm:$0xff]  }
 0x285   : > { %6204 = vmatprep.mubr.msk.bf16.mxu0 %vm1568_vm0, %v9188_v61  ;;  %6206 = vmatprep.mubr.msk.bf16.mxu1 %vm1568_vm0, %v9188_v61  ;;  %v3586_v56 = vsel %vm1572_vm1, %v6193_v53, 0 }
 0x287   : > { %3766 = vmatpush1.bf16.msra.mxu0 %v7184_v57  ;;  %3809 = vmatpush1.bf16.msra.mxu1 %v7187_v58  ;;  %v7238_v57 = vld [vmem:[%s8746_s14 + $0xab4] ss:$48 sps:$4 sm:$0xff]   ;;  %v7241_v58 = vld [vmem:[%s8746_s14 + $0xabc] ss:$48 sps:$4 sm:$0xff]  }
 0x288   : > { %3767 = vmatprep.subr.bf16.mxu0 %v7192_v59  ;;  %3810 = vmatprep.subr.bf16.mxu1 %v7195_v60  ;;  %v7632_v59 = vmov 0   ;;  %v7236_v60 = vld [vmem:[%s8746_s14 + $0xab0] ss:$48 sps:$4 sm:$0xff]  }
 0x289   : > { %6710 = vset.pattern.permute.xlu0 %v7632_v59  ;;  %v7266_v59 = vld [vmem:[%s8746_s14 + $0xc90] ss:$48 sps:$4 sm:$0xff]  }
 0x28a   : > { %4880 = vperm.xlu0 %6710, %v4876_v54  }
 0x28b   : > { %3768 = vmatpush1.bf16.msra.mxu0 %v7190_v23  ;;  %3811 = vmatpush1.bf16.msra.mxu1 %v7193_v62  ;;  %v7239_v23 = vld [vmem:[%s8746_s14 + $0xab8] ss:$48 sps:$4 sm:$0xff]   ;;  %v7244_v62 = vld [vmem:[%s8746_s14 + $0xb14] ss:$48 sps:$4 sm:$0xff]  }
 0x28c   : > { %3769 = vmatprep.subr.bf16.mxu0 %v7198_v63  ;;  %3812 = vmatprep.subr.bf16.mxu1 %v7201_v0  ;;  %v7247_v63 = vld [vmem:[%s8746_s14 + $0xb1c] ss:$48 sps:$4 sm:$0xff]   ;;  %v9254_v0 = vld [vmem:[%s10078_s1] ss:$8 sps:$4 sm:$0xff]  }
 0x28d   : > { %v9202_v5 = vpop.f32.mrb[8].mxu0  ;;  %v9204_v6 = vpop.f32.mrb[8].mxu1 }
 0x28e   : > { %v9206_v47 = vpop.f32.mrb[9].mxu0  ;;  %v9208_v12 = vpop.f32.mrb[9].mxu1 }
 0x28f   : > { %v9210_v13 = vpop.f32.mrb[10].mxu0  ;;  %v9212_v16 = vpop.f32.mrb[10].mxu1  ;;  %3770 = vmatpush1.bf16.msra.mxu0 %v7196_v1  ;;  %3813 = vmatpush1.bf16.msra.mxu1 %v7199_v2  ;;  %v7242_v1 = vld [vmem:[%s8746_s14 + $0xb10] ss:$48 sps:$4 sm:$0xff]   ;;  %v7245_v2 = vld [vmem:[%s8746_s14 + $0xb18] ss:$48 sps:$4 sm:$0xff]  }
 0x290   : > { %v9216_v28 = vpop.f32.mrb[11].mxu0  ;;  %v9218_v29 = vpop.f32.mrb[11].mxu1  ;;  %3771 = vmatprep.subr.bf16.mxu0 %v7204_v3  ;;  %3814 = vmatprep.subr.bf16.mxu1 %v7207_v4  ;;  %v4877_v3 = vld [vmem:[%s10079_s2 + $0x8] sm:$0xff]  ;;  %v7250_v4 = vld [vmem:[%s8746_s14 + $0xb74] ss:$48 sps:$4 sm:$0xff]  }
 0x291   : > { %4885 = vperm.xlu0 %6710, %v4877_v3   ;;  %v7283_v3 = vld [vmem:[%s8746_s14 + $0xd5c] ss:$48 sps:$4 sm:$0xff]  }
 0x293   : > { %3772 = vmatpush1.bf16.msra.mxu0 %v7202_v24  ;;  %3815 = vmatpush1.bf16.msra.mxu1 %v7205_v25  ;;  %v7253_v24 = vld [vmem:[%s8746_s14 + $0xb7c] ss:$48 sps:$4 sm:$0xff]   ;;  %v7248_v25 = vld [vmem:[%s8746_s14 + $0xb70] ss:$48 sps:$4 sm:$0xff]  }
 0x294   : > { %3773 = vmatprep.subr.bf16.mxu0 %v7210_v30  ;;  %3816 = vmatprep.subr.bf16.mxu1 %v7213_v32  ;;  %v7251_v30 = vld [vmem:[%s8746_s14 + $0xb78] ss:$48 sps:$4 sm:$0xff]   ;;  %v7256_v32 = vld [vmem:[%s8746_s14 + $0xbd4] ss:$48 sps:$4 sm:$0xff]  }
 0x297   : > { %3774 = vmatpush1.bf16.msra.mxu0 %v7208_v33  ;;  %3817 = vmatpush1.bf16.msra.mxu1 %v7211_v34  ;;  %v7259_v33 = vld [vmem:[%s8746_s14 + $0xbdc] ss:$48 sps:$4 sm:$0xff]   ;;  %v7254_v34 = vld [vmem:[%s8746_s14 + $0xbd0] ss:$48 sps:$4 sm:$0xff]  }
 0x298   : > { %3775 = vmatprep.subr.bf16.mxu0 %v7216_v35  ;;  %3818 = vmatprep.subr.bf16.mxu1 %v7219_v36  ;;  %v7257_v35 = vld [vmem:[%s8746_s14 + $0xbd8] ss:$48 sps:$4 sm:$0xff]   ;;  %v7262_v36 = vld [vmem:[%s8746_s14 + $0xc34] ss:$48 sps:$4 sm:$0xff]  }
 0x29b   : > { %3776 = vmatpush1.bf16.msra.mxu0 %v7214_v37  ;;  %3819 = vmatpush1.bf16.msra.mxu1 %v7217_v38  ;;  %v7265_v37 = vld [vmem:[%s8746_s14 + $0xc3c] ss:$48 sps:$4 sm:$0xff]  }
 0x29c   : > { %3777 = vmatprep.subr.bf16.mxu0 %v7222_v39  ;;  %3820 = vmatprep.subr.bf16.mxu1 %v7225_v40 }
 0x29f   : > { %3778 = vmatpush1.bf16.msra.mxu0 %v7220_v41  ;;  %3821 = vmatpush1.bf16.msra.mxu1 %v7223_v42  ;;  %v7403_v41 = vld [vmem:[%s8746_s14 + $0xdd8] ss:$48 sps:$4 sm:$0xff]  }
 0x2a0   : > { %3779 = vmatprep.subr.bf16.mxu0 %v7228_v43  ;;  %3822 = vmatprep.subr.bf16.mxu1 %v7231_v44  ;;  %v6320_v44 = vld [vmem:[%s8746_s14 + $0xe38] sm:$0x77] }
 0x2a3   : > { %3780 = vmatpush1.bf16.msra.mxu0 %v7226_v31  ;;  %3823 = vmatpush1.bf16.msra.mxu1 %v7229_v49  ;;  %v7260_v49 = vld [vmem:[%s8746_s14 + $0xc30] ss:$48 sps:$4 sm:$0xff]  }
 0x2a4   : > { %6203 = vmatprep.subr.msk.bf16.mxu0 %vm1572_vm1, %v6192_v50  ;;  %6205 = vmatprep.subr.msk.bf16.mxu1 %vm1572_vm1, %v6194_v51  ;;  %v7263_v50 = vld [vmem:[%s8746_s14 + $0xc38] ss:$48 sps:$4 sm:$0xff]  }
 0x2a5   : > { %v7391_v51 = vld [vmem:[%s8746_s14 + $0xd18] ss:$48 sps:$4 sm:$0xff]  }
 0x2a7   : > { %3782 = vmatpush1.bf16.msra.mxu0 %v3580_v55  ;;  %3825 = vmatpush1.bf16.msra.mxu1 %v3586_v56  ;;  %v7268_v55 = vld [vmem:[%s8746_s14 + $0xc94] ss:$48 sps:$4 sm:$0xff]   ;;  %v7271_v56 = vld [vmem:[%s8746_s14 + $0xc9c] ss:$48 sps:$4 sm:$0xff]  }
 0x2a8   : > { %4594 = vmatprep.subr.bf16.mxu0 %v7238_v57  ;;  %4637 = vmatprep.subr.bf16.mxu1 %v7241_v58  ;;  %v7388_v57 = vld [vmem:[%s8746_s14 + $0xd10] ss:$48 sps:$4 sm:$0xff]  }
 0x2aa   : > { %3796 = vmatmul.mubr.bf16.vlgmr.msra.gmra.mrb[32].mxu0 %v9254_v0  ;;  %3839 = vmatmul.mubr.bf16.vlgmr.msra.gmra.mrb[32].mxu1 %v9254_v0 }
 0x2ab   : > { %4595 = vmatpush1.bf16.msra.mxu0 %v7236_v60  ;;  %4638 = vmatpush1.bf16.msra.mxu1 %v7239_v23  ;;  %v7269_v60 = vld [vmem:[%s8746_s14 + $0xc98] ss:$48 sps:$4 sm:$0xff]   ;;  %v7274_v23 = vld [vmem:[%s8746_s14 + $0xcf4] ss:$48 sps:$4 sm:$0xff]  }
 0x2ac   : > { %4596 = vmatprep.subr.bf16.mxu0 %v7244_v62  ;;  %4639 = vmatprep.subr.bf16.mxu1 %v7247_v63  ;;  %v7277_v62 = vld [vmem:[%s8746_s14 + $0xcfc] ss:$48 sps:$4 sm:$0xff]   ;;  %v7272_v63 = vld [vmem:[%s8746_s14 + $0xcf0] ss:$48 sps:$4 sm:$0xff]  }
 0x2ad   : > { %6442 = vmatprep.mubr.msk.bf16.mxu0 %vm1568_vm0, %v9188_v61  ;;  %6444 = vmatprep.mubr.msk.bf16.mxu1 %vm1568_vm0, %v9188_v61 }
 0x2af   : > { %4597 = vmatpush1.bf16.msra.mxu0 %v7242_v1  ;;  %4640 = vmatpush1.bf16.msra.mxu1 %v7245_v2  ;;  %v7275_v1 = vld [vmem:[%s8746_s14 + $0xcf8] ss:$48 sps:$4 sm:$0xff]   ;;  %v7280_v2 = vld [vmem:[%s8746_s14 + $0xd54] ss:$48 sps:$4 sm:$0xff]  }
 0x2b0   : > { %4598 = vmatprep.subr.bf16.mxu0 %v7250_v4  ;;  %4641 = vmatprep.subr.bf16.mxu1 %v7253_v24  ;;  %v7278_v4 = vld [vmem:[%s8746_s14 + $0xd50] ss:$48 sps:$4 sm:$0xff]   ;;  %v7281_v24 = vld [vmem:[%s8746_s14 + $0xd58] ss:$48 sps:$4 sm:$0xff]  }
 0x2b3   : > { %4599 = vmatpush1.bf16.msra.mxu0 %v7248_v25  ;;  %4642 = vmatpush1.bf16.msra.mxu1 %v7251_v30  ;;  %v7286_v25 = vld [vmem:[%s8746_s14 + $0xdb4] ss:$48 sps:$4 sm:$0xff]   ;;  %v7289_v30 = vld [vmem:[%s8746_s14 + $0xdbc] ss:$48 sps:$4 sm:$0xff]  }
 0x2b4   : > { %4600 = vmatprep.subr.bf16.mxu0 %v7256_v32  ;;  %4643 = vmatprep.subr.bf16.mxu1 %v7259_v33  ;;  %v6315_v32 = vld [vmem:[%s8746_s14 + $0xe10] sm:$0x77]  ;;  %v6316_v33 = vld [vmem:[%s8746_s14 + $0xe18] sm:$0x77] }
 0x2b5   : > { %v9277_v38 = vpop.f32.mrb[12].mxu0  ;;  %v9279_v39 = vpop.f32.mrb[12].mxu1 }
 0x2b6   : > { %v9285_v42 = vpop.f32.mrb[13].mxu0  ;;  %v9287_v43 = vpop.f32.mrb[13].mxu1 }
 0x2b7   : > { %v9293_v46 = vpop.f32.mrb[14].mxu0  ;;  %v9295_v31 = vpop.f32.mrb[14].mxu1  ;;  %4601 = vmatpush1.bf16.msra.mxu0 %v7254_v34  ;;  %4644 = vmatpush1.bf16.msra.mxu1 %v7257_v35  ;;  %v7284_v34 = vld [vmem:[%s8746_s14 + $0xdb0] ss:$48 sps:$4 sm:$0xff]   ;;  %v7287_v35 = vld [vmem:[%s8746_s14 + $0xdb8] ss:$48 sps:$4 sm:$0xff]  }
 0x2b8   : > { %v9303_v53 = vpop.f32.mrb[15].mxu0  ;;  %v9305_v54 = vpop.f32.mrb[15].mxu1  ;;  %4602 = vmatprep.subr.bf16.mxu0 %v7262_v36  ;;  %4645 = vmatprep.subr.bf16.mxu1 %v7265_v37  ;;  %v6430_v36 = vcombine.high %v6315_v32, %v6315_v32  ;;  %v6432_v37 = vcombine.high %v6316_v33, %v6316_v33 }
 0x2bb   : > { %4603 = vmatpush1.bf16.msra.mxu0 %v7260_v49  ;;  %4646 = vmatpush1.bf16.msra.mxu1 %v7263_v50  ;;  %v6429_v49 = vcombine.low %v6315_v32, %v6315_v32  ;;  %v6431_v50 = vcombine.low %v6316_v33, %v6316_v33  ;;  %v7314_v32 = vld [vmem:[%s8746_s14 + $0xbe4] ss:$48 sps:$4 sm:$0xff]   ;;  %v7317_v33 = vld [vmem:[%s8746_s14 + $0xbec] ss:$48 sps:$4 sm:$0xff]  }
 0x2bc   : > { %4604 = vmatprep.subr.bf16.mxu0 %v7268_v55  ;;  %4647 = vmatprep.subr.bf16.mxu1 %v7271_v56 }
 0x2bd   : > { %v4559_v55 = vsel %vm1572_vm1, %v6429_v49, 0  ;;  %v4565_v56 = vsel %vm1572_vm1, %v6431_v50, 0 }
 0x2bf   : > { %4605 = vmatpush1.bf16.msra.mxu0 %v7266_v59  ;;  %4648 = vmatpush1.bf16.msra.mxu1 %v7269_v60  ;;  %v7296_v59 = vld [vmem:[%s8746_s14 + $0xac4] ss:$48 sps:$4 sm:$0xff]   ;;  %v7299_v60 = vld [vmem:[%s8746_s14 + $0xacc] ss:$48 sps:$4 sm:$0xff]  }
 0x2c0   : > { %4606 = vmatprep.subr.bf16.mxu0 %v7274_v23  ;;  %4649 = vmatprep.subr.bf16.mxu1 %v7277_v62  ;;  %v7294_v23 = vld [vmem:[%s8746_s14 + $0xac0] ss:$48 sps:$4 sm:$0xff]   ;;  %v7297_v62 = vld [vmem:[%s8746_s14 + $0xac8] ss:$48 sps:$4 sm:$0xff]  }
 0x2c3   : > { %4607 = vmatpush1.bf16.msra.mxu0 %v7272_v63  ;;  %4650 = vmatpush1.bf16.msra.mxu1 %v7275_v1  ;;  %v7302_v63 = vld [vmem:[%s8746_s14 + $0xb24] ss:$48 sps:$4 sm:$0xff]   ;;  %v7305_v1 = vld [vmem:[%s8746_s14 + $0xb2c] ss:$48 sps:$4 sm:$0xff]  }
 0x2c4   : > { %4608 = vmatprep.subr.bf16.mxu0 %v7280_v2  ;;  %4651 = vmatprep.subr.bf16.mxu1 %v7283_v3  ;;  %v7300_v2 = vld [vmem:[%s8746_s14 + $0xb20] ss:$48 sps:$4 sm:$0xff]   ;;  %v7303_v3 = vld [vmem:[%s8746_s14 + $0xb28] ss:$48 sps:$4 sm:$0xff]  }
 0x2c7   : > { %4609 = vmatpush1.bf16.msra.mxu0 %v7278_v4  ;;  %4652 = vmatpush1.bf16.msra.mxu1 %v7281_v24  ;;  %v7308_v4 = vld [vmem:[%s8746_s14 + $0xb84] ss:$48 sps:$4 sm:$0xff]   ;;  %v7311_v24 = vld [vmem:[%s8746_s14 + $0xb8c] ss:$48 sps:$4 sm:$0xff]  }
 0x2c8   : > { %4610 = vmatprep.subr.bf16.mxu0 %v7286_v25  ;;  %4653 = vmatprep.subr.bf16.mxu1 %v7289_v30  ;;  %v7306_v25 = vld [vmem:[%s8746_s14 + $0xb80] ss:$48 sps:$4 sm:$0xff]   ;;  %v7309_v30 = vld [vmem:[%s8746_s14 + $0xb88] ss:$48 sps:$4 sm:$0xff]  }
 0x2cb   : > { %4611 = vmatpush1.bf16.msra.mxu0 %v7284_v34  ;;  %4654 = vmatpush1.bf16.msra.mxu1 %v7287_v35  ;;  %v7312_v34 = vld [vmem:[%s8746_s14 + $0xbe0] ss:$48 sps:$4 sm:$0xff]   ;;  %v7315_v35 = vld [vmem:[%s8746_s14 + $0xbe8] ss:$48 sps:$4 sm:$0xff]  }
 0x2cc   : > { %6441 = vmatprep.subr.msk.bf16.mxu0 %vm1572_vm1, %v6430_v36  ;;  %6443 = vmatprep.subr.msk.bf16.mxu1 %vm1572_vm1, %v6432_v37  ;;  %v7320_v36 = vld [vmem:[%s8746_s14 + $0xc44] ss:$48 sps:$4 sm:$0xff]   ;;  %v7323_v37 = vld [vmem:[%s8746_s14 + $0xc4c] ss:$48 sps:$4 sm:$0xff]  }
 0x2cf   : > { %4613 = vmatpush1.bf16.msra.mxu0 %v4559_v55  ;;  %4656 = vmatpush1.bf16.msra.mxu1 %v4565_v56  ;;  %v6318_v56 = vld [vmem:[%s8746_s14 + $0xe28] sm:$0x77]  ;;  %v7402_v55 = vld [vmem:[%s8746_s14 + $0xdd4] ss:$48 sps:$4 sm:$0xff]  }
 0x2d0   : > { %4680 = vmatprep.subr.bf16.mxu0 %v7296_v59  ;;  %4723 = vmatprep.subr.bf16.mxu1 %v7299_v60 }
 0x2d2   : > { %4627 = vmatmul.mubr.bf16.vlgmr.msra.gmra.mrb[36].mxu0 %v9254_v0  ;;  %4670 = vmatmul.mubr.bf16.vlgmr.msra.gmra.mrb[36].mxu1 %v9254_v0 }
 0x2d3   : > { %4681 = vmatpush1.bf16.msra.mxu0 %v7294_v23  ;;  %4724 = vmatpush1.bf16.msra.mxu1 %v7297_v62  ;;  %v7333_v62 = vld [vmem:[%s8746_s14 + $0xd08] ss:$48 sps:$4 sm:$0xff]   ;;  %v7347_v23 = vld [vmem:[%s8746_s14 + $0xdcc] ss:$48 sps:$4 sm:$0xff]  }
 0x2d4   : > { %4682 = vmatprep.subr.bf16.mxu0 %v7302_v63  ;;  %4725 = vmatprep.subr.bf16.mxu1 %v7305_v1 }
 0x2d5   : > { %6446 = vmatprep.mubr.msk.bf16.mxu0 %vm1568_vm0, %v9188_v61  ;;  %6448 = vmatprep.mubr.msk.bf16.mxu1 %vm1568_vm0, %v9188_v61 }
 0x2d7   : > { %4683 = vmatpush1.bf16.msra.mxu0 %v7300_v2  ;;  %4726 = vmatpush1.bf16.msra.mxu1 %v7303_v3  ;;  %v7318_v2 = vld [vmem:[%s8746_s14 + $0xc40] ss:$48 sps:$4 sm:$0xff]   ;;  %v7321_v3 = vld [vmem:[%s8746_s14 + $0xc48] ss:$48 sps:$4 sm:$0xff]  }
 0x2d8   : > { %4684 = vmatprep.subr.bf16.mxu0 %v7308_v4  ;;  %4727 = vmatprep.subr.bf16.mxu1 %v7311_v24  ;;  %v7324_v24 = vld [vmem:[%s8746_s14 + $0xca0] ss:$48 sps:$4 sm:$0xff]   ;;  %v7327_v4 = vld [vmem:[%s8746_s14 + $0xca8] ss:$48 sps:$4 sm:$0xff]  }
 0x2db   : > { %4685 = vmatpush1.bf16.msra.mxu0 %v7306_v25  ;;  %4728 = vmatpush1.bf16.msra.mxu1 %v7309_v30 }
 0x2dc   : > { %4686 = vmatprep.subr.bf16.mxu0 %v7314_v32  ;;  %4729 = vmatprep.subr.bf16.mxu1 %v7317_v33  ;;  %v7326_v32 = vld [vmem:[%s8746_s14 + $0xca4] ss:$48 sps:$4 sm:$0xff]   ;;  %v7329_v33 = vld [vmem:[%s8746_s14 + $0xcac] ss:$48 sps:$4 sm:$0xff]  }
 0x2dd   : > { %v9357_v49 = vpop.f32.mrb[16].mxu0  ;;  %v9359_v50 = vpop.f32.mrb[16].mxu1 }
 0x2de   : > { %v9365_v59 = vpop.f32.mrb[17].mxu0  ;;  %v9367_v60 = vpop.f32.mrb[17].mxu1 }
 0x2df   : > { %v9373_v63 = vpop.f32.mrb[18].mxu0  ;;  %v9375_v1 = vpop.f32.mrb[18].mxu1  ;;  %4687 = vmatpush1.bf16.msra.mxu0 %v7312_v34  ;;  %4730 = vmatpush1.bf16.msra.mxu1 %v7315_v35  ;;  %v7330_v34 = vld [vmem:[%s8746_s14 + $0xd00] ss:$48 sps:$4 sm:$0xff]   ;;  %v7344_v35 = vld [vmem:[%s8746_s14 + $0xdc4] ss:$48 sps:$4 sm:$0xff]  }
 0x2e0   : > { %v9383_v25 = vpop.f32.mrb[19].mxu0  ;;  %v9385_v30 = vpop.f32.mrb[19].mxu1  ;;  %4688 = vmatprep.subr.bf16.mxu0 %v7320_v36  ;;  %4731 = vmatprep.subr.bf16.mxu1 %v7323_v37  ;;  %v7332_v36 = vld [vmem:[%s8746_s14 + $0xd04] ss:$48 sps:$4 sm:$0xff]   ;;  %v7335_v37 = vld [vmem:[%s8746_s14 + $0xd0c] ss:$48 sps:$4 sm:$0xff]  }
 0x2e3   : > { %4689 = vmatpush1.bf16.msra.mxu0 %v7318_v2  ;;  %4732 = vmatpush1.bf16.msra.mxu1 %v7321_v3  ;;  %v7338_v2 = vld [vmem:[%s8746_s14 + $0xd64] ss:$48 sps:$4 sm:$0xff]   ;;  %v7341_v3 = vld [vmem:[%s8746_s14 + $0xd6c] ss:$48 sps:$4 sm:$0xff]  }
 0x2e4   : > { %4690 = vmatprep.subr.bf16.mxu0 %v7326_v32  ;;  %4733 = vmatprep.subr.bf16.mxu1 %v7329_v33  ;;  %v7336_v32 = vld [vmem:[%s8746_s14 + $0xd60] ss:$48 sps:$4 sm:$0xff]   ;;  %v7339_v33 = vld [vmem:[%s8746_s14 + $0xd68] ss:$48 sps:$4 sm:$0xff]  }
 0x2e7   : > { %4691 = vmatpush1.bf16.msra.mxu0 %v7324_v24  ;;  %4734 = vmatpush1.bf16.msra.mxu1 %v7327_v4  ;;  %v6317_v24 = vld [vmem:[%s8746_s14 + $0xe20] sm:$0x77] }
 0x2e8   : > { %4692 = vmatprep.subr.bf16.mxu0 %v7332_v36  ;;  %4735 = vmatprep.subr.bf16.mxu1 %v7335_v37  ;;  %v7342_v4 = vld [vmem:[%s8746_s14 + $0xdc0] ss:$48 sps:$4 sm:$0xff]   ;;  %v7345_v36 = vld [vmem:[%s8746_s14 + $0xdc8] ss:$48 sps:$4 sm:$0xff]   ;;  %v6434_v37 = vcombine.high %v6317_v24, %v6317_v24 }
 0x2eb   : > { %4693 = vmatpush1.bf16.msra.mxu0 %v7330_v34  ;;  %4736 = vmatpush1.bf16.msra.mxu1 %v7333_v62  ;;  %v6436_v62 = vcombine.high %v6318_v56, %v6318_v56  ;;  %v6433_v34 = vcombine.low %v6317_v24, %v6317_v24  ;;  %v7360_v24 = vld [vmem:[%s8746_s14 + $0xb34] ss:$48 sps:$4 sm:$0xff]  }
 0x2ec   : > { %4694 = vmatprep.subr.bf16.mxu0 %v7338_v2  ;;  %4737 = vmatprep.subr.bf16.mxu1 %v7341_v3  ;;  %v6435_v2 = vcombine.low %v6318_v56, %v6318_v56  ;;  %v7352_v56 = vld [vmem:[%s8746_s14 + $0xad0] ss:$48 sps:$4 sm:$0xff]  }
 0x2ed   : > { %v4571_v3 = vsel %vm1572_vm1, %v6433_v34, 0  ;;  %v7369_v34 = vld [vmem:[%s8746_s14 + $0xb9c] ss:$48 sps:$4 sm:$0xff]  }
 0x2ef   : > { %4695 = vmatpush1.bf16.msra.mxu0 %v7336_v32  ;;  %4738 = vmatpush1.bf16.msra.mxu1 %v7339_v33  ;;  %v4577_v32 = vsel %vm1572_vm1, %v6435_v2, 0  ;;  %v7357_v33 = vld [vmem:[%s8746_s14 + $0xadc] ss:$48 sps:$4 sm:$0xff]   ;;  %v7364_v2 = vld [vmem:[%s8746_s14 + $0xb90] ss:$48 sps:$4 sm:$0xff]  }
 0x2f0   : > { %4696 = vmatprep.subr.bf16.mxu0 %v7344_v35  ;;  %4739 = vmatprep.subr.bf16.mxu1 %v7347_v23  ;;  %v7354_v35 = vld [vmem:[%s8746_s14 + $0xad4] ss:$48 sps:$4 sm:$0xff]   ;;  %v7355_v23 = vld [vmem:[%s8746_s14 + $0xad8] ss:$48 sps:$4 sm:$0xff]  }
 0x2f3   : > { %4697 = vmatpush1.bf16.msra.mxu0 %v7342_v4  ;;  %4740 = vmatpush1.bf16.msra.mxu1 %v7345_v36  ;;  %v7363_v4 = vld [vmem:[%s8746_s14 + $0xb3c] ss:$48 sps:$4 sm:$0xff]   ;;  %v7358_v36 = vld [vmem:[%s8746_s14 + $0xb30] ss:$48 sps:$4 sm:$0xff]  }
 0x2f4   : > { %6445 = vmatprep.subr.msk.bf16.mxu0 %vm1572_vm1, %v6434_v37  ;;  %6447 = vmatprep.subr.msk.bf16.mxu1 %vm1572_vm1, %v6436_v62  ;;  %v7361_v37 = vld [vmem:[%s8746_s14 + $0xb38] ss:$48 sps:$4 sm:$0xff]   ;;  %v7366_v62 = vld [vmem:[%s8746_s14 + $0xb94] ss:$48 sps:$4 sm:$0xff]  }
 0x2f7   : > { %4699 = vmatpush1.bf16.msra.mxu0 %v4571_v3  ;;  %4742 = vmatpush1.bf16.msra.mxu1 %v4577_v32  ;;  %v7367_v3 = vld [vmem:[%s8746_s14 + $0xb98] ss:$48 sps:$4 sm:$0xff]   ;;  %v7372_v32 = vld [vmem:[%s8746_s14 + $0xbf4] ss:$48 sps:$4 sm:$0xff]  }
 0x2f8   : > { %4766 = vmatprep.subr.bf16.mxu0 %v7354_v35  ;;  %4809 = vmatprep.subr.bf16.mxu1 %v7357_v33  ;;  %v7375_v35 = vld [vmem:[%s8746_s14 + $0xbfc] ss:$48 sps:$4 sm:$0xff]   ;;  %v7370_v33 = vld [vmem:[%s8746_s14 + $0xbf0] ss:$48 sps:$4 sm:$0xff]  }
 0x2fa   : > { %4713 = vmatmul.mubr.bf16.vlgmr.msra.gmra.mrb[40].mxu0 %v9254_v0  ;;  %4756 = vmatmul.mubr.bf16.vlgmr.msra.gmra.mrb[40].mxu1 %v9254_v0 }
 0x2fb   : > { %4767 = vmatpush1.bf16.msra.mxu0 %v7352_v56  ;;  %4810 = vmatpush1.bf16.msra.mxu1 %v7355_v23  ;;  %v7373_v56 = vld [vmem:[%s8746_s14 + $0xbf8] ss:$48 sps:$4 sm:$0xff]   ;;  %v7378_v23 = vld [vmem:[%s8746_s14 + $0xc54] ss:$48 sps:$4 sm:$0xff]  }
 0x2fc   : > { %4768 = vmatprep.subr.bf16.mxu0 %v7360_v24  ;;  %4811 = vmatprep.subr.bf16.mxu1 %v7363_v4  ;;  %v7381_v24 = vld [vmem:[%s8746_s14 + $0xc5c] ss:$48 sps:$4 sm:$0xff]  }
 0x2fd   : > { %6450 = vmatprep.mubr.msk.bf16.mxu0 %vm1568_vm0, %v9188_v61  ;;  %6452 = vmatprep.mubr.msk.bf16.mxu1 %vm1568_vm0, %v9188_v61 }
 0x2ff   : > { %4769 = vmatpush1.bf16.msra.mxu0 %v7358_v36  ;;  %4812 = vmatpush1.bf16.msra.mxu1 %v7361_v37  ;;  %v7376_v37 = vld [vmem:[%s8746_s14 + $0xc50] ss:$48 sps:$4 sm:$0xff]   ;;  %v7379_v36 = vld [vmem:[%s8746_s14 + $0xc58] ss:$48 sps:$4 sm:$0xff]  }
 0x300   : > { %4770 = vmatprep.subr.bf16.mxu0 %v7366_v62  ;;  %4813 = vmatprep.subr.bf16.mxu1 %v7369_v34 }
 0x303   : > { %4771 = vmatpush1.bf16.msra.mxu0 %v7364_v2  ;;  %4814 = vmatpush1.bf16.msra.mxu1 %v7367_v3  ;;  %v7382_v2 = vld [vmem:[%s8746_s14 + $0xcb0] ss:$48 sps:$4 sm:$0xff]  }
 0x304   : > { %4772 = vmatprep.subr.bf16.mxu0 %v7372_v32  ;;  %4815 = vmatprep.subr.bf16.mxu1 %v7375_v35 }
 0x305   : > { %v9437_v61 = vpop.f32.mrb[20].mxu0  ;;  %v9439_v4 = vpop.f32.mrb[20].mxu1 }
 0x306   : > { %v9445_v62 = vpop.f32.mrb[21].mxu0  ;;  %v9447_v34 = vpop.f32.mrb[21].mxu1 }
 0x307   : > { %v9453_v32 = vpop.f32.mrb[22].mxu0  ;;  %v9455_v35 = vpop.f32.mrb[22].mxu1  ;;  %4773 = vmatpush1.bf16.msra.mxu0 %v7370_v33  ;;  %4816 = vmatpush1.bf16.msra.mxu1 %v7373_v56  ;;  %v7384_v33 = vld [vmem:[%s8746_s14 + $0xcb4] ss:$48 sps:$4 sm:$0xff]   ;;  %v7387_v56 = vld [vmem:[%s8746_s14 + $0xcbc] ss:$48 sps:$4 sm:$0xff]  }
 0x308   : > { %v9463_v58 = vpop.f32.mrb[23].mxu0  ;;  %v9465_v3 = vpop.f32.mrb[23].mxu1  ;;  %4774 = vmatprep.subr.bf16.mxu0 %v7378_v23  ;;  %4817 = vmatprep.subr.bf16.mxu1 %v7381_v24  ;;  %v7390_v23 = vld [vmem:[%s8746_s14 + $0xd14] ss:$48 sps:$4 sm:$0xff]   ;;  %v7393_v24 = vld [vmem:[%s8746_s14 + $0xd1c] ss:$48 sps:$4 sm:$0xff]  }
 0x309   : > { %10093 = vst [vmem:[#allocation4_spill] sm:$0xff] %v9465_v3  ;;  %v6439_v3 = vcombine.low %v6320_v44, %v6320_v44 }
 0x30b   : > { %4775 = vmatpush1.bf16.msra.mxu0 %v7376_v37  ;;  %4818 = vmatpush1.bf16.msra.mxu1 %v7379_v36  ;;  %v7396_v36 = vld [vmem:[%s8746_s14 + $0xd74] ss:$48 sps:$4 sm:$0xff]   ;;  %v7399_v37 = vld [vmem:[%s8746_s14 + $0xd7c] ss:$48 sps:$4 sm:$0xff]  }
 0x30c   : > { %4776 = vmatprep.subr.bf16.mxu0 %v7384_v33  ;;  %4819 = vmatprep.subr.bf16.mxu1 %v7387_v56  ;;  %v7394_v33 = vld [vmem:[%s8746_s14 + $0xd70] ss:$48 sps:$4 sm:$0xff]   ;;  %v7397_v56 = vld [vmem:[%s8746_s14 + $0xd78] ss:$48 sps:$4 sm:$0xff]  }
 0x30f   : > { %4777 = vmatpush1.bf16.msra.mxu0 %v7382_v2  ;;  %4820 = vmatpush1.bf16.msra.mxu1 %v7385_v52  ;;  %v6319_v2 = vld [vmem:[%s8746_s14 + $0xe30] sm:$0x77] }
 0x310   : > { %4778 = vmatprep.subr.bf16.mxu0 %v7390_v23  ;;  %4821 = vmatprep.subr.bf16.mxu1 %v7393_v24  ;;  %v7400_v52 = vld [vmem:[%s8746_s14 + $0xdd0] ss:$48 sps:$4 sm:$0xff]   ;;  %v6438_v23 = vcombine.high %v6319_v2, %v6319_v2  ;;  %v6440_v24 = vcombine.high %v6320_v44, %v6320_v44  ;;  %v6437_v40 = vcombine.low %v6319_v2, %v6319_v2  ;;  %s9690_s14 = scalar_lea.vmem (%p7686_p5), %s10080_s3, %s6481_s30  }
 0x311   : > { %v10094_v44 = vmax.f32 %v9069_v17, %v9277_v38  ;;  %v10097_v2 = vmax.f32 %v9075_v20, %v9287_v43  ;;  %v10098_v17 = vmax.f32 %v9077_v21, %v9293_v46  ;;  %v10101_v20 = vmax.f32 %v9085_v27, %v9305_v54 }
 0x312   : > { %v10105_v54 = vmax.f32 %v9139_v9, %v9367_v60  ;;  %v10109_v60 = vmax.f32 %v9149_v15, %v9385_v30  ;;  %v10112_v15 = vmax.f32 %v9206_v47, %v9445_v62 }
 0x313   : > { %4779 = vmatpush1.bf16.msra.mxu0 %v7388_v57  ;;  %4822 = vmatpush1.bf16.msra.mxu1 %v7391_v51  ;;  %v4583_v51 = vsel %vm1572_vm1, %v6437_v40, 0  ;;  %v4589_v57 = vsel %vm1572_vm1, %v6439_v3, 0  ;;  %v10096_v3 = vmax.f32 %v9073_v19, %v9285_v42  ;;  %v10100_v19 = vmax.f32 %v9083_v26, %v9303_v53 }
 0x314   : > { %4780 = vmatprep.subr.bf16.mxu0 %v7396_v36  ;;  %4823 = vmatprep.subr.bf16.mxu1 %v7399_v37  ;;  %v10095_v36 = vmax.f32 %v9071_v18, %v9279_v39  ;;  %v10099_v18 = vmax.f32 %v9079_v22, %v9295_v31  ;;  %v10103_v31 = vmax.f32 %v9135_v8, %v9359_v50 }
 0x315   : > { %v10107_v50 = vmax.f32 %v9143_v11, %v9375_v1  ;;  %v10111_v1 = vmax.f32 %v9204_v6, %v9439_v4  ;;  %v10114_v6 = vmax.f32 %v9210_v13, %v9453_v32  ;;  %v9607_v13 = vpop.permute.xlu0 %4880 }
 0x317   : > { %4781 = vmatpush1.bf16.msra.mxu0 %v7394_v33  ;;  %4824 = vmatpush1.bf16.msra.mxu1 %v7397_v56 }
 0x318   : > { %4782 = vmatprep.subr.bf16.mxu0 %v7402_v55  ;;  %4825 = vmatprep.subr.bf16.mxu1 %v7405_v45 }
 0x319   : > { %v9609_v32 = vpop.permute.xlu0 %4885 }
 0x31b   : > { %4783 = vmatpush1.bf16.msra.mxu0 %v7400_v52  ;;  %4826 = vmatpush1.bf16.msra.mxu1 %v7403_v41 }
 0x31c   : > { %6449 = vmatprep.subr.msk.bf16.mxu0 %vm1572_vm1, %v6438_v23  ;;  %6451 = vmatprep.subr.msk.bf16.mxu1 %vm1572_vm1, %v6440_v24 }
 0x31f   : > { %4785 = vmatpush1.bf16.msra.mxu0 %v4583_v51  ;;  %4828 = vmatpush1.bf16.msra.mxu1 %v4589_v57  ;;  %v10102_v57 = vmax.f32 %v9133_v7, %v9357_v49 }
 0x322   : > { %4799 = vmatmul.mubr.bf16.vlgmr.msra.gmra.mrb[44].mxu0 %v9254_v0  ;;  %4842 = vmatmul.mubr.bf16.vlgmr.msra.gmra.mrb[44].mxu1 %v9254_v0 }
 0x32d   : > { %v3625_v45 = vpop.f32.mrb[24].mxu0  ;;  %v3668_v55 = vpop.f32.mrb[24].mxu1 }
 0x32e   : > { %v3849_v41 = vmax.f32 %v10094_v44, %v3625_v45  ;;  %v3851_v37 = vmax.f32 %v10095_v36, %v3668_v55  ;;  %v3627_v33 = vpop.f32.mrb[25].mxu0  ;;  %v3670_v40 = vpop.f32.mrb[25].mxu1  ;;  %v10104_v55 = vmax.f32 %v9137_v48, %v9365_v59  ;;  %v10106_v36 = vmax.f32 %v9141_v10, %v9373_v63 }
 0x32f   : > { %v3850_v56 = vmax.f32 %v10096_v3, %v3627_v33  ;;  %v3852_v0 = vmax.f32 %v10097_v2, %v3670_v40  ;;  %v3629_v52 = vpop.f32.mrb[26].mxu0  ;;  %v3672_v23 = vpop.f32.mrb[26].mxu1  ;;  %v10108_v40 = vmax.f32 %v9147_v14, %v9383_v25  ;;  %v10110_v2 = vmax.f32 %v9202_v5, %v9437_v61 }
 0x330   : > { %v9510_v38 = vmax.f32 %v10098_v17, %v3629_v52  ;;  %v9515_v39 = vmax.f32 %v10099_v18, %v3672_v23  ;;  %v3631_v24 = vpop.f32.mrb[27].mxu0  ;;  %v3674_v51 = vpop.f32.mrb[27].mxu1  ;;  %v10113_v23 = vmax.f32 %v9208_v12, %v9447_v34  ;;  %v10115_v18 = vmax.f32 %v9212_v16, %v9455_v35  ;;  %v10117_v34 = vld [vmem:[#allocation4_spill] sm:$0xff] }
 0x331   : > { %v9520_v42 = vmax.f32 %v10100_v19, %v3631_v24  ;;  %v9525_v43 = vmax.f32 %v10101_v20, %v3674_v51  ;;  %v10116_v51 = vmax.f32 %v9216_v28, %v9463_v58  ;;  %v10118_v19 = vmax.f32 %v9218_v29, %v10117_v34 }
 0x355   : > { %v3711_v21 = vpop.f32.mrb[28].mxu0  ;;  %v3754_v46 = vpop.f32.mrb[28].mxu1 }
 0x356   : > { %v9530_v22 = vmax.f32 %v10102_v57, %v3711_v21  ;;  %v9535_v45 = vmax.f32 %v10103_v31, %v3754_v46  ;;  %v3713_v26 = vpop.f32.mrb[29].mxu0  ;;  %v3756_v53 = vpop.f32.mrb[29].mxu1 }
 0x357   : > { %v9540_v27 = vmax.f32 %v10104_v55, %v3713_v26  ;;  %v9545_v44 = vmax.f32 %v10105_v54, %v3756_v53  ;;  %v3715_v7 = vpop.f32.mrb[30].mxu0  ;;  %v3758_v49 = vpop.f32.mrb[30].mxu1 }
 0x358   : > { %v9550_v8 = vmax.f32 %v10106_v36, %v3715_v7  ;;  %v9555_v33 = vmax.f32 %v10107_v50, %v3758_v49  ;;  %v3717_v48 = vpop.f32.mrb[31].mxu0  ;;  %v3760_v59 = vpop.f32.mrb[31].mxu1 }
 0x359   : > { %v9560_v9 = vmax.f32 %v10108_v40, %v3717_v48  ;;  %v9565_v3 = vmax.f32 %v10109_v60, %v3760_v59 }
 0x37d   : > { %v3797_v10 = vpop.f32.mrb[32].mxu0  ;;  %v3840_v63 = vpop.f32.mrb[32].mxu1 }
 0x37e   : > { %v9570_v11 = vmax.f32 %v10110_v2, %v3797_v10  ;;  %v9575_v52 = vmax.f32 %v10111_v1, %v3840_v63  ;;  %v3799_v14 = vpop.f32.mrb[33].mxu0  ;;  %v3842_v25 = vpop.f32.mrb[33].mxu1 }
 0x37f   : > { %v9580_v30 = vmax.f32 %v10112_v15, %v3799_v14  ;;  %v9585_v17 = vmax.f32 %v10113_v23, %v3842_v25  ;;  %v3801_v5 = vpop.f32.mrb[34].mxu0  ;;  %v3844_v61 = vpop.f32.mrb[34].mxu1 }
 0x380   : > { %v9590_v4 = vmax.f32 %v10114_v6, %v3801_v5  ;;  %v9595_v24 = vmax.f32 %v10115_v18, %v3844_v61  ;;  %v3803_v47 = vpop.f32.mrb[35].mxu0  ;;  %v3846_v62 = vpop.f32.mrb[35].mxu1 }
 0x381   : > { %v9600_v12 = vmax.f32 %v10116_v51, %v3803_v47  ;;  %v9605_v20 = vmax.f32 %v10118_v19, %v3846_v62 }
 0x3a5   : > { %v4628_v16 = vpop.f32.mrb[36].mxu0  ;;  %v4671_v35 = vpop.f32.mrb[36].mxu1 }
 0x3a6   : > { %v4852_v21 = vmax.f32 %v3849_v41, %v4628_v16  ;;  %v4854_v46 = vmax.f32 %v3851_v37, %v4671_v35  ;;  %v4630_v57 = vpop.f32.mrb[37].mxu0  ;;  %v4673_v31 = vpop.f32.mrb[37].mxu1 }
 0x3a7   : > { %v4853_v28 = vmax.f32 %v3850_v56, %v4630_v57  ;;  %v4855_v58 = vmax.f32 %v3852_v0, %v4673_v31  ;;  %v4632_v26 = vpop.f32.mrb[38].mxu0  ;;  %v4675_v53 = vpop.f32.mrb[38].mxu1 }
 0x3a8   : > { %v4888_v29 = vadd.f32 %v9607_v13, %v4852_v21  ;;  %v4890_v55 = vadd.f32 %v9607_v13, %v4854_v46  ;;  %v4864_v54 = vmax.f32 %v9510_v38, %v4632_v26  ;;  %v4866_v7 = vmax.f32 %v9515_v39, %v4675_v53  ;;  %v4634_v49 = vpop.f32.mrb[39].mxu0  ;;  %v4677_v36 = vpop.f32.mrb[39].mxu1 }
 0x3a9   : > { %v4889_v50 = vadd.f32 %v9607_v13, %v4853_v28  ;;  %v4891_v41 = vadd.f32 %v9607_v13, %v4855_v58  ;;  %v4865_v37 = vmax.f32 %v9520_v42, %v4634_v49  ;;  %v4867_v56 = vmax.f32 %v9525_v43, %v4677_v36 }
 0x3aa   : > { %v4912_v0 = vmax.f32 %v4888_v29, 0.0  ;;  %v4914_v48 = vmax.f32 %v4890_v55, 0.0  ;;  %v4900_v59 = vadd.f32 %v9609_v32, %v4864_v54  ;;  %v4902_v40 = vadd.f32 %v9609_v32, %v4866_v7 }
 0x3ab   : > { %v4913_v60 = vmax.f32 %v4889_v50, 0.0  ;;  %v4915_v38 = vmax.f32 %v4891_v41, 0.0  ;;  %v4901_v39 = vadd.f32 %v9609_v32, %v4865_v37  ;;  %v4903_v10 = vadd.f32 %v9609_v32, %v4867_v56 }
 0x3ac   : > { %4936 = vst [vmem:[%s9625_s12] sm:$0xff] %v4912_v0  ;;  %4938 = vst [vmem:[%s9625_s12 + $0x10] sm:$0xff] %v4914_v48  ;;  %v4924_v42 = vmax.f32 %v4900_v59, 0.0  ;;  %v4926_v43 = vmax.f32 %v4902_v40, 0.0 }
 0x3ad   : > { %4937 = vst [vmem:[%s9625_s12 + $0x8] sm:$0xff] %v4913_v60  ;;  %4939 = vst [vmem:[%s9625_s12 + $0x18] sm:$0xff] %v4915_v38  ;;  %v4925_v63 = vmax.f32 %v4901_v39, 0.0  ;;  %v4927_v2 = vmax.f32 %v4903_v10, 0.0 }
 0x3ae   : > { %4948 = vst [vmem:[%s9625_s12 + $0x60] sm:$0xff] %v4924_v42  ;;  %4950 = vst [vmem:[%s9625_s12 + $0x70] sm:$0xff] %v4926_v43 }
 0x3af   : > { %4949 = vst [vmem:[%s9625_s12 + $0x68] sm:$0xff] %v4925_v63  ;;  %4951 = vst [vmem:[%s9625_s12 + $0x78] sm:$0xff] %v4927_v2 }
 0x3cd   : > { %v4714_v1 = vpop.f32.mrb[40].mxu0  ;;  %v4757_v14 = vpop.f32.mrb[40].mxu1 }
 0x3ce   : > { %v4856_v25 = vmax.f32 %v9530_v22, %v4714_v1  ;;  %v4858_v15 = vmax.f32 %v9535_v45, %v4757_v14  ;;  %v4716_v23 = vpop.f32.mrb[41].mxu0  ;;  %v4759_v5 = vpop.f32.mrb[41].mxu1 }
 0x3cf   : > { %v4857_v61 = vmax.f32 %v9540_v27, %v4716_v23  ;;  %v4859_v6 = vmax.f32 %v9545_v44, %v4759_v5  ;;  %v4718_v18 = vpop.f32.mrb[42].mxu0  ;;  %v4761_v47 = vpop.f32.mrb[42].mxu1 }
 0x3d0   : > { %v4892_v62 = vadd.f32 %v9607_v13, %v4856_v25  ;;  %v4894_v51 = vadd.f32 %v9607_v13, %v4858_v15  ;;  %v4868_v34 = vmax.f32 %v9550_v8, %v4718_v18  ;;  %v4870_v19 = vmax.f32 %v9555_v33, %v4761_v47  ;;  %v4720_v22 = vpop.f32.mrb[43].mxu0  ;;  %v4763_v45 = vpop.f32.mrb[43].mxu1 }
 0x3d1   : > { %v4893_v16 = vadd.f32 %v9607_v13, %v4857_v61  ;;  %v4895_v27 = vadd.f32 %v9607_v13, %v4859_v6  ;;  %v4869_v44 = vmax.f32 %v9560_v9, %v4720_v22  ;;  %v4871_v35 = vmax.f32 %v9565_v3, %v4763_v45 }
 0x3d2   : > { %v4916_v21 = vmax.f32 %v4892_v62, 0.0  ;;  %v4918_v46 = vmax.f32 %v4894_v51, 0.0  ;;  %v4904_v8 = vadd.f32 %v9609_v32, %v4868_v34  ;;  %v4906_v33 = vadd.f32 %v9609_v32, %v4870_v19 }
 0x3d3   : > { %v4917_v57 = vmax.f32 %v4893_v16, 0.0  ;;  %v4919_v31 = vmax.f32 %v4895_v27, 0.0  ;;  %v4905_v28 = vadd.f32 %v9609_v32, %v4869_v44  ;;  %v4907_v58 = vadd.f32 %v9609_v32, %v4871_v35 }
 0x3d4   : > { %4940 = vst [vmem:[%s9625_s12 + $0x20] sm:$0xff] %v4916_v21  ;;  %4942 = vst [vmem:[%s9625_s12 + $0x30] sm:$0xff] %v4918_v46  ;;  %v4928_v9 = vmax.f32 %v4904_v8, 0.0  ;;  %v4930_v3 = vmax.f32 %v4906_v33, 0.0 }
 0x3d5   : > { %4941 = vst [vmem:[%s9625_s12 + $0x28] sm:$0xff] %v4917_v57  ;;  %4943 = vst [vmem:[%s9625_s12 + $0x38] sm:$0xff] %v4919_v31  ;;  %v4929_v26 = vmax.f32 %v4905_v28, 0.0  ;;  %v4931_v53 = vmax.f32 %v4907_v58, 0.0 }
 0x3d6   : > { %4952 = vst [vmem:[%s9625_s12 + $0x80] sm:$0xff] %v4928_v9  ;;  %4954 = vst [vmem:[%s9625_s12 + $0x90] sm:$0xff] %v4930_v3 }
 0x3d7   : > { %4953 = vst [vmem:[%s9625_s12 + $0x88] sm:$0xff] %v4929_v26  ;;  %4955 = vst [vmem:[%s9625_s12 + $0x98] sm:$0xff] %v4931_v53 }
 0x3f5   : > { %v4800_v29 = vpop.f32.mrb[44].mxu0  ;;  %v4843_v55 = vpop.f32.mrb[44].mxu1 }
 0x3f6   : > { %v4860_v54 = vmax.f32 %v9570_v11, %v4800_v29  ;;  %v4862_v7 = vmax.f32 %v9575_v52, %v4843_v55  ;;  %v4802_v49 = vpop.f32.mrb[45].mxu0  ;;  %v4845_v36 = vpop.f32.mrb[45].mxu1 }
 0x3f7   : > { %v4861_v50 = vmax.f32 %v9580_v30, %v4802_v49  ;;  %v4863_v41 = vmax.f32 %v9585_v17, %v4845_v36  ;;  %v4804_v37 = vpop.f32.mrb[46].mxu0  ;;  %v4847_v56 = vpop.f32.mrb[46].mxu1 }
 0x3f8   : > { %v4896_v0 = vadd.f32 %v9607_v13, %v4860_v54  ;;  %v4898_v48 = vadd.f32 %v9607_v13, %v4862_v7  ;;  %v4872_v59 = vmax.f32 %v9590_v4, %v4804_v37  ;;  %v4874_v40 = vmax.f32 %v9595_v24, %v4847_v56  ;;  %v4806_v11 = vpop.f32.mrb[47].mxu0  ;;  %v4849_v52 = vpop.f32.mrb[47].mxu1 }
 0x3f9   : > { %v4897_v60 = vadd.f32 %v9607_v13, %v4861_v50  ;;  %v4899_v30 = vadd.f32 %v9607_v13, %v4863_v41  ;;  %v4873_v17 = vmax.f32 %v9600_v12, %v4806_v11  ;;  %v4875_v38 = vmax.f32 %v9605_v20, %v4849_v52  ;;  %4966 = sbr.rel (!%p7686_p5) target bundleno = 1184 (0x4a0), region = 88 }
 0x3fa   : > { %v4920_v39 = vmax.f32 %v4896_v0, 0.0  ;;  %v4922_v10 = vmax.f32 %v4898_v48, 0.0  ;;  %v4908_v4 = vadd.f32 %v9609_v32, %v4872_v59  ;;  %v4910_v24 = vadd.f32 %v9609_v32, %v4874_v40 }
 0x3fb   : > { %v4921_v42 = vmax.f32 %v4897_v60, 0.0  ;;  %v4923_v43 = vmax.f32 %v4899_v30, 0.0  ;;  %v4909_v63 = vadd.f32 %v9609_v32, %v4873_v17  ;;  %v4911_v13 = vadd.f32 %v9609_v32, %v4875_v38 }
 0x3fc   : > { %4944 = vst [vmem:[%s9625_s12 + $0x40] sm:$0xff] %v4920_v39  ;;  %4946 = vst [vmem:[%s9625_s12 + $0x50] sm:$0xff] %v4922_v10  ;;  %v4932_v12 = vmax.f32 %v4908_v4, 0.0  ;;  %v4934_v20 = vmax.f32 %v4910_v24, 0.0 }
 0x3fd   : > { %4945 = vst [vmem:[%s9625_s12 + $0x48] sm:$0xff] %v4921_v42  ;;  %4947 = vst [vmem:[%s9625_s12 + $0x58] sm:$0xff] %v4923_v43  ;;  %v4933_v2 = vmax.f32 %v4909_v63, 0.0  ;;  %v4935_v1 = vmax.f32 %v4911_v13, 0.0 }
 0x3fe   : > { %4956 = vst [vmem:[%s9625_s12 + $0xa0] sm:$0xff] %v4932_v12  ;;  %4958 = vst [vmem:[%s9625_s12 + $0xb0] sm:$0xff] %v4934_v20 }
 0x3ff   : > { %4957 = vst [vmem:[%s9625_s12 + $0xa8] sm:$0xff] %v4933_v2  ;;  %4959 = vst [vmem:[%s9625_s12 + $0xb8] sm:$0xff] %v4935_v1 }
 0x400   : > { %s10141_s21 = smov (!%p4969_p9, %s4968_s21), 12 }
 0x401   : > { %s6453_s4 = sshll.u32 %s10141_s21, 8  ;;  %s9692_s23 = sshll.u32 %s10141_s21, 3 }
 0x402   : > { %p6457_p10 = scmp.eq.s32.totalorder %s6453_s4, 0 }
 0x403   : > { %p4979_p11 = scmp.lt.u32.totalorder (!%p6457_p10), %s9692_s23, 8 }
 0x404   : > { %4978 = sbr.rel (%p6457_p10) target bundleno = 1184 (0x4a0), region = 92 }
 0x40b   : > { %4982 = sbr.rel (%p4979_p11) target bundleno = 1175 (0x497), region = 96  ;;  %s9696_s20 = sand.u32 (!%p4979_p11), 7, %s9692_s23  }
 0x40c   : > { %p5000_p5 = scmp.eq.s32.totalorder (!%p4979_p11), %s9696_s20, 0  ;;  %p6458_p12 = scmp.ne.s32.totalorder (!%p4979_p11), %s9696_s20, 0 }
 0x412   : > { %5003 = sbr.rel (%p6458_p12) target bundleno = 1106 (0x452), region = 111  ;;  %s5004_s15 = sshrl.u32 (!%p6458_p12), %s9692_s23, 3 }
 0x413   : > { %s9703_s24 = sshrl.u32 (!%p6458_p12), %s5004_s15, 5 }
 0x414   : > { %p6459_p13 = scmp.le.s32.totalorder (!%p6458_p12), %s9703_s24, 0 }
 0x419   : > { %5493 = sbr.rel (%p6459_p13) target bundleno = 1086 (0x43e), region = 232  ;;  %s10119_s25 = smov (!%p6459_p13), %s9690_s14 }
 0x41a   : > { %s10120_s26 = smov (!%p6459_p13), %s9625_s12  ;;  %s9712_s27 = smov (!%p6459_p13), 0  }
 0x41b   : > { %s9714_s29 = smov (!%p6459_p13), 0  }
 0x420 LB: >> { %v5017_v32 = vld [vmem:[%s7572_s26] sm:$0xff]  ;;  %v5019_v14 = vld [vmem:[%s7572_s26 + $0x8] sm:$0xff]  ;;  %v5021_v25 = vld [vmem:[%s7572_s26 + $0x10] sm:$0xff]  ;;  %s5145_s6 = sadd.s32 1, %s7576_s27  ;;  %s5011_s29 = sadd.s32 1, %s7580_s29   ;;  %s7580_s29 = sphi %s9714_s29, %s5011_s29   ;;  %s7576_s27 = sphi %s9712_s27, %s10124_s27   ;;  %s7572_s26 = sphi %s10120_s26, %s10123_s26   ;;  %s7568_s25 = sphi %s10119_s25, %s10122_s25  }
 0x421   : >> { %5018 = vst [vmem:[%s7568_s25] sm:$0xff] %v5017_v32  ;;  %5020 = vst [vmem:[%s7568_s25 + $0x8] sm:$0xff] %v5019_v14  ;;  %v5023_v15 = vld [vmem:[%s7572_s26 + $0x18] sm:$0xff]  ;;  %v5025_v23 = vld [vmem:[%s7572_s26 + $0x20] sm:$0xff]  ;;  %p9751_p0 = scmp.ge.s32.totalorder %s5145_s6, %s9703_s24  ;;  %p5010_p1 = scmp.ge.s32.totalorder %s5011_s29, %s9703_s24 }
 0x422   : >> { %5022 = vst [vmem:[%s7568_s25 + $0x10] sm:$0xff] %v5021_v25  ;;  %v5027_v5 = vld [vmem:[%s7572_s26 + $0x28] sm:$0xff]  ;;  %5024 = vst [vmem:[%s7568_s25 + $0x18] sm:$0xff] %v5023_v15  ;;  %v5029_v61 = vld [vmem:[%s7572_s26 + $0x30] sm:$0xff] }
 0x423   : >> { %5026 = vst [vmem:[%s7568_s25 + $0x20] sm:$0xff] %v5025_v23  ;;  %5028 = vst [vmem:[%s7568_s25 + $0x28] sm:$0xff] %v5027_v5  ;;  %v5031_v6 = vld [vmem:[%s7572_s26 + $0x38] sm:$0xff]  ;;  %v5033_v18 = vld [vmem:[%s7572_s26 + $0x40] sm:$0xff]  ;;  %s10143_s6 = smov (%p9751_p0, %s5145_s6), 0 }
 0x424   : >> { %5030 = vst [vmem:[%s7568_s25 + $0x30] sm:$0xff] %v5029_v61  ;;  %5032 = vst [vmem:[%s7568_s25 + $0x38] sm:$0xff] %v5031_v6  ;;  %v5035_v47 = vld [vmem:[%s7572_s26 + $0x48] sm:$0xff]  ;;  %v5037_v62 = vld [vmem:[%s7572_s26 + $0x50] sm:$0xff]  ;;  %s6460_s8 = sshll.u32 %s10143_s6, 8  ;;  %s10124_s27 = smov %s10143_s6 }
 0x425   : >> { %5034 = vst [vmem:[%s7568_s25 + $0x40] sm:$0xff] %v5033_v18  ;;  %v5039_v51 = vld [vmem:[%s7572_s26 + $0x58] sm:$0xff]  ;;  %5036 = vst [vmem:[%s7568_s25 + $0x48] sm:$0xff] %v5035_v47  ;;  %v5041_v34 = vld [vmem:[%s7572_s26 + $0x60] sm:$0xff]  ;;  %s9803_s9 = scalar_lea.vmem %s9625_s12, %s6460_s8 [#allocation3]   ;;  %s9806_s10 = scalar_lea.vmem %s9690_s14, %s6460_s8  }
 0x426   : >> { %5038 = vst [vmem:[%s7568_s25 + $0x50] sm:$0xff] %v5037_v62  ;;  %5040 = vst [vmem:[%s7568_s25 + $0x58] sm:$0xff] %v5039_v51  ;;  %v5043_v19 = vld [vmem:[%s7572_s26 + $0x68] sm:$0xff]  ;;  %v5045_v22 = vld [vmem:[%s7572_s26 + $0x70] sm:$0xff] }
 0x427   : >> { %5042 = vst [vmem:[%s7568_s25 + $0x60] sm:$0xff] %v5041_v34  ;;  %5044 = vst [vmem:[%s7568_s25 + $0x68] sm:$0xff] %v5043_v19  ;;  %v5047_v45 = vld [vmem:[%s7572_s26 + $0x78] sm:$0xff]  ;;  %v5049_v16 = vld [vmem:[%s7572_s26 + $0x80] sm:$0xff] }
 0x428   : >> { %5046 = vst [vmem:[%s7568_s25 + $0x70] sm:$0xff] %v5045_v22  ;;  %v5051_v27 = vld [vmem:[%s7572_s26 + $0x88] sm:$0xff]  ;;  %5082 = vst [vmem:[%s7568_s25 + $0xc8] sm:$0xff] %v5041_v34  ;;  %v5053_v44 = vld [vmem:[%s7572_s26 + $0x90] sm:$0xff] }
 0x429   : >> { %5084 = vst [vmem:[%s7568_s25 + $0xd0] sm:$0xff] %v5043_v19  ;;  %5086 = vst [vmem:[%s7568_s25 + $0xd8] sm:$0xff] %v5045_v22  ;;  %v5055_v35 = vld [vmem:[%s7572_s26 + $0x98] sm:$0xff]  ;;  %v5057_v21 = vld [vmem:[%s7572_s26 + $0xa0] sm:$0xff] }
 0x42a   : >> { %5048 = vst [vmem:[%s7568_s25 + $0x78] sm:$0xff] %v5047_v45  ;;  %5050 = vst [vmem:[%s7568_s25 + $0x80] sm:$0xff] %v5049_v16  ;;  %v5059_v46 = vld [vmem:[%s7572_s26 + $0xa8] sm:$0xff]  ;;  %v5061_v8 = vld [vmem:[%s7572_s26 + $0xb0] sm:$0xff] }
 0x42b   : >> { %5052 = vst [vmem:[%s7568_s25 + $0x88] sm:$0xff] %v5051_v27  ;;  %5088 = vst [vmem:[%s7568_s25 + $0xe0] sm:$0xff] %v5047_v45  ;;  %v5063_v33 = vld [vmem:[%s7572_s26 + $0xb8] sm:$0xff]  ;;  %v5065_v57 = vld [vmem:[%s7572_s26 + $0xc0] sm:$0xff] }
 0x42c   : >> { %5090 = vst [vmem:[%s7568_s25 + $0xe8] sm:$0xff] %v5049_v16  ;;  %5092 = vst [vmem:[%s7568_s25 + $0xf0] sm:$0xff] %v5051_v27  ;;  %v5107_v31 = vld [vmem:[%s7572_s26 + $0xc8] sm:$0xff]  ;;  %v5109_v28 = vld [vmem:[%s7572_s26 + $0xd0] sm:$0xff] }
 0x42d   : >> { %5054 = vst [vmem:[%s7568_s25 + $0x90] sm:$0xff] %v5053_v44  ;;  %5056 = vst [vmem:[%s7568_s25 + $0x98] sm:$0xff] %v5055_v35  ;;  %v5111_v58 = vld [vmem:[%s7572_s26 + $0xd8] sm:$0xff]  ;;  %v5113_v9 = vld [vmem:[%s7572_s26 + $0xe0] sm:$0xff] }
 0x42e   : >> { %5058 = vst [vmem:[%s7568_s25 + $0xa0] sm:$0xff] %v5057_v21  ;;  %5094 = vst [vmem:[%s7568_s25 + $0xf8] sm:$0xff] %v5053_v44  ;;  %v5115_v3 = vld [vmem:[%s7572_s26 + $0xe8] sm:$0xff]  ;;  %v5117_v26 = vld [vmem:[%s7572_s26 + $0xf0] sm:$0xff] }
 0x42f   : >> { %5096 = vst [vmem:[%s7568_s25 + $0x100] sm:$0xff] %v5055_v35  ;;  %5098 = vst [vmem:[%s7568_s25 + $0x108] sm:$0xff] %v5057_v21  ;;  %v5119_v53 = vld [vmem:[%s7572_s26 + $0xf8] sm:$0xff]  ;;  %v5121_v29 = vld [vmem:[%s7572_s26 + $0x100] sm:$0xff] }
 0x430   : >> { %5060 = vst [vmem:[%s7568_s25 + $0xa8] sm:$0xff] %v5059_v46  ;;  %5062 = vst [vmem:[%s7568_s25 + $0xb0] sm:$0xff] %v5061_v8  ;;  %v5123_v55 = vld [vmem:[%s7572_s26 + $0x108] sm:$0xff]  ;;  %v5125_v54 = vld [vmem:[%s7572_s26 + $0x110] sm:$0xff] }
 0x431   : >> { %5064 = vst [vmem:[%s7568_s25 + $0xb8] sm:$0xff] %v5063_v33  ;;  %5100 = vst [vmem:[%s7568_s25 + $0x110] sm:$0xff] %v5059_v46  ;;  %v5127_v7 = vld [vmem:[%s7572_s26 + $0x118] sm:$0xff]  ;;  %v5129_v49 = vld [vmem:[%s7572_s26 + $0x120] sm:$0xff] }
 0x432   : >> { %5102 = vst [vmem:[%s7568_s25 + $0x118] sm:$0xff] %v5061_v8  ;;  %5104 = vst [vmem:[%s7568_s25 + $0x120] sm:$0xff] %v5063_v33  ;;  %v5131_v36 = vld [vmem:[%s7572_s26 + $0x128] sm:$0xff]  ;;  %v5133_v50 = vld [vmem:[%s7572_s26 + $0x130] sm:$0xff] }
 0x433   : >> { %5066 = vst [vmem:[%s7568_s25 + $0xc0] sm:$0xff] %v5065_v57  ;;  %5106 = vst [vmem:[%s7568_s25 + $0x128] sm:$0xff] %v5065_v57  ;;  %v5135_v41 = vld [vmem:[%s7572_s26 + $0x138] sm:$0xff]  ;;  %v5137_v37 = vld [vmem:[%s7572_s26 + $0x140] sm:$0xff] }
 0x434   : >> { %5108 = vst [vmem:[%s7568_s25 + $0x130] sm:$0xff] %v5107_v31  ;;  %5110 = vst [vmem:[%s7568_s25 + $0x138] sm:$0xff] %v5109_v28  ;;  %v5139_v56 = vld [vmem:[%s7572_s26 + $0x148] sm:$0xff]  ;;  %v5141_v0 = vld [vmem:[%s7572_s26 + $0x150] sm:$0xff] }
 0x435   : >> { %5112 = vst [vmem:[%s7568_s25 + $0x140] sm:$0xff] %v5111_v58  ;;  %5114 = vst [vmem:[%s7568_s25 + $0x148] sm:$0xff] %v5113_v9  ;;  %v5143_v48 = vld [vmem:[%s7572_s26 + $0x158] sm:$0xff]  ;;  %s10123_s26 = smov %s9803_s9 }
 0x436   : >> { %5116 = vst [vmem:[%s7568_s25 + $0x150] sm:$0xff] %v5115_v3  ;;  %5118 = vst [vmem:[%s7568_s25 + $0x158] sm:$0xff] %v5117_v26 }
 0x437   : >> { %5120 = vst [vmem:[%s7568_s25 + $0x160] sm:$0xff] %v5119_v53  ;;  %5122 = vst [vmem:[%s7568_s25 + $0x168] sm:$0xff] %v5121_v29  ;;  %5013 = sbr.rel (!%p5010_p1) target bundleno = 1056 (0x420), region = 238 }
 0x438   : >> { %5124 = vst [vmem:[%s7568_s25 + $0x170] sm:$0xff] %v5123_v55  ;;  %5126 = vst [vmem:[%s7568_s25 + $0x178] sm:$0xff] %v5125_v54 }
 0x439   : >> { %5128 = vst [vmem:[%s7568_s25 + $0x180] sm:$0xff] %v5127_v7  ;;  %5130 = vst [vmem:[%s7568_s25 + $0x188] sm:$0xff] %v5129_v49 }
 0x43a   : >> { %5132 = vst [vmem:[%s7568_s25 + $0x190] sm:$0xff] %v5131_v36  ;;  %5134 = vst [vmem:[%s7568_s25 + $0x198] sm:$0xff] %v5133_v50 }
 0x43b   : >> { %5136 = vst [vmem:[%s7568_s25 + $0x1a0] sm:$0xff] %v5135_v41  ;;  %5138 = vst [vmem:[%s7568_s25 + $0x1a8] sm:$0xff] %v5137_v37 }
 0x43c   : >> { %5140 = vst [vmem:[%s7568_s25 + $0x1b0] sm:$0xff] %v5139_v56  ;;  %5142 = vst [vmem:[%s7568_s25 + $0x1b8] sm:$0xff] %v5141_v0 }
 0x43d   : >> { %5144 = vst [vmem:[%s7568_s25 + $0x1c0] sm:$0xff] %v5143_v48  ;;  %s10122_s25 = smov %s9806_s10 }
 0x43e PF: > { %s9861_s11 = sand.u32 31, %s5004_s15   ;;  %s6482_s17 = sshll.u32 %s9703_s24, 12 }
 0x43f   : > { %s5156_s5 = sshra.s32 %s6482_s17, 4  ;;  %p6465_p2 = scmp.le.s32.totalorder %s9861_s11, 0 }
 0x440   : > { %s9865_s18 = scalar_lea.vmem %s9625_s12, %s5156_s5 [#allocation3]   ;;  %s5160_s30 = scalar_lea.vmem %s9690_s14, %s5156_s5  }
 0x441   : > { %5507 = sbr.rel (%p6465_p2) target bundleno = 1106 (0x452), region = 243  ;;  %s7582_s21 = smov (!%p6465_p2), %s5160_s30  }
 0x442   : > { %s7586_s22 = smov (!%p6465_p2), %s9865_s18   ;;  %s7590_s28 = smov (!%p6465_p2), 0  }
 0x443   : > { %s7594_s4 = smov (!%p6465_p2), 0  }
 0x448 LB: >> { %v5172_v59 = vld [vmem:[%s7588_s22] sm:$0xff]  ;;  %s5176_s15 = sadd.s32 1, %s7592_s28  ;;  %s5166_s4 = sadd.s32 1, %s7596_s4   ;;  %s7596_s4 = sphi %s7594_s4, %s5166_s4   ;;  %s7592_s28 = sphi %s7590_s28, %s7591_s28   ;;  %s7588_s22 = sphi %s7586_s22, %s5181_s22   ;;  %s7584_s21 = sphi %s7582_s21, %s5182_s21  }
 0x449   : >> { %v5174_v40 = vld [vmem:[%s7588_s22 + $0x60] sm:$0xff]  ;;  %5173 = vst [vmem:[%s7584_s21] sm:$0xff] %v5172_v59  ;;  %p5177_p3 = scmp.ge.s32.totalorder %s5176_s15, %s9861_s11  ;;  %p5165_p4 = scmp.ge.s32.totalorder %s5166_s4, %s9861_s11 }
 0x44a   : >> { %5175 = vst [vmem:[%s7584_s21 + $0xc8] sm:$0xff] %v5174_v40 }
 0x44b   : >> { %s10145_s15 = smov (%p5177_p3, %s5176_s15), 0  ;;  %5168 = sbr.rel (!%p5165_p4) target bundleno = 1096 (0x448), region = 249 }
 0x44c   : >> { %s6466_s24 = sshll.u32 %s10145_s15, 3  ;;  %s7591_s28 = smov %s10145_s15  }
 0x44d   : >> { %s5181_s22 = scalar_lea.vmem %s9865_s18, %s6466_s24 [#allocation3]   ;;  %s5182_s21 = scalar_lea.vmem %s5160_s30, %s6466_s24  }
 0x452 PF: > { %5185 = sbr.rel (%p5000_p5) target bundleno = 1175 (0x497), region = 129  ;;  %s5187_s25 = ssub.s32 (!%p5000_p5), %s9692_s23, %s9696_s20 }
 0x453   : > { %s5191_s26 = sshrl.u32 (!%p5000_p5), %s9692_s23, 3  ;;  %s9879_s27 = scalar_lea.vmem (!%p5000_p5), %s9625_s12, %s5187_s25 [#allocation3] }
 0x454   : > { %s9882_s29 = scalar_lea.vmem (!%p5000_p5), %s9690_s14, %s5187_s25  ;;  %s9886_s6 = sshrl.u32 (!%p5000_p5), %s5191_s26, 5 }
 0x455   : > { %p6468_p6 = scmp.le.s32.totalorder (!%p5000_p5), %s9886_s6, 0 }
 0x459   : > { %5521 = sbr.rel (%p6468_p6) target bundleno = 1150 (0x47e), region = 254  ;;  %s10125_s7 = smov (!%p6468_p6), %s9690_s14 }
 0x45a   : > { %s10126_s8 = smov (!%p6468_p6), %s9625_s12  ;;  %s9895_s9 = smov (!%p6468_p6), 0  }
 0x45b   : > { %s9897_s10 = smov (!%p6468_p6), 0  }
 0x460 LB: >> { %v5204_v11 = vld [vmem:[%s7604_s8] sm:$0xff]  ;;  %v5206_v52 = vld [vmem:[%s7604_s8 + $0x8] sm:$0xff]  ;;  %v5208_v60 = vld [vmem:[%s7604_s8 + $0x10] sm:$0xff]  ;;  %s5332_s11 = sadd.s32 1, %s7608_s9  ;;  %s5198_s10 = sadd.s32 1, %s7612_s10   ;;  %s7612_s10 = sphi %s9897_s10, %s5198_s10   ;;  %s7608_s9 = sphi %s9895_s9, %s10130_s9   ;;  %s7604_s8 = sphi %s10126_s8, %s10129_s8   ;;  %s7600_s7 = sphi %s10125_s7, %s10128_s7  }
 0x461   : >> { %5205 = vst [vmem:[%s7600_s7] sm:$0xff] %v5204_v11  ;;  %5207 = vst [vmem:[%s7600_s7 + $0x8] sm:$0xff] %v5206_v52  ;;  %v5210_v30 = vld [vmem:[%s7604_s8 + $0x18] sm:$0xff]  ;;  %v5212_v17 = vld [vmem:[%s7604_s8 + $0x20] sm:$0xff]  ;;  %p9934_p7 = scmp.ge.s32.totalorder %s5332_s11, %s9886_s6  ;;  %p5197_p8 = scmp.ge.s32.totalorder %s5198_s10, %s9886_s6 }
 0x462   : >> { %5209 = vst [vmem:[%s7600_s7 + $0x10] sm:$0xff] %v5208_v60  ;;  %v5214_v38 = vld [vmem:[%s7604_s8 + $0x28] sm:$0xff]  ;;  %5211 = vst [vmem:[%s7600_s7 + $0x18] sm:$0xff] %v5210_v30  ;;  %v5216_v39 = vld [vmem:[%s7604_s8 + $0x30] sm:$0xff] }
 0x463   : >> { %5213 = vst [vmem:[%s7600_s7 + $0x20] sm:$0xff] %v5212_v17  ;;  %5215 = vst [vmem:[%s7600_s7 + $0x28] sm:$0xff] %v5214_v38  ;;  %v5218_v10 = vld [vmem:[%s7604_s8 + $0x38] sm:$0xff]  ;;  %v5220_v4 = vld [vmem:[%s7604_s8 + $0x40] sm:$0xff]  ;;  %s10147_s11 = smov (%p9934_p7, %s5332_s11), 0 }
 0x464   : >> { %5217 = vst [vmem:[%s7600_s7 + $0x30] sm:$0xff] %v5216_v39  ;;  %5219 = vst [vmem:[%s7600_s7 + $0x38] sm:$0xff] %v5218_v10  ;;  %v5222_v24 = vld [vmem:[%s7604_s8 + $0x48] sm:$0xff]  ;;  %v5224_v42 = vld [vmem:[%s7604_s8 + $0x50] sm:$0xff]  ;;  %s6469_s5 = sshll.u32 %s10147_s11, 8  ;;  %s10130_s9 = smov %s10147_s11 }
 0x465   : >> { %5221 = vst [vmem:[%s7600_s7 + $0x40] sm:$0xff] %v5220_v4  ;;  %v5226_v43 = vld [vmem:[%s7604_s8 + $0x58] sm:$0xff]  ;;  %5223 = vst [vmem:[%s7600_s7 + $0x48] sm:$0xff] %v5222_v24  ;;  %v5228_v63 = vld [vmem:[%s7604_s8 + $0x60] sm:$0xff]  ;;  %s9986_s18 = scalar_lea.vmem %s9625_s12, %s6469_s5 [#allocation3]   ;;  %s9989_s30 = scalar_lea.vmem %s9690_s14, %s6469_s5  }
 0x466   : >> { %5225 = vst [vmem:[%s7600_s7 + $0x50] sm:$0xff] %v5224_v42  ;;  %5227 = vst [vmem:[%s7600_s7 + $0x58] sm:$0xff] %v5226_v43  ;;  %v5230_v13 = vld [vmem:[%s7604_s8 + $0x68] sm:$0xff]  ;;  %v5232_v12 = vld [vmem:[%s7604_s8 + $0x70] sm:$0xff] }
 0x467   : >> { %5229 = vst [vmem:[%s7600_s7 + $0x60] sm:$0xff] %v5228_v63  ;;  %5231 = vst [vmem:[%s7600_s7 + $0x68] sm:$0xff] %v5230_v13  ;;  %v5234_v20 = vld [vmem:[%s7604_s8 + $0x78] sm:$0xff]  ;;  %v5236_v2 = vld [vmem:[%s7604_s8 + $0x80] sm:$0xff] }
 0x468   : >> { %5233 = vst [vmem:[%s7600_s7 + $0x70] sm:$0xff] %v5232_v12  ;;  %v5238_v1 = vld [vmem:[%s7604_s8 + $0x88] sm:$0xff]  ;;  %5269 = vst [vmem:[%s7600_s7 + $0xc8] sm:$0xff] %v5228_v63  ;;  %v5240_v32 = vld [vmem:[%s7604_s8 + $0x90] sm:$0xff] }
 0x469   : >> { %5271 = vst [vmem:[%s7600_s7 + $0xd0] sm:$0xff] %v5230_v13  ;;  %5273 = vst [vmem:[%s7600_s7 + $0xd8] sm:$0xff] %v5232_v12  ;;  %v5242_v14 = vld [vmem:[%s7604_s8 + $0x98] sm:$0xff]  ;;  %v5244_v25 = vld [vmem:[%s7604_s8 + $0xa0] sm:$0xff] }
 0x46a   : >> { %5235 = vst [vmem:[%s7600_s7 + $0x78] sm:$0xff] %v5234_v20  ;;  %5237 = vst [vmem:[%s7600_s7 + $0x80] sm:$0xff] %v5236_v2  ;;  %v5246_v15 = vld [vmem:[%s7604_s8 + $0xa8] sm:$0xff]  ;;  %v5248_v23 = vld [vmem:[%s7604_s8 + $0xb0] sm:$0xff] }
 0x46b   : >> { %5239 = vst [vmem:[%s7600_s7 + $0x88] sm:$0xff] %v5238_v1  ;;  %5275 = vst [vmem:[%s7600_s7 + $0xe0] sm:$0xff] %v5234_v20  ;;  %v5250_v5 = vld [vmem:[%s7604_s8 + $0xb8] sm:$0xff]  ;;  %v5252_v61 = vld [vmem:[%s7604_s8 + $0xc0] sm:$0xff] }
 0x46c   : >> { %5277 = vst [vmem:[%s7600_s7 + $0xe8] sm:$0xff] %v5236_v2  ;;  %5279 = vst [vmem:[%s7600_s7 + $0xf0] sm:$0xff] %v5238_v1  ;;  %v5294_v6 = vld [vmem:[%s7604_s8 + $0xc8] sm:$0xff]  ;;  %v5296_v18 = vld [vmem:[%s7604_s8 + $0xd0] sm:$0xff] }
 0x46d   : >> { %5241 = vst [vmem:[%s7600_s7 + $0x90] sm:$0xff] %v5240_v32  ;;  %5243 = vst [vmem:[%s7600_s7 + $0x98] sm:$0xff] %v5242_v14  ;;  %v5298_v47 = vld [vmem:[%s7604_s8 + $0xd8] sm:$0xff]  ;;  %v5300_v62 = vld [vmem:[%s7604_s8 + $0xe0] sm:$0xff] }
 0x46e   : >> { %5245 = vst [vmem:[%s7600_s7 + $0xa0] sm:$0xff] %v5244_v25  ;;  %5281 = vst [vmem:[%s7600_s7 + $0xf8] sm:$0xff] %v5240_v32  ;;  %v5302_v51 = vld [vmem:[%s7604_s8 + $0xe8] sm:$0xff]  ;;  %v5304_v34 = vld [vmem:[%s7604_s8 + $0xf0] sm:$0xff] }
 0x46f   : >> { %5283 = vst [vmem:[%s7600_s7 + $0x100] sm:$0xff] %v5242_v14  ;;  %5285 = vst [vmem:[%s7600_s7 + $0x108] sm:$0xff] %v5244_v25  ;;  %v5306_v19 = vld [vmem:[%s7604_s8 + $0xf8] sm:$0xff]  ;;  %v5308_v22 = vld [vmem:[%s7604_s8 + $0x100] sm:$0xff] }
 0x470   : >> { %5247 = vst [vmem:[%s7600_s7 + $0xa8] sm:$0xff] %v5246_v15  ;;  %5249 = vst [vmem:[%s7600_s7 + $0xb0] sm:$0xff] %v5248_v23  ;;  %v5310_v45 = vld [vmem:[%s7604_s8 + $0x108] sm:$0xff]  ;;  %v5312_v16 = vld [vmem:[%s7604_s8 + $0x110] sm:$0xff] }
 0x471   : >> { %5251 = vst [vmem:[%s7600_s7 + $0xb8] sm:$0xff] %v5250_v5  ;;  %5287 = vst [vmem:[%s7600_s7 + $0x110] sm:$0xff] %v5246_v15  ;;  %v5314_v27 = vld [vmem:[%s7604_s8 + $0x118] sm:$0xff]  ;;  %v5316_v44 = vld [vmem:[%s7604_s8 + $0x120] sm:$0xff] }
 0x472   : >> { %5289 = vst [vmem:[%s7600_s7 + $0x118] sm:$0xff] %v5248_v23  ;;  %5291 = vst [vmem:[%s7600_s7 + $0x120] sm:$0xff] %v5250_v5  ;;  %v5318_v35 = vld [vmem:[%s7604_s8 + $0x128] sm:$0xff]  ;;  %v5320_v21 = vld [vmem:[%s7604_s8 + $0x130] sm:$0xff] }
 0x473   : >> { %5253 = vst [vmem:[%s7600_s7 + $0xc0] sm:$0xff] %v5252_v61  ;;  %5293 = vst [vmem:[%s7600_s7 + $0x128] sm:$0xff] %v5252_v61  ;;  %v5322_v46 = vld [vmem:[%s7604_s8 + $0x138] sm:$0xff]  ;;  %v5324_v8 = vld [vmem:[%s7604_s8 + $0x140] sm:$0xff] }
 0x474   : >> { %5295 = vst [vmem:[%s7600_s7 + $0x130] sm:$0xff] %v5294_v6  ;;  %5297 = vst [vmem:[%s7600_s7 + $0x138] sm:$0xff] %v5296_v18  ;;  %v5326_v33 = vld [vmem:[%s7604_s8 + $0x148] sm:$0xff]  ;;  %v5328_v57 = vld [vmem:[%s7604_s8 + $0x150] sm:$0xff] }
 0x475   : >> { %5299 = vst [vmem:[%s7600_s7 + $0x140] sm:$0xff] %v5298_v47  ;;  %5301 = vst [vmem:[%s7600_s7 + $0x148] sm:$0xff] %v5300_v62  ;;  %v5330_v31 = vld [vmem:[%s7604_s8 + $0x158] sm:$0xff]  ;;  %s10129_s8 = smov %s9986_s18 }
 0x476   : >> { %5303 = vst [vmem:[%s7600_s7 + $0x150] sm:$0xff] %v5302_v51  ;;  %5305 = vst [vmem:[%s7600_s7 + $0x158] sm:$0xff] %v5304_v34 }
 0x477   : >> { %5307 = vst [vmem:[%s7600_s7 + $0x160] sm:$0xff] %v5306_v19  ;;  %5309 = vst [vmem:[%s7600_s7 + $0x168] sm:$0xff] %v5308_v22  ;;  %5200 = sbr.rel (!%p5197_p8) target bundleno = 1120 (0x460), region = 260 }
 0x478   : >> { %5311 = vst [vmem:[%s7600_s7 + $0x170] sm:$0xff] %v5310_v45  ;;  %5313 = vst [vmem:[%s7600_s7 + $0x178] sm:$0xff] %v5312_v16 }
 0x479   : >> { %5315 = vst [vmem:[%s7600_s7 + $0x180] sm:$0xff] %v5314_v27  ;;  %5317 = vst [vmem:[%s7600_s7 + $0x188] sm:$0xff] %v5316_v44 }
 0x47a   : >> { %5319 = vst [vmem:[%s7600_s7 + $0x190] sm:$0xff] %v5318_v35  ;;  %5321 = vst [vmem:[%s7600_s7 + $0x198] sm:$0xff] %v5320_v21 }
 0x47b   : >> { %5323 = vst [vmem:[%s7600_s7 + $0x1a0] sm:$0xff] %v5322_v46  ;;  %5325 = vst [vmem:[%s7600_s7 + $0x1a8] sm:$0xff] %v5324_v8 }
 0x47c   : >> { %5327 = vst [vmem:[%s7600_s7 + $0x1b0] sm:$0xff] %v5326_v33  ;;  %5329 = vst [vmem:[%s7600_s7 + $0x1b8] sm:$0xff] %v5328_v57 }
 0x47d   : >> { %5331 = vst [vmem:[%s7600_s7 + $0x1c0] sm:$0xff] %v5330_v31  ;;  %s10128_s7 = smov %s9989_s30 }
 0x47e PF: > { %s10044_s21 = sand.u32 31, %s5191_s26   ;;  %s6484_s22 = sshll.u32 %s9886_s6, 12 }
 0x47f   : > { %s5343_s28 = sshra.s32 %s6484_s22, 4  ;;  %p6474_p9 = scmp.le.s32.totalorder %s10044_s21, 0 }
 0x480   : > { %s10048_s4 = scalar_lea.vmem %s9625_s12, %s5343_s28 [#allocation3]   ;;  %s5347_s15 = scalar_lea.vmem %s9690_s14, %s5343_s28  }
 0x481   : > { %5535 = sbr.rel (%p6474_p9) target bundleno = 1170 (0x492), region = 265  ;;  %s7614_s24 = smov (!%p6474_p9), %s5347_s15  }
 0x482   : > { %s7618_s25 = smov (!%p6474_p9), %s10048_s4   ;;  %s7622_s10 = smov (!%p6474_p9), 0  }
 0x483   : > { %s7626_s7 = smov (!%p6474_p9), 0  }
 0x488 LB: >> { %v5359_v28 = vld [vmem:[%s7620_s25] sm:$0xff]  ;;  %s5363_s26 = sadd.s32 1, %s7624_s10  ;;  %s5353_s7 = sadd.s32 1, %s7628_s7   ;;  %s7628_s7 = sphi %s7626_s7, %s5353_s7   ;;  %s7624_s10 = sphi %s7622_s10, %s7623_s10   ;;  %s7620_s25 = sphi %s7618_s25, %s5368_s25   ;;  %s7616_s24 = sphi %s7614_s24, %s5369_s24  }
 0x489   : >> { %v5361_v58 = vld [vmem:[%s7620_s25 + $0x60] sm:$0xff]  ;;  %5360 = vst [vmem:[%s7616_s24] sm:$0xff] %v5359_v28  ;;  %p5364_p10 = scmp.ge.s32.totalorder %s5363_s26, %s10044_s21  ;;  %p5352_p11 = scmp.ge.s32.totalorder %s5353_s7, %s10044_s21 }
 0x48a   : >> { %5362 = vst [vmem:[%s7616_s24 + $0xc8] sm:$0xff] %v5361_v58 }
 0x48b   : >> { %s10149_s26 = smov (%p5364_p10, %s5363_s26), 0  ;;  %5355 = sbr.rel (!%p5352_p11) target bundleno = 1160 (0x488), region = 271 }
 0x48c   : >> { %s6475_s6 = sshll.u32 %s10149_s26, 3  ;;  %s7623_s10 = smov %s10149_s26  }
 0x48d   : >> { %s5368_s25 = scalar_lea.vmem %s10048_s4, %s6475_s6 [#allocation3]   ;;  %s5369_s24 = scalar_lea.vmem %s5347_s15, %s6475_s6  }
 0x492 PF: > { %s7633_s8 = smov 0  }
 0x493   : > { %s5370_s9 = sshllo.u32 %s7633_s8, %s9696_s20 }
 0x494   : > { %v5379_v9 = vld [vmem:[%s9879_s27] sm:%s5370_s9] }
 0x495   : > { %v5381_v3 = vld [vmem:[%s9879_s27 + $0x60] sm:%s5370_s9]  ;;  %5380 = vst [vmem:[%s9882_s29] sm:%s5370_s9] %v5379_v9 }
 0x496   : > { %5382 = vst [vmem:[%s9882_s29 + $0xc8] sm:%s5370_s9] %v5381_v3 }
 0x497 PF: > { %p6477_p5 = scmp.ge.u32.totalorder %s9692_s23, 8 }
 0x498   : > { %s7634_s11 = smov (!%p6477_p5), 0  }
 0x499   : > { %4985 = sbr.rel (%p6477_p5) target bundleno = 1184 (0x4a0), region = 100  ;;  %s4986_s17 = sshllo.u32 (!%p6477_p5), %s7634_s11, %s9692_s23 }
 0x49a   : > { %v4995_v26 = vld [vmem:[%s9625_s12] sm:%s4986_s17] (!%p6477_p5) }
 0x49b   : > { %v4997_v53 = vld [vmem:[%s9625_s12 + $0x60] sm:%s4986_s17] (!%p6477_p5)  ;;  %4996 = vst [vmem:[%s9690_s14] sm:%s4986_s17] (!%p6477_p5), %v4995_v26 }
 0x49c   : > { %4998 = vst [vmem:[%s9690_s14 + $0xc8] sm:%s4986_s17] (!%p6477_p5), %v4997_v53 }
 0x4a0 PF: > { %p10_p12 = scmp.ge.s32.totalorder %s7674_s16, 5   ;;  %s10131_s12 = smov %s7528_s13 }
 0x4a1   : > { %s10132_s13 = smov %s7684_s19  ;;  %s10133_s14 = smov %s7674_s16 }
 0x4a2   :  { %12 = sbr.rel (!%p10_p12) target bundleno = 2 (0x2), region = 282 }

// kernel: cnn_cifar_forward.5
= control target key start
LH: loop header
LB: loop body
LE: loop exit
PB: predicated region body
PF: predicated region fallthrough
CT: control target
= control target key end

     0   :  { %v1274_v2 = vmov 0.0|0.0   ;;  %vm147_vm0 = vcmask 130048   ;;  %vm854_vm1 = vcmask 80896   ;;  %s1869_s1 = inlined_call_operand.vmem [shape: f32[400,128], index: 1, kind: input, shape index: {}]   ;;  %s1870_s0 = inlined_call_operand.vmem [shape: f32[128,400], index: 0, kind: input, shape index: {}]   ;;  %s1871_s3 = inlined_call_operand.vmem [shape: f32[128,128], index: 3, kind: input, shape index: {}]   ;;  %s1872_s5 = inlined_call_operand.vmem [shape: f32[128,10], index: 5, kind: input, shape index: {}]   ;;  %s1873_s2 = inlined_call_operand.vmem [shape: f32[1,128], index: 2, kind: input, shape index: {}]   ;;  %s1874_s4 = inlined_call_operand.vmem [shape: f32[1,128], index: 4, kind: input, shape index: {}]   ;;  %s1875_s6 = inlined_call_operand.vmem [shape: f32[1,10], index: 6, kind: input, shape index: {}]   ;;  %s1876_s7 = inlined_call_operand.vmem [shape: f32[128,10], index: 7, kind: output, shape index: {}]  }
   0x1   :  { %v106_v0 = vld [vmem:[%s1869_s1 + $0x80] sm:$0xff]  ;;  %v107_v1 = vld [vmem:[%s1869_s1 + $0x88] sm:$0xff]  ;;  %1182 = vmatprep.subr.bf16.mxu1 %v1274_v2  ;;  %v108_v10 = vld [vmem:[%s1869_s1 + $0x90] sm:$0xff] }
   0x2   :  { %v90_v3 = vld [vmem:[%s1869_s1] sm:$0xff]  ;;  %v1150_v4 = vpack.c.bf16 %v107_v1, %v106_v0  ;;  %v91_v5 = vld [vmem:[%s1869_s1 + $0x8] sm:$0xff]  ;;  %v109_v11 = vld [vmem:[%s1869_s1 + $0x98] sm:$0xff] }
   0x3   :  { %v122_v6 = vld [vmem:[%s1869_s1 + $0x100] sm:$0xff]  ;;  %v123_v7 = vld [vmem:[%s1869_s1 + $0x108] sm:$0xff]  ;;  %v1152_v8 = vpack.c.bf16 %v91_v5, %v90_v3  ;;  %v92_v12 = vld [vmem:[%s1869_s1 + $0x10] sm:$0xff]  ;;  %v1154_v13 = vpack.c.bf16 %v109_v11, %v108_v10 }
   0x4   :  { %v1183_v9 = vpack.c.bf16 %v123_v7, %v122_v6  ;;  %1151 = vmatprep.subr.bf16.mxu0 %v1150_v4  ;;  %v93_v14 = vld [vmem:[%s1869_s1 + $0x18] sm:$0xff]  ;;  %v124_v15 = vld [vmem:[%s1869_s1 + $0x110] sm:$0xff]  ;;  %v110_v19 = vld [vmem:[%s1869_s1 + $0xa0] sm:$0xff] }
   0x5   :  { %v125_v16 = vld [vmem:[%s1869_s1 + $0x118] sm:$0xff]  ;;  %1153 = vmatpush3.bf16.msra.mxu0 %v1152_v8  ;;  %v1156_v17 = vpack.c.bf16 %v93_v14, %v92_v12  ;;  %v111_v20 = vld [vmem:[%s1869_s1 + $0xa8] sm:$0xff]  ;;  %v94_v21 = vld [vmem:[%s1869_s1 + $0x20] sm:$0xff] }
   0x6   :  { %1184 = vmatpush1.bf16.msra.mxu1 %v1183_v9  ;;  %v1186_v18 = vpack.c.bf16 %v125_v16, %v124_v15  ;;  %1155 = vmatprep.subr.bf16.mxu0 %v1154_v13  ;;  %v1158_v22 = vpack.c.bf16 %v111_v20, %v110_v19  ;;  %v95_v23 = vld [vmem:[%s1869_s1 + $0x28] sm:$0xff]  ;;  %v126_v24 = vld [vmem:[%s1869_s1 + $0x120] sm:$0xff]  ;;  %v112_v26 = vld [vmem:[%s1869_s1 + $0xb0] sm:$0xff] }
   0x7   :  { %1185 = vmatprep.subr.bf16.mxu1 %v1274_v2  ;;  %v127_v25 = vld [vmem:[%s1869_s1 + $0x128] sm:$0xff]  ;;  %v113_v27 = vld [vmem:[%s1869_s1 + $0xb8] sm:$0xff]  ;;  %v1160_v28 = vpack.c.bf16 %v95_v23, %v94_v21  ;;  %v96_v30 = vld [vmem:[%s1869_s1 + $0x30] sm:$0xff] }
   0x8   :  { %v1189_v29 = vpack.c.bf16 %v127_v25, %v126_v24  ;;  %v1162_v31 = vpack.c.bf16 %v113_v27, %v112_v26  ;;  %v97_v32 = vld [vmem:[%s1869_s1 + $0x38] sm:$0xff]  ;;  %v128_v33 = vld [vmem:[%s1869_s1 + $0x130] sm:$0xff]  ;;  %v114_v35 = vld [vmem:[%s1869_s1 + $0xc0] sm:$0xff] }
   0x9   :  { %1157 = vmatpush3.bf16.msra.mxu0 %v1156_v17  ;;  %v129_v34 = vld [vmem:[%s1869_s1 + $0x138] sm:$0xff]  ;;  %v115_v36 = vld [vmem:[%s1869_s1 + $0xc8] sm:$0xff]  ;;  %v1164_v37 = vpack.c.bf16 %v97_v32, %v96_v30  ;;  %v98_v39 = vld [vmem:[%s1869_s1 + $0x40] sm:$0xff] }
   0xa   :  { %1187 = vmatpush1.bf16.msra.mxu1 %v1186_v18  ;;  %1159 = vmatprep.subr.bf16.mxu0 %v1158_v22  ;;  %v1192_v38 = vpack.c.bf16 %v129_v34, %v128_v33  ;;  %v1166_v40 = vpack.c.bf16 %v115_v36, %v114_v35  ;;  %v99_v41 = vld [vmem:[%s1869_s1 + $0x48] sm:$0xff]  ;;  %v130_v42 = vld [vmem:[%s1869_s1 + $0x140] sm:$0xff]  ;;  %v116_v44 = vld [vmem:[%s1869_s1 + $0xd0] sm:$0xff] }
   0xb   :  { %1188 = vmatprep.subr.bf16.mxu1 %v1274_v2  ;;  %v131_v43 = vld [vmem:[%s1869_s1 + $0x148] sm:$0xff]  ;;  %v117_v45 = vld [vmem:[%s1869_s1 + $0xd8] sm:$0xff]  ;;  %v1168_v46 = vpack.c.bf16 %v99_v41, %v98_v39  ;;  %v100_v48 = vld [vmem:[%s1869_s1 + $0x50] sm:$0xff] }
   0xc   :  { %v1195_v47 = vpack.c.bf16 %v131_v43, %v130_v42  ;;  %v101_v49 = vld [vmem:[%s1869_s1 + $0x58] sm:$0xff]  ;;  %v27_v50 = vld [vmem:[%s1870_s0 + $0x8] sm:$0xff]  ;;  %v1170_v51 = vpack.c.bf16 %v117_v45, %v116_v44  ;;  %v132_v52 = vld [vmem:[%s1869_s1 + $0x150] sm:$0xff] }
   0xd   :  { %1161 = vmatpush3.bf16.msra.mxu0 %v1160_v28  ;;  %v133_v53 = vld [vmem:[%s1869_s1 + $0x158] sm:$0xff]  ;;  %v118_v55 = vld [vmem:[%s1869_s1 + $0xe0] sm:$0xff]  ;;  %v119_v56 = vld [vmem:[%s1869_s1 + $0xe8] sm:$0xff]  ;;  %260 = vmatprep.mubr.f32.mxu0 %v27_v50  ;;  %v1172_v57 = vpack.c.bf16 %v101_v49, %v100_v48 }
   0xe   :  { %1190 = vmatpush1.bf16.msra.mxu1 %v1189_v29  ;;  %1163 = vmatprep.subr.bf16.mxu0 %v1162_v31  ;;  %v29_v54 = vld [vmem:[%s1870_s0 + $0x18] sm:$0xff]  ;;  %v1198_v58 = vpack.c.bf16 %v133_v53, %v132_v52  ;;  %v102_v59 = vld [vmem:[%s1869_s1 + $0x60] sm:$0xff]  ;;  %v1174_v60 = vpack.c.bf16 %v119_v56, %v118_v55  ;;  %v103_v61 = vld [vmem:[%s1869_s1 + $0x68] sm:$0xff] }
   0xf   :  { %1191 = vmatprep.subr.bf16.mxu1 %v1274_v2  ;;  %876 = vmatprep.mubr.msk.f32.mxu1 %vm147_vm0, %v29_v54  ;;  %v134_v62 = vld [vmem:[%s1869_s1 + $0x160] sm:$0xff]  ;;  %v135_v63 = vld [vmem:[%s1869_s1 + $0x168] sm:$0xff]  ;;  %v120_v0 = vld [vmem:[%s1869_s1 + $0xf0] sm:$0xff]  ;;  %v1176_v3 = vpack.c.bf16 %v103_v61, %v102_v59 }
  0x10   :  { %v121_v1 = vld [vmem:[%s1869_s1 + $0xf8] sm:$0xff]  ;;  %v1201_v4 = vpack.c.bf16 %v135_v63, %v134_v62  ;;  %v104_v5 = vld [vmem:[%s1869_s1 + $0x70] sm:$0xff]  ;;  %v138_v12 = vld [vmem:[%s1869_s1 + $0x180] sm:$0xff] }
  0x11   :  { %1165 = vmatpush3.bf16.msra.mxu0 %v1164_v37  ;;  %v1178_v6 = vpack.c.bf16 %v121_v1, %v120_v0  ;;  %v105_v7 = vld [vmem:[%s1869_s1 + $0x78] sm:$0xff]  ;;  %v136_v8 = vld [vmem:[%s1869_s1 + $0x170] sm:$0xff]  ;;  %v139_v13 = vld [vmem:[%s1869_s1 + $0x188] sm:$0xff] }
  0x12   :  { %1193 = vmatpush1.bf16.msra.mxu1 %v1192_v38  ;;  %1167 = vmatprep.subr.bf16.mxu0 %v1166_v40  ;;  %v137_v9 = vld [vmem:[%s1869_s1 + $0x178] sm:$0xff]  ;;  %v1180_v10 = vpack.c.bf16 %v105_v7, %v104_v5  ;;  %v26_v14 = vld [vmem:[%s1870_s0] sm:$0xff]  ;;  %v1207_v15 = vpack.c.bf16 %v139_v13, %v138_v12  ;;  %v31_v16 = vld [vmem:[%s1870_s0 + $0x28] sm:$0xff] }
  0x13   :  { %1194 = vmatprep.subr.bf16.mxu1 %v1274_v2  ;;  %v1204_v11 = vpack.c.bf16 %v137_v9, %v136_v8  ;;  %v30_v17 = vld [vmem:[%s1870_s0 + $0x20] sm:$0xff]  ;;  %v28_v18 = vld [vmem:[%s1870_s0 + $0x10] sm:$0xff]  ;;  %v35_v19 = vld [vmem:[%s1870_s0 + $0x48] sm:$0xff] }
  0x14   :  { %v502_v20 = vld [vmem:[%s1871_s3] sm:$0xff]  ;;  %v503_v21 = vld [vmem:[%s1871_s3 + $0x8] sm:$0xff]  ;;  %v504_v22 = vld [vmem:[%s1871_s3 + $0x10] sm:$0xff] }
  0x15   :  { %1169 = vmatpush3.bf16.msra.mxu0 %v1168_v46  ;;  %v1209_v23 = vpack.c.bf16 %v503_v21, %v502_v20  ;;  %v505_v24 = vld [vmem:[%s1871_s3 + $0x18] sm:$0xff]  ;;  %v34_v25 = vld [vmem:[%s1870_s0 + $0x40] sm:$0xff]  ;;  %v32_v26 = vld [vmem:[%s1870_s0 + $0x30] sm:$0xff] }
  0x16   :  { %1196 = vmatpush1.bf16.msra.mxu1 %v1195_v47  ;;  %1171 = vmatprep.subr.bf16.mxu0 %v1170_v51  ;;  %v39_v27 = vld [vmem:[%s1870_s0 + $0x68] sm:$0xff]  ;;  %v37_v28 = vld [vmem:[%s1870_s0 + $0x58] sm:$0xff]  ;;  %v1213_v29 = vpack.c.bf16 %v505_v24, %v504_v22  ;;  %v506_v30 = vld [vmem:[%s1871_s3 + $0x20] sm:$0xff] }
  0x17   :  { %1197 = vmatprep.subr.bf16.mxu1 %v1274_v2  ;;  %v507_v31 = vld [vmem:[%s1871_s3 + $0x28] sm:$0xff]  ;;  %v38_v32 = vld [vmem:[%s1870_s0 + $0x60] sm:$0xff]  ;;  %v36_v33 = vld [vmem:[%s1870_s0 + $0x50] sm:$0xff] }
  0x18   :  { %v43_v34 = vld [vmem:[%s1870_s0 + $0x88] sm:$0xff]  ;;  %v41_v35 = vld [vmem:[%s1870_s0 + $0x78] sm:$0xff]  ;;  %v1217_v36 = vpack.c.bf16 %v507_v31, %v506_v30  ;;  %v508_v37 = vld [vmem:[%s1871_s3 + $0x30] sm:$0xff] }
  0x19   :  { %1173 = vmatpush3.bf16.msra.mxu0 %v1172_v57  ;;  %v509_v38 = vld [vmem:[%s1871_s3 + $0x38] sm:$0xff]  ;;  %v42_v39 = vld [vmem:[%s1870_s0 + $0x80] sm:$0xff]  ;;  %v40_v40 = vld [vmem:[%s1870_s0 + $0x70] sm:$0xff] }
  0x1a   :  { %1199 = vmatpush1.bf16.msra.mxu1 %v1198_v58  ;;  %1175 = vmatprep.subr.bf16.mxu0 %v1174_v60  ;;  %v47_v41 = vld [vmem:[%s1870_s0 + $0xa8] sm:$0xff]  ;;  %v45_v42 = vld [vmem:[%s1870_s0 + $0x98] sm:$0xff]  ;;  %v1221_v43 = vpack.c.bf16 %v509_v38, %v508_v37  ;;  %v510_v44 = vld [vmem:[%s1871_s3 + $0x40] sm:$0xff] }
  0x1b   :  { %1200 = vmatprep.subr.bf16.mxu1 %v1274_v2  ;;  %v511_v45 = vld [vmem:[%s1871_s3 + $0x48] sm:$0xff]  ;;  %v46_v46 = vld [vmem:[%s1870_s0 + $0xa0] sm:$0xff]  ;;  %v44_v47 = vld [vmem:[%s1870_s0 + $0x90] sm:$0xff] }
  0x1c   :  { %v51_v48 = vld [vmem:[%s1870_s0 + $0xc8] sm:$0xff]  ;;  %v49_v49 = vld [vmem:[%s1870_s0 + $0xb8] sm:$0xff]  ;;  %v1225_v50 = vpack.c.bf16 %v511_v45, %v510_v44  ;;  %v50_v51 = vld [vmem:[%s1870_s0 + $0xc0] sm:$0xff] }
  0x1d   :  { %1177 = vmatpush3.bf16.msra.mxu0 %v1176_v3  ;;  %v48_v52 = vld [vmem:[%s1870_s0 + $0xb0] sm:$0xff]  ;;  %v55_v53 = vld [vmem:[%s1870_s0 + $0xe8] sm:$0xff]  ;;  %v53_v54 = vld [vmem:[%s1870_s0 + $0xd8] sm:$0xff] }
  0x1e   :  { %1202 = vmatpush1.bf16.msra.mxu1 %v1201_v4  ;;  %1179 = vmatprep.subr.bf16.mxu0 %v1178_v6  ;;  %v54_v55 = vld [vmem:[%s1870_s0 + $0xe0] sm:$0xff]  ;;  %v52_v56 = vld [vmem:[%s1870_s0 + $0xd0] sm:$0xff]  ;;  %v59_v57 = vld [vmem:[%s1870_s0 + $0x108] sm:$0xff] }
  0x1f   :  { %1203 = vmatprep.subr.bf16.mxu1 %v1274_v2  ;;  %v57_v58 = vld [vmem:[%s1870_s0 + $0xf8] sm:$0xff]  ;;  %v58_v59 = vld [vmem:[%s1870_s0 + $0x100] sm:$0xff]  ;;  %v56_v60 = vld [vmem:[%s1870_s0 + $0xf0] sm:$0xff] }
  0x20   :  { %v63_v61 = vld [vmem:[%s1870_s0 + $0x128] sm:$0xff]  ;;  %v61_v62 = vld [vmem:[%s1870_s0 + $0x118] sm:$0xff]  ;;  %v62_v63 = vld [vmem:[%s1870_s0 + $0x120] sm:$0xff] }
  0x21   :  { %1181 = vmatpush3.bf16.msra.mxu0 %v1180_v10  ;;  %v60_v0 = vld [vmem:[%s1870_s0 + $0x110] sm:$0xff]  ;;  %v67_v1 = vld [vmem:[%s1870_s0 + $0x148] sm:$0xff]  ;;  %v65_v3 = vld [vmem:[%s1870_s0 + $0x138] sm:$0xff] }
  0x22   :  { %1205 = vmatpush1.bf16.msra.mxu1 %v1204_v11  ;;  %1210 = vmatprep.subr.bf16.mxu0 %v1209_v23  ;;  %v66_v4 = vld [vmem:[%s1870_s0 + $0x140] sm:$0xff]  ;;  %v64_v5 = vld [vmem:[%s1870_s0 + $0x130] sm:$0xff]  ;;  %v71_v6 = vld [vmem:[%s1870_s0 + $0x168] sm:$0xff] }
  0x23   :  { %1206 = vmatprep.subr.bf16.mxu1 %v1274_v2  ;;  %v33_v2 = vld [vmem:[%s1870_s0 + $0x38] sm:$0xff]  ;;  %v70_v8 = vld [vmem:[%s1870_s0 + $0x160] sm:$0xff]  ;;  %v68_v9 = vld [vmem:[%s1870_s0 + $0x150] sm:$0xff] }
  0x24   :  { %261 = vmatmul.mubr.f32.vlgmr.msra.gmra.mrb[0].mxu0 %v26_v14  ;;  %v69_v7 = vld [vmem:[%s1870_s0 + $0x158] sm:$0xff]  ;;  %v75_v10 = vld [vmem:[%s1870_s0 + $0x188] sm:$0xff]  ;;  %v74_v12 = vld [vmem:[%s1870_s0 + $0x180] sm:$0xff] }
  0x25   :  { %265 = vmatprep.mubr.f32.mxu0 %v31_v16  ;;  %1212 = vmatpush3.bf16.msra.mxu0 %v1209_v23  ;;  %v73_v11 = vld [vmem:[%s1870_s0 + $0x178] sm:$0xff]  ;;  %v72_v13 = vld [vmem:[%s1870_s0 + $0x170] sm:$0xff]  ;;  %v79_v14 = vld [vmem:[%s1870_s0 + $0x1a8] sm:$0xff] }
  0x26   :  { %1208 = vmatpush1.bf16.msra.mxu1 %v1207_v15  ;;  %1214 = vmatprep.subr.bf16.mxu0 %v1213_v29  ;;  %v77_v15 = vld [vmem:[%s1870_s0 + $0x198] sm:$0xff]  ;;  %v78_v16 = vld [vmem:[%s1870_s0 + $0x1a0] sm:$0xff]  ;;  %v80_v20 = vld [vmem:[%s1870_s0 + $0x1b0] sm:$0xff] }
  0x27   :  { %v87_v21 = vld [vmem:[%s1870_s0 + $0x1e8] sm:$0xff]  ;;  %v85_v22 = vld [vmem:[%s1870_s0 + $0x1d8] sm:$0xff]  ;;  %v86_v23 = vld [vmem:[%s1870_s0 + $0x1e0] sm:$0xff] }
  0x28   :  { %266 = vmatmul.mubr.f32.gmra.mrb[2].mxu0 %v30_v17  ;;  %v76_v17 = vld [vmem:[%s1870_s0 + $0x190] sm:$0xff]  ;;  %v514_v30 = vld [vmem:[%s1871_s3 + $0x60] sm:$0xff]  ;;  %v515_v31 = vld [vmem:[%s1871_s3 + $0x68] sm:$0xff] }
  0x29   :  { %406 = vmatmul.mubr.f32.vlgmr.msra.gmra.mrb[0].mxu1 %v28_v18  ;;  %270 = vmatprep.mubr.f32.mxu0 %v35_v19  ;;  %v83_v18 = vld [vmem:[%s1870_s0 + $0x1c8] sm:$0xff]  ;;  %v81_v19 = vld [vmem:[%s1870_s0 + $0x1b8] sm:$0xff]  ;;  %v84_v24 = vld [vmem:[%s1870_s0 + $0x1d0] sm:$0xff] }
  0x2a   :  { %877 = vmatprep.mubr.msk.f32.mxu1 %vm147_vm0, %v33_v2  ;;  %1216 = vmatpush3.bf16.msra.mxu0 %v1213_v29  ;;  %v82_v2 = vld [vmem:[%s1870_s0 + $0x1c0] sm:$0xff]  ;;  %v687_v37 = vld [vmem:[%s1872_s5 + $0x8] sm:$0xff]  ;;  %v688_v38 = vld [vmem:[%s1872_s5 + $0x10] sm:$0xff] }
  0x2b   :  { %1218 = vmatprep.subr.bf16.mxu0 %v1217_v36  ;;  %v692_v45 = vld [vmem:[%s1872_s5 + $0x30] sm:$0xff] }
  0x2c   :  { %271 = vmatmul.mubr.f32.gmra.mrb[4].mxu0 %v34_v25  ;;  %v89_v25 = vld [vmem:[%s1870_s0 + $0x1f8] sm:$0xff] }
  0x2d   :  { %411 = vmatmul.mubr.f32.gmra.mrb[2].mxu1 %v32_v26  ;;  %275 = vmatprep.mubr.f32.mxu0 %v39_v27  ;;  %v88_v26 = vld [vmem:[%s1870_s0 + $0x1f0] sm:$0xff] }
  0x2e   :  { %878 = vmatprep.mubr.msk.f32.mxu1 %vm147_vm0, %v37_v28  ;;  %1220 = vmatpush3.bf16.msra.mxu0 %v1217_v36  ;;  %v512_v27 = vld [vmem:[%s1871_s3 + $0x50] sm:$0xff]  ;;  %v513_v28 = vld [vmem:[%s1871_s3 + $0x58] sm:$0xff]  ;;  %v686_v36 = vld [vmem:[%s1872_s5] sm:$0xff] }
  0x2f   :  { %1222 = vmatprep.subr.bf16.mxu0 %v1221_v43  ;;  %v1229_v29 = vpack.c.bf16 %v513_v28, %v512_v27 }
  0x30   :  { %276 = vmatmul.mubr.f32.gmra.mrb[6].mxu0 %v38_v32  ;;  %v1233_v32 = vpack.c.bf16 %v515_v31, %v514_v30 }
  0x31   :  { %416 = vmatmul.mubr.f32.gmra.mrb[4].mxu1 %v36_v33  ;;  %280 = vmatprep.mubr.f32.mxu0 %v43_v34  ;;  %v516_v33 = vld [vmem:[%s1871_s3 + $0x70] sm:$0xff]  ;;  %v517_v34 = vld [vmem:[%s1871_s3 + $0x78] sm:$0xff] }
  0x32   :  { %879 = vmatprep.mubr.msk.f32.mxu1 %vm147_vm0, %v41_v35  ;;  %1224 = vmatpush3.bf16.msra.mxu0 %v1221_v43  ;;  %v1237_v35 = vpack.c.bf16 %v517_v34, %v516_v33  ;;  %v691_v43 = vld [vmem:[%s1872_s5 + $0x28] sm:$0xff] }
  0x33   :  { %1226 = vmatprep.subr.bf16.mxu0 %v1225_v50 }
  0x34   :  { %281 = vmatmul.mubr.f32.gmra.mrb[8].mxu0 %v42_v39  ;;  %v1241_v39 = vpack.c.bf16 %v687_v37, %v686_v36 }
  0x35   :  { %421 = vmatmul.mubr.f32.gmra.mrb[6].mxu1 %v40_v40  ;;  %285 = vmatprep.mubr.f32.mxu0 %v47_v41  ;;  %v689_v40 = vld [vmem:[%s1872_s5 + $0x18] sm:$0xff] }
  0x36   :  { %880 = vmatprep.mubr.msk.f32.mxu1 %vm147_vm0, %v45_v42  ;;  %1228 = vmatpush3.bf16.msra.mxu0 %v1225_v50  ;;  %v1245_v41 = vpack.c.bf16 %v689_v40, %v688_v38  ;;  %v690_v42 = vld [vmem:[%s1872_s5 + $0x20] sm:$0xff] }
  0x37   :  { %1230 = vmatprep.subr.bf16.mxu0 %v1229_v29  ;;  %1242 = vmatprep.subr.bf16.mxu1 %v1241_v39  ;;  %v1249_v44 = vpack.c.bf16 %v691_v43, %v690_v42 }
  0x38   :  { %286 = vmatmul.mubr.f32.gmra.mrb[10].mxu0 %v46_v46  ;;  %1244 = vmatpush3.bf16.msra.mxu1 %v1241_v39  ;;  %v693_v46 = vld [vmem:[%s1872_s5 + $0x38] sm:$0xff] }
  0x39   :  { %426 = vmatmul.mubr.f32.gmra.mrb[8].mxu1 %v44_v47  ;;  %290 = vmatprep.mubr.f32.mxu0 %v51_v48  ;;  %v1253_v47 = vpack.c.bf16 %v693_v46, %v692_v45  ;;  %v694_v48 = vld [vmem:[%s1872_s5 + $0x40] sm:$0xff] }
  0x3a   :  { %881 = vmatprep.mubr.msk.f32.mxu1 %vm147_vm0, %v49_v49  ;;  %1232 = vmatpush3.bf16.msra.mxu0 %v1229_v29  ;;  %v695_v49 = vld [vmem:[%s1872_s5 + $0x48] sm:$0xff] }
  0x3b   :  { %1234 = vmatprep.subr.bf16.mxu0 %v1233_v32  ;;  %1246 = vmatprep.subr.bf16.mxu1 %v1245_v41  ;;  %v1257_v50 = vpack.c.bf16 %v695_v49, %v694_v48 }
  0x3c   :  { %291 = vmatmul.mubr.f32.gmra.mrb[12].mxu0 %v50_v51  ;;  %1248 = vmatpush3.bf16.msra.mxu1 %v1245_v41  ;;  %v696_v51 = vld [vmem:[%s1872_s5 + $0x50] sm:$0xff] }
  0x3d   :  { %431 = vmatmul.mubr.f32.gmra.mrb[10].mxu1 %v48_v52  ;;  %295 = vmatprep.mubr.f32.mxu0 %v55_v53  ;;  %v697_v52 = vld [vmem:[%s1872_s5 + $0x58] sm:$0xff] }
  0x3e   :  { %882 = vmatprep.mubr.msk.f32.mxu1 %vm147_vm0, %v53_v54  ;;  %1236 = vmatpush3.bf16.msra.mxu0 %v1233_v32  ;;  %v1261_v53 = vpack.c.bf16 %v697_v52, %v696_v51  ;;  %v698_v54 = vld [vmem:[%s1872_s5 + $0x60] sm:$0xff] }
  0x3f   :  { %1238 = vmatprep.subr.bf16.mxu0 %v1237_v35  ;;  %1250 = vmatprep.subr.bf16.mxu1 %v1249_v44 }
  0x40   :  { %296 = vmatmul.mubr.f32.gmra.mrb[14].mxu0 %v54_v55  ;;  %1252 = vmatpush3.bf16.msra.mxu1 %v1249_v44  ;;  %v699_v55 = vld [vmem:[%s1872_s5 + $0x68] sm:$0xff] }
  0x41   :  { %436 = vmatmul.mubr.f32.gmra.mrb[12].mxu1 %v52_v56  ;;  %300 = vmatprep.mubr.f32.mxu0 %v59_v57  ;;  %v1265_v56 = vpack.c.bf16 %v699_v55, %v698_v54 }
  0x42   :  { %883 = vmatprep.mubr.msk.f32.mxu1 %vm147_vm0, %v57_v58  ;;  %1240 = vmatpush3.bf16.msra.mxu0 %v1237_v35 }
  0x43   :  { %1254 = vmatprep.subr.bf16.mxu1 %v1253_v47 }
  0x44   :  { %301 = vmatmul.mubr.f32.gmra.mrb[16].mxu0 %v58_v59  ;;  %1256 = vmatpush3.bf16.msra.mxu1 %v1253_v47  ;;  %v1775_v59 = vld [vmem:[%s1873_s2] ss:$0 sm:$0xff] }
  0x45   :  { %441 = vmatmul.mubr.f32.gmra.mrb[14].mxu1 %v56_v60  ;;  %305 = vmatprep.mubr.f32.mxu0 %v63_v61 }
  0x46   :  { %884 = vmatprep.mubr.msk.f32.mxu1 %vm147_vm0, %v61_v62  ;;  %1258 = vmatprep.subr.bf16.mxu1 %v1257_v50 }
  0x48   :  { %306 = vmatmul.mubr.f32.gmra.mrb[18].mxu0 %v62_v63  ;;  %1260 = vmatpush3.bf16.msra.mxu1 %v1257_v50 }
  0x49   :  { %446 = vmatmul.mubr.f32.gmra.mrb[16].mxu1 %v60_v0  ;;  %310 = vmatprep.mubr.f32.mxu0 %v67_v1 }
  0x4a   :  { %885 = vmatprep.mubr.msk.f32.mxu1 %vm147_vm0, %v65_v3  ;;  %1262 = vmatprep.subr.bf16.mxu1 %v1261_v53 }
  0x4c   :  { %311 = vmatmul.mubr.f32.gmra.mrb[20].mxu0 %v66_v4  ;;  %1264 = vmatpush3.bf16.msra.mxu1 %v1261_v53 }
  0x4d   :  { %451 = vmatmul.mubr.f32.gmra.mrb[18].mxu1 %v64_v5  ;;  %315 = vmatprep.mubr.f32.mxu0 %v71_v6 }
  0x4e   :  { %886 = vmatprep.mubr.msk.f32.mxu1 %vm147_vm0, %v69_v7  ;;  %1266 = vmatprep.subr.bf16.mxu1 %v1265_v56 }
  0x50   :  { %316 = vmatmul.mubr.f32.gmra.mrb[22].mxu0 %v70_v8  ;;  %1268 = vmatpush3.bf16.msra.mxu1 %v1265_v56 }
  0x51   :  { %456 = vmatmul.mubr.f32.gmra.mrb[20].mxu1 %v68_v9  ;;  %320 = vmatprep.mubr.f32.mxu0 %v75_v10 }
  0x52   :  { %887 = vmatprep.mubr.msk.f32.mxu1 %vm147_vm0, %v73_v11 }
  0x54   :  { %321 = vmatmul.mubr.f32.gmra.mrb[24].mxu0 %v74_v12 }
  0x55   :  { %461 = vmatmul.mubr.f32.gmra.mrb[22].mxu1 %v72_v13  ;;  %325 = vmatprep.mubr.f32.mxu0 %v79_v14 }
  0x56   :  { %888 = vmatprep.mubr.msk.f32.mxu1 %vm147_vm0, %v77_v15 }
  0x58   :  { %326 = vmatmul.mubr.f32.gmra.mrb[26].mxu0 %v78_v16 }
  0x59   :  { %466 = vmatmul.mubr.f32.gmra.mrb[24].mxu1 %v76_v17  ;;  %330 = vmatprep.mubr.f32.mxu0 %v83_v18 }
  0x5a   :  { %889 = vmatprep.mubr.msk.f32.mxu1 %vm147_vm0, %v81_v19 }
  0x5c   :  { %331 = vmatmul.mubr.f32.gmra.mrb[28].mxu0 %v82_v2 }
  0x5d   :  { %471 = vmatmul.mubr.f32.gmra.mrb[26].mxu1 %v80_v20  ;;  %335 = vmatprep.mubr.f32.mxu0 %v87_v21 }
  0x5e   :  { %890 = vmatprep.mubr.msk.f32.mxu1 %vm147_vm0, %v85_v22 }
  0x60   :  { %336 = vmatmul.mubr.f32.gmra.mrb[30].mxu0 %v86_v23 }
  0x61   :  { %476 = vmatmul.mubr.f32.gmra.mrb[28].mxu1 %v84_v24 }
  0x62   :  { %891 = vmatprep.mubr.msk.f32.mxu1 %vm147_vm0, %v89_v25 }
  0x65   :  { %481 = vmatmul.mubr.f32.gmra.mrb[30].mxu1 %v88_v26 }
  0xf7   :  { %v926_v57 = vpop.f32.mrb[0].mxu0 }
  0xf8   :  { %v927_v58 = vpop.f32.mrb[1].mxu0 }
  0xf9   :  { %v928_v60 = vadd.f32 %v927_v58, %v926_v57 }
  0xfb   :  { %v929_v61 = vpop.f32.mrb[2].mxu0  ;;  %v263_v62 = vadd.f32 %v928_v60, %v1775_v59 }
  0xfc   :  { %v407_v63 = vpop.f32.mrb[0].mxu1  ;;  %v930_v0 = vpop.f32.mrb[3].mxu0 }
  0xfd   :  { %v409_v1 = vpop.f32.mrb[1].mxu1  ;;  %v408_v3 = vadd.f32 %v407_v63, %v263_v62  ;;  %v931_v4 = vadd.f32 %v930_v0, %v929_v61 }
  0xff   :  { %v486_v5 = vmax.f32 %v408_v3, 0.0  ;;  %v932_v6 = vpop.f32.mrb[4].mxu0  ;;  %v268_v7 = vadd.f32 %v931_v4, %v1775_v59 }
 0x100   :  { %v412_v8 = vpop.f32.mrb[2].mxu1  ;;  %v933_v9 = vpop.f32.mrb[5].mxu0 }
 0x101   :  { %v414_v10 = vpop.f32.mrb[3].mxu1  ;;  %v413_v11 = vadd.f32 %v412_v8, %v268_v7  ;;  %v934_v12 = vadd.f32 %v933_v9, %v932_v6  ;;  %1070 = vmatprep.mubr.f32.mxu0 %v486_v5 }
 0x103   :  { %v487_v13 = vmax.f32 %v413_v11, 0.0  ;;  %v935_v14 = vpop.f32.mrb[6].mxu0  ;;  %v273_v15 = vadd.f32 %v934_v12, %v1775_v59 }
 0x104   :  { %v417_v16 = vpop.f32.mrb[4].mxu1  ;;  %v936_v17 = vpop.f32.mrb[7].mxu0 }
 0x105   :  { %v419_v18 = vpop.f32.mrb[5].mxu1  ;;  %v418_v19 = vadd.f32 %v417_v16, %v273_v15  ;;  %v937_v2 = vadd.f32 %v936_v17, %v935_v14  ;;  %1071 = vmatmul.mubr.f32.vlgmr.msra.gmra.mrb[32].mxu0 %v487_v13 }
 0x107   :  { %v488_v20 = vmax.f32 %v418_v19, 0.0  ;;  %v938_v21 = vpop.f32.mrb[8].mxu0  ;;  %v278_v22 = vadd.f32 %v937_v2, %v1775_v59 }
 0x108   :  { %v422_v23 = vpop.f32.mrb[6].mxu1  ;;  %v939_v24 = vpop.f32.mrb[9].mxu0 }
 0x109   :  { %v424_v25 = vpop.f32.mrb[7].mxu1  ;;  %v423_v26 = vadd.f32 %v422_v23, %v278_v22  ;;  %v940_v27 = vadd.f32 %v939_v24, %v938_v21  ;;  %1073 = vmatprep.mubr.f32.mxu0 %v488_v20 }
 0x10b   :  { %v489_v28 = vmax.f32 %v423_v26, 0.0  ;;  %v941_v29 = vpop.f32.mrb[10].mxu0  ;;  %v283_v30 = vadd.f32 %v940_v27, %v1775_v59 }
 0x10c   :  { %v427_v31 = vpop.f32.mrb[8].mxu1  ;;  %v942_v32 = vpop.f32.mrb[11].mxu0 }
 0x10d   :  { %v429_v33 = vpop.f32.mrb[9].mxu1  ;;  %v428_v34 = vadd.f32 %v427_v31, %v283_v30  ;;  %v943_v35 = vadd.f32 %v942_v32, %v941_v29  ;;  %1074 = vmatmul.mubr.f32.gmra.mrb[34].mxu0 %v489_v28 }
 0x10f   :  { %v490_v36 = vmax.f32 %v428_v34, 0.0  ;;  %v944_v37 = vpop.f32.mrb[12].mxu0  ;;  %v288_v38 = vadd.f32 %v943_v35, %v1775_v59 }
 0x110   :  { %v432_v39 = vpop.f32.mrb[10].mxu1  ;;  %v945_v40 = vpop.f32.mrb[13].mxu0 }
 0x111   :  { %v434_v41 = vpop.f32.mrb[11].mxu1  ;;  %v433_v42 = vadd.f32 %v432_v39, %v288_v38  ;;  %v946_v43 = vadd.f32 %v945_v40, %v944_v37  ;;  %1076 = vmatprep.mubr.f32.mxu0 %v490_v36 }
 0x113   :  { %v491_v44 = vmax.f32 %v433_v42, 0.0  ;;  %v947_v45 = vpop.f32.mrb[14].mxu0  ;;  %v293_v46 = vadd.f32 %v946_v43, %v1775_v59 }
 0x114   :  { %v437_v47 = vpop.f32.mrb[12].mxu1  ;;  %v948_v48 = vpop.f32.mrb[15].mxu0 }
 0x115   :  { %v439_v49 = vpop.f32.mrb[13].mxu1  ;;  %v438_v50 = vadd.f32 %v437_v47, %v293_v46  ;;  %v949_v51 = vadd.f32 %v948_v48, %v947_v45  ;;  %1077 = vmatmul.mubr.f32.gmra.mrb[36].mxu0 %v491_v44 }
 0x117   :  { %v492_v52 = vmax.f32 %v438_v50, 0.0  ;;  %v950_v53 = vpop.f32.mrb[16].mxu0  ;;  %v298_v54 = vadd.f32 %v949_v51, %v1775_v59 }
 0x118   :  { %v442_v55 = vpop.f32.mrb[14].mxu1  ;;  %v951_v56 = vpop.f32.mrb[17].mxu0 }
 0x119   :  { %v444_v57 = vpop.f32.mrb[15].mxu1  ;;  %v443_v58 = vadd.f32 %v442_v55, %v298_v54  ;;  %v952_v60 = vadd.f32 %v951_v56, %v950_v53  ;;  %1079 = vmatprep.mubr.f32.mxu0 %v492_v52 }
 0x11b   :  { %v493_v61 = vmax.f32 %v443_v58, 0.0  ;;  %v953_v62 = vpop.f32.mrb[18].mxu0  ;;  %v303_v63 = vadd.f32 %v952_v60, %v1775_v59  ;;  %v700_v60 = vld [vmem:[%s1872_s5 + $0x70] sm:$0xff] }
 0x11c   :  { %v447_v0 = vpop.f32.mrb[16].mxu1  ;;  %v954_v1 = vpop.f32.mrb[19].mxu0 }
 0x11d   :  { %v449_v3 = vpop.f32.mrb[17].mxu1  ;;  %v448_v4 = vadd.f32 %v447_v0, %v303_v63  ;;  %v955_v5 = vadd.f32 %v954_v1, %v953_v62  ;;  %1080 = vmatmul.mubr.f32.gmra.mrb[38].mxu0 %v493_v61  ;;  %v701_v61 = vld [vmem:[%s1872_s5 + $0x78] sm:$0xff] }
 0x11e   :  { %v1269_v62 = vpack.c.bf16 %v701_v61, %v700_v60 }
 0x11f   :  { %v494_v6 = vmax.f32 %v448_v4, 0.0  ;;  %v956_v7 = vpop.f32.mrb[20].mxu0  ;;  %v308_v8 = vadd.f32 %v955_v5, %v1775_v59 }
 0x120   :  { %v452_v9 = vpop.f32.mrb[18].mxu1  ;;  %v957_v10 = vpop.f32.mrb[21].mxu0  ;;  %1270 = vmatprep.subr.bf16.mxu1 %v1269_v62 }
 0x121   :  { %v454_v11 = vpop.f32.mrb[19].mxu1  ;;  %v453_v12 = vadd.f32 %v452_v9, %v308_v8  ;;  %v958_v13 = vadd.f32 %v957_v10, %v956_v7  ;;  %1082 = vmatprep.mubr.f32.mxu0 %v494_v6  ;;  %1272 = vmatpush3.bf16.msra.mxu1 %v1269_v62 }
 0x123   :  { %v495_v14 = vmax.f32 %v453_v12, 0.0  ;;  %v959_v15 = vpop.f32.mrb[22].mxu0  ;;  %v313_v16 = vadd.f32 %v958_v13, %v1775_v59 }
 0x124   :  { %v457_v17 = vpop.f32.mrb[20].mxu1  ;;  %v960_v18 = vpop.f32.mrb[23].mxu0 }
 0x125   :  { %v459_v19 = vpop.f32.mrb[21].mxu1  ;;  %v458_v2 = vadd.f32 %v457_v17, %v313_v16  ;;  %v961_v20 = vadd.f32 %v960_v18, %v959_v15  ;;  %1083 = vmatmul.mubr.f32.gmra.mrb[40].mxu0 %v495_v14 }
 0x127   :  { %v496_v21 = vmax.f32 %v458_v2, 0.0  ;;  %v962_v22 = vpop.f32.mrb[24].mxu0  ;;  %v318_v23 = vadd.f32 %v961_v20, %v1775_v59 }
 0x128   :  { %v462_v24 = vpop.f32.mrb[22].mxu1  ;;  %v963_v25 = vpop.f32.mrb[25].mxu0 }
 0x129   :  { %v464_v26 = vpop.f32.mrb[23].mxu1  ;;  %v463_v27 = vadd.f32 %v462_v24, %v318_v23  ;;  %v964_v28 = vadd.f32 %v963_v25, %v962_v22  ;;  %1085 = vmatprep.mubr.f32.mxu0 %v496_v21 }
 0x12b   :  { %v497_v29 = vmax.f32 %v463_v27, 0.0  ;;  %v965_v30 = vpop.f32.mrb[26].mxu0  ;;  %v323_v31 = vadd.f32 %v964_v28, %v1775_v59 }
 0x12c   :  { %v467_v32 = vpop.f32.mrb[24].mxu1  ;;  %v966_v33 = vpop.f32.mrb[27].mxu0 }
 0x12d   :  { %v469_v34 = vpop.f32.mrb[25].mxu1  ;;  %v468_v35 = vadd.f32 %v467_v32, %v323_v31  ;;  %v967_v36 = vadd.f32 %v966_v33, %v965_v30  ;;  %1086 = vmatmul.mubr.f32.gmra.mrb[42].mxu0 %v497_v29 }
 0x12f   :  { %v498_v37 = vmax.f32 %v468_v35, 0.0  ;;  %v968_v38 = vpop.f32.mrb[28].mxu0  ;;  %v328_v39 = vadd.f32 %v967_v36, %v1775_v59 }
 0x130   :  { %v472_v40 = vpop.f32.mrb[26].mxu1  ;;  %v969_v41 = vpop.f32.mrb[29].mxu0 }
 0x131   :  { %v474_v42 = vpop.f32.mrb[27].mxu1  ;;  %v473_v43 = vadd.f32 %v472_v40, %v328_v39  ;;  %v970_v44 = vadd.f32 %v969_v41, %v968_v38  ;;  %1088 = vmatprep.mubr.f32.mxu0 %v498_v37 }
 0x133   :  { %v499_v45 = vmax.f32 %v473_v43, 0.0  ;;  %v971_v46 = vpop.f32.mrb[30].mxu0  ;;  %v333_v47 = vadd.f32 %v970_v44, %v1775_v59 }
 0x134   :  { %v477_v48 = vpop.f32.mrb[28].mxu1  ;;  %v972_v49 = vpop.f32.mrb[31].mxu0 }
 0x135   :  { %v479_v50 = vpop.f32.mrb[29].mxu1  ;;  %v478_v51 = vadd.f32 %v477_v48, %v333_v47  ;;  %v973_v52 = vadd.f32 %v972_v49, %v971_v46  ;;  %1089 = vmatmul.mubr.f32.gmra.mrb[44].mxu0 %v499_v45  ;;  %v893_v47 = vld [vmem:[%s1875_s6] ss:$0 sm:$0xff] }
 0x137   :  { %v500_v53 = vmax.f32 %v478_v51, 0.0  ;;  %v338_v54 = vadd.f32 %v973_v52, %v1775_v59  ;;  %v892_v59 = vld [vmem:[%s1874_s4] ss:$0 sm:$0xff] }
 0x138   :  { %v482_v55 = vpop.f32.mrb[30].mxu1 }
 0x139   :  { %v484_v56 = vpop.f32.mrb[31].mxu1  ;;  %v483_v57 = vadd.f32 %v482_v55, %v338_v54  ;;  %1091 = vmatprep.mubr.f32.mxu0 %v500_v53 }
 0x13b   :  { %v501_v58 = vmax.f32 %v483_v57, 0.0 }
 0x13d   :  { %1092 = vmatmul.mubr.f32.gmra.mrb[46].mxu0 %v501_v58 }
 0x1d8   :  { %v1072_v63 = vpop.f32.mrb[32].mxu0 }
 0x1d9   :  { %v597_v0 = vadd.f32 %v1072_v63, %v892_v59  ;;  %v591_v1 = vpop.f32.mrb[33].mxu0 }
 0x1da   :  { %v592_v3 = vadd.f32 %v892_v59, %v591_v1 }
 0x1db   :  { %v671_v5 = vmax.f32 %v597_v0, 0.0 }
 0x1dc   :  { %v670_v4 = vmax.f32 %v592_v3, 0.0 }
 0x1de   :  { %1126 = vmatprep.mubr.f32.mxu1 %v670_v4 }
 0x1df   :  { %1127 = vmatmul.mubr.f32.vlgmr.msra.gmra.mrb[32].mxu1 %v671_v5 }
 0x1e0   :  { %v1075_v6 = vpop.f32.mrb[34].mxu0 }
 0x1e1   :  { %v607_v7 = vadd.f32 %v1075_v6, %v892_v59  ;;  %v601_v8 = vpop.f32.mrb[35].mxu0 }
 0x1e2   :  { %v602_v9 = vadd.f32 %v892_v59, %v601_v8 }
 0x1e3   :  { %v673_v11 = vmax.f32 %v607_v7, 0.0 }
 0x1e4   :  { %v672_v10 = vmax.f32 %v602_v9, 0.0 }
 0x1e6   :  { %1129 = vmatprep.mubr.f32.mxu1 %v672_v10 }
 0x1e7   :  { %1130 = vmatmul.mubr.f32.gmra.mrb[34].mxu1 %v673_v11 }
 0x1e8   :  { %v1078_v12 = vpop.f32.mrb[36].mxu0 }
 0x1e9   :  { %v617_v13 = vadd.f32 %v1078_v12, %v892_v59  ;;  %v611_v14 = vpop.f32.mrb[37].mxu0 }
 0x1ea   :  { %v612_v15 = vadd.f32 %v892_v59, %v611_v14 }
 0x1eb   :  { %v675_v17 = vmax.f32 %v617_v13, 0.0 }
 0x1ec   :  { %v674_v16 = vmax.f32 %v612_v15, 0.0 }
 0x1ee   :  { %1132 = vmatprep.mubr.f32.mxu1 %v674_v16 }
 0x1ef   :  { %1133 = vmatmul.mubr.f32.gmra.mrb[36].mxu1 %v675_v17 }
 0x1f0   :  { %v1081_v18 = vpop.f32.mrb[38].mxu0 }
 0x1f1   :  { %v627_v19 = vadd.f32 %v1081_v18, %v892_v59  ;;  %v621_v2 = vpop.f32.mrb[39].mxu0 }
 0x1f2   :  { %v622_v20 = vadd.f32 %v892_v59, %v621_v2 }
 0x1f3   :  { %v677_v22 = vmax.f32 %v627_v19, 0.0 }
 0x1f4   :  { %v676_v21 = vmax.f32 %v622_v20, 0.0 }
 0x1f6   :  { %1135 = vmatprep.mubr.f32.mxu1 %v676_v21 }
 0x1f7   :  { %1136 = vmatmul.mubr.f32.gmra.mrb[38].mxu1 %v677_v22 }
 0x1f8   :  { %v1084_v23 = vpop.f32.mrb[40].mxu0 }
 0x1f9   :  { %v637_v24 = vadd.f32 %v1084_v23, %v892_v59  ;;  %v631_v25 = vpop.f32.mrb[41].mxu0 }
 0x1fa   :  { %v632_v26 = vadd.f32 %v892_v59, %v631_v25 }
 0x1fb   :  { %v679_v28 = vmax.f32 %v637_v24, 0.0 }
 0x1fc   :  { %v678_v27 = vmax.f32 %v632_v26, 0.0 }
 0x1fe   :  { %1138 = vmatprep.mubr.f32.mxu1 %v678_v27 }
 0x1ff   :  { %1139 = vmatmul.mubr.f32.gmra.mrb[40].mxu1 %v679_v28 }
 0x200   :  { %v1087_v29 = vpop.f32.mrb[42].mxu0 }
 0x201   :  { %v647_v30 = vadd.f32 %v1087_v29, %v892_v59  ;;  %v641_v31 = vpop.f32.mrb[43].mxu0 }
 0x202   :  { %v642_v32 = vadd.f32 %v892_v59, %v641_v31 }
 0x203   :  { %v681_v34 = vmax.f32 %v647_v30, 0.0 }
 0x204   :  { %v680_v33 = vmax.f32 %v642_v32, 0.0 }
 0x206   :  { %1141 = vmatprep.mubr.f32.mxu1 %v680_v33 }
 0x207   :  { %1142 = vmatmul.mubr.f32.gmra.mrb[42].mxu1 %v681_v34 }
 0x208   :  { %v1090_v35 = vpop.f32.mrb[44].mxu0 }
 0x209   :  { %v657_v36 = vadd.f32 %v1090_v35, %v892_v59  ;;  %v651_v37 = vpop.f32.mrb[45].mxu0 }
 0x20a   :  { %v652_v38 = vadd.f32 %v892_v59, %v651_v37 }
 0x20b   :  { %v683_v40 = vmax.f32 %v657_v36, 0.0 }
 0x20c   :  { %v682_v39 = vmax.f32 %v652_v38, 0.0 }
 0x20e   :  { %1144 = vmatprep.mubr.f32.mxu1 %v682_v39 }
 0x20f   :  { %1145 = vmatmul.mubr.f32.gmra.mrb[44].mxu1 %v683_v40 }
 0x210   :  { %v1093_v41 = vpop.f32.mrb[46].mxu0 }
 0x211   :  { %v667_v42 = vadd.f32 %v1093_v41, %v892_v59  ;;  %v661_v43 = vpop.f32.mrb[47].mxu0 }
 0x212   :  { %v662_v44 = vadd.f32 %v892_v59, %v661_v43 }
 0x213   :  { %v685_v46 = vmax.f32 %v667_v42, 0.0 }
 0x214   :  { %v684_v45 = vmax.f32 %v662_v44, 0.0 }
 0x216   :  { %1147 = vmatprep.mubr.f32.mxu1 %v684_v45 }
 0x217   :  { %1148 = vmatmul.mubr.f32.gmra.mrb[46].mxu1 %v685_v46 }
 0x2b2   :  { %v1128_v48 = vpop.f32.mrb[32].mxu1 }
 0x2b3   :  { %v781_v49 = vadd.f32 %v1128_v48, %v893_v47  ;;  %v775_v50 = vpop.f32.mrb[33].mxu1 }
 0x2b4   :  { %v776_v51 = vadd.f32 %v893_v47, %v775_v50 }
 0x2b5   :  { %856 = vst.msk [vmem:[%s1876_s7 + $0x8] sm:$0xff] %vm854_vm1, %v781_v49 }
 0x2b6   :  { %855 = vst.msk [vmem:[%s1876_s7] sm:$0xff] %vm854_vm1, %v776_v51 }
 0x2ba   :  { %v1131_v52 = vpop.f32.mrb[34].mxu1 }
 0x2bb   :  { %v791_v53 = vadd.f32 %v1131_v52, %v893_v47  ;;  %v785_v54 = vpop.f32.mrb[35].mxu1 }
 0x2bc   :  { %v786_v55 = vadd.f32 %v893_v47, %v785_v54 }
 0x2bd   :  { %858 = vst.msk [vmem:[%s1876_s7 + $0x18] sm:$0xff] %vm854_vm1, %v791_v53 }
 0x2be   :  { %857 = vst.msk [vmem:[%s1876_s7 + $0x10] sm:$0xff] %vm854_vm1, %v786_v55 }
 0x2c2   :  { %v1134_v56 = vpop.f32.mrb[36].mxu1 }
 0x2c3   :  { %v801_v57 = vadd.f32 %v1134_v56, %v893_v47  ;;  %v795_v58 = vpop.f32.mrb[37].mxu1 }
 0x2c4   :  { %v796_v60 = vadd.f32 %v893_v47, %v795_v58 }
 0x2c5   :  { %860 = vst.msk [vmem:[%s1876_s7 + $0x28] sm:$0xff] %vm854_vm1, %v801_v57 }
 0x2c6   :  { %859 = vst.msk [vmem:[%s1876_s7 + $0x20] sm:$0xff] %vm854_vm1, %v796_v60 }
 0x2ca   :  { %v1137_v61 = vpop.f32.mrb[38].mxu1 }
 0x2cb   :  { %v811_v62 = vadd.f32 %v1137_v61, %v893_v47  ;;  %v805_v59 = vpop.f32.mrb[39].mxu1 }
 0x2cc   :  { %v806_v63 = vadd.f32 %v893_v47, %v805_v59 }
 0x2cd   :  { %862 = vst.msk [vmem:[%s1876_s7 + $0x38] sm:$0xff] %vm854_vm1, %v811_v62 }
 0x2ce   :  { %861 = vst.msk [vmem:[%s1876_s7 + $0x30] sm:$0xff] %vm854_vm1, %v806_v63 }
 0x2d2   :  { %v1140_v0 = vpop.f32.mrb[40].mxu1 }
 0x2d3   :  { %v821_v1 = vadd.f32 %v1140_v0, %v893_v47  ;;  %v815_v3 = vpop.f32.mrb[41].mxu1 }
 0x2d4   :  { %v816_v4 = vadd.f32 %v893_v47, %v815_v3 }
 0x2d5   :  { %864 = vst.msk [vmem:[%s1876_s7 + $0x48] sm:$0xff] %vm854_vm1, %v821_v1 }
 0x2d6   :  { %863 = vst.msk [vmem:[%s1876_s7 + $0x40] sm:$0xff] %vm854_vm1, %v816_v4 }
 0x2da   :  { %v1143_v5 = vpop.f32.mrb[42].mxu1 }
 0x2db   :  { %v831_v6 = vadd.f32 %v1143_v5, %v893_v47  ;;  %v825_v7 = vpop.f32.mrb[43].mxu1 }
 0x2dc   :  { %v826_v8 = vadd.f32 %v893_v47, %v825_v7 }
 0x2dd   :  { %866 = vst.msk [vmem:[%s1876_s7 + $0x58] sm:$0xff] %vm854_vm1, %v831_v6 }
 0x2de   :  { %865 = vst.msk [vmem:[%s1876_s7 + $0x50] sm:$0xff] %vm854_vm1, %v826_v8 }
 0x2e2   :  { %v1146_v9 = vpop.f32.mrb[44].mxu1 }
 0x2e3   :  { %v841_v10 = vadd.f32 %v1146_v9, %v893_v47  ;;  %v835_v11 = vpop.f32.mrb[45].mxu1 }
 0x2e4   :  { %v836_v12 = vadd.f32 %v893_v47, %v835_v11 }
 0x2e5   :  { %868 = vst.msk [vmem:[%s1876_s7 + $0x68] sm:$0xff] %vm854_vm1, %v841_v10 }
 0x2e6   :  { %867 = vst.msk [vmem:[%s1876_s7 + $0x60] sm:$0xff] %vm854_vm1, %v836_v12 }
 0x2ea   :  { %v1149_v13 = vpop.f32.mrb[46].mxu1 }
 0x2eb   :  { %v851_v14 = vadd.f32 %v1149_v13, %v893_v47  ;;  %v845_v15 = vpop.f32.mrb[47].mxu1 }
 0x2ec   :  { %v846_v16 = vadd.f32 %v893_v47, %v845_v15 }
 0x2ed   :  { %870 = vst.msk [vmem:[%s1876_s7 + $0x78] sm:$0xff] %vm854_vm1, %v851_v14 }
 0x2ee   :  { %869 = vst.msk [vmem:[%s1876_s7 + $0x70] sm:$0xff] %vm854_vm1, %v846_v16 }

</bundles_post_ra>
